<compile_context>
chip_gen: v7x
topology: tpu7x:2x2x1
jax: 0.10.0
libtpu: 0.0.40
codegen_flags: <defaults>
</compile_context>

<pallas_src>
import functools
import math

import jax
import jax.numpy as jnp
from jax.experimental import pallas as pl
from jax.experimental.pallas import tpu as pltpu

HIDDEN_DIM = 256
NUM_HERMITIAN_LAYERS = 6
_VMEM_LIMIT = 32 * 1024 * 1024  # safe on v5e/v6e/v7x; tile footprint is a few MB


def _round_up(x, m):
  return (x + m - 1) // m * m


# -----------------------------------------------------------------------------
# Fused layer kernels
# -----------------------------------------------------------------------------
def _layer0_fused_kernel(prop_ref, x_ref, wr_ref, wi_ref, br_ref, bi_ref,
                         or_ref, oi_ref, acc_r, acc_i):
  """out = A_hat @ (x @ (Wr + i Wi) + (br + i bi)); A_hat and x are real."""
  k = pl.program_id(1)

  @pl.when(k == 0)
  def _():
    acc_r[...] = jnp.zeros_like(acc_r)
    acc_i[...] = jnp.zeros_like(acc_i)

  x = x_ref[...]
  # h-tile for this k row-block of nodes (bias applied once per node row).
  hr = jnp.dot(x, wr_ref[...], preferred_element_type=jnp.float32) + br_ref[...]
  hi = jnp.dot(x, wi_ref[...], preferred_element_type=jnp.float32) + bi_ref[...]

  p = prop_ref[...]
  acc_r[...] += jnp.dot(p, hr.astype(p.dtype), preferred_element_type=jnp.float32)
  acc_i[...] += jnp.dot(p, hi.astype(p.dtype), preferred_element_type=jnp.float32)

  @pl.when(k == pl.num_programs(1) - 1)
  def _():
    or_ref[...] = acc_r[...].astype(or_ref.dtype)
    oi_ref[...] = acc_i[...].astype(oi_ref.dtype)


def _hermitian_fused_kernel(pr_ref, pi_ref, xr_ref, xi_ref, wr_ref, wi_ref,
                            br_ref, bi_ref, or_ref, oi_ref, acc_r, acc_i):
  """out = (Pr + i Pi) @ ((xr + i xi) @ (Wr + i Wi) + b), 3-mult complex prods."""
  k = pl.program_id(1)

  @pl.when(k == 0)
  def _():
    acc_r[...] = jnp.zeros_like(acc_r)
    acc_i[...] = jnp.zeros_like(acc_i)

  xr = xr_ref[...]
  xi = xi_ref[...]
  wr = wr_ref[...]
  wi = wi_ref[...]
  # Karatsuba/Gauss complex linear: 3 matmuls.
  t1 = jnp.dot(xr, wr, preferred_element_type=jnp.float32)
  t2 = jnp.dot(xi, wi, preferred_element_type=jnp.float32)
  t3 = jnp.dot(xr + xi, wr + wi, preferred_element_type=jnp.float32)
  hr = t1 - t2 + br_ref[...]
  hi = t3 - t1 - t2 + bi_ref[...]

  pr = pr_ref[...]
  pi = pi_ref[...]
  hrb = hr.astype(pr.dtype)
  hib = hi.astype(pr.dtype)
  # Karatsuba/Gauss complex propagation accumulate: 3 matmuls.
  u1 = jnp.dot(pr, hrb, preferred_element_type=jnp.float32)
  u2 = jnp.dot(pi, hib, preferred_element_type=jnp.float32)
  u3 = jnp.dot(pr + pi, hrb + hib, preferred_element_type=jnp.float32)
  acc_r[...] += u1 - u2
  acc_i[...] += u3 - u1 - u2

  @pl.when(k == pl.num_programs(1) - 1)
  def _():
    or_ref[...] = acc_r[...].astype(or_ref.dtype)
    oi_ref[...] = acc_i[...].astype(oi_ref.dtype)


# -----------------------------------------------------------------------------
# pallas_call wrappers
# -----------------------------------------------------------------------------
def _compiler_params():
  return pltpu.CompilerParams(
      dimension_semantics=("parallel", "arbitrary"),
      vmem_limit_bytes=_VMEM_LIMIT)


def fused_layer0(a_hat, x, wr, wi, br, bi, *, tm, tk):
  n = a_hat.shape[0]
  din = x.shape[1]
  h = wr.shape[1]
  out = jax.ShapeDtypeStruct((n, h), jnp.bfloat16)
  return pl.pallas_call(
      _layer0_fused_kernel,
      out_shape=(out, out),
      grid_spec=pltpu.PrefetchScalarGridSpec(
          num_scalar_prefetch=0,
          grid=(n // tm, n // tk),
          in_specs=[
              pl.BlockSpec((tm, tk), lambda i, k: (i, k)),     # A_hat tile
              pl.BlockSpec((tk, din), lambda i, k: (k, 0)),    # x row-block
              pl.BlockSpec((din, h), lambda i, k: (0, 0)),     # W_re (resident)
              pl.BlockSpec((din, h), lambda i, k: (0, 0)),     # W_im
              pl.BlockSpec((1, h), lambda i, k: (0, 0)),       # b_re
              pl.BlockSpec((1, h), lambda i, k: (0, 0)),       # b_im
          ],
          out_specs=(
              pl.BlockSpec((tm, h), lambda i, k: (i, 0)),
              pl.BlockSpec((tm, h), lambda i, k: (i, 0)),
          ),
          scratch_shapes=[pltpu.VMEM((tm, h), jnp.float32),
                          pltpu.VMEM((tm, h), jnp.float32)],
      ),
      compiler_params=_compiler_params(),
  )(a_hat, x, wr, wi, br, bi)


def fused_hermitian(p_re, p_im, x_re, x_im, wr, wi, br, bi, *, tm, tk):
  n = p_re.shape[0]
  din = x_re.shape[1]
  h = wr.shape[1]
  out = jax.ShapeDtypeStruct((n, h), jnp.bfloat16)
  return pl.pallas_call(
      _hermitian_fused_kernel,
      out_shape=(out, out),
      grid_spec=pltpu.PrefetchScalarGridSpec(
          num_scalar_prefetch=0,
          grid=(n // tm, n // tk),
          in_specs=[
              pl.BlockSpec((tm, tk), lambda i, k: (i, k)),     # Prop_re tile
              pl.BlockSpec((tm, tk), lambda i, k: (i, k)),     # Prop_im tile
              pl.BlockSpec((tk, din), lambda i, k: (k, 0)),    # x_re row-block
              pl.BlockSpec((tk, din), lambda i, k: (k, 0)),    # x_im row-block
              pl.BlockSpec((din, h), lambda i, k: (0, 0)),     # W_re (resident)
              pl.BlockSpec((din, h), lambda i, k: (0, 0)),     # W_im
              pl.BlockSpec((1, h), lambda i, k: (0, 0)),       # b_re
              pl.BlockSpec((1, h), lambda i, k: (0, 0)),       # b_im
          ],
          out_specs=(
              pl.BlockSpec((tm, h), lambda i, k: (i, 0)),
              pl.BlockSpec((tm, h), lambda i, k: (i, 0)),
          ),
          scratch_shapes=[pltpu.VMEM((tm, h), jnp.float32),
                          pltpu.VMEM((tm, h), jnp.float32)],
      ),
      compiler_params=_compiler_params(),
  )(p_re, p_im, x_re, x_im, wr, wi, br, bi)


# -----------------------------------------------------------------------------
# Model glue (preprocessing + tiny head in plain JAX)
# -----------------------------------------------------------------------------
def init_params(key, input_dim, output_dim):
  params = {"conv": []}
  dims = [(input_dim, HIDDEN_DIM)] + [(HIDDEN_DIM, HIDDEN_DIM)] * NUM_HERMITIAN_LAYERS
  for (din, dout) in dims:
    key, k1, k2, k3, k4 = jax.random.split(key, 5)
    scale = 1.0 / jnp.sqrt(jnp.float32(din))
    params["conv"].append({
        "w_re": jax.random.normal(k1, (din, dout), jnp.float32) * scale,
        "w_im": jax.random.normal(k2, (din, dout), jnp.float32) * scale,
        "b_re": jax.random.normal(k3, (1, dout), jnp.float32) * 0.01,
        "b_im": jax.random.normal(k4, (1, dout), jnp.float32) * 0.01,
    })
  key, k1, k2, k3, k4 = jax.random.split(key, 5)
  params["hidden_w"] = jax.random.normal(k1, (HIDDEN_DIM, HIDDEN_DIM), jnp.float32) / 16.0
  params["hidden_b"] = jax.random.normal(k2, (1, HIDDEN_DIM), jnp.float32) * 0.01
  params["out_w"] = jax.random.normal(k3, (HIDDEN_DIM, output_dim), jnp.float32) / 16.0
  params["out_b"] = jax.random.normal(k4, (1, output_dim), jnp.float32) * 0.01
  return params


def build_adjacencies(edge_index, num_nodes, q=0.25):
  """Symmetric-normalized real adjacency and Hermitian (magnetic) adjacency."""
  src, dst = edge_index
  a_dir = jnp.zeros((num_nodes, num_nodes), jnp.float32).at[src, dst].set(1.0)
  a_sym = ((a_dir + a_dir.T) > 0).astype(jnp.float32)
  a_hat_un = a_sym + jnp.eye(num_nodes, dtype=jnp.float32)
  deg = jnp.sum(a_hat_un, axis=1)
  d_inv_sqrt = 1.0 / jnp.sqrt(deg)
  a_hat = a_hat_un * d_inv_sqrt[:, None] * d_inv_sqrt[None, :]
  theta = 2.0 * jnp.pi * q * (a_dir - a_dir.T)   # antisymmetric phase
  h_re = a_hat * jnp.cos(theta)
  h_im = a_hat * jnp.sin(theta)                  # Hermitian: H^H == H
  return a_hat, h_re, h_im


def orthogonal_gcn_forward(params, x, a_hat, h_re, h_im, pool_mat,
                           *, tm=128, tk=128):
  """Forward pass.  x: [N, input_dim] real node features."""
  n = x.shape[0]
  blk = (tm * tk) // math.gcd(tm, tk)
  n_pad = _round_up(n, blk)
  pn = n_pad - n
  bf16 = jnp.bfloat16

  # Zero padding is matmul-safe: padded Prop rows/cols are zero, so padded
  # nodes never contribute to (or receive) real-node features.
  a_hat_p = jnp.pad(a_hat, ((0, pn), (0, pn))).astype(bf16)
  h_re_p = jnp.pad(h_re, ((0, pn), (0, pn))).astype(bf16)
  h_im_p = jnp.pad(h_im, ((0, pn), (0, pn))).astype(bf16)
  x_p = jnp.pad(x.astype(jnp.float32), ((0, pn), (0, 0))).astype(bf16)

  lp = params["conv"][0]
  xr, xi = fused_layer0(a_hat_p, x_p,
                        lp["w_re"].astype(bf16), lp["w_im"].astype(bf16),
                        lp["b_re"], lp["b_im"], tm=tm, tk=tk)
  for lp in params["conv"][1:]:
    xr, xi = fused_hermitian(h_re_p, h_im_p, xr, xi,
                             lp["w_re"].astype(bf16), lp["w_im"].astype(bf16),
                             lp["b_re"], lp["b_im"], tm=tm, tk=tk)

  # Tiny head ([num_graphs, 256]) stays in plain jnp/XLA per perf review:
  # global_mean_pool(x.real), ReLU(hidden), output, squeeze.
  x_real = xr[:n].astype(jnp.float32)
  pooled = pool_mat @ x_real
  h = jnp.maximum(pooled @ params["hidden_w"] + params["hidden_b"], 0.0)
  out = h @ params["out_w"] + params["out_b"]
  return jnp.squeeze(out)


def reference_forward(params, x, a_hat, h_re, h_im, pool_mat):
  """Pure-jnp f32 reference (complex carried as re/im pairs)."""
  xr = x.astype(jnp.float32)
  xi = jnp.zeros_like(xr)
  for li, lp in enumerate(params["conv"]):
    hr = xr @ lp["w_re"] - xi @ lp["w_im"] + lp["b_re"]
    hi = xr @ lp["w_im"] + xi @ lp["w_re"] + lp["b_im"]
    if li == 0:
      xr, xi = a_hat @ hr, a_hat @ hi
    else:
      xr, xi = h_re @ hr - h_im @ hi, h_re @ hi + h_im @ hr
  pooled = pool_mat @ xr
  h = jnp.maximum(pooled @ params["hidden_w"] + params["hidden_b"], 0.0)
  out = h @ params["out_w"] + params["out_b"]
  return jnp.squeeze(out)


if __name__ == "__main__":
  key = jax.random.PRNGKey(0)

  # Small synthetic graph batch: 2 graphs x 100 nodes = 200 nodes
  # (pads to 256 -> a 2x2 grid, exercising the tiled reduction path).
  num_nodes = 200
  num_graphs = 2
  input_dim = 8
  output_dim = 3
  num_edges = 600

  key, kx, ke1, ke2, kp = jax.random.split(key, 5)
  x = jax.random.normal(kx, (num_nodes, input_dim), jnp.float32)
  src = jax.random.randint(ke1, (num_edges,), 0, num_nodes)
  dst = jax.random.randint(ke2, (num_edges,), 0, num_nodes)
  edge_index = (src, dst)

  batch = jnp.repeat(jnp.arange(num_graphs), num_nodes // num_graphs)
  counts = jnp.bincount(batch, length=num_graphs).astype(jnp.float32)
  pool_mat = (jnp.equal(jnp.arange(num_graphs)[:, None], batch[None, :])
              .astype(jnp.float32) / counts[:, None])           # [G, N]

  a_hat, h_re, h_im = build_adjacencies(edge_index, num_nodes)
  params = init_params(kp, input_dim, output_dim)

  fwd = jax.jit(functools.partial(orthogonal_gcn_forward, tm=128, tk=128))
  out = fwd(params, x, a_hat, h_re, h_im, pool_mat)
  jax.block_until_ready(out)

  ref = reference_forward(params, x, a_hat, h_re, h_im, pool_mat)
  rel_err = float(jnp.max(jnp.abs(out - ref)) / (jnp.max(jnp.abs(ref)) + 1e-6))

  assert out.shape == (num_graphs, output_dim)
  assert jnp.all(jnp.isfinite(out))
  assert rel_err < 0.25, f"bf16 kernel drifted too far from f32 ref: {rel_err}"
  print("KERNEL_OK")
</pallas_src>

<mosaic_0001>
module attributes {stable_mosaic.version = 11 : i64} {
  func.func @_layer0_fused_kernel(%arg0: i32, %arg1: i32, %arg2: memref<128x128xbf16, #tpu.memory_space<vmem>>, %arg3: memref<128x8xbf16, #tpu.memory_space<vmem>>, %arg4: memref<8x256xbf16, #tpu.memory_space<vmem>>, %arg5: memref<8x256xbf16, #tpu.memory_space<vmem>>, %arg6: memref<1x256xf32, #tpu.memory_space<vmem>>, %arg7: memref<1x256xf32, #tpu.memory_space<vmem>>, %arg8: memref<128x256xbf16, #tpu.memory_space<vmem>>, %arg9: memref<128x256xbf16, #tpu.memory_space<vmem>>, %arg10: memref<128x256xf32, #tpu.memory_space<vmem>>, %arg11: memref<128x256xf32, #tpu.memory_space<vmem>>) attributes {dimension_semantics = [#tpu.dimension_semantics<parallel>, #tpu.dimension_semantics<arbitrary>], iteration_bounds = array<i64: 2, 2>, scalar_prefetch = 0 : i64, scratch_operands = 2 : i64, tpu.core_type = #tpu.core_type<tc>, window_params = [{transform_indices = @transform_0, window_bounds = array<i64: 128, 128>}, {transform_indices = @transform_1, window_bounds = array<i64: 128, 8>}, {pipeline_mode = #tpu.pipeline_mode<synchronous>, transform_indices = @transform_2, window_bounds = array<i64: 8, 256>}, {pipeline_mode = #tpu.pipeline_mode<synchronous>, transform_indices = @transform_3, window_bounds = array<i64: 8, 256>}, {pipeline_mode = #tpu.pipeline_mode<synchronous>, transform_indices = @transform_4, window_bounds = array<i64: 1, 256>}, {pipeline_mode = #tpu.pipeline_mode<synchronous>, transform_indices = @transform_5, window_bounds = array<i64: 1, 256>}, {transform_indices = @transform_6, window_bounds = array<i64: 128, 256>}, {transform_indices = @transform_7, window_bounds = array<i64: 128, 256>}]} {
    %c0_i32 = arith.constant 0 : i32
    %0 = arith.cmpi eq, %arg1, %c0_i32 : i32
    %1 = arith.extui %0 : i1 to i32
    %c0_i32_0 = arith.constant 0 : i32
    %2 = arith.cmpi ne, %1, %c0_i32_0 : i32
    scf.if %2 {
      %cst_24 = arith.constant 0.000000e+00 : f32
      %28 = vector.broadcast %cst_24 : f32 to vector<128x256xf32>
      %c0_25 = arith.constant 0 : index
      %c0_26 = arith.constant 0 : index
      %29 = vector.load %arg10[%c0_25, %c0_26] : memref<128x256xf32, #tpu.memory_space<vmem>>, vector<128x256xf32>
      tpu.vector_store %arg10[%c0_25, %c0_26], %28 {strides = array<i32>} : memref<128x256xf32, #tpu.memory_space<vmem>>, vector<128x256xf32>,
      %cst_27 = arith.constant 0.000000e+00 : f32
      %30 = vector.broadcast %cst_27 : f32 to vector<128x256xf32>
      %c0_28 = arith.constant 0 : index
      %c0_29 = arith.constant 0 : index
      %31 = vector.load %arg11[%c0_28, %c0_29] : memref<128x256xf32, #tpu.memory_space<vmem>>, vector<128x256xf32>
      tpu.vector_store %arg11[%c0_28, %c0_29], %30 {strides = array<i32>} : memref<128x256xf32, #tpu.memory_space<vmem>>, vector<128x256xf32>,
    } else {
    }
    %c0 = arith.constant 0 : index
    %c0_1 = arith.constant 0 : index
    %3 = vector.load %arg3[%c0, %c0_1] : memref<128x8xbf16, #tpu.memory_space<vmem>>, vector<128x8xbf16>
    %c0_2 = arith.constant 0 : index
    %c0_3 = arith.constant 0 : index
    %4 = vector.load %arg4[%c0_2, %c0_3] : memref<8x256xbf16, #tpu.memory_space<vmem>>, vector<8x256xbf16>
    %cst = arith.constant dense<0.000000e+00> : vector<128x256xf32>
    %5 = tpu.matmul %3, %4, %cst {dimension_numbers = #tpu.dot_dimension_numbers<[1], [0], [0], [1], [0, 0, 1, 1], [], []>} : vector<128x8xbf16>, vector<8x256xbf16>, vector<128x256xf32> -> vector<128x256xf32>
    %c0_4 = arith.constant 0 : index
    %c0_5 = arith.constant 0 : index
    %6 = vector.load %arg6[%c0_4, %c0_5] : memref<1x256xf32, #tpu.memory_space<vmem>>, vector<1x256xf32>
    %7 = vector.broadcast %6 : vector<1x256xf32> to vector<128x256xf32>
    %8 = arith.addf %5, %7 : vector<128x256xf32>
    %c0_6 = arith.constant 0 : index
    %c0_7 = arith.constant 0 : index
    %9 = vector.load %arg5[%c0_6, %c0_7] : memref<8x256xbf16, #tpu.memory_space<vmem>>, vector<8x256xbf16>
    %cst_8 = arith.constant dense<0.000000e+00> : vector<128x256xf32>
    %10 = tpu.matmul %3, %9, %cst_8 {dimension_numbers = #tpu.dot_dimension_numbers<[1], [0], [0], [1], [0, 0, 1, 1], [], []>} : vector<128x8xbf16>, vector<8x256xbf16>, vector<128x256xf32> -> vector<128x256xf32>
    %c0_9 = arith.constant 0 : index
    %c0_10 = arith.constant 0 : index
    %11 = vector.load %arg7[%c0_9, %c0_10] : memref<1x256xf32, #tpu.memory_space<vmem>>, vector<1x256xf32>
    %12 = vector.broadcast %11 : vector<1x256xf32> to vector<128x256xf32>
    %13 = arith.addf %10, %12 : vector<128x256xf32>
    %c0_11 = arith.constant 0 : index
    %c0_12 = arith.constant 0 : index
    %14 = vector.load %arg2[%c0_11, %c0_12] : memref<128x128xbf16, #tpu.memory_space<vmem>>, vector<128x128xbf16>
    %c0_13 = arith.constant 0 : index
    %c0_14 = arith.constant 0 : index
    %15 = vector.load %arg10[%c0_13, %c0_14] : memref<128x256xf32, #tpu.memory_space<vmem>>, vector<128x256xf32>
    %16 = arith.truncf %8 : vector<128x256xf32> to vector<128x256xbf16>
    %cst_15 = arith.constant dense<0.000000e+00> : vector<128x256xf32>
    %17 = tpu.matmul %14, %16, %cst_15 {dimension_numbers = #tpu.dot_dimension_numbers<[1], [0], [0], [1], [0, 0, 1, 1], [], []>} : vector<128x128xbf16>, vector<128x256xbf16>, vector<128x256xf32> -> vector<128x256xf32>
    %18 = arith.addf %15, %17 : vector<128x256xf32>
    %c0_16 = arith.constant 0 : index
    %c0_17 = arith.constant 0 : index
    %19 = vector.load %arg10[%c0_16, %c0_17] : memref<128x256xf32, #tpu.memory_space<vmem>>, vector<128x256xf32>
    tpu.vector_store %arg10[%c0_16, %c0_17], %18 {strides = array<i32>} : memref<128x256xf32, #tpu.memory_space<vmem>>, vector<128x256xf32>,
    %c0_18 = arith.constant 0 : index
    %c0_19 = arith.constant 0 : index
    %20 = vector.load %arg11[%c0_18, %c0_19] : memref<128x256xf32, #tpu.memory_space<vmem>>, vector<128x256xf32>
    %21 = arith.truncf %13 : vector<128x256xf32> to vector<128x256xbf16>
    %cst_20 = arith.constant dense<0.000000e+00> : vector<128x256xf32>
    %22 = tpu.matmul %14, %21, %cst_20 {dimension_numbers = #tpu.dot_dimension_numbers<[1], [0], [0], [1], [0, 0, 1, 1], [], []>} : vector<128x128xbf16>, vector<128x256xbf16>, vector<128x256xf32> -> vector<128x256xf32>
    %23 = arith.addf %20, %22 : vector<128x256xf32>
    %c0_21 = arith.constant 0 : index
    %c0_22 = arith.constant 0 : index
    %24 = vector.load %arg11[%c0_21, %c0_22] : memref<128x256xf32, #tpu.memory_space<vmem>>, vector<128x256xf32>
    tpu.vector_store %arg11[%c0_21, %c0_22], %23 {strides = array<i32>} : memref<128x256xf32, #tpu.memory_space<vmem>>, vector<128x256xf32>,
    %c1_i32 = arith.constant 1 : i32
    %25 = arith.cmpi eq, %arg1, %c1_i32 : i32
    %26 = arith.extui %25 : i1 to i32
    %c0_i32_23 = arith.constant 0 : i32
    %27 = arith.cmpi ne, %26, %c0_i32_23 : i32
    scf.if %27 {
      %c0_24 = arith.constant 0 : index
      %c0_25 = arith.constant 0 : index
      %28 = vector.load %arg10[%c0_24, %c0_25] : memref<128x256xf32, #tpu.memory_space<vmem>>, vector<128x256xf32>
      %29 = arith.truncf %28 : vector<128x256xf32> to vector<128x256xbf16>
      %c0_26 = arith.constant 0 : index
      %c0_27 = arith.constant 0 : index
      %30 = vector.load %arg8[%c0_26, %c0_27] : memref<128x256xbf16, #tpu.memory_space<vmem>>, vector<128x256xbf16>
      tpu.vector_store %arg8[%c0_26, %c0_27], %29 {strides = array<i32>} : memref<128x256xbf16, #tpu.memory_space<vmem>>, vector<128x256xbf16>,
      %c0_28 = arith.constant 0 : index
      %c0_29 = arith.constant 0 : index
      %31 = vector.load %arg11[%c0_28, %c0_29] : memref<128x256xf32, #tpu.memory_space<vmem>>, vector<128x256xf32>
      %32 = arith.truncf %31 : vector<128x256xf32> to vector<128x256xbf16>
      %c0_30 = arith.constant 0 : index
      %c0_31 = arith.constant 0 : index
      %33 = vector.load %arg9[%c0_30, %c0_31] : memref<128x256xbf16, #tpu.memory_space<vmem>>, vector<128x256xbf16>
      tpu.vector_store %arg9[%c0_30, %c0_31], %32 {strides = array<i32>} : memref<128x256xbf16, #tpu.memory_space<vmem>>, vector<128x256xbf16>,
    } else {
    }
    return
  }
  func.func @transform_0(%arg0: i32, %arg1: i32) -> (i32, i32) {
    %c0_i32 = arith.constant 0 : i32
    return %arg0, %arg1 : i32, i32
  }
  func.func @transform_1(%arg0: i32, %arg1: i32) -> (i32, i32) {
    %c0_i32 = arith.constant 0 : i32
    %c0_i32_0 = arith.constant 0 : i32
    return %arg1, %c0_i32 : i32, i32
  }
  func.func @transform_2(%arg0: i32, %arg1: i32) -> (i32, i32) {
    %c0_i32 = arith.constant 0 : i32
    %c0_i32_0 = arith.constant 0 : i32
    %c0_i32_1 = arith.constant 0 : i32
    return %c0_i32, %c0_i32_0 : i32, i32
  }
  func.func @transform_3(%arg0: i32, %arg1: i32) -> (i32, i32) {
    %c0_i32 = arith.constant 0 : i32
    %c0_i32_0 = arith.constant 0 : i32
    %c0_i32_1 = arith.constant 0 : i32
    return %c0_i32, %c0_i32_0 : i32, i32
  }
  func.func @transform_4(%arg0: i32, %arg1: i32) -> (i32, i32) {
    %c0_i32 = arith.constant 0 : i32
    %c0_i32_0 = arith.constant 0 : i32
    %c0_i32_1 = arith.constant 0 : i32
    return %c0_i32, %c0_i32_0 : i32, i32
  }
  func.func @transform_5(%arg0: i32, %arg1: i32) -> (i32, i32) {
    %c0_i32 = arith.constant 0 : i32
    %c0_i32_0 = arith.constant 0 : i32
    %c0_i32_1 = arith.constant 0 : i32
    return %c0_i32, %c0_i32_0 : i32, i32
  }
  func.func @transform_6(%arg0: i32, %arg1: i32) -> (i32, i32) {
    %c0_i32 = arith.constant 0 : i32
    %c0_i32_0 = arith.constant 0 : i32
    return %arg0, %c0_i32 : i32, i32
  }
  func.func @transform_7(%arg0: i32, %arg1: i32) -> (i32, i32) {
    %c0_i32 = arith.constant 0 : i32
    %c0_i32_0 = arith.constant 0 : i32
    return %arg0, %c0_i32 : i32, i32
  }
}

module attributes {stable_mosaic.version = 11 : i64} {
  func.func @_hermitian_fused_kernel(%arg0: i32, %arg1: i32, %arg2: memref<128x128xbf16, #tpu.memory_space<vmem>>, %arg3: memref<128x128xbf16, #tpu.memory_space<vmem>>, %arg4: memref<128x256xbf16, #tpu.memory_space<vmem>>, %arg5: memref<128x256xbf16, #tpu.memory_space<vmem>>, %arg6: memref<256x256xbf16, #tpu.memory_space<vmem>>, %arg7: memref<256x256xbf16, #tpu.memory_space<vmem>>, %arg8: memref<1x256xf32, #tpu.memory_space<vmem>>, %arg9: memref<1x256xf32, #tpu.memory_space<vmem>>, %arg10: memref<128x256xbf16, #tpu.memory_space<vmem>>, %arg11: memref<128x256xbf16, #tpu.memory_space<vmem>>, %arg12: memref<128x256xf32, #tpu.memory_space<vmem>>, %arg13: memref<128x256xf32, #tpu.memory_space<vmem>>) attributes {dimension_semantics = [#tpu.dimension_semantics<parallel>, #tpu.dimension_semantics<arbitrary>], iteration_bounds = array<i64: 2, 2>, scalar_prefetch = 0 : i64, scratch_operands = 2 : i64, tpu.core_type = #tpu.core_type<tc>, window_params = [{transform_indices = @transform_0, window_bounds = array<i64: 128, 128>}, {transform_indices = @transform_1, window_bounds = array<i64: 128, 128>}, {transform_indices = @transform_2, window_bounds = array<i64: 128, 256>}, {transform_indices = @transform_3, window_bounds = array<i64: 128, 256>}, {pipeline_mode = #tpu.pipeline_mode<synchronous>, transform_indices = @transform_4, window_bounds = array<i64: 256, 256>}, {pipeline_mode = #tpu.pipeline_mode<synchronous>, transform_indices = @transform_5, window_bounds = array<i64: 256, 256>}, {pipeline_mode = #tpu.pipeline_mode<synchronous>, transform_indices = @transform_6, window_bounds = array<i64: 1, 256>}, {pipeline_mode = #tpu.pipeline_mode<synchronous>, transform_indices = @transform_7, window_bounds = array<i64: 1, 256>}, {transform_indices = @transform_8, window_bounds = array<i64: 128, 256>}, {transform_indices = @transform_9, window_bounds = array<i64: 128, 256>}]} {
    %c0_i32 = arith.constant 0 : i32
    %0 = arith.cmpi eq, %arg1, %c0_i32 : i32
    %1 = arith.extui %0 : i1 to i32
    %c0_i32_0 = arith.constant 0 : i32
    %2 = arith.cmpi ne, %1, %c0_i32_0 : i32
    scf.if %2 {
      %cst_30 = arith.constant 0.000000e+00 : f32
      %42 = vector.broadcast %cst_30 : f32 to vector<128x256xf32>
      %c0_31 = arith.constant 0 : index
      %c0_32 = arith.constant 0 : index
      %43 = vector.load %arg12[%c0_31, %c0_32] : memref<128x256xf32, #tpu.memory_space<vmem>>, vector<128x256xf32>
      tpu.vector_store %arg12[%c0_31, %c0_32], %42 {strides = array<i32>} : memref<128x256xf32, #tpu.memory_space<vmem>>, vector<128x256xf32>,
      %cst_33 = arith.constant 0.000000e+00 : f32
      %44 = vector.broadcast %cst_33 : f32 to vector<128x256xf32>
      %c0_34 = arith.constant 0 : index
      %c0_35 = arith.constant 0 : index
      %45 = vector.load %arg13[%c0_34, %c0_35] : memref<128x256xf32, #tpu.memory_space<vmem>>, vector<128x256xf32>
      tpu.vector_store %arg13[%c0_34, %c0_35], %44 {strides = array<i32>} : memref<128x256xf32, #tpu.memory_space<vmem>>, vector<128x256xf32>,
    } else {
    }
    %c0 = arith.constant 0 : index
    %c0_1 = arith.constant 0 : index
    %3 = vector.load %arg4[%c0, %c0_1] : memref<128x256xbf16, #tpu.memory_space<vmem>>, vector<128x256xbf16>
    %c0_2 = arith.constant 0 : index
    %c0_3 = arith.constant 0 : index
    %4 = vector.load %arg5[%c0_2, %c0_3] : memref<128x256xbf16, #tpu.memory_space<vmem>>, vector<128x256xbf16>
    %c0_4 = arith.constant 0 : index
    %c0_5 = arith.constant 0 : index
    %5 = vector.load %arg6[%c0_4, %c0_5] : memref<256x256xbf16, #tpu.memory_space<vmem>>, vector<256x256xbf16>
    %c0_6 = arith.constant 0 : index
    %c0_7 = arith.constant 0 : index
    %6 = vector.load %arg7[%c0_6, %c0_7] : memref<256x256xbf16, #tpu.memory_space<vmem>>, vector<256x256xbf16>
    %cst = arith.constant dense<0.000000e+00> : vector<128x256xf32>
    %7 = tpu.matmul %3, %5, %cst {dimension_numbers = #tpu.dot_dimension_numbers<[1], [0], [0], [1], [0, 0, 1, 1], [], []>} : vector<128x256xbf16>, vector<256x256xbf16>, vector<128x256xf32> -> vector<128x256xf32>
    %cst_8 = arith.constant dense<0.000000e+00> : vector<128x256xf32>
    %8 = tpu.matmul %4, %6, %cst_8 {dimension_numbers = #tpu.dot_dimension_numbers<[1], [0], [0], [1], [0, 0, 1, 1], [], []>} : vector<128x256xbf16>, vector<256x256xbf16>, vector<128x256xf32> -> vector<128x256xf32>
    %9 = arith.addf %3, %4 : vector<128x256xbf16>
    %10 = arith.addf %5, %6 : vector<256x256xbf16>
    %cst_9 = arith.constant dense<0.000000e+00> : vector<128x256xf32>
    %11 = tpu.matmul %9, %10, %cst_9 {dimension_numbers = #tpu.dot_dimension_numbers<[1], [0], [0], [1], [0, 0, 1, 1], [], []>} : vector<128x256xbf16>, vector<256x256xbf16>, vector<128x256xf32> -> vector<128x256xf32>
    %12 = arith.subf %7, %8 : vector<128x256xf32>
    %c0_10 = arith.constant 0 : index
    %c0_11 = arith.constant 0 : index
    %13 = vector.load %arg8[%c0_10, %c0_11] : memref<1x256xf32, #tpu.memory_space<vmem>>, vector<1x256xf32>
    %14 = vector.broadcast %13 : vector<1x256xf32> to vector<128x256xf32>
    %15 = arith.addf %12, %14 : vector<128x256xf32>
    %16 = arith.subf %11, %7 : vector<128x256xf32>
    %17 = arith.subf %16, %8 : vector<128x256xf32>
    %c0_12 = arith.constant 0 : index
    %c0_13 = arith.constant 0 : index
    %18 = vector.load %arg9[%c0_12, %c0_13] : memref<1x256xf32, #tpu.memory_space<vmem>>, vector<1x256xf32>
    %19 = vector.broadcast %18 : vector<1x256xf32> to vector<128x256xf32>
    %20 = arith.addf %17, %19 : vector<128x256xf32>
    %c0_14 = arith.constant 0 : index
    %c0_15 = arith.constant 0 : index
    %21 = vector.load %arg2[%c0_14, %c0_15] : memref<128x128xbf16, #tpu.memory_space<vmem>>, vector<128x128xbf16>
    %c0_16 = arith.constant 0 : index
    %c0_17 = arith.constant 0 : index
    %22 = vector.load %arg3[%c0_16, %c0_17] : memref<128x128xbf16, #tpu.memory_space<vmem>>, vector<128x128xbf16>
    %23 = arith.truncf %15 : vector<128x256xf32> to vector<128x256xbf16>
    %24 = arith.truncf %20 : vector<128x256xf32> to vector<128x256xbf16>
    %cst_18 = arith.constant dense<0.000000e+00> : vector<128x256xf32>
    %25 = tpu.matmul %21, %23, %cst_18 {dimension_numbers = #tpu.dot_dimension_numbers<[1], [0], [0], [1], [0, 0, 1, 1], [], []>} : vector<128x128xbf16>, vector<128x256xbf16>, vector<128x256xf32> -> vector<128x256xf32>
    %cst_19 = arith.constant dense<0.000000e+00> : vector<128x256xf32>
    %26 = tpu.matmul %22, %24, %cst_19 {dimension_numbers = #tpu.dot_dimension_numbers<[1], [0], [0], [1], [0, 0, 1, 1], [], []>} : vector<128x128xbf16>, vector<128x256xbf16>, vector<128x256xf32> -> vector<128x256xf32>
    %27 = arith.addf %21, %22 : vector<128x128xbf16>
    %28 = arith.addf %23, %24 : vector<128x256xbf16>
    %cst_20 = arith.constant dense<0.000000e+00> : vector<128x256xf32>
    %29 = tpu.matmul %27, %28, %cst_20 {dimension_numbers = #tpu.dot_dimension_numbers<[1], [0], [0], [1], [0, 0, 1, 1], [], []>} : vector<128x128xbf16>, vector<128x256xbf16>, vector<128x256xf32> -> vector<128x256xf32>
    %c0_21 = arith.constant 0 : index
    %c0_22 = arith.constant 0 : index
    %30 = vector.load %arg12[%c0_21, %c0_22] : memref<128x256xf32, #tpu.memory_space<vmem>>, vector<128x256xf32>
    %31 = arith.subf %25, %26 : vector<128x256xf32>
    %32 = arith.addf %30, %31 : vector<128x256xf32>
    %c0_23 = arith.constant 0 : index
    %c0_24 = arith.constant 0 : index
    %33 = vector.load %arg12[%c0_23, %c0_24] : memref<128x256xf32, #tpu.memory_space<vmem>>, vector<128x256xf32>
    tpu.vector_store %arg12[%c0_23, %c0_24], %32 {strides = array<i32>} : memref<128x256xf32, #tpu.memory_space<vmem>>, vector<128x256xf32>,
    %c0_25 = arith.constant 0 : index
    %c0_26 = arith.constant 0 : index
    %34 = vector.load %arg13[%c0_25, %c0_26] : memref<128x256xf32, #tpu.memory_space<vmem>>, vector<128x256xf32>
    %35 = arith.subf %29, %25 : vector<128x256xf32>
    %36 = arith.subf %35, %26 : vector<128x256xf32>
    %37 = arith.addf %34, %36 : vector<128x256xf32>
    %c0_27 = arith.constant 0 : index
    %c0_28 = arith.constant 0 : index
    %38 = vector.load %arg13[%c0_27, %c0_28] : memref<128x256xf32, #tpu.memory_space<vmem>>, vector<128x256xf32>
    tpu.vector_store %arg13[%c0_27, %c0_28], %37 {strides = array<i32>} : memref<128x256xf32, #tpu.memory_space<vmem>>, vector<128x256xf32>,
    %c1_i32 = arith.constant 1 : i32
    %39 = arith.cmpi eq, %arg1, %c1_i32 : i32
    %40 = arith.extui %39 : i1 to i32
    %c0_i32_29 = arith.constant 0 : i32
    %41 = arith.cmpi ne, %40, %c0_i32_29 : i32
    scf.if %41 {
      %c0_30 = arith.constant 0 : index
      %c0_31 = arith.constant 0 : index
      %42 = vector.load %arg12[%c0_30, %c0_31] : memref<128x256xf32, #tpu.memory_space<vmem>>, vector<128x256xf32>
      %43 = arith.truncf %42 : vector<128x256xf32> to vector<128x256xbf16>
      %c0_32 = arith.constant 0 : index
      %c0_33 = arith.constant 0 : index
      %44 = vector.load %arg10[%c0_32, %c0_33] : memref<128x256xbf16, #tpu.memory_space<vmem>>, vector<128x256xbf16>
      tpu.vector_store %arg10[%c0_32, %c0_33], %43 {strides = array<i32>} : memref<128x256xbf16, #tpu.memory_space<vmem>>, vector<128x256xbf16>,
      %c0_34 = arith.constant 0 : index
      %c0_35 = arith.constant 0 : index
      %45 = vector.load %arg13[%c0_34, %c0_35] : memref<128x256xf32, #tpu.memory_space<vmem>>, vector<128x256xf32>
      %46 = arith.truncf %45 : vector<128x256xf32> to vector<128x256xbf16>
      %c0_36 = arith.constant 0 : index
      %c0_37 = arith.constant 0 : index
      %47 = vector.load %arg11[%c0_36, %c0_37] : memref<128x256xbf16, #tpu.memory_space<vmem>>, vector<128x256xbf16>
      tpu.vector_store %arg11[%c0_36, %c0_37], %46 {strides = array<i32>} : memref<128x256xbf16, #tpu.memory_space<vmem>>, vector<128x256xbf16>,
    } else {
    }
    return
  }
  func.func @transform_0(%arg0: i32, %arg1: i32) -> (i32, i32) {
    %c0_i32 = arith.constant 0 : i32
    return %arg0, %arg1 : i32, i32
  }
  func.func @transform_1(%arg0: i32, %arg1: i32) -> (i32, i32) {
    %c0_i32 = arith.constant 0 : i32
    return %arg0, %arg1 : i32, i32
  }
  func.func @transform_2(%arg0: i32, %arg1: i32) -> (i32, i32) {
    %c0_i32 = arith.constant 0 : i32
    %c0_i32_0 = arith.constant 0 : i32
    return %arg1, %c0_i32 : i32, i32
  }
  func.func @transform_3(%arg0: i32, %arg1: i32) -> (i32, i32) {
    %c0_i32 = arith.constant 0 : i32
    %c0_i32_0 = arith.constant 0 : i32
    return %arg1, %c0_i32 : i32, i32
  }
  func.func @transform_4(%arg0: i32, %arg1: i32) -> (i32, i32) {
    %c0_i32 = arith.constant 0 : i32
    %c0_i32_0 = arith.constant 0 : i32
    %c0_i32_1 = arith.constant 0 : i32
    return %c0_i32, %c0_i32_0 : i32, i32
  }
  func.func @transform_5(%arg0: i32, %arg1: i32) -> (i32, i32) {
    %c0_i32 = arith.constant 0 : i32
    %c0_i32_0 = arith.constant 0 : i32
    %c0_i32_1 = arith.constant 0 : i32
    return %c0_i32, %c0_i32_0 : i32, i32
  }
  func.func @transform_6(%arg0: i32, %arg1: i32) -> (i32, i32) {
    %c0_i32 = arith.constant 0 : i32
    %c0_i32_0 = arith.constant 0 : i32
    %c0_i32_1 = arith.constant 0 : i32
    return %c0_i32, %c0_i32_0 : i32, i32
  }
  func.func @transform_7(%arg0: i32, %arg1: i32) -> (i32, i32) {
    %c0_i32 = arith.constant 0 : i32
    %c0_i32_0 = arith.constant 0 : i32
    %c0_i32_1 = arith.constant 0 : i32
    return %c0_i32, %c0_i32_0 : i32, i32
  }
  func.func @transform_8(%arg0: i32, %arg1: i32) -> (i32, i32) {
    %c0_i32 = arith.constant 0 : i32
    %c0_i32_0 = arith.constant 0 : i32
    return %arg0, %c0_i32 : i32, i32
  }
  func.func @transform_9(%arg0: i32, %arg1: i32) -> (i32, i32) {
    %c0_i32 = arith.constant 0 : i32
    %c0_i32_0 = arith.constant 0 : i32
    return %arg0, %c0_i32 : i32, i32
  }
}

module attributes {stable_mosaic.version = 11 : i64} {
  func.func @_hermitian_fused_kernel(%arg0: i32, %arg1: i32, %arg2: memref<128x128xbf16, #tpu.memory_space<vmem>>, %arg3: memref<128x128xbf16, #tpu.memory_space<vmem>>, %arg4: memref<128x256xbf16, #tpu.memory_space<vmem>>, %arg5: memref<128x256xbf16, #tpu.memory_space<vmem>>, %arg6: memref<256x256xbf16, #tpu.memory_space<vmem>>, %arg7: memref<256x256xbf16, #tpu.memory_space<vmem>>, %arg8: memref<1x256xf32, #tpu.memory_space<vmem>>, %arg9: memref<1x256xf32, #tpu.memory_space<vmem>>, %arg10: memref<128x256xbf16, #tpu.memory_space<vmem>>, %arg11: memref<128x256xbf16, #tpu.memory_space<vmem>>, %arg12: memref<128x256xf32, #tpu.memory_space<vmem>>, %arg13: memref<128x256xf32, #tpu.memory_space<vmem>>) attributes {dimension_semantics = [#tpu.dimension_semantics<parallel>, #tpu.dimension_semantics<arbitrary>], iteration_bounds = array<i64: 2, 2>, scalar_prefetch = 0 : i64, scratch_operands = 2 : i64, tpu.core_type = #tpu.core_type<tc>, window_params = [{transform_indices = @transform_0, window_bounds = array<i64: 128, 128>}, {transform_indices = @transform_1, window_bounds = array<i64: 128, 128>}, {transform_indices = @transform_2, window_bounds = array<i64: 128, 256>}, {transform_indices = @transform_3, window_bounds = array<i64: 128, 256>}, {pipeline_mode = #tpu.pipeline_mode<synchronous>, transform_indices = @transform_4, window_bounds = array<i64: 256, 256>}, {pipeline_mode = #tpu.pipeline_mode<synchronous>, transform_indices = @transform_5, window_bounds = array<i64: 256, 256>}, {pipeline_mode = #tpu.pipeline_mode<synchronous>, transform_indices = @transform_6, window_bounds = array<i64: 1, 256>}, {pipeline_mode = #tpu.pipeline_mode<synchronous>, transform_indices = @transform_7, window_bounds = array<i64: 1, 256>}, {transform_indices = @transform_8, window_bounds = array<i64: 128, 256>}, {transform_indices = @transform_9, window_bounds = array<i64: 128, 256>}]} {
    %c0_i32 = arith.constant 0 : i32
    %0 = arith.cmpi eq, %arg1, %c0_i32 : i32
    %1 = arith.extui %0 : i1 to i32
    %c0_i32_0 = arith.constant 0 : i32
    %2 = arith.cmpi ne, %1, %c0_i32_0 : i32
    scf.if %2 {
      %cst_30 = arith.constant 0.000000e+00 : f32
      %42 = vector.broadcast %cst_30 : f32 to vector<128x256xf32>
      %c0_31 = arith.constant 0 : index
      %c0_32 = arith.constant 0 : index
      %43 = vector.load %arg12[%c0_31, %c0_32] : memref<128x256xf32, #tpu.memory_space<vmem>>, vector<128x256xf32>
      tpu.vector_store %arg12[%c0_31, %c0_32], %42 {strides = array<i32>} : memref<128x256xf32, #tpu.memory_space<vmem>>, vector<128x256xf32>,
      %cst_33 = arith.constant 0.000000e+00 : f32
      %44 = vector.broadcast %cst_33 : f32 to vector<128x256xf32>
      %c0_34 = arith.constant 0 : index
      %c0_35 = arith.constant 0 : index
      %45 = vector.load %arg13[%c0_34, %c0_35] : memref<128x256xf32, #tpu.memory_space<vmem>>, vector<128x256xf32>
      tpu.vector_store %arg13[%c0_34, %c0_35], %44 {strides = array<i32>} : memref<128x256xf32, #tpu.memory_space<vmem>>, vector<128x256xf32>,
    } else {
    }
    %c0 = arith.constant 0 : index
    %c0_1 = arith.constant 0 : index
    %3 = vector.load %arg4[%c0, %c0_1] : memref<128x256xbf16, #tpu.memory_space<vmem>>, vector<128x256xbf16>
    %c0_2 = arith.constant 0 : index
    %c0_3 = arith.constant 0 : index
    %4 = vector.load %arg5[%c0_2, %c0_3] : memref<128x256xbf16, #tpu.memory_space<vmem>>, vector<128x256xbf16>
    %c0_4 = arith.constant 0 : index
    %c0_5 = arith.constant 0 : index
    %5 = vector.load %arg6[%c0_4, %c0_5] : memref<256x256xbf16, #tpu.memory_space<vmem>>, vector<256x256xbf16>
    %c0_6 = arith.constant 0 : index
    %c0_7 = arith.constant 0 : index
    %6 = vector.load %arg7[%c0_6, %c0_7] : memref<256x256xbf16, #tpu.memory_space<vmem>>, vector<256x256xbf16>
    %cst = arith.constant dense<0.000000e+00> : vector<128x256xf32>
    %7 = tpu.matmul %3, %5, %cst {dimension_numbers = #tpu.dot_dimension_numbers<[1], [0], [0], [1], [0, 0, 1, 1], [], []>} : vector<128x256xbf16>, vector<256x256xbf16>, vector<128x256xf32> -> vector<128x256xf32>
    %cst_8 = arith.constant dense<0.000000e+00> : vector<128x256xf32>
    %8 = tpu.matmul %4, %6, %cst_8 {dimension_numbers = #tpu.dot_dimension_numbers<[1], [0], [0], [1], [0, 0, 1, 1], [], []>} : vector<128x256xbf16>, vector<256x256xbf16>, vector<128x256xf32> -> vector<128x256xf32>
    %9 = arith.addf %3, %4 : vector<128x256xbf16>
    %10 = arith.addf %5, %6 : vector<256x256xbf16>
    %cst_9 = arith.constant dense<0.000000e+00> : vector<128x256xf32>
    %11 = tpu.matmul %9, %10, %cst_9 {dimension_numbers = #tpu.dot_dimension_numbers<[1], [0], [0], [1], [0, 0, 1, 1], [], []>} : vector<128x256xbf16>, vector<256x256xbf16>, vector<128x256xf32> -> vector<128x256xf32>
    %12 = arith.subf %7, %8 : vector<128x256xf32>
    %c0_10 = arith.constant 0 : index
    %c0_11 = arith.constant 0 : index
    %13 = vector.load %arg8[%c0_10, %c0_11] : memref<1x256xf32, #tpu.memory_space<vmem>>, vector<1x256xf32>
    %14 = vector.broadcast %13 : vector<1x256xf32> to vector<128x256xf32>
    %15 = arith.addf %12, %14 : vector<128x256xf32>
    %16 = arith.subf %11, %7 : vector<128x256xf32>
    %17 = arith.subf %16, %8 : vector<128x256xf32>
    %c0_12 = arith.constant 0 : index
    %c0_13 = arith.constant 0 : index
    %18 = vector.load %arg9[%c0_12, %c0_13] : memref<1x256xf32, #tpu.memory_space<vmem>>, vector<1x256xf32>
    %19 = vector.broadcast %18 : vector<1x256xf32> to vector<128x256xf32>
    %20 = arith.addf %17, %19 : vector<128x256xf32>
    %c0_14 = arith.constant 0 : index
    %c0_15 = arith.constant 0 : index
    %21 = vector.load %arg2[%c0_14, %c0_15] : memref<128x128xbf16, #tpu.memory_space<vmem>>, vector<128x128xbf16>
    %c0_16 = arith.constant 0 : index
    %c0_17 = arith.constant 0 : index
    %22 = vector.load %arg3[%c0_16, %c0_17] : memref<128x128xbf16, #tpu.memory_space<vmem>>, vector<128x128xbf16>
    %23 = arith.truncf %15 : vector<128x256xf32> to vector<128x256xbf16>
    %24 = arith.truncf %20 : vector<128x256xf32> to vector<128x256xbf16>
    %cst_18 = arith.constant dense<0.000000e+00> : vector<128x256xf32>
    %25 = tpu.matmul %21, %23, %cst_18 {dimension_numbers = #tpu.dot_dimension_numbers<[1], [0], [0], [1], [0, 0, 1, 1], [], []>} : vector<128x128xbf16>, vector<128x256xbf16>, vector<128x256xf32> -> vector<128x256xf32>
    %cst_19 = arith.constant dense<0.000000e+00> : vector<128x256xf32>
    %26 = tpu.matmul %22, %24, %cst_19 {dimension_numbers = #tpu.dot_dimension_numbers<[1], [0], [0], [1], [0, 0, 1, 1], [], []>} : vector<128x128xbf16>, vector<128x256xbf16>, vector<128x256xf32> -> vector<128x256xf32>
    %27 = arith.addf %21, %22 : vector<128x128xbf16>
    %28 = arith.addf %23, %24 : vector<128x256xbf16>
    %cst_20 = arith.constant dense<0.000000e+00> : vector<128x256xf32>
    %29 = tpu.matmul %27, %28, %cst_20 {dimension_numbers = #tpu.dot_dimension_numbers<[1], [0], [0], [1], [0, 0, 1, 1], [], []>} : vector<128x128xbf16>, vector<128x256xbf16>, vector<128x256xf32> -> vector<128x256xf32>
    %c0_21 = arith.constant 0 : index
    %c0_22 = arith.constant 0 : index
    %30 = vector.load %arg12[%c0_21, %c0_22] : memref<128x256xf32, #tpu.memory_space<vmem>>, vector<128x256xf32>
    %31 = arith.subf %25, %26 : vector<128x256xf32>
    %32 = arith.addf %30, %31 : vector<128x256xf32>
    %c0_23 = arith.constant 0 : index
    %c0_24 = arith.constant 0 : index
    %33 = vector.load %arg12[%c0_23, %c0_24] : memref<128x256xf32, #tpu.memory_space<vmem>>, vector<128x256xf32>
    tpu.vector_store %arg12[%c0_23, %c0_24], %32 {strides = array<i32>} : memref<128x256xf32, #tpu.memory_space<vmem>>, vector<128x256xf32>,
    %c0_25 = arith.constant 0 : index
    %c0_26 = arith.constant 0 : index
    %34 = vector.load %arg13[%c0_25, %c0_26] : memref<128x256xf32, #tpu.memory_space<vmem>>, vector<128x256xf32>
    %35 = arith.subf %29, %25 : vector<128x256xf32>
    %36 = arith.subf %35, %26 : vector<128x256xf32>
    %37 = arith.addf %34, %36 : vector<128x256xf32>
    %c0_27 = arith.constant 0 : index
    %c0_28 = arith.constant 0 : index
    %38 = vector.load %arg13[%c0_27, %c0_28] : memref<128x256xf32, #tpu.memory_space<vmem>>, vector<128x256xf32>
    tpu.vector_store %arg13[%c0_27, %c0_28], %37 {strides = array<i32>} : memref<128x256xf32, #tpu.memory_space<vmem>>, vector<128x256xf32>,
    %c1_i32 = arith.constant 1 : i32
    %39 = arith.cmpi eq, %arg1, %c1_i32 : i32
    %40 = arith.extui %39 : i1 to i32
    %c0_i32_29 = arith.constant 0 : i32
    %41 = arith.cmpi ne, %40, %c0_i32_29 : i32
    scf.if %41 {
      %c0_30 = arith.constant 0 : index
      %c0_31 = arith.constant 0 : index
      %42 = vector.load %arg12[%c0_30, %c0_31] : memref<128x256xf32, #tpu.memory_space<vmem>>, vector<128x256xf32>
      %43 = arith.truncf %42 : vector<128x256xf32> to vector<128x256xbf16>
      %c0_32 = arith.constant 0 : index
      %c0_33 = arith.constant 0 : index
      %44 = vector.load %arg10[%c0_32, %c0_33] : memref<128x256xbf16, #tpu.memory_space<vmem>>, vector<128x256xbf16>
      tpu.vector_store %arg10[%c0_32, %c0_33], %43 {strides = array<i32>} : memref<128x256xbf16, #tpu.memory_space<vmem>>, vector<128x256xbf16>,
      %c0_34 = arith.constant 0 : index
      %c0_35 = arith.constant 0 : index
      %45 = vector.load %arg13[%c0_34, %c0_35] : memref<128x256xf32, #tpu.memory_space<vmem>>, vector<128x256xf32>
      %46 = arith.truncf %45 : vector<128x256xf32> to vector<128x256xbf16>
      %c0_36 = arith.constant 0 : index
      %c0_37 = arith.constant 0 : index
      %47 = vector.load %arg11[%c0_36, %c0_37] : memref<128x256xbf16, #tpu.memory_space<vmem>>, vector<128x256xbf16>
      tpu.vector_store %arg11[%c0_36, %c0_37], %46 {strides = array<i32>} : memref<128x256xbf16, #tpu.memory_space<vmem>>, vector<128x256xbf16>,
    } else {
    }
    return
  }
  func.func @transform_0(%arg0: i32, %arg1: i32) -> (i32, i32) {
    %c0_i32 = arith.constant 0 : i32
    return %arg0, %arg1 : i32, i32
  }
  func.func @transform_1(%arg0: i32, %arg1: i32) -> (i32, i32) {
    %c0_i32 = arith.constant 0 : i32
    return %arg0, %arg1 : i32, i32
  }
  func.func @transform_2(%arg0: i32, %arg1: i32) -> (i32, i32) {
    %c0_i32 = arith.constant 0 : i32
    %c0_i32_0 = arith.constant 0 : i32
    return %arg1, %c0_i32 : i32, i32
  }
  func.func @transform_3(%arg0: i32, %arg1: i32) -> (i32, i32) {
    %c0_i32 = arith.constant 0 : i32
    %c0_i32_0 = arith.constant 0 : i32
    return %arg1, %c0_i32 : i32, i32
  }
  func.func @transform_4(%arg0: i32, %arg1: i32) -> (i32, i32) {
    %c0_i32 = arith.constant 0 : i32
    %c0_i32_0 = arith.constant 0 : i32
    %c0_i32_1 = arith.constant 0 : i32
    return %c0_i32, %c0_i32_0 : i32, i32
  }
  func.func @transform_5(%arg0: i32, %arg1: i32) -> (i32, i32) {
    %c0_i32 = arith.constant 0 : i32
    %c0_i32_0 = arith.constant 0 : i32
    %c0_i32_1 = arith.constant 0 : i32
    return %c0_i32, %c0_i32_0 : i32, i32
  }
  func.func @transform_6(%arg0: i32, %arg1: i32) -> (i32, i32) {
    %c0_i32 = arith.constant 0 : i32
    %c0_i32_0 = arith.constant 0 : i32
    %c0_i32_1 = arith.constant 0 : i32
    return %c0_i32, %c0_i32_0 : i32, i32
  }
  func.func @transform_7(%arg0: i32, %arg1: i32) -> (i32, i32) {
    %c0_i32 = arith.constant 0 : i32
    %c0_i32_0 = arith.constant 0 : i32
    %c0_i32_1 = arith.constant 0 : i32
    return %c0_i32, %c0_i32_0 : i32, i32
  }
  func.func @transform_8(%arg0: i32, %arg1: i32) -> (i32, i32) {
    %c0_i32 = arith.constant 0 : i32
    %c0_i32_0 = arith.constant 0 : i32
    return %arg0, %c0_i32 : i32, i32
  }
  func.func @transform_9(%arg0: i32, %arg1: i32) -> (i32, i32) {
    %c0_i32 = arith.constant 0 : i32
    %c0_i32_0 = arith.constant 0 : i32
    return %arg0, %c0_i32 : i32, i32
  }
}

</mosaic_0001>

<bundles_post_ra>
// kernel: orthogonal_gcn_forward.7
= control target key start
LH: loop header
LB: loop body
LE: loop exit
PB: predicated region body
PF: predicated region fallthrough
CT: control target
= control target key end

     0   :  { %s2099_s24 = smov 0   ;;  %s2101_s25 = smov 0   ;;  %s2466_s0 = inlined_call_operand.vmem [shape: bf16[256,256], index: 0, kind: input, shape index: {}]   ;;  %s2467_s1 = inlined_call_operand.vmem [shape: bf16[256,8], index: 1, kind: input, shape index: {}]   ;;  %s2468_s2 = inlined_call_operand.vmem [shape: bf16[8,256], index: 2, kind: input, shape index: {}]   ;;  %s2469_s3 = inlined_call_operand.vmem [shape: bf16[8,256], index: 3, kind: input, shape index: {}]   ;;  %s2470_s4 = inlined_call_operand.vmem [shape: f32[1,256], index: 4, kind: input, shape index: {}]   ;;  %s2471_s5 = inlined_call_operand.vmem [shape: f32[1,256], index: 5, kind: input, shape index: {}]   ;;  %s2472_s6 = inlined_call_operand.vmem [shape: bf16[256,256], index: 6, kind: output, shape index: {0}]   ;;  %s2473_s7 = inlined_call_operand.vmem [shape: bf16[256,256], index: 7, kind: output, shape index: {1}]  }
   0x1   :  { %s2103_s26 = smov 0   ;;  %s2105_s27 = smov 0  }
   0x2   :  { %s2107_s28 = smov 0   ;;  %s2109_s29 = smov 0  }
   0x3   :  { %s2111_s30 = smov 0  }
   0x4 LB: > { %s27_s8 = sadd.s32 1, %s2047_s28  ;;  %s30_s9 = sadd.s32 1, %s2051_s29  ;;  %s2055_s30 = sphi %s2111_s30, %s18_s30   ;;  %s2051_s29 = sphi %s2109_s29, %s2479_s29   ;;  %s2047_s28 = sphi %s2107_s28, %s2478_s28   ;;  %s2043_s27 = sphi %s2105_s27, %s2477_s27   ;;  %s2039_s26 = sphi %s2103_s26, %s2476_s26   ;;  %s2035_s25 = sphi %s2101_s25, %s2475_s25   ;;  %s2031_s24 = sphi %s2099_s24, %s2474_s24  }
   0x5   : > { %p28_p0 = scmp.ge.s32.totalorder %s27_s8, 2  ;;  %p46_p1 = scmp.ne.s32.totalorder %s2035_s25, %s2031_s24 }
   0x6   : > { %p47_p2 = scmp.eq.s32.totalorder %s2055_s30, 0  ;;  %s39_s13 = sadd.s32 1, %s2035_s25 }
   0x7   : > { %s2481_s8 = smov (%p28_p0, %s27_s8), 0  ;;  %s2483_s9 = smov (!%p28_p0, %s30_s9), %s2051_s29 }
   0x8   : > { %p48_p3 = por %p47_p2, %p46_p1  ;;  %p32_p4 = scmp.ge.s32.totalorder %s2483_s9, 2 }
   0x9   : > { %s35_s10 = ssub.s32 %s2047_s28, %s2481_s8  ;;  %p1799_p6 = scmp.ge.s32.totalorder %s2055_s30, 4 }
   0xa   : > { %s2485_s9 = smov (%p32_p4, %s2483_s9), 0 }
   0xb   : > { %s34_s11 = ssub.s32 %s2051_s29, %s2485_s9  ;;  %246 = sbr.rel (%p1799_p6) target bundleno = 34 (0x22), region = 32 }
   0xc   : > { %s36_s12 = sor.u32 %s35_s10, %s34_s11 }
   0xd   : > { %p37_p5 = scmp.eq.s32.totalorder %s36_s12, 0 }
   0xf   : > { %s2150_s14 = scalar_select %p37_p5, %s2035_s25, %s39_s13  }
  0x12   : > { %249 = sbr.rel (!%p48_p3) target bundleno = 34 (0x22), region = 36  ;;  %s251_s15 = sand.u32 (%p48_p3), 1, %s2035_s25  }
  0x13   : > { %s1888_s16 = sshll.u32 (%p48_p3), %s2051_s29, 5  ;;  %s1800_s17 = sshll.u32 (%p48_p3), %s251_s15, 6 }
  0x14   : > { %s256_s18 = sadd.s32 (%p48_p3), %s2047_s28, %s1888_s16  ;;  %s253_s23 = scalar_lea.vmem (%p48_p3), [#allocation4], %s1800_s17 }
  0x15   : > { %s1803_s19 = sshll.u32 (%p48_p3), %s256_s18, 2 }
  0x16   : > { %s2159_s22 = scalar_lea.vmem (%p48_p3), %s2466_s0, %s1803_s19 }
  0x17   : > { %v274_v0 = vld [vmem:[%s2159_s22] sm:$0xf] (%p48_p3)  ;;  %v276_v1 = vld [vmem:[%s2159_s22 + $0x8] sm:$0xf] (%p48_p3)  ;;  %v278_v2 = vld [vmem:[%s2159_s22 + $0x10] sm:$0xf] (%p48_p3) }
  0x18   : > { %275 = vst [vmem:[%s253_s23] sm:$0xf] (%p48_p3), %v274_v0  ;;  %277 = vst [vmem:[%s253_s23 + $0x4] sm:$0xf] (%p48_p3), %v276_v1  ;;  %v280_v3 = vld [vmem:[%s2159_s22 + $0x18] sm:$0xf] (%p48_p3) }
  0x19   : > { %279 = vst [vmem:[%s253_s23 + $0x8] sm:$0xf] %v278_v2  ;;  %v282_v4 = vld [vmem:[%s2159_s22 + $0x20] sm:$0xf]  ;;  %v284_v5 = vld [vmem:[%s2159_s22 + $0x28] sm:$0xf] }
  0x1a   : > { %281 = vst [vmem:[%s253_s23 + $0xc] sm:$0xf] %v280_v3  ;;  %283 = vst [vmem:[%s253_s23 + $0x10] sm:$0xf] %v282_v4  ;;  %v286_v6 = vld [vmem:[%s2159_s22 + $0x30] sm:$0xf] }
  0x1b   : > { %285 = vst [vmem:[%s253_s23 + $0x14] sm:$0xf] %v284_v5  ;;  %v288_v7 = vld [vmem:[%s2159_s22 + $0x38] sm:$0xf]  ;;  %v290_v8 = vld [vmem:[%s2159_s22 + $0x40] sm:$0xf] }
  0x1c   : > { %287 = vst [vmem:[%s253_s23 + $0x18] sm:$0xf] %v286_v6  ;;  %289 = vst [vmem:[%s253_s23 + $0x1c] sm:$0xf] %v288_v7  ;;  %v292_v9 = vld [vmem:[%s2159_s22 + $0x48] sm:$0xf] }
  0x1d   : > { %291 = vst [vmem:[%s253_s23 + $0x20] sm:$0xf] %v290_v8  ;;  %v294_v10 = vld [vmem:[%s2159_s22 + $0x50] sm:$0xf]  ;;  %v296_v11 = vld [vmem:[%s2159_s22 + $0x58] sm:$0xf] }
  0x1e   : > { %293 = vst [vmem:[%s253_s23 + $0x24] sm:$0xf] %v292_v9  ;;  %295 = vst [vmem:[%s253_s23 + $0x28] sm:$0xf] %v294_v10  ;;  %v298_v12 = vld [vmem:[%s2159_s22 + $0x60] sm:$0xf] }
  0x1f   : > { %297 = vst [vmem:[%s253_s23 + $0x2c] sm:$0xf] %v296_v11  ;;  %v300_v13 = vld [vmem:[%s2159_s22 + $0x68] sm:$0xf]  ;;  %v302_v14 = vld [vmem:[%s2159_s22 + $0x70] sm:$0xf] }
  0x20   : > { %299 = vst [vmem:[%s253_s23 + $0x30] sm:$0xf] %v298_v12  ;;  %301 = vst [vmem:[%s253_s23 + $0x34] sm:$0xf] %v300_v13  ;;  %v304_v15 = vld [vmem:[%s2159_s22 + $0x78] sm:$0xf] }
  0x21   : > { %303 = vst [vmem:[%s253_s23 + $0x38] sm:$0xf] %v302_v14  ;;  %305 = vst [vmem:[%s253_s23 + $0x3c] sm:$0xf] %v304_v15 }
  0x22 PF: > { %p1804_p7 = scmp.ge.s32.totalorder %s2055_s30, 1  ;;  %p368_p8 = scmp.lt.s32.totalorder %s2055_s30, 5 }
  0x24   : > { %p369_p9 = pnand %p1804_p7, %p368_p8 }
  0x25   : > { %s375_s10 = sand.u32 (!%p369_p9), 1, %s2031_s24   ;;  %s1806_s11 = sshll.u32 (!%p369_p9), %s2039_s26, 4 }
  0x26   : > { %372 = sbr.rel (%p369_p9) target bundleno = 652 (0x28c), region = 81  ;;  %s1805_s12 = sshll.u32 (!%p369_p9), %s375_s10, 6 }
  0x27   : > { %p420_p10 = scmp.lt.s32.totalorder (!%p369_p9), %s1806_s11, 31  ;;  %s1808_s13 = sshll.u32 (!%p369_p9), %s2043_s27, 4 }
  0x28   : > { %p426_p11 = scmp.lt.s32.totalorder (!%p369_p9), %s1808_s13, 31  ;;  %s2197_s27 = scalar_lea.vmem (!%p369_p9), [#allocation4], %s1805_s12 }
  0x29   : > { %p1814_p12 = scmp.ne.s32.totalorder (!%p369_p9), %s2039_s26, 0 }
  0x2d   : > { %s2487_s11 = smov (!%p420_p10, %s1806_s11), 31  ;;  %s2489_s13 = smov (!%p426_p11, %s1808_s13), 31 }
  0x2e   : > { %s1807_s15 = sshll.u32 %s2487_s11, 2  ;;  %s1889_s19 = sshll.u32 %s2489_s13, 3  ;;  %v2057_v16 = vmov (!%p1814_p12), 0.0  }
  0x2f   : > { %s2185_s18 = scalar_lea.vmem %s2467_s1, %s1807_s15  ;;  %s2190_s22 = scalar_lea.vmem %s2472_s6, %s1889_s19  ;;  %444 = vst [vmem:[#allocation2] sm:$0xff] (!%p1814_p12), %v2057_v16  ;;  %445 = vst [vmem:[#allocation2 + $0x8] sm:$0xff] (!%p1814_p12), %v2057_v16 }
  0x30   : > { %s2195_s10 = scalar_lea.vmem %s2473_s7, %s1889_s19  ;;  %443 = sbr.rel (%p1814_p12) target bundleno = 79 (0x4f), region = 89  ;;  %446 = vst [vmem:[#allocation2 + $0x10] sm:$0xff] (!%p1814_p12), %v2057_v16  ;;  %447 = vst [vmem:[#allocation2 + $0x18] sm:$0xff] (!%p1814_p12), %v2057_v16 }
  0x31   : > { %448 = vst [vmem:[#allocation2 + $0x20] sm:$0xff] (!%p1814_p12), %v2057_v16  ;;  %449 = vst [vmem:[#allocation2 + $0x28] sm:$0xff] (!%p1814_p12), %v2057_v16 }
  0x32   : > { %450 = vst [vmem:[#allocation2 + $0x30] sm:$0xff] (!%p1814_p12), %v2057_v16  ;;  %451 = vst [vmem:[#allocation2 + $0x38] sm:$0xff] (!%p1814_p12), %v2057_v16 }
  0x33   : > { %452 = vst [vmem:[#allocation2 + $0x40] sm:$0xff] (!%p1814_p12), %v2057_v16  ;;  %453 = vst [vmem:[#allocation2 + $0x48] sm:$0xff] (!%p1814_p12), %v2057_v16 }
  0x34   : > { %454 = vst [vmem:[#allocation2 + $0x50] sm:$0xff] (!%p1814_p12), %v2057_v16  ;;  %455 = vst [vmem:[#allocation2 + $0x58] sm:$0xff] (!%p1814_p12), %v2057_v16 }
  0x35   : > { %456 = vst [vmem:[#allocation2 + $0x60] sm:$0xff] (!%p1814_p12), %v2057_v16  ;;  %457 = vst [vmem:[#allocation2 + $0x68] sm:$0xff] (!%p1814_p12), %v2057_v16 }
  0x36   : > { %458 = vst [vmem:[#allocation2 + $0x70] sm:$0xff] (!%p1814_p12), %v2057_v16  ;;  %459 = vst [vmem:[#allocation2 + $0x78] sm:$0xff] (!%p1814_p12), %v2057_v16 }
  0x37   : > { %460 = vst [vmem:[#allocation2 + $0x80] sm:$0xff] %v2057_v16  ;;  %461 = vst [vmem:[#allocation2 + $0x88] sm:$0xff] %v2057_v16 }
  0x38   : > { %462 = vst [vmem:[#allocation2 + $0x90] sm:$0xff] %v2057_v16  ;;  %463 = vst [vmem:[#allocation2 + $0x98] sm:$0xff] %v2057_v16 }
  0x39   : > { %464 = vst [vmem:[#allocation2 + $0xa0] sm:$0xff] %v2057_v16  ;;  %465 = vst [vmem:[#allocation2 + $0xa8] sm:$0xff] %v2057_v16 }
  0x3a   : > { %466 = vst [vmem:[#allocation2 + $0xb0] sm:$0xff] %v2057_v16  ;;  %467 = vst [vmem:[#allocation2 + $0xb8] sm:$0xff] %v2057_v16 }
  0x3b   : > { %468 = vst [vmem:[#allocation2 + $0xc0] sm:$0xff] %v2057_v16  ;;  %469 = vst [vmem:[#allocation2 + $0xc8] sm:$0xff] %v2057_v16 }
  0x3c   : > { %470 = vst [vmem:[#allocation2 + $0xd0] sm:$0xff] %v2057_v16  ;;  %471 = vst [vmem:[#allocation2 + $0xd8] sm:$0xff] %v2057_v16 }
  0x3d   : > { %472 = vst [vmem:[#allocation2 + $0xe0] sm:$0xff] %v2057_v16  ;;  %473 = vst [vmem:[#allocation2 + $0xe8] sm:$0xff] %v2057_v16 }
  0x3e   : > { %474 = vst [vmem:[#allocation2 + $0xf0] sm:$0xff] %v2057_v16  ;;  %475 = vst [vmem:[#allocation2 + $0xf8] sm:$0xff] %v2057_v16 }
  0x3f   : > { %476 = vst [vmem:[#allocation3] sm:$0xff] %v2057_v16  ;;  %477 = vst [vmem:[#allocation3 + $0x8] sm:$0xff] %v2057_v16 }
  0x40   : > { %478 = vst [vmem:[#allocation3 + $0x10] sm:$0xff] %v2057_v16  ;;  %479 = vst [vmem:[#allocation3 + $0x18] sm:$0xff] %v2057_v16 }
  0x41   : > { %480 = vst [vmem:[#allocation3 + $0x20] sm:$0xff] %v2057_v16  ;;  %481 = vst [vmem:[#allocation3 + $0x28] sm:$0xff] %v2057_v16 }
  0x42   : > { %482 = vst [vmem:[#allocation3 + $0x30] sm:$0xff] %v2057_v16  ;;  %483 = vst [vmem:[#allocation3 + $0x38] sm:$0xff] %v2057_v16 }
  0x43   : > { %484 = vst [vmem:[#allocation3 + $0x40] sm:$0xff] %v2057_v16  ;;  %485 = vst [vmem:[#allocation3 + $0x48] sm:$0xff] %v2057_v16 }
  0x44   : > { %486 = vst [vmem:[#allocation3 + $0x50] sm:$0xff] %v2057_v16  ;;  %487 = vst [vmem:[#allocation3 + $0x58] sm:$0xff] %v2057_v16 }
  0x45   : > { %488 = vst [vmem:[#allocation3 + $0x60] sm:$0xff] %v2057_v16  ;;  %489 = vst [vmem:[#allocation3 + $0x68] sm:$0xff] %v2057_v16 }
  0x46   : > { %490 = vst [vmem:[#allocation3 + $0x70] sm:$0xff] %v2057_v16  ;;  %491 = vst [vmem:[#allocation3 + $0x78] sm:$0xff] %v2057_v16 }
  0x47   : > { %492 = vst [vmem:[#allocation3 + $0x80] sm:$0xff] %v2057_v16  ;;  %493 = vst [vmem:[#allocation3 + $0x88] sm:$0xff] %v2057_v16 }
  0x48   : > { %494 = vst [vmem:[#allocation3 + $0x90] sm:$0xff] %v2057_v16  ;;  %495 = vst [vmem:[#allocation3 + $0x98] sm:$0xff] %v2057_v16 }
  0x49   : > { %496 = vst [vmem:[#allocation3 + $0xa0] sm:$0xff] %v2057_v16  ;;  %497 = vst [vmem:[#allocation3 + $0xa8] sm:$0xff] %v2057_v16 }
  0x4a   : > { %498 = vst [vmem:[#allocation3 + $0xb0] sm:$0xff] %v2057_v16  ;;  %499 = vst [vmem:[#allocation3 + $0xb8] sm:$0xff] %v2057_v16 }
  0x4b   : > { %500 = vst [vmem:[#allocation3 + $0xc0] sm:$0xff] %v2057_v16  ;;  %501 = vst [vmem:[#allocation3 + $0xc8] sm:$0xff] %v2057_v16 }
  0x4c   : > { %502 = vst [vmem:[#allocation3 + $0xd0] sm:$0xff] %v2057_v16  ;;  %503 = vst [vmem:[#allocation3 + $0xd8] sm:$0xff] %v2057_v16 }
  0x4d   : > { %504 = vst [vmem:[#allocation3 + $0xe0] sm:$0xff] %v2057_v16  ;;  %505 = vst [vmem:[#allocation3 + $0xe8] sm:$0xff] %v2057_v16 }
  0x4e   : > { %506 = vst [vmem:[#allocation3 + $0xf0] sm:$0xff] %v2057_v16  ;;  %507 = vst [vmem:[#allocation3 + $0xf8] sm:$0xff] %v2057_v16 }
  0x4f PF: > { %v524_v17 = vld [vmem:[%s2468_s2] sm:$0xff]  ;;  %vm607_vm0 = vcmask 1043456   ;;  %v2058_v23 = vmov 0   ;;  %vm582_vm1 = vcmask 64512   ;;  %v1986_v27 = vld [vmem:[%s2185_s18 + $0x8] sm:$0xff]   ;;  %v1987_v28 = vld [vmem:[%s2185_s18 + $0x10] sm:$0xff]   ;;  %v527_v34 = vlaneseq }
  0x50   : > { %v727_v18 = vld [vmem:[%s2469_s3] sm:$0xff]  ;;  %v1824_v19 = vcombine.high %v524_v17, %v524_v17  ;;  %v1823_v21 = vcombine.low %v524_v17, %v524_v17  ;;  %646 = vmatprep.mubr.bf16.mxu0 %v2058_v23  ;;  %783 = vmatprep.mubr.bf16.mxu1 %v2058_v23  ;;  %v1988_v29 = vld [vmem:[%s2185_s18 + $0x18] sm:$0xff]   ;;  %v1990_v31 = vld [vmem:[%s2185_s18 + $0x28] sm:$0xff]   ;;  %p1853_p13 = scmp.ne.s32.totalorder %s2039_s26, 1 }
  0x51   : > { %v1835_v20 = vcombine.high %v727_v18, %v727_v18  ;;  %v1834_v22 = vcombine.low %v727_v18, %v727_v18  ;;  %v1985_v26 = vld [vmem:[%s2185_s18] sm:$0xff]   ;;  %v1991_v32 = vld [vmem:[%s2185_s18 + $0x30] sm:$0xff]   ;;  %v1992_v33 = vld [vmem:[%s2185_s18 + $0x38] sm:$0xff]   ;;  %v528_v35 = vshrl.u32 %v527_v34, 7 }
  0x52   : > { %1825 = vmatprep.subr.msk.bf16.mxu0 %vm607_vm0, %v1824_v19  ;;  %v609_v24 = vsel %vm607_vm0, %v1823_v21, 0  ;;  %v1989_v30 = vld [vmem:[%s2185_s18 + $0x20] sm:$0xff]  }
  0x53   : > { %1836 = vmatprep.subr.msk.bf16.mxu1 %vm607_vm0, %v1835_v20  ;;  %v746_v25 = vsel %vm607_vm0, %v1834_v22, 0  ;;  %615 = vmatpush1.bf16.msra.mxu0 %v609_v24  ;;  %v529_v36 = vsub.s32 0, %v528_v35  ;;  %v525_v37 = vld [vmem:[%s2470_s4] sm:$0x3]  ;;  %v533_v39 = vsub.s32 1, %v528_v35 }
  0x54   : > { %752 = vmatpush1.bf16.msra.mxu1 %v746_v25  ;;  %v728_v38 = vld [vmem:[%s2471_s5] sm:$0x3] }
  0x55   : > { %v2318_v40 = vrot.slane %v525_v37, %v529_v36  ;;  %v2320_v41 = vrot.slane %v728_v38, %v529_v36  ;;  %v2322_v44 = vrot.slane %v525_v37, %v533_v39  ;;  %v2324_v45 = vrot.slane %v728_v38, %v533_v39 }
  0x56   : > { %1826 = vmatmul.mubr.msk.bf16.vlgmr.msra.gmra.mrb[0].mxu0 %vm582_vm1, %v1985_v26 }
  0x57   : > { %1837 = vmatmul.mubr.msk.bf16.vlgmr.msra.gmra.mrb[0].mxu1 %vm582_vm1, %v1985_v26  ;;  %656 = vmatprep.mubr.bf16.mxu0 %v2058_v23 }
  0x58   : > { %793 = vmatprep.mubr.bf16.mxu1 %v2058_v23 }
  0x5e   : > { %1827 = vmatmul.mubr.msk.bf16.gmra.mrb[4].mxu0 %vm582_vm1, %v1986_v27 }
  0x5f   : > { %1838 = vmatmul.mubr.msk.bf16.gmra.mrb[4].mxu1 %vm582_vm1, %v1986_v27  ;;  %666 = vmatprep.mubr.bf16.mxu0 %v2058_v23 }
  0x60   : > { %803 = vmatprep.mubr.bf16.mxu1 %v2058_v23 }
  0x66   : > { %1828 = vmatmul.mubr.msk.bf16.gmra.mrb[8].mxu0 %vm582_vm1, %v1987_v28 }
  0x67   : > { %1839 = vmatmul.mubr.msk.bf16.gmra.mrb[8].mxu1 %vm582_vm1, %v1987_v28  ;;  %676 = vmatprep.mubr.bf16.mxu0 %v2058_v23 }
  0x68   : > { %813 = vmatprep.mubr.bf16.mxu1 %v2058_v23 }
  0x6e   : > { %1829 = vmatmul.mubr.msk.bf16.gmra.mrb[12].mxu0 %vm582_vm1, %v1988_v29 }
  0x6f   : > { %1840 = vmatmul.mubr.msk.bf16.gmra.mrb[12].mxu1 %vm582_vm1, %v1988_v29  ;;  %686 = vmatprep.mubr.bf16.mxu0 %v2058_v23 }
  0x70   : > { %823 = vmatprep.mubr.bf16.mxu1 %v2058_v23 }
  0x76   : > { %1830 = vmatmul.mubr.msk.bf16.gmra.mrb[16].mxu0 %vm582_vm1, %v1989_v30 }
  0x77   : > { %1841 = vmatmul.mubr.msk.bf16.gmra.mrb[16].mxu1 %vm582_vm1, %v1989_v30  ;;  %696 = vmatprep.mubr.bf16.mxu0 %v2058_v23 }
  0x78   : > { %833 = vmatprep.mubr.bf16.mxu1 %v2058_v23 }
  0x7e   : > { %1831 = vmatmul.mubr.msk.bf16.gmra.mrb[20].mxu0 %vm582_vm1, %v1990_v31 }
  0x7f   : > { %1842 = vmatmul.mubr.msk.bf16.gmra.mrb[20].mxu1 %vm582_vm1, %v1990_v31  ;;  %706 = vmatprep.mubr.bf16.mxu0 %v2058_v23 }
  0x80   : > { %843 = vmatprep.mubr.bf16.mxu1 %v2058_v23 }
  0x86   : > { %1832 = vmatmul.mubr.msk.bf16.gmra.mrb[24].mxu0 %vm582_vm1, %v1991_v32 }
  0x87   : > { %1843 = vmatmul.mubr.msk.bf16.gmra.mrb[24].mxu1 %vm582_vm1, %v1991_v32  ;;  %716 = vmatprep.mubr.bf16.mxu0 %v2058_v23 }
  0x88   : > { %853 = vmatprep.mubr.bf16.mxu1 %v2058_v23 }
  0x8e   : > { %1833 = vmatmul.mubr.msk.bf16.gmra.mrb[28].mxu0 %vm582_vm1, %v1992_v33 }
  0x8f   : > { %1844 = vmatmul.mubr.msk.bf16.gmra.mrb[28].mxu1 %vm582_vm1, %v1992_v33  ;;  %1008 = vmatprep.mubr.bf16.mxu0 %v2058_v23 }
  0x90   : > { %1233 = vmatprep.mubr.bf16.mxu1 %v2058_v23 }
 0x129   : > { %v648_v42 = vpop.f32.mrb[0].mxu0 }
 0x12a   : > { %v785_v43 = vpop.f32.mrb[0].mxu1  ;;  %v650_v46 = vpop.f32.mrb[1].mxu0  ;;  %v649_v50 = vadd.f32 %v648_v42, %v2318_v40 }
 0x12b   : > { %v787_v47 = vpop.f32.mrb[1].mxu1  ;;  %v652_v48 = vpop.f32.mrb[2].mxu0  ;;  %v786_v51 = vadd.f32 %v785_v43, %v2320_v41  ;;  %v651_v56 = vadd.f32 %v650_v46, %v2322_v44 }
 0x12c   : > { %v789_v49 = vpop.f32.mrb[2].mxu1  ;;  %v653_v52 = vadd.f32 %v652_v48, %v2318_v40  ;;  %v654_v54 = vpop.f32.mrb[3].mxu0  ;;  %v788_v57 = vadd.f32 %v787_v47, %v2324_v45 }
 0x12d   : > { %v790_v53 = vadd.f32 %v789_v49, %v2320_v41  ;;  %v791_v55 = vpop.f32.mrb[3].mxu1  ;;  %v655_v58 = vadd.f32 %v654_v54, %v2322_v44 }
 0x12e   : > { %v792_v59 = vadd.f32 %v791_v55, %v2324_v45  ;;  %v912_v60 = vpack.c.bf16 %v653_v52, %v649_v50 }
 0x12f   : > { %v1185_v61 = vpack.c.bf16 %v790_v53, %v786_v51  ;;  %v913_v62 = vpack.c.bf16 %v655_v58, %v651_v56 }
 0x130   : > { %v1186_v63 = vpack.c.bf16 %v792_v59, %v788_v57 }
 0x131   : > { %v658_v0 = vpop.f32.mrb[4].mxu0  ;;  %976 = vmatprep.subr.bf16.mxu0 %v913_v62 }
 0x132   : > { %v795_v1 = vpop.f32.mrb[4].mxu1  ;;  %1201 = vmatprep.subr.bf16.mxu1 %v1186_v63  ;;  %v660_v2 = vpop.f32.mrb[5].mxu0  ;;  %977 = vmatpush1.bf16.msra.mxu0 %v912_v60  ;;  %v659_v6 = vadd.f32 %v658_v0, %v2318_v40 }
 0x133   : > { %v797_v3 = vpop.f32.mrb[5].mxu1  ;;  %1202 = vmatpush1.bf16.msra.mxu1 %v1185_v61  ;;  %v662_v4 = vpop.f32.mrb[6].mxu0  ;;  %v796_v7 = vadd.f32 %v795_v1, %v2320_v41  ;;  %v661_v12 = vadd.f32 %v660_v2, %v2322_v44 }
 0x134   : > { %v799_v5 = vpop.f32.mrb[6].mxu1  ;;  %v663_v8 = vadd.f32 %v662_v4, %v2318_v40  ;;  %v664_v10 = vpop.f32.mrb[7].mxu0  ;;  %v798_v13 = vadd.f32 %v797_v3, %v2324_v45 }
 0x135   : > { %v800_v9 = vadd.f32 %v799_v5, %v2320_v41  ;;  %v801_v11 = vpop.f32.mrb[7].mxu1  ;;  %v665_v14 = vadd.f32 %v664_v10, %v2322_v44 }
 0x136   : > { %v802_v15 = vadd.f32 %v801_v11, %v2324_v45  ;;  %v914_v16 = vpack.c.bf16 %v663_v8, %v659_v6 }
 0x137   : > { %v1187_v17 = vpack.c.bf16 %v800_v9, %v796_v7  ;;  %v915_v18 = vpack.c.bf16 %v665_v14, %v661_v12 }
 0x138   : > { %v1188_v19 = vpack.c.bf16 %v802_v15, %v798_v13 }
 0x139   : > { %v668_v20 = vpop.f32.mrb[8].mxu0  ;;  %978 = vmatprep.subr.bf16.mxu0 %v915_v18 }
 0x13a   : > { %v805_v21 = vpop.f32.mrb[8].mxu1  ;;  %1203 = vmatprep.subr.bf16.mxu1 %v1188_v19  ;;  %v670_v22 = vpop.f32.mrb[9].mxu0  ;;  %979 = vmatpush1.bf16.msra.mxu0 %v914_v16  ;;  %v669_v27 = vadd.f32 %v668_v20, %v2318_v40 }
 0x13b   : > { %v807_v24 = vpop.f32.mrb[9].mxu1  ;;  %1204 = vmatpush1.bf16.msra.mxu1 %v1187_v17  ;;  %v672_v25 = vpop.f32.mrb[10].mxu0  ;;  %v806_v28 = vadd.f32 %v805_v21, %v2320_v41  ;;  %v671_v33 = vadd.f32 %v670_v22, %v2322_v44 }
 0x13c   : > { %v809_v26 = vpop.f32.mrb[10].mxu1  ;;  %v673_v29 = vadd.f32 %v672_v25, %v2318_v40  ;;  %v674_v31 = vpop.f32.mrb[11].mxu0  ;;  %v808_v34 = vadd.f32 %v807_v24, %v2324_v45 }
 0x13d   : > { %v810_v30 = vadd.f32 %v809_v26, %v2320_v41  ;;  %v811_v32 = vpop.f32.mrb[11].mxu1  ;;  %v675_v35 = vadd.f32 %v674_v31, %v2322_v44 }
 0x13e   : > { %v812_v36 = vadd.f32 %v811_v32, %v2324_v45  ;;  %v916_v37 = vpack.c.bf16 %v673_v29, %v669_v27 }
 0x13f   : > { %v1189_v38 = vpack.c.bf16 %v810_v30, %v806_v28  ;;  %v917_v39 = vpack.c.bf16 %v675_v35, %v671_v33 }
 0x140   : > { %v1190_v42 = vpack.c.bf16 %v812_v36, %v808_v34 }
 0x141   : > { %v678_v43 = vpop.f32.mrb[12].mxu0  ;;  %980 = vmatprep.subr.bf16.mxu0 %v917_v39 }
 0x142   : > { %v815_v46 = vpop.f32.mrb[12].mxu1  ;;  %1205 = vmatprep.subr.bf16.mxu1 %v1190_v42  ;;  %v680_v47 = vpop.f32.mrb[13].mxu0  ;;  %981 = vmatpush1.bf16.msra.mxu0 %v916_v37  ;;  %v679_v51 = vadd.f32 %v678_v43, %v2318_v40 }
 0x143   : > { %v817_v48 = vpop.f32.mrb[13].mxu1  ;;  %1206 = vmatpush1.bf16.msra.mxu1 %v1189_v38  ;;  %v682_v49 = vpop.f32.mrb[14].mxu0  ;;  %v816_v52 = vadd.f32 %v815_v46, %v2320_v41  ;;  %v681_v57 = vadd.f32 %v680_v47, %v2322_v44 }
 0x144   : > { %v819_v50 = vpop.f32.mrb[14].mxu1  ;;  %v683_v53 = vadd.f32 %v682_v49, %v2318_v40  ;;  %v684_v55 = vpop.f32.mrb[15].mxu0  ;;  %v818_v58 = vadd.f32 %v817_v48, %v2324_v45 }
 0x145   : > { %v820_v54 = vadd.f32 %v819_v50, %v2320_v41  ;;  %v821_v56 = vpop.f32.mrb[15].mxu1  ;;  %v685_v59 = vadd.f32 %v684_v55, %v2322_v44 }
 0x146   : > { %v822_v60 = vadd.f32 %v821_v56, %v2324_v45  ;;  %v918_v61 = vpack.c.bf16 %v683_v53, %v679_v51 }
 0x147   : > { %v1191_v62 = vpack.c.bf16 %v820_v54, %v816_v52  ;;  %v919_v63 = vpack.c.bf16 %v685_v59, %v681_v57 }
 0x148   : > { %v1192_v0 = vpack.c.bf16 %v822_v60, %v818_v58 }
 0x149   : > { %v688_v1 = vpop.f32.mrb[16].mxu0  ;;  %982 = vmatprep.subr.bf16.mxu0 %v919_v63 }
 0x14a   : > { %v825_v2 = vpop.f32.mrb[16].mxu1  ;;  %1207 = vmatprep.subr.bf16.mxu1 %v1192_v0  ;;  %v690_v3 = vpop.f32.mrb[17].mxu0  ;;  %983 = vmatpush1.bf16.msra.mxu0 %v918_v61  ;;  %v689_v7 = vadd.f32 %v688_v1, %v2318_v40 }
 0x14b   : > { %v827_v4 = vpop.f32.mrb[17].mxu1  ;;  %1208 = vmatpush1.bf16.msra.mxu1 %v1191_v62  ;;  %v692_v5 = vpop.f32.mrb[18].mxu0  ;;  %v826_v8 = vadd.f32 %v825_v2, %v2320_v41  ;;  %v691_v13 = vadd.f32 %v690_v3, %v2322_v44 }
 0x14c   : > { %v829_v6 = vpop.f32.mrb[18].mxu1  ;;  %v693_v9 = vadd.f32 %v692_v5, %v2318_v40  ;;  %v694_v11 = vpop.f32.mrb[19].mxu0  ;;  %v828_v14 = vadd.f32 %v827_v4, %v2324_v45 }
 0x14d   : > { %v830_v10 = vadd.f32 %v829_v6, %v2320_v41  ;;  %v831_v12 = vpop.f32.mrb[19].mxu1  ;;  %v695_v15 = vadd.f32 %v694_v11, %v2322_v44 }
 0x14e   : > { %v832_v16 = vadd.f32 %v831_v12, %v2324_v45  ;;  %v920_v17 = vpack.c.bf16 %v693_v9, %v689_v7 }
 0x14f   : > { %v1193_v18 = vpack.c.bf16 %v830_v10, %v826_v8  ;;  %v921_v19 = vpack.c.bf16 %v695_v15, %v691_v13 }
 0x150   : > { %v1194_v20 = vpack.c.bf16 %v832_v16, %v828_v14 }
 0x151   : > { %v698_v21 = vpop.f32.mrb[20].mxu0  ;;  %984 = vmatprep.subr.bf16.mxu0 %v921_v19 }
 0x152   : > { %v835_v22 = vpop.f32.mrb[20].mxu1  ;;  %1209 = vmatprep.subr.bf16.mxu1 %v1194_v20  ;;  %v700_v24 = vpop.f32.mrb[21].mxu0  ;;  %985 = vmatpush1.bf16.msra.mxu0 %v920_v17  ;;  %v699_v28 = vadd.f32 %v698_v21, %v2318_v40 }
 0x153   : > { %v837_v25 = vpop.f32.mrb[21].mxu1  ;;  %1210 = vmatpush1.bf16.msra.mxu1 %v1193_v18  ;;  %v702_v26 = vpop.f32.mrb[22].mxu0  ;;  %v836_v29 = vadd.f32 %v835_v22, %v2320_v41  ;;  %v701_v34 = vadd.f32 %v700_v24, %v2322_v44  ;;  %v1997_v22 = vld [vmem:[%s2197_s27 + $0x20] sm:$0xff]   ;;  %v1998_v24 = vld [vmem:[%s2197_s27 + $0x28] sm:$0xff]  }
 0x154   : > { %v839_v27 = vpop.f32.mrb[22].mxu1  ;;  %v703_v30 = vadd.f32 %v702_v26, %v2318_v40  ;;  %v704_v32 = vpop.f32.mrb[23].mxu0  ;;  %v838_v35 = vadd.f32 %v837_v25, %v2324_v45  ;;  %v1999_v25 = vld [vmem:[%s2197_s27 + $0x30] sm:$0xff]   ;;  %v2000_v26 = vld [vmem:[%s2197_s27 + $0x38] sm:$0xff]  }
 0x155   : > { %v840_v31 = vadd.f32 %v839_v27, %v2320_v41  ;;  %v841_v33 = vpop.f32.mrb[23].mxu1  ;;  %v705_v36 = vadd.f32 %v704_v32, %v2322_v44  ;;  %v880_v27 = vld [vmem:[#allocation2] sm:$0xff] }
 0x156   : > { %v842_v37 = vadd.f32 %v841_v33, %v2324_v45  ;;  %v922_v38 = vpack.c.bf16 %v703_v30, %v699_v28  ;;  %v1153_v28 = vld [vmem:[#allocation3] sm:$0xff]  ;;  %v1154_v30 = vld [vmem:[#allocation3 + $0x8] sm:$0xff]  ;;  %v882_v33 = vld [vmem:[#allocation2 + $0x10] sm:$0xff] }
 0x157   : > { %v1195_v39 = vpack.c.bf16 %v840_v31, %v836_v29  ;;  %v923_v42 = vpack.c.bf16 %v705_v36, %v701_v34  ;;  %v881_v29 = vld [vmem:[#allocation2 + $0x8] sm:$0xff]  ;;  %v1155_v34 = vld [vmem:[#allocation3 + $0x10] sm:$0xff] }
 0x158   : > { %v1196_v43 = vpack.c.bf16 %v842_v37, %v838_v35 }
 0x159   : > { %v708_v46 = vpop.f32.mrb[24].mxu0  ;;  %986 = vmatprep.subr.bf16.mxu0 %v923_v42  ;;  %v1156_v42 = vld [vmem:[#allocation3 + $0x18] sm:$0xff] }
 0x15a   : > { %v845_v47 = vpop.f32.mrb[24].mxu1  ;;  %1211 = vmatprep.subr.bf16.mxu1 %v1196_v43  ;;  %v710_v48 = vpop.f32.mrb[25].mxu0  ;;  %987 = vmatpush1.bf16.msra.mxu0 %v922_v38  ;;  %v709_v52 = vadd.f32 %v708_v46, %v2318_v40 }
 0x15b   : > { %v847_v49 = vpop.f32.mrb[25].mxu1  ;;  %1212 = vmatpush1.bf16.msra.mxu1 %v1195_v39  ;;  %v712_v50 = vpop.f32.mrb[26].mxu0  ;;  %v846_v53 = vadd.f32 %v845_v47, %v2320_v41  ;;  %v711_v58 = vadd.f32 %v710_v48, %v2322_v44  ;;  %v883_v39 = vld [vmem:[#allocation2 + $0x18] sm:$0xff] }
 0x15c   : > { %v849_v51 = vpop.f32.mrb[26].mxu1  ;;  %v713_v54 = vadd.f32 %v712_v50, %v2318_v40  ;;  %v714_v56 = vpop.f32.mrb[27].mxu0  ;;  %v848_v59 = vadd.f32 %v847_v49, %v2324_v45 }
 0x15d   : > { %v850_v55 = vadd.f32 %v849_v51, %v2320_v41  ;;  %v851_v57 = vpop.f32.mrb[27].mxu1  ;;  %v715_v60 = vadd.f32 %v714_v56, %v2322_v44  ;;  %v885_v56 = vld [vmem:[#allocation2 + $0x28] sm:$0xff] }
 0x15e   : > { %v852_v61 = vadd.f32 %v851_v57, %v2324_v45  ;;  %v924_v62 = vpack.c.bf16 %v713_v54, %v709_v52  ;;  %v884_v54 = vld [vmem:[#allocation2 + $0x20] sm:$0xff]  ;;  %v1158_v57 = vld [vmem:[#allocation3 + $0x28] sm:$0xff] }
 0x15f   : > { %v1197_v63 = vpack.c.bf16 %v850_v55, %v846_v53  ;;  %v925_v0 = vpack.c.bf16 %v715_v60, %v711_v58  ;;  %v1157_v55 = vld [vmem:[#allocation3 + $0x20] sm:$0xff]  ;;  %v886_v60 = vld [vmem:[#allocation2 + $0x30] sm:$0xff] }
 0x160   : > { %v1198_v1 = vpack.c.bf16 %v852_v61, %v848_v59  ;;  %v1159_v61 = vld [vmem:[#allocation3 + $0x30] sm:$0xff] }
 0x161   : > { %v718_v2 = vpop.f32.mrb[28].mxu0  ;;  %988 = vmatprep.subr.bf16.mxu0 %v925_v0 }
 0x162   : > { %v855_v3 = vpop.f32.mrb[28].mxu1  ;;  %1213 = vmatprep.subr.bf16.mxu1 %v1198_v1  ;;  %v720_v4 = vpop.f32.mrb[29].mxu0  ;;  %989 = vmatpush1.bf16.msra.mxu0 %v924_v62  ;;  %v719_v8 = vadd.f32 %v718_v2, %v2318_v40  ;;  %v887_v2 = vld [vmem:[#allocation2 + $0x38] sm:$0xff] }
 0x163   : > { %v857_v5 = vpop.f32.mrb[29].mxu1  ;;  %1214 = vmatpush1.bf16.msra.mxu1 %v1197_v63  ;;  %v722_v6 = vpop.f32.mrb[30].mxu0  ;;  %v856_v9 = vadd.f32 %v855_v3, %v2320_v41  ;;  %v721_v14 = vadd.f32 %v720_v4, %v2322_v44  ;;  %v1160_v3 = vld [vmem:[#allocation3 + $0x38] sm:$0xff] }
 0x164   : > { %v859_v7 = vpop.f32.mrb[30].mxu1  ;;  %v723_v10 = vadd.f32 %v722_v6, %v2318_v40  ;;  %v724_v12 = vpop.f32.mrb[31].mxu0  ;;  %v858_v15 = vadd.f32 %v857_v5, %v2324_v45  ;;  %v1993_v40 = vld [vmem:[%s2197_s27] sm:$0xff]  }
 0x165   : > { %v860_v11 = vadd.f32 %v859_v7, %v2320_v41  ;;  %v861_v13 = vpop.f32.mrb[31].mxu1  ;;  %v725_v16 = vadd.f32 %v724_v12, %v2322_v44  ;;  %v1994_v41 = vld [vmem:[%s2197_s27 + $0x8] sm:$0xff]   ;;  %v1995_v44 = vld [vmem:[%s2197_s27 + $0x10] sm:$0xff]  }
 0x166   : > { %v862_v17 = vadd.f32 %v861_v13, %v2324_v45  ;;  %v926_v18 = vpack.c.bf16 %v723_v10, %v719_v8  ;;  %v1996_v45 = vld [vmem:[%s2197_s27 + $0x18] sm:$0xff]  }
 0x167   : > { %v1199_v19 = vpack.c.bf16 %v860_v11, %v856_v9  ;;  %v927_v20 = vpack.c.bf16 %v725_v16, %v721_v14  ;;  %v888_v14 = vld [vmem:[#allocation2 + $0x40] sm:$0xff]  ;;  %v889_v16 = vld [vmem:[#allocation2 + $0x48] sm:$0xff] }
 0x168   : > { %v1200_v21 = vpack.c.bf16 %v862_v17, %v858_v15  ;;  %v1161_v15 = vld [vmem:[#allocation3 + $0x40] sm:$0xff]  ;;  %v1162_v17 = vld [vmem:[#allocation3 + $0x48] sm:$0xff] }
 0x169   : > { %990 = vmatprep.subr.bf16.mxu0 %v927_v20  ;;  %v890_v20 = vld [vmem:[#allocation2 + $0x50] sm:$0xff] }
 0x16a   : > { %1215 = vmatprep.subr.bf16.mxu1 %v1200_v21  ;;  %991 = vmatpush1.bf16.msra.mxu0 %v926_v18  ;;  %v1163_v21 = vld [vmem:[#allocation3 + $0x50] sm:$0xff] }
 0x16b   : > { %1216 = vmatpush1.bf16.msra.mxu1 %v1199_v19 }
 0x16d   : > { %1009 = vmatmul.mubr.bf16.vlgmr.msra.gmra.mrb[32].mxu0 %v1993_v40 }
 0x16e   : > { %1234 = vmatmul.mubr.bf16.vlgmr.msra.gmra.mrb[32].mxu1 %v1993_v40  ;;  %1018 = vmatprep.mubr.bf16.mxu0 %v2058_v23 }
 0x16f   : > { %1243 = vmatprep.mubr.bf16.mxu1 %v2058_v23 }
 0x175   : > { %1019 = vmatmul.mubr.bf16.gmra.mrb[36].mxu0 %v1994_v41 }
 0x176   : > { %1244 = vmatmul.mubr.bf16.gmra.mrb[36].mxu1 %v1994_v41  ;;  %1028 = vmatprep.mubr.bf16.mxu0 %v2058_v23 }
 0x177   : > { %1253 = vmatprep.mubr.bf16.mxu1 %v2058_v23 }
 0x17d   : > { %1029 = vmatmul.mubr.bf16.gmra.mrb[40].mxu0 %v1995_v44 }
 0x17e   : > { %1254 = vmatmul.mubr.bf16.gmra.mrb[40].mxu1 %v1995_v44  ;;  %1038 = vmatprep.mubr.bf16.mxu0 %v2058_v23 }
 0x17f   : > { %1263 = vmatprep.mubr.bf16.mxu1 %v2058_v23 }
 0x185   : > { %1039 = vmatmul.mubr.bf16.gmra.mrb[44].mxu0 %v1996_v45 }
 0x186   : > { %1264 = vmatmul.mubr.bf16.gmra.mrb[44].mxu1 %v1996_v45  ;;  %1048 = vmatprep.mubr.bf16.mxu0 %v2058_v23 }
 0x187   : > { %1273 = vmatprep.mubr.bf16.mxu1 %v2058_v23 }
 0x18d   : > { %1049 = vmatmul.mubr.bf16.gmra.mrb[48].mxu0 %v1997_v22 }
 0x18e   : > { %1274 = vmatmul.mubr.bf16.gmra.mrb[48].mxu1 %v1997_v22  ;;  %1058 = vmatprep.mubr.bf16.mxu0 %v2058_v23  ;;  %v891_v22 = vld [vmem:[#allocation2 + $0x58] sm:$0xff] }
 0x18f   : > { %1283 = vmatprep.mubr.bf16.mxu1 %v2058_v23 }
 0x195   : > { %1059 = vmatmul.mubr.bf16.gmra.mrb[52].mxu0 %v1998_v24 }
 0x196   : > { %1284 = vmatmul.mubr.bf16.gmra.mrb[52].mxu1 %v1998_v24  ;;  %1068 = vmatprep.mubr.bf16.mxu0 %v2058_v23  ;;  %v1164_v24 = vld [vmem:[#allocation3 + $0x58] sm:$0xff] }
 0x197   : > { %1293 = vmatprep.mubr.bf16.mxu1 %v2058_v23 }
 0x19d   : > { %1069 = vmatmul.mubr.bf16.gmra.mrb[56].mxu0 %v1999_v25 }
 0x19e   : > { %1294 = vmatmul.mubr.bf16.gmra.mrb[56].mxu1 %v1999_v25  ;;  %1078 = vmatprep.mubr.bf16.mxu0 %v2058_v23 }
 0x19f   : > { %1303 = vmatprep.mubr.bf16.mxu1 %v2058_v23 }
 0x1a5   : > { %1079 = vmatmul.mubr.bf16.gmra.mrb[60].mxu0 %v2000_v26 }
 0x1a6   : > { %1304 = vmatmul.mubr.bf16.gmra.mrb[60].mxu1 %v2000_v26 }
 0x240   : > { %v1010_v31 = vpop.f32.mrb[32].mxu0 }
 0x241   : > { %v1235_v32 = vpop.f32.mrb[32].mxu1  ;;  %v1089_v35 = vadd.f32 %v1010_v31, %v880_v27  ;;  %v1012_v37 = vpop.f32.mrb[33].mxu0 }
 0x242   : > { %v1314_v36 = vadd.f32 %v1235_v32, %v1153_v28  ;;  %v1237_v38 = vpop.f32.mrb[33].mxu1  ;;  %v1090_v43 = vadd.f32 %v1012_v37, %v881_v29  ;;  %v1014_v23 = vpop.f32.mrb[34].mxu0  ;;  %v893_v37 = vld [vmem:[#allocation2 + $0x68] sm:$0xff] }
 0x243   : > { %v1315_v46 = vadd.f32 %v1237_v38, %v1154_v30  ;;  %v1239_v47 = vpop.f32.mrb[34].mxu1  ;;  %1121 = vst [vmem:[#allocation2] sm:$0xff] %v1089_v35  ;;  %v1091_v48 = vadd.f32 %v1014_v23, %v882_v33  ;;  %v1016_v50 = vpop.f32.mrb[35].mxu0  ;;  %v892_v35 = vld [vmem:[#allocation2 + $0x60] sm:$0xff]  ;;  %v1166_v38 = vld [vmem:[#allocation3 + $0x68] sm:$0xff] }
 0x244   : > { %1346 = vst [vmem:[#allocation3] sm:$0xff] %v1314_v36  ;;  %v1316_v49 = vadd.f32 %v1239_v47, %v1155_v34  ;;  %v1241_v51 = vpop.f32.mrb[35].mxu1  ;;  %1122 = vst [vmem:[#allocation2 + $0x8] sm:$0xff] %v1090_v43  ;;  %v1092_v52 = vadd.f32 %v1016_v50, %v883_v39  ;;  %v1165_v36 = vld [vmem:[#allocation3 + $0x60] sm:$0xff]  ;;  %v894_v43 = vld [vmem:[#allocation2 + $0x70] sm:$0xff] }
 0x245   : > { %1347 = vst [vmem:[#allocation3 + $0x8] sm:$0xff] %v1315_v46  ;;  %v1317_v53 = vadd.f32 %v1241_v51, %v1156_v42  ;;  %1123 = vst [vmem:[#allocation2 + $0x10] sm:$0xff] %v1091_v48  ;;  %v1167_v46 = vld [vmem:[#allocation3 + $0x70] sm:$0xff]  ;;  %v895_v50 = vld [vmem:[#allocation2 + $0x78] sm:$0xff] }
 0x246   : > { %1348 = vst [vmem:[#allocation3 + $0x10] sm:$0xff] %v1316_v49  ;;  %1124 = vst [vmem:[#allocation2 + $0x18] sm:$0xff] %v1092_v52  ;;  %v1168_v51 = vld [vmem:[#allocation3 + $0x78] sm:$0xff] }
 0x247   : > { %1349 = vst [vmem:[#allocation3 + $0x18] sm:$0xff] %v1317_v53 }
 0x248   : > { %v1020_v58 = vpop.f32.mrb[36].mxu0 }
 0x249   : > { %v1245_v59 = vpop.f32.mrb[36].mxu1  ;;  %v1093_v62 = vadd.f32 %v1020_v58, %v884_v54  ;;  %v1022_v0 = vpop.f32.mrb[37].mxu0 }
 0x24a   : > { %v1318_v63 = vadd.f32 %v1245_v59, %v1157_v55  ;;  %v1247_v1 = vpop.f32.mrb[37].mxu1  ;;  %v1094_v4 = vadd.f32 %v1022_v0, %v885_v56  ;;  %v1024_v6 = vpop.f32.mrb[38].mxu0  ;;  %v897_v0 = vld [vmem:[#allocation2 + $0x88] sm:$0xff] }
 0x24b   : > { %v1319_v5 = vadd.f32 %v1247_v1, %v1158_v57  ;;  %v1249_v7 = vpop.f32.mrb[38].mxu1  ;;  %1125 = vst [vmem:[#allocation2 + $0x20] sm:$0xff] %v1093_v62  ;;  %v1095_v8 = vadd.f32 %v1024_v6, %v886_v60  ;;  %v1026_v10 = vpop.f32.mrb[39].mxu0  ;;  %v896_v62 = vld [vmem:[#allocation2 + $0x80] sm:$0xff]  ;;  %v1170_v1 = vld [vmem:[#allocation3 + $0x88] sm:$0xff] }
 0x24c   : > { %1350 = vst [vmem:[#allocation3 + $0x20] sm:$0xff] %v1318_v63  ;;  %v1320_v9 = vadd.f32 %v1249_v7, %v1159_v61  ;;  %v1251_v11 = vpop.f32.mrb[39].mxu1  ;;  %1126 = vst [vmem:[#allocation2 + $0x28] sm:$0xff] %v1094_v4  ;;  %v1096_v12 = vadd.f32 %v1026_v10, %v887_v2  ;;  %v1169_v63 = vld [vmem:[#allocation3 + $0x80] sm:$0xff]  ;;  %v898_v4 = vld [vmem:[#allocation2 + $0x90] sm:$0xff] }
 0x24d   : > { %1351 = vst [vmem:[#allocation3 + $0x28] sm:$0xff] %v1319_v5  ;;  %v1321_v13 = vadd.f32 %v1251_v11, %v1160_v3  ;;  %1127 = vst [vmem:[#allocation2 + $0x30] sm:$0xff] %v1095_v8  ;;  %v1171_v5 = vld [vmem:[#allocation3 + $0x90] sm:$0xff]  ;;  %v899_v10 = vld [vmem:[#allocation2 + $0x98] sm:$0xff] }
 0x24e   : > { %1352 = vst [vmem:[#allocation3 + $0x30] sm:$0xff] %v1320_v9  ;;  %1128 = vst [vmem:[#allocation2 + $0x38] sm:$0xff] %v1096_v12  ;;  %v1172_v11 = vld [vmem:[#allocation3 + $0x98] sm:$0xff] }
 0x24f   : > { %1353 = vst [vmem:[#allocation3 + $0x38] sm:$0xff] %v1321_v13 }
 0x250   : > { %v1030_v18 = vpop.f32.mrb[40].mxu0 }
 0x251   : > { %v1255_v19 = vpop.f32.mrb[40].mxu1  ;;  %v1097_v40 = vadd.f32 %v1030_v18, %v888_v14  ;;  %v1032_v44 = vpop.f32.mrb[41].mxu0 }
 0x252   : > { %v1322_v41 = vadd.f32 %v1255_v19, %v1161_v15  ;;  %v1257_v45 = vpop.f32.mrb[41].mxu1  ;;  %v1098_v25 = vadd.f32 %v1032_v44, %v889_v16  ;;  %v1034_v27 = vpop.f32.mrb[42].mxu0  ;;  %v901_v44 = vld [vmem:[#allocation2 + $0xa8] sm:$0xff] }
 0x253   : > { %v1323_v26 = vadd.f32 %v1257_v45, %v1162_v17  ;;  %v1259_v28 = vpop.f32.mrb[42].mxu1  ;;  %1129 = vst [vmem:[#allocation2 + $0x40] sm:$0xff] %v1097_v40  ;;  %v1099_v29 = vadd.f32 %v1034_v27, %v890_v20  ;;  %v1036_v31 = vpop.f32.mrb[43].mxu0  ;;  %v900_v40 = vld [vmem:[#allocation2 + $0xa0] sm:$0xff]  ;;  %v1174_v45 = vld [vmem:[#allocation3 + $0xa8] sm:$0xff] }
 0x254   : > { %1354 = vst [vmem:[#allocation3 + $0x40] sm:$0xff] %v1322_v41  ;;  %v1324_v30 = vadd.f32 %v1259_v28, %v1163_v21  ;;  %v1261_v32 = vpop.f32.mrb[43].mxu1  ;;  %1130 = vst [vmem:[#allocation2 + $0x48] sm:$0xff] %v1098_v25  ;;  %v1100_v33 = vadd.f32 %v1036_v31, %v891_v22  ;;  %v1173_v41 = vld [vmem:[#allocation3 + $0xa0] sm:$0xff]  ;;  %v902_v25 = vld [vmem:[#allocation2 + $0xb0] sm:$0xff] }
 0x255   : > { %1355 = vst [vmem:[#allocation3 + $0x48] sm:$0xff] %v1323_v26  ;;  %v1325_v34 = vadd.f32 %v1261_v32, %v1164_v24  ;;  %1131 = vst [vmem:[#allocation2 + $0x50] sm:$0xff] %v1099_v29  ;;  %v1175_v26 = vld [vmem:[#allocation3 + $0xb0] sm:$0xff]  ;;  %v903_v31 = vld [vmem:[#allocation2 + $0xb8] sm:$0xff] }
 0x256   : > { %1356 = vst [vmem:[#allocation3 + $0x50] sm:$0xff] %v1324_v30  ;;  %1132 = vst [vmem:[#allocation2 + $0x58] sm:$0xff] %v1100_v33  ;;  %v1176_v32 = vld [vmem:[#allocation3 + $0xb8] sm:$0xff] }
 0x257   : > { %1357 = vst [vmem:[#allocation3 + $0x58] sm:$0xff] %v1325_v34 }
 0x258   : > { %v1040_v39 = vpop.f32.mrb[44].mxu0 }
 0x259   : > { %v1265_v42 = vpop.f32.mrb[44].mxu1  ;;  %v1101_v23 = vadd.f32 %v1040_v39, %v892_v35  ;;  %v1042_v48 = vpop.f32.mrb[45].mxu0 }
 0x25a   : > { %v1326_v47 = vadd.f32 %v1265_v42, %v1165_v36  ;;  %v1267_v49 = vpop.f32.mrb[45].mxu1  ;;  %v1102_v52 = vadd.f32 %v1042_v48, %v893_v37  ;;  %v1044_v54 = vpop.f32.mrb[46].mxu0  ;;  %v905_v48 = vld [vmem:[#allocation2 + $0xc8] sm:$0xff] }
 0x25b   : > { %v1327_v53 = vadd.f32 %v1267_v49, %v1166_v38  ;;  %v1269_v55 = vpop.f32.mrb[46].mxu1  ;;  %1133 = vst [vmem:[#allocation2 + $0x60] sm:$0xff] %v1101_v23  ;;  %v1103_v56 = vadd.f32 %v1044_v54, %v894_v43  ;;  %v1046_v58 = vpop.f32.mrb[47].mxu0  ;;  %v904_v23 = vld [vmem:[#allocation2 + $0xc0] sm:$0xff]  ;;  %v1178_v49 = vld [vmem:[#allocation3 + $0xc8] sm:$0xff] }
 0x25c   : > { %1358 = vst [vmem:[#allocation3 + $0x60] sm:$0xff] %v1326_v47  ;;  %v1328_v57 = vadd.f32 %v1269_v55, %v1167_v46  ;;  %v1271_v59 = vpop.f32.mrb[47].mxu1  ;;  %1134 = vst [vmem:[#allocation2 + $0x68] sm:$0xff] %v1102_v52  ;;  %v1104_v60 = vadd.f32 %v1046_v58, %v895_v50  ;;  %v1177_v47 = vld [vmem:[#allocation3 + $0xc0] sm:$0xff]  ;;  %v906_v52 = vld [vmem:[#allocation2 + $0xd0] sm:$0xff] }
 0x25d   : > { %1359 = vst [vmem:[#allocation3 + $0x68] sm:$0xff] %v1327_v53  ;;  %v1329_v61 = vadd.f32 %v1271_v59, %v1168_v51  ;;  %1135 = vst [vmem:[#allocation2 + $0x70] sm:$0xff] %v1103_v56  ;;  %v1179_v53 = vld [vmem:[#allocation3 + $0xd0] sm:$0xff]  ;;  %v907_v58 = vld [vmem:[#allocation2 + $0xd8] sm:$0xff] }
 0x25e   : > { %1360 = vst [vmem:[#allocation3 + $0x70] sm:$0xff] %v1328_v57  ;;  %1136 = vst [vmem:[#allocation2 + $0x78] sm:$0xff] %v1104_v60  ;;  %v1180_v59 = vld [vmem:[#allocation3 + $0xd8] sm:$0xff] }
 0x25f   : > { %1361 = vst [vmem:[#allocation3 + $0x78] sm:$0xff] %v1329_v61 }
 0x260   : > { %v1050_v2 = vpop.f32.mrb[48].mxu0 }
 0x261   : > { %v1275_v3 = vpop.f32.mrb[48].mxu1  ;;  %v1105_v6 = vadd.f32 %v1050_v2, %v896_v62  ;;  %v1052_v8 = vpop.f32.mrb[49].mxu0 }
 0x262   : > { %v1330_v7 = vadd.f32 %v1275_v3, %v1169_v63  ;;  %v1277_v9 = vpop.f32.mrb[49].mxu1  ;;  %v1106_v12 = vadd.f32 %v1052_v8, %v897_v0  ;;  %v1054_v14 = vpop.f32.mrb[50].mxu0  ;;  %v909_v8 = vld [vmem:[#allocation2 + $0xe8] sm:$0xff] }
 0x263   : > { %v1331_v13 = vadd.f32 %v1277_v9, %v1170_v1  ;;  %v1279_v15 = vpop.f32.mrb[50].mxu1  ;;  %1137 = vst [vmem:[#allocation2 + $0x80] sm:$0xff] %v1105_v6  ;;  %v1107_v16 = vadd.f32 %v1054_v14, %v898_v4  ;;  %v1056_v18 = vpop.f32.mrb[51].mxu0  ;;  %v908_v6 = vld [vmem:[#allocation2 + $0xe0] sm:$0xff]  ;;  %v1182_v9 = vld [vmem:[#allocation3 + $0xe8] sm:$0xff] }
 0x264   : > { %1362 = vst [vmem:[#allocation3 + $0x80] sm:$0xff] %v1330_v7  ;;  %v1332_v17 = vadd.f32 %v1279_v15, %v1171_v5  ;;  %v1281_v19 = vpop.f32.mrb[51].mxu1  ;;  %1138 = vst [vmem:[#allocation2 + $0x88] sm:$0xff] %v1106_v12  ;;  %v1108_v20 = vadd.f32 %v1056_v18, %v899_v10  ;;  %v1181_v7 = vld [vmem:[#allocation3 + $0xe0] sm:$0xff]  ;;  %v910_v12 = vld [vmem:[#allocation2 + $0xf0] sm:$0xff] }
 0x265   : > { %1363 = vst [vmem:[#allocation3 + $0x88] sm:$0xff] %v1331_v13  ;;  %v1333_v21 = vadd.f32 %v1281_v19, %v1172_v11  ;;  %1139 = vst [vmem:[#allocation2 + $0x90] sm:$0xff] %v1107_v16  ;;  %v1183_v13 = vld [vmem:[#allocation3 + $0xf0] sm:$0xff]  ;;  %v911_v18 = vld [vmem:[#allocation2 + $0xf8] sm:$0xff] }
 0x266   : > { %1364 = vst [vmem:[#allocation3 + $0x90] sm:$0xff] %v1332_v17  ;;  %1140 = vst [vmem:[#allocation2 + $0x98] sm:$0xff] %v1108_v20  ;;  %v1184_v19 = vld [vmem:[#allocation3 + $0xf8] sm:$0xff] }
 0x267   : > { %1365 = vst [vmem:[#allocation3 + $0x98] sm:$0xff] %v1333_v21 }
 0x268   : > { %v1060_v22 = vpop.f32.mrb[52].mxu0 }
 0x269   : > { %v1285_v24 = vpop.f32.mrb[52].mxu1  ;;  %v1109_v27 = vadd.f32 %v1060_v22, %v900_v40  ;;  %v1062_v29 = vpop.f32.mrb[53].mxu0 }
 0x26a   : > { %v1334_v28 = vadd.f32 %v1285_v24, %v1173_v41  ;;  %v1287_v30 = vpop.f32.mrb[53].mxu1  ;;  %v1110_v33 = vadd.f32 %v1062_v29, %v901_v44  ;;  %v1064_v35 = vpop.f32.mrb[54].mxu0  ;;  %v1384_v29 = vld [vmem:[#allocation2 + $0x10] sm:$0xff] (!%p1853_p13) }
 0x26b   : > { %v1335_v34 = vadd.f32 %v1287_v30, %v1174_v45  ;;  %v1289_v36 = vpop.f32.mrb[54].mxu1  ;;  %1141 = vst [vmem:[#allocation2 + $0xa0] sm:$0xff] %v1109_v27  ;;  %v1111_v37 = vadd.f32 %v1064_v35, %v902_v25  ;;  %v1066_v39 = vpop.f32.mrb[55].mxu0  ;;  %v1382_v27 = vld [vmem:[#allocation2] sm:$0xff] (!%p1853_p13) }
 0x26c   : > { %1366 = vst [vmem:[#allocation3 + $0xa0] sm:$0xff] %v1334_v28  ;;  %v1336_v38 = vadd.f32 %v1289_v36, %v1175_v26  ;;  %v1291_v42 = vpop.f32.mrb[55].mxu1  ;;  %1142 = vst [vmem:[#allocation2 + $0xa8] sm:$0xff] %v1110_v33  ;;  %v1112_v43 = vadd.f32 %v1066_v39, %v903_v31  ;;  %v1383_v28 = vld [vmem:[#allocation2 + $0x8] sm:$0xff] (!%p1853_p13)  ;;  %v1385_v31 = vld [vmem:[#allocation2 + $0x18] sm:$0xff] (!%p1853_p13) }
 0x26d   : > { %1367 = vst [vmem:[#allocation3 + $0xa8] sm:$0xff] %v1335_v34  ;;  %v1337_v46 = vadd.f32 %v1291_v42, %v1176_v32  ;;  %1143 = vst [vmem:[#allocation2 + $0xb0] sm:$0xff] %v1111_v37  ;;  %v1891_v30 = vpack.c.bf16 (!%p1853_p13), %v1383_v28, %v1382_v27  ;;  %v1386_v32 = vld [vmem:[#allocation2 + $0x20] sm:$0xff] (!%p1853_p13)  ;;  %v1387_v33 = vld [vmem:[#allocation2 + $0x28] sm:$0xff] (!%p1853_p13)  ;;  %v1892_v34 = vpack.c.bf16 (!%p1853_p13), %v1385_v31, %v1384_v29 }
 0x26e   : > { %1368 = vst [vmem:[#allocation3 + $0xb0] sm:$0xff] %v1336_v38  ;;  %1144 = vst [vmem:[#allocation2 + $0xb8] sm:$0xff] %v1112_v43  ;;  %v1893_v35 = vpack.c.bf16 (!%p1853_p13), %v1387_v33, %v1386_v32  ;;  %v1388_v36 = vld [vmem:[#allocation2 + $0x30] sm:$0xff] (!%p1853_p13)  ;;  %v1389_v37 = vld [vmem:[#allocation2 + $0x38] sm:$0xff] (!%p1853_p13) }
 0x26f   : > { %1369 = vst [vmem:[#allocation3 + $0xb8] sm:$0xff] %v1337_v46  ;;  %v1390_v38 = vld [vmem:[#allocation2 + $0x40] sm:$0xff] (!%p1853_p13)  ;;  %1510 = vst [vmem:[%s2190_s22] sm:$0xff] (!%p1853_p13), %v1891_v30  ;;  %v1894_v39 = vpack.c.bf16 (!%p1853_p13), %v1389_v37, %v1388_v36  ;;  %v1391_v42 = vld [vmem:[#allocation2 + $0x48] sm:$0xff] (!%p1853_p13) }
 0x270   : > { %v1070_v50 = vpop.f32.mrb[56].mxu0  ;;  %v1392_v43 = vld [vmem:[#allocation2 + $0x50] sm:$0xff] (!%p1853_p13)  ;;  %v1393_v46 = vld [vmem:[#allocation2 + $0x58] sm:$0xff] (!%p1853_p13)  ;;  %1511 = vst [vmem:[%s2190_s22 + $0x8] sm:$0xff] (!%p1853_p13), %v1892_v34  ;;  %1512 = vst [vmem:[%s2190_s22 + $0x10] sm:$0xff] (!%p1853_p13), %v1893_v35 }
 0x271   : > { %v1295_v51 = vpop.f32.mrb[56].mxu1  ;;  %v1113_v54 = vadd.f32 %v1070_v50, %v904_v23  ;;  %v1072_v56 = vpop.f32.mrb[57].mxu0  ;;  %v1895_v23 = vpack.c.bf16 (!%p1853_p13), %v1391_v42, %v1390_v38  ;;  %v1396_v50 = vld [vmem:[#allocation2 + $0x70] sm:$0xff] (!%p1853_p13)  ;;  %1513 = vst [vmem:[%s2190_s22 + $0x18] sm:$0xff] (!%p1853_p13), %v1894_v39  ;;  %v1537_v27 = vld [vmem:[#allocation3 + $0x58] sm:$0xff] (!%p1853_p13)  ;;  %v1538_v28 = vld [vmem:[#allocation3 + $0x60] sm:$0xff] (!%p1853_p13) }
 0x272   : > { %v1338_v55 = vadd.f32 %v1295_v51, %v1177_v47  ;;  %v1297_v57 = vpop.f32.mrb[57].mxu1  ;;  %v1114_v60 = vadd.f32 %v1072_v56, %v905_v48  ;;  %v1074_v62 = vpop.f32.mrb[58].mxu0  ;;  %v1896_v47 = vpack.c.bf16 (!%p1853_p13), %v1393_v46, %v1392_v43  ;;  %v1394_v48 = vld [vmem:[#allocation2 + $0x60] sm:$0xff] (!%p1853_p13)  ;;  %v1539_v30 = vld [vmem:[#allocation3 + $0x68] sm:$0xff] (!%p1853_p13)  ;;  %v1540_v31 = vld [vmem:[#allocation3 + $0x70] sm:$0xff] (!%p1853_p13) }
 0x273   : > { %v1339_v61 = vadd.f32 %v1297_v57, %v1178_v49  ;;  %v1299_v63 = vpop.f32.mrb[58].mxu1  ;;  %1145 = vst [vmem:[#allocation2 + $0xc0] sm:$0xff] %v1113_v54  ;;  %v1115_v0 = vadd.f32 %v1074_v62, %v906_v52  ;;  %v1076_v2 = vpop.f32.mrb[59].mxu0  ;;  %v1395_v49 = vld [vmem:[#allocation2 + $0x68] sm:$0xff] (!%p1853_p13)  ;;  %v1397_v52 = vld [vmem:[#allocation2 + $0x78] sm:$0xff] (!%p1853_p13)  ;;  %1514 = vst [vmem:[%s2190_s22 + $0x20] sm:$0xff] (!%p1853_p13), %v1895_v23  ;;  %v1913_v33 = vpack.c.bf16 (!%p1853_p13), %v1539_v30, %v1538_v28 }
 0x274   : > { %1370 = vst [vmem:[#allocation3 + $0xc0] sm:$0xff] %v1338_v55  ;;  %v1340_v1 = vadd.f32 %v1299_v63, %v1179_v53  ;;  %v1301_v3 = vpop.f32.mrb[59].mxu1  ;;  %1146 = vst [vmem:[#allocation2 + $0xc8] sm:$0xff] %v1114_v60  ;;  %v1116_v4 = vadd.f32 %v1076_v2, %v907_v58  ;;  %v1897_v51 = vpack.c.bf16 (!%p1853_p13), %v1395_v49, %v1394_v48  ;;  %v1398_v53 = vld [vmem:[#allocation2 + $0x80] sm:$0xff] (!%p1853_p13)  ;;  %v1399_v54 = vld [vmem:[#allocation2 + $0x88] sm:$0xff] (!%p1853_p13) }
 0x275   : > { %1371 = vst [vmem:[#allocation3 + $0xc8] sm:$0xff] %v1339_v61  ;;  %v1341_v5 = vadd.f32 %v1301_v3, %v1180_v59  ;;  %1147 = vst [vmem:[#allocation2 + $0xd0] sm:$0xff] %v1115_v0  ;;  %v1898_v55 = vpack.c.bf16 (!%p1853_p13), %v1397_v52, %v1396_v50  ;;  %v1899_v56 = vpack.c.bf16 (!%p1853_p13), %v1399_v54, %v1398_v53  ;;  %v1400_v57 = vld [vmem:[#allocation2 + $0x90] sm:$0xff] (!%p1853_p13)  ;;  %v1401_v58 = vld [vmem:[#allocation2 + $0x98] sm:$0xff] (!%p1853_p13) }
 0x276   : > { %1372 = vst [vmem:[#allocation3 + $0xd0] sm:$0xff] %v1340_v1  ;;  %1148 = vst [vmem:[#allocation2 + $0xd8] sm:$0xff] %v1116_v4  ;;  %v1402_v59 = vld [vmem:[#allocation2 + $0xa0] sm:$0xff] (!%p1853_p13)  ;;  %v1900_v60 = vpack.c.bf16 (!%p1853_p13), %v1401_v58, %v1400_v57  ;;  %v1403_v61 = vld [vmem:[#allocation2 + $0xa8] sm:$0xff] (!%p1853_p13) }
 0x277   : > { %1373 = vst [vmem:[#allocation3 + $0xd8] sm:$0xff] %v1341_v5  ;;  %1515 = vst [vmem:[%s2190_s22 + $0x28] sm:$0xff] (!%p1853_p13), %v1896_v47  ;;  %v1404_v62 = vld [vmem:[#allocation2 + $0xb0] sm:$0xff] (!%p1853_p13)  ;;  %v1405_v63 = vld [vmem:[#allocation2 + $0xb8] sm:$0xff] (!%p1853_p13)  ;;  %v1901_v0 = vpack.c.bf16 (!%p1853_p13), %v1403_v61, %v1402_v59 }
 0x278   : > { %v1080_v10 = vpop.f32.mrb[60].mxu0  ;;  %1516 = vst [vmem:[%s2190_s22 + $0x30] sm:$0xff] (!%p1853_p13), %v1897_v51  ;;  %1517 = vst [vmem:[%s2190_s22 + $0x38] sm:$0xff] (!%p1853_p13), %v1898_v55  ;;  %v1902_v1 = vpack.c.bf16 (!%p1853_p13), %v1405_v63, %v1404_v62  ;;  %v1541_v32 = vld [vmem:[#allocation3 + $0x78] sm:$0xff] (!%p1853_p13)  ;;  %v1542_v35 = vld [vmem:[#allocation3 + $0x80] sm:$0xff] (!%p1853_p13) }
 0x279   : > { %v1305_v11 = vpop.f32.mrb[60].mxu1  ;;  %v1117_v14 = vadd.f32 %v1080_v10, %v908_v6  ;;  %v1082_v16 = vpop.f32.mrb[61].mxu0  ;;  %1381 = sbr.rel (%p1853_p13) target bundleno = 652 (0x28c), region = 93  ;;  %1518 = vst [vmem:[%s2190_s22 + $0x40] sm:$0xff] (!%p1853_p13), %v1899_v56  ;;  %1519 = vst [vmem:[%s2190_s22 + $0x48] sm:$0xff] (!%p1853_p13), %v1900_v60  ;;  %v1914_v34 = vpack.c.bf16 (!%p1853_p13), %v1541_v32, %v1540_v31  ;;  %v1543_v36 = vld [vmem:[#allocation3 + $0x88] sm:$0xff] (!%p1853_p13) }
 0x27a   : > { %v1342_v15 = vadd.f32 %v1305_v11, %v1181_v7  ;;  %v1307_v17 = vpop.f32.mrb[61].mxu1  ;;  %v1118_v20 = vadd.f32 %v1082_v16, %v909_v8  ;;  %v1084_v40 = vpop.f32.mrb[62].mxu0  ;;  %v1406_v2 = vld [vmem:[#allocation2 + $0xc0] sm:$0xff] (!%p1853_p13)  ;;  %1520 = vst [vmem:[%s2190_s22 + $0x50] sm:$0xff] (!%p1853_p13), %v1901_v0  ;;  %1521 = vst [vmem:[%s2190_s22 + $0x58] sm:$0xff] (!%p1853_p13), %v1902_v1  ;;  %v1528_v16 = vld [vmem:[#allocation3 + $0x10] sm:$0xff] (!%p1853_p13)  ;;  %v1915_v38 = vpack.c.bf16 (!%p1853_p13), %v1543_v36, %v1542_v35 }
 0x27b   : > { %v1343_v21 = vadd.f32 %v1307_v17, %v1182_v9  ;;  %v1309_v41 = vpop.f32.mrb[62].mxu1  ;;  %1149 = vst [vmem:[#allocation2 + $0xe0] sm:$0xff] %v1117_v14  ;;  %v1119_v44 = vadd.f32 %v1084_v40, %v910_v12  ;;  %v1086_v22 = vpop.f32.mrb[63].mxu0  ;;  %v1407_v3 = vld [vmem:[#allocation2 + $0xc8] sm:$0xff] (!%p1853_p13)  ;;  %v1529_v17 = vld [vmem:[#allocation3 + $0x18] sm:$0xff] (!%p1853_p13)  ;;  %v1532_v40 = vld [vmem:[#allocation3 + $0x30] sm:$0xff] (!%p1853_p13) }
 0x27c   : > { %1374 = vst [vmem:[#allocation3 + $0xe0] sm:$0xff] %v1342_v15  ;;  %v1344_v45 = vadd.f32 %v1309_v41, %v1183_v13  ;;  %v1311_v24 = vpop.f32.mrb[63].mxu1  ;;  %1150 = vst [vmem:[#allocation2 + $0xe8] sm:$0xff] %v1118_v20  ;;  %v1120_v25 = vadd.f32 %v1086_v22, %v911_v18  ;;  %v1408_v4 = vld [vmem:[#allocation2 + $0xd0] sm:$0xff] (!%p1853_p13)  ;;  %v1903_v5 = vpack.c.bf16 (!%p1853_p13), %v1407_v3, %v1406_v2  ;;  %v1526_v13 = vld [vmem:[#allocation3] sm:$0xff] (!%p1853_p13) }
 0x27d   : > { %1375 = vst [vmem:[#allocation3 + $0xe8] sm:$0xff] %v1343_v21  ;;  %v1345_v26 = vadd.f32 %v1311_v24, %v1184_v19  ;;  %1151 = vst [vmem:[#allocation2 + $0xf0] sm:$0xff] %v1119_v44  ;;  %v1409_v6 = vld [vmem:[#allocation2 + $0xd8] sm:$0xff] (!%p1853_p13)  ;;  %v1527_v15 = vld [vmem:[#allocation3 + $0x8] sm:$0xff] (!%p1853_p13)  ;;  %v1908_v19 = vpack.c.bf16 (!%p1853_p13), %v1529_v17, %v1528_v16 }
 0x27e   : > { %1376 = vst [vmem:[#allocation3 + $0xf0] sm:$0xff] %v1344_v45  ;;  %1152 = vst [vmem:[#allocation2 + $0xf8] sm:$0xff] %v1120_v25  ;;  %v1904_v9 = vpack.c.bf16 (!%p1853_p13), %v1409_v6, %v1408_v4  ;;  %v1907_v18 = vpack.c.bf16 (!%p1853_p13), %v1527_v15, %v1526_v13  ;;  %v1530_v20 = vld [vmem:[#allocation3 + $0x20] sm:$0xff] (!%p1853_p13)  ;;  %v1531_v21 = vld [vmem:[#allocation3 + $0x28] sm:$0xff] (!%p1853_p13) }
 0x27f   : > { %1377 = vst [vmem:[#allocation3 + $0xf8] sm:$0xff] %v1345_v26  ;;  %1522 = vst [vmem:[%s2190_s22 + $0x60] sm:$0xff] (!%p1853_p13), %v1903_v5  ;;  %v1909_v41 = vpack.c.bf16 (!%p1853_p13), %v1531_v21, %v1530_v20  ;;  %v1533_v44 = vld [vmem:[#allocation3 + $0x38] sm:$0xff] (!%p1853_p13)  ;;  %v1534_v45 = vld [vmem:[#allocation3 + $0x40] sm:$0xff] (!%p1853_p13) }
 0x280   : > { %1523 = vst [vmem:[%s2190_s22 + $0x68] sm:$0xff] %v1904_v9  ;;  %v1535_v22 = vld [vmem:[#allocation3 + $0x48] sm:$0xff]  ;;  %1654 = vst [vmem:[%s2195_s10] sm:$0xff] %v1907_v18  ;;  %v1910_v24 = vpack.c.bf16 %v1533_v44, %v1532_v40  ;;  %v1536_v26 = vld [vmem:[#allocation3 + $0x50] sm:$0xff] }
 0x281   : > { %1655 = vst [vmem:[%s2195_s10 + $0x8] sm:$0xff] %v1908_v19  ;;  %v1911_v25 = vpack.c.bf16 %v1535_v22, %v1534_v45  ;;  %1656 = vst [vmem:[%s2195_s10 + $0x10] sm:$0xff] %v1909_v41  ;;  %v1912_v29 = vpack.c.bf16 %v1537_v27, %v1536_v26  ;;  %v1544_v37 = vld [vmem:[#allocation3 + $0x90] sm:$0xff]  ;;  %v1545_v39 = vld [vmem:[#allocation3 + $0x98] sm:$0xff] }
 0x282   : > { %v1410_v7 = vld [vmem:[#allocation2 + $0xe0] sm:$0xff]  ;;  %1657 = vst [vmem:[%s2195_s10 + $0x18] sm:$0xff] %v1910_v24  ;;  %v1547_v43 = vld [vmem:[#allocation3 + $0xa8] sm:$0xff]  ;;  %1660 = vst [vmem:[%s2195_s10 + $0x30] sm:$0xff] %v1913_v33  ;;  %v1916_v46 = vpack.c.bf16 %v1545_v39, %v1544_v37 }
 0x283   : > { %v1411_v8 = vld [vmem:[#allocation2 + $0xe8] sm:$0xff]  ;;  %1658 = vst [vmem:[%s2195_s10 + $0x20] sm:$0xff] %v1911_v25  ;;  %1659 = vst [vmem:[%s2195_s10 + $0x28] sm:$0xff] %v1912_v29  ;;  %v1546_v42 = vld [vmem:[#allocation3 + $0xa0] sm:$0xff] }
 0x284   : > { %v1905_v10 = vpack.c.bf16 %v1411_v8, %v1410_v7  ;;  %v1412_v11 = vld [vmem:[#allocation2 + $0xf0] sm:$0xff]  ;;  %1661 = vst [vmem:[%s2195_s10 + $0x38] sm:$0xff] %v1914_v34  ;;  %v1917_v23 = vpack.c.bf16 %v1547_v43, %v1546_v42  ;;  %v1549_v48 = vld [vmem:[#allocation3 + $0xb8] sm:$0xff]  ;;  %v1550_v49 = vld [vmem:[#allocation3 + $0xc0] sm:$0xff] }
 0x285   : > { %v1413_v12 = vld [vmem:[#allocation2 + $0xf8] sm:$0xff]  ;;  %v1548_v47 = vld [vmem:[#allocation3 + $0xb0] sm:$0xff]  ;;  %1662 = vst [vmem:[%s2195_s10 + $0x40] sm:$0xff] %v1915_v38  ;;  %v1551_v51 = vld [vmem:[#allocation3 + $0xc8] sm:$0xff] }
 0x286   : > { %v1906_v14 = vpack.c.bf16 %v1413_v12, %v1412_v11  ;;  %1524 = vst [vmem:[%s2190_s22 + $0x70] sm:$0xff] %v1905_v10  ;;  %v1918_v50 = vpack.c.bf16 %v1549_v48, %v1548_v47  ;;  %v1552_v52 = vld [vmem:[#allocation3 + $0xd0] sm:$0xff]  ;;  %v1553_v53 = vld [vmem:[#allocation3 + $0xd8] sm:$0xff]  ;;  %1663 = vst [vmem:[%s2195_s10 + $0x48] sm:$0xff] %v1916_v46  ;;  %v1919_v54 = vpack.c.bf16 %v1551_v51, %v1550_v49 }
 0x287   : > { %1664 = vst [vmem:[%s2195_s10 + $0x50] sm:$0xff] %v1917_v23  ;;  %v1920_v55 = vpack.c.bf16 %v1553_v53, %v1552_v52  ;;  %v1554_v56 = vld [vmem:[#allocation3 + $0xe0] sm:$0xff]  ;;  %v1555_v57 = vld [vmem:[#allocation3 + $0xe8] sm:$0xff]  ;;  %v1556_v58 = vld [vmem:[#allocation3 + $0xf0] sm:$0xff] }
 0x288   : > { %1525 = vst [vmem:[%s2190_s22 + $0x78] sm:$0xff] %v1906_v14  ;;  %1665 = vst [vmem:[%s2195_s10 + $0x58] sm:$0xff] %v1918_v50  ;;  %v1921_v59 = vpack.c.bf16 %v1555_v57, %v1554_v56  ;;  %v1557_v60 = vld [vmem:[#allocation3 + $0xf8] sm:$0xff] }
 0x289   : > { %1666 = vst [vmem:[%s2195_s10 + $0x60] sm:$0xff] %v1919_v54  ;;  %1667 = vst [vmem:[%s2195_s10 + $0x68] sm:$0xff] %v1920_v55  ;;  %v1922_v61 = vpack.c.bf16 %v1557_v60, %v1556_v58 }
 0x28a   : > { %1668 = vst [vmem:[%s2195_s10 + $0x70] sm:$0xff] %v1921_v59 }
 0x28b   : > { %1669 = vst [vmem:[%s2195_s10 + $0x78] sm:$0xff] %v1922_v61 }
 0x28c PF: > { %s18_s30 = sadd.s32 1, %s2055_s30   ;;  %s2474_s24 = smov %s2035_s25 }
 0x28d   : > { %p15_p0 = scmp.ge.s32.totalorder %s18_s30, 6   ;;  %s2475_s25 = smov %s2150_s14 }
 0x28e   : > { %s2476_s26 = smov %s2047_s28  ;;  %s2477_s27 = smov %s2051_s29 }
 0x28f   : > { %s2478_s28 = smov %s2481_s8  ;;  %s2479_s29 = smov %s2485_s9 }
 0x290   :  { %17 = sbr.rel (!%p15_p0) target bundleno = 4 (0x4), region = 143 }

// kernel: orthogonal_gcn_forward.8
= control target key start
LH: loop header
LB: loop body
LE: loop exit
PB: predicated region body
PF: predicated region fallthrough
CT: control target
= control target key end

     0   :  { %s5671_s0 = inlined_call_operand.vmem [shape: bf16[256,256], index: 0, kind: input, shape index: {}]   ;;  %s5672_s1 = inlined_call_operand.vmem [shape: bf16[256,256], index: 1, kind: input, shape index: {}]   ;;  %s5673_s2 = inlined_call_operand.vmem [shape: bf16[256,256], index: 2, kind: input, shape index: {}]   ;;  %s5674_s3 = inlined_call_operand.vmem [shape: bf16[256,256], index: 3, kind: input, shape index: {}]   ;;  %s5675_s4 = inlined_call_operand.vmem [shape: bf16[256,256], index: 4, kind: input, shape index: {}]   ;;  %s5676_s5 = inlined_call_operand.vmem [shape: bf16[256,256], index: 5, kind: input, shape index: {}]   ;;  %s5677_s6 = inlined_call_operand.vmem [shape: f32[1,256], index: 6, kind: input, shape index: {}]   ;;  %s5678_s7 = inlined_call_operand.vmem [shape: f32[1,256], index: 7, kind: input, shape index: {}]   ;;  %s5679_s8 = inlined_call_operand.vmem [shape: bf16[256,256], index: 8, kind: output, shape index: {0}]   ;;  %s5680_s9 = inlined_call_operand.vmem [shape: bf16[256,256], index: 9, kind: output, shape index: {1}]  }
   0x1   :  { %5767 = sst [smem:[#allocation76_spill]] %s5671_s0 }
   0x2   :  { %5768 = sst [smem:[#allocation77_spill]] %s5672_s1 }
   0x3   :  { %s3968_s30 = smov 0   ;;  %s3970_s10 = smov 0  }
   0x4   :  { %s3972_s11 = smov 0   ;;  %s3974_s12 = smov 0  }
   0x5   :  { %s3976_s13 = smov 0   ;;  %s3978_s14 = smov 0  }
   0x6   :  { %s3980_s15 = smov 0  }
   0x7 LB: > { %s29_s16 = sadd.s32 1, %s3906_s13  ;;  %s32_s17 = sadd.s32 1, %s3910_s14  ;;  %s3914_s15 = sphi %s3980_s15, %s20_s15   ;;  %s3910_s14 = sphi %s3978_s14, %s5954_s14   ;;  %s3906_s13 = sphi %s3976_s13, %s5953_s13   ;;  %s3902_s12 = sphi %s3974_s12, %s5952_s12   ;;  %s3898_s11 = sphi %s3972_s11, %s5951_s11   ;;  %s3894_s10 = sphi %s3970_s10, %s5950_s10   ;;  %s3890_s30 = sphi %s3968_s30, %s5949_s30  }
   0x8   : > { %p30_p0 = scmp.ge.s32.totalorder %s29_s16, 2  ;;  %p48_p1 = scmp.ne.s32.totalorder %s3894_s10, %s3890_s30 }
   0x9   : > { %p49_p2 = scmp.eq.s32.totalorder %s3914_s15, 0  ;;  %s41_s22 = sadd.s32 1, %s3894_s10 }
   0xa   : > { %s5956_s16 = smov (%p30_p0, %s29_s16), 0  ;;  %s5958_s17 = smov (!%p30_p0, %s32_s17), %s3910_s14 }
   0xb   : > { %p4011_p3 = por %p49_p2, %p48_p1  ;;  %p34_p4 = scmp.ge.s32.totalorder %s5958_s17, 2 }
   0xc   : > { %s37_s19 = ssub.s32 %s3906_s13, %s5956_s16  ;;  %p3424_p6 = scmp.ge.s32.totalorder %s3914_s15, 4 }
   0xd   : > { %s5960_s17 = smov (%p34_p4, %s5958_s17), 0 }
   0xe   : > { %5770 = sst [smem:[#allocation6_spill]] %s5960_s17  ;;  %s36_s20 = ssub.s32 %s3910_s14, %s5960_s17 }
   0xf   : > { %s38_s21 = sor.u32 %s37_s19, %s36_s20  ;;  %302 = sbr.rel (%p3424_p6) target bundleno = 62 (0x3e), region = 32 }
  0x10   : > { %p39_p5 = scmp.eq.s32.totalorder %s38_s21, 0 }
  0x12   : > { %s4023_s23 = scalar_select %p39_p5, %s3894_s10, %s41_s22  }
  0x16   : > { %305 = sbr.rel (!%p4011_p3) target bundleno = 42 (0x2a), region = 36  ;;  %s307_s24 = sand.u32 (%p4011_p3), 1, %s3894_s10  }
  0x17   : > { %s3652_s25 = sshll.u32 (%p4011_p3), %s3910_s14, 5  ;;  %s3425_s26 = sshll.u32 (%p4011_p3), %s307_s24, 6 }
  0x18   : > { %s312_s27 = sadd.s32 (%p4011_p3), %s3906_s13, %s3652_s25  ;;  %s5771_s0 = sld [smem:[#allocation76_spill]] (%p4011_p3) }
  0x19   : > { %s3428_s28 = sshll.u32 (%p4011_p3), %s312_s27, 2  ;;  %s309_s21 = scalar_lea.vmem (%p4011_p3), [#allocation4], %s3425_s26 }
  0x1e   : > { %s4034_s20 = scalar_lea.vmem %s5771_s0, %s3428_s28 }
  0x1f   : > { %v330_v0 = vld [vmem:[%s4034_s20] sm:$0xf]  ;;  %v332_v1 = vld [vmem:[%s4034_s20 + $0x8] sm:$0xf]  ;;  %v334_v2 = vld [vmem:[%s4034_s20 + $0x10] sm:$0xf] }
  0x20   : > { %331 = vst [vmem:[%s309_s21] sm:$0xf] %v330_v0  ;;  %333 = vst [vmem:[%s309_s21 + $0x4] sm:$0xf] %v332_v1  ;;  %v336_v3 = vld [vmem:[%s4034_s20 + $0x18] sm:$0xf] }
  0x21   : > { %335 = vst [vmem:[%s309_s21 + $0x8] sm:$0xf] %v334_v2  ;;  %v338_v4 = vld [vmem:[%s4034_s20 + $0x20] sm:$0xf]  ;;  %v340_v5 = vld [vmem:[%s4034_s20 + $0x28] sm:$0xf] }
  0x22   : > { %337 = vst [vmem:[%s309_s21 + $0xc] sm:$0xf] %v336_v3  ;;  %339 = vst [vmem:[%s309_s21 + $0x10] sm:$0xf] %v338_v4  ;;  %v342_v6 = vld [vmem:[%s4034_s20 + $0x30] sm:$0xf] }
  0x23   : > { %341 = vst [vmem:[%s309_s21 + $0x14] sm:$0xf] %v340_v5  ;;  %v344_v7 = vld [vmem:[%s4034_s20 + $0x38] sm:$0xf]  ;;  %v346_v8 = vld [vmem:[%s4034_s20 + $0x40] sm:$0xf] }
  0x24   : > { %343 = vst [vmem:[%s309_s21 + $0x18] sm:$0xf] %v342_v6  ;;  %345 = vst [vmem:[%s309_s21 + $0x1c] sm:$0xf] %v344_v7  ;;  %v348_v9 = vld [vmem:[%s4034_s20 + $0x48] sm:$0xf] }
  0x25   : > { %347 = vst [vmem:[%s309_s21 + $0x20] sm:$0xf] %v346_v8  ;;  %v350_v10 = vld [vmem:[%s4034_s20 + $0x50] sm:$0xf]  ;;  %v352_v11 = vld [vmem:[%s4034_s20 + $0x58] sm:$0xf] }
  0x26   : > { %349 = vst [vmem:[%s309_s21 + $0x24] sm:$0xf] %v348_v9  ;;  %351 = vst [vmem:[%s309_s21 + $0x28] sm:$0xf] %v350_v10  ;;  %v354_v12 = vld [vmem:[%s4034_s20 + $0x60] sm:$0xf] }
  0x27   : > { %353 = vst [vmem:[%s309_s21 + $0x2c] sm:$0xf] %v352_v11  ;;  %v356_v13 = vld [vmem:[%s4034_s20 + $0x68] sm:$0xf]  ;;  %v358_v14 = vld [vmem:[%s4034_s20 + $0x70] sm:$0xf] }
  0x28   : > { %355 = vst [vmem:[%s309_s21 + $0x30] sm:$0xf] %v354_v12  ;;  %357 = vst [vmem:[%s309_s21 + $0x34] sm:$0xf] %v356_v13  ;;  %v360_v15 = vld [vmem:[%s4034_s20 + $0x78] sm:$0xf] }
  0x29   : > { %359 = vst [vmem:[%s309_s21 + $0x38] sm:$0xf] %v358_v14  ;;  %361 = vst [vmem:[%s309_s21 + $0x3c] sm:$0xf] %v360_v15 }
  0x2a PF: > { %416 = sbr.rel (!%p4011_p3) target bundleno = 62 (0x3e), region = 77  ;;  %s418_s22 = sand.u32 (%p4011_p3), 1, %s3894_s10  }
  0x2b   : > { %s3653_s24 = sshll.u32 (%p4011_p3), %s3910_s14, 5  ;;  %s3429_s25 = sshll.u32 (%p4011_p3), %s418_s22, 6 }
  0x2c   : > { %s423_s26 = sadd.s32 (%p4011_p3), %s3906_s13, %s3653_s24  ;;  %s5772_s1 = sld [smem:[#allocation77_spill]] (%p4011_p3) }
  0x2d   : > { %s3432_s27 = sshll.u32 (%p4011_p3), %s423_s26, 2  ;;  %s420_s18 = scalar_lea.vmem (%p4011_p3), [#allocation5], %s3429_s25 }
  0x32   : > { %s4060_s19 = scalar_lea.vmem %s5772_s1, %s3432_s27 }
  0x33   : > { %v441_v16 = vld [vmem:[%s4060_s19] sm:$0xf]  ;;  %v443_v17 = vld [vmem:[%s4060_s19 + $0x8] sm:$0xf]  ;;  %v445_v18 = vld [vmem:[%s4060_s19 + $0x10] sm:$0xf] }
  0x34   : > { %442 = vst [vmem:[%s420_s18] sm:$0xf] %v441_v16  ;;  %444 = vst [vmem:[%s420_s18 + $0x4] sm:$0xf] %v443_v17  ;;  %v447_v19 = vld [vmem:[%s4060_s19 + $0x18] sm:$0xf] }
  0x35   : > { %446 = vst [vmem:[%s420_s18 + $0x8] sm:$0xf] %v445_v18  ;;  %v449_v20 = vld [vmem:[%s4060_s19 + $0x20] sm:$0xf]  ;;  %v451_v21 = vld [vmem:[%s4060_s19 + $0x28] sm:$0xf] }
  0x36   : > { %448 = vst [vmem:[%s420_s18 + $0xc] sm:$0xf] %v447_v19  ;;  %450 = vst [vmem:[%s420_s18 + $0x10] sm:$0xf] %v449_v20  ;;  %v453_v22 = vld [vmem:[%s4060_s19 + $0x30] sm:$0xf] }
  0x37   : > { %452 = vst [vmem:[%s420_s18 + $0x14] sm:$0xf] %v451_v21  ;;  %v455_v23 = vld [vmem:[%s4060_s19 + $0x38] sm:$0xf]  ;;  %v457_v24 = vld [vmem:[%s4060_s19 + $0x40] sm:$0xf] }
  0x38   : > { %454 = vst [vmem:[%s420_s18 + $0x18] sm:$0xf] %v453_v22  ;;  %456 = vst [vmem:[%s420_s18 + $0x1c] sm:$0xf] %v455_v23  ;;  %v459_v25 = vld [vmem:[%s4060_s19 + $0x48] sm:$0xf] }
  0x39   : > { %458 = vst [vmem:[%s420_s18 + $0x20] sm:$0xf] %v457_v24  ;;  %v461_v26 = vld [vmem:[%s4060_s19 + $0x50] sm:$0xf]  ;;  %v463_v27 = vld [vmem:[%s4060_s19 + $0x58] sm:$0xf] }
  0x3a   : > { %460 = vst [vmem:[%s420_s18 + $0x24] sm:$0xf] %v459_v25  ;;  %462 = vst [vmem:[%s420_s18 + $0x28] sm:$0xf] %v461_v26  ;;  %v465_v28 = vld [vmem:[%s4060_s19 + $0x60] sm:$0xf] }
  0x3b   : > { %464 = vst [vmem:[%s420_s18 + $0x2c] sm:$0xf] %v463_v27  ;;  %v467_v29 = vld [vmem:[%s4060_s19 + $0x68] sm:$0xf]  ;;  %v469_v30 = vld [vmem:[%s4060_s19 + $0x70] sm:$0xf] }
  0x3c   : > { %466 = vst [vmem:[%s420_s18 + $0x30] sm:$0xf] %v465_v28  ;;  %468 = vst [vmem:[%s420_s18 + $0x34] sm:$0xf] %v467_v29  ;;  %v471_v31 = vld [vmem:[%s4060_s19 + $0x78] sm:$0xf] }
  0x3d   : > { %470 = vst [vmem:[%s420_s18 + $0x38] sm:$0xf] %v469_v30  ;;  %472 = vst [vmem:[%s420_s18 + $0x3c] sm:$0xf] %v471_v31 }
  0x3e PF: > { %p3433_p7 = scmp.ge.s32.totalorder %s3914_s15, 1  ;;  %p546_p8 = scmp.lt.s32.totalorder %s3914_s15, 5 }
  0x40   : > { %p547_p9 = pnand %p3433_p7, %p546_p8 }
  0x42   : > { %550 = sbr.rel (%p547_p9) target bundleno = 822 (0x336), region = 126 }
  0x49   : > { %s553_s20 = sand.u32 1, %s3890_s30   ;;  %s3436_s21 = sshll.u32 %s3898_s11, 4 }
  0x4a   : > { %s3434_s22 = sshll.u32 %s553_s20, 6  ;;  %p621_p10 = scmp.lt.s32.totalorder %s3436_s21, 31 }
  0x4b   : > { %s3442_s24 = sshll.u32 %s3902_s12, 4  ;;  %s4103_s26 = scalar_lea.vmem [#allocation4], %s3434_s22 }
  0x4c   : > { %s5962_s21 = smov (!%p621_p10, %s3436_s21), 31  ;;  %p635_p11 = scmp.lt.s32.totalorder %s3442_s24, 31 }
  0x4d   : > { %s3654_s25 = sshll.u32 %s5962_s21, 3  ;;  %s4105_s27 = scalar_lea.vmem [#allocation5], %s3434_s22 }
  0x4e   : > { %s4086_s28 = scalar_lea.vmem %s5673_s2, %s3654_s25  ;;  %s4091_s18 = scalar_lea.vmem %s5674_s3, %s3654_s25 }
  0x4f   : > { %s5964_s24 = smov (!%p635_p11, %s3442_s24), 31  ;;  %p3448_p12 = scmp.ne.s32.totalorder %s3898_s11, 0 }
  0x50   : > { %s3656_s0 = sshll.u32 %s5964_s24, 3  ;;  %v3916_v32 = vmov (!%p3448_p12), 0.0  }
  0x51   : > { %s4096_s20 = scalar_lea.vmem %s5679_s8, %s3656_s0  ;;  %s4101_s17 = scalar_lea.vmem %s5680_s9, %s3656_s0  ;;  %653 = vst [vmem:[#allocation2] sm:$0xff] (!%p3448_p12), %v3916_v32  ;;  %654 = vst [vmem:[#allocation2 + $0x8] sm:$0xff] (!%p3448_p12), %v3916_v32 }
  0x52   : > { %652 = sbr.rel (%p3448_p12) target bundleno = 113 (0x71), region = 138  ;;  %655 = vst [vmem:[#allocation2 + $0x10] sm:$0xff] (!%p3448_p12), %v3916_v32  ;;  %656 = vst [vmem:[#allocation2 + $0x18] sm:$0xff] (!%p3448_p12), %v3916_v32 }
  0x53   : > { %657 = vst [vmem:[#allocation2 + $0x20] sm:$0xff] (!%p3448_p12), %v3916_v32  ;;  %658 = vst [vmem:[#allocation2 + $0x28] sm:$0xff] (!%p3448_p12), %v3916_v32 }
  0x54   : > { %659 = vst [vmem:[#allocation2 + $0x30] sm:$0xff] (!%p3448_p12), %v3916_v32  ;;  %660 = vst [vmem:[#allocation2 + $0x38] sm:$0xff] (!%p3448_p12), %v3916_v32 }
  0x55   : > { %661 = vst [vmem:[#allocation2 + $0x40] sm:$0xff] (!%p3448_p12), %v3916_v32  ;;  %662 = vst [vmem:[#allocation2 + $0x48] sm:$0xff] (!%p3448_p12), %v3916_v32 }
  0x56   : > { %663 = vst [vmem:[#allocation2 + $0x50] sm:$0xff] (!%p3448_p12), %v3916_v32  ;;  %664 = vst [vmem:[#allocation2 + $0x58] sm:$0xff] (!%p3448_p12), %v3916_v32 }
  0x57   : > { %665 = vst [vmem:[#allocation2 + $0x60] sm:$0xff] (!%p3448_p12), %v3916_v32  ;;  %666 = vst [vmem:[#allocation2 + $0x68] sm:$0xff] (!%p3448_p12), %v3916_v32 }
  0x58   : > { %667 = vst [vmem:[#allocation2 + $0x70] sm:$0xff] (!%p3448_p12), %v3916_v32  ;;  %668 = vst [vmem:[#allocation2 + $0x78] sm:$0xff] (!%p3448_p12), %v3916_v32 }
  0x59   : > { %669 = vst [vmem:[#allocation2 + $0x80] sm:$0xff] %v3916_v32  ;;  %670 = vst [vmem:[#allocation2 + $0x88] sm:$0xff] %v3916_v32 }
  0x5a   : > { %671 = vst [vmem:[#allocation2 + $0x90] sm:$0xff] %v3916_v32  ;;  %672 = vst [vmem:[#allocation2 + $0x98] sm:$0xff] %v3916_v32 }
  0x5b   : > { %673 = vst [vmem:[#allocation2 + $0xa0] sm:$0xff] %v3916_v32  ;;  %674 = vst [vmem:[#allocation2 + $0xa8] sm:$0xff] %v3916_v32 }
  0x5c   : > { %675 = vst [vmem:[#allocation2 + $0xb0] sm:$0xff] %v3916_v32  ;;  %676 = vst [vmem:[#allocation2 + $0xb8] sm:$0xff] %v3916_v32 }
  0x5d   : > { %677 = vst [vmem:[#allocation2 + $0xc0] sm:$0xff] %v3916_v32  ;;  %678 = vst [vmem:[#allocation2 + $0xc8] sm:$0xff] %v3916_v32 }
  0x5e   : > { %679 = vst [vmem:[#allocation2 + $0xd0] sm:$0xff] %v3916_v32  ;;  %680 = vst [vmem:[#allocation2 + $0xd8] sm:$0xff] %v3916_v32 }
  0x5f   : > { %681 = vst [vmem:[#allocation2 + $0xe0] sm:$0xff] %v3916_v32  ;;  %682 = vst [vmem:[#allocation2 + $0xe8] sm:$0xff] %v3916_v32 }
  0x60   : > { %683 = vst [vmem:[#allocation2 + $0xf0] sm:$0xff] %v3916_v32  ;;  %684 = vst [vmem:[#allocation2 + $0xf8] sm:$0xff] %v3916_v32 }
  0x61   : > { %685 = vst [vmem:[#allocation3] sm:$0xff] %v3916_v32  ;;  %686 = vst [vmem:[#allocation3 + $0x8] sm:$0xff] %v3916_v32 }
  0x62   : > { %687 = vst [vmem:[#allocation3 + $0x10] sm:$0xff] %v3916_v32  ;;  %688 = vst [vmem:[#allocation3 + $0x18] sm:$0xff] %v3916_v32 }
  0x63   : > { %689 = vst [vmem:[#allocation3 + $0x20] sm:$0xff] %v3916_v32  ;;  %690 = vst [vmem:[#allocation3 + $0x28] sm:$0xff] %v3916_v32 }
  0x64   : > { %691 = vst [vmem:[#allocation3 + $0x30] sm:$0xff] %v3916_v32  ;;  %692 = vst [vmem:[#allocation3 + $0x38] sm:$0xff] %v3916_v32 }
  0x65   : > { %693 = vst [vmem:[#allocation3 + $0x40] sm:$0xff] %v3916_v32  ;;  %694 = vst [vmem:[#allocation3 + $0x48] sm:$0xff] %v3916_v32 }
  0x66   : > { %695 = vst [vmem:[#allocation3 + $0x50] sm:$0xff] %v3916_v32  ;;  %696 = vst [vmem:[#allocation3 + $0x58] sm:$0xff] %v3916_v32 }
  0x67   : > { %697 = vst [vmem:[#allocation3 + $0x60] sm:$0xff] %v3916_v32  ;;  %698 = vst [vmem:[#allocation3 + $0x68] sm:$0xff] %v3916_v32 }
  0x68   : > { %699 = vst [vmem:[#allocation3 + $0x70] sm:$0xff] %v3916_v32  ;;  %700 = vst [vmem:[#allocation3 + $0x78] sm:$0xff] %v3916_v32 }
  0x69   : > { %701 = vst [vmem:[#allocation3 + $0x80] sm:$0xff] %v3916_v32  ;;  %702 = vst [vmem:[#allocation3 + $0x88] sm:$0xff] %v3916_v32 }
  0x6a   : > { %703 = vst [vmem:[#allocation3 + $0x90] sm:$0xff] %v3916_v32  ;;  %704 = vst [vmem:[#allocation3 + $0x98] sm:$0xff] %v3916_v32 }
  0x6b   : > { %705 = vst [vmem:[#allocation3 + $0xa0] sm:$0xff] %v3916_v32  ;;  %706 = vst [vmem:[#allocation3 + $0xa8] sm:$0xff] %v3916_v32 }
  0x6c   : > { %707 = vst [vmem:[#allocation3 + $0xb0] sm:$0xff] %v3916_v32  ;;  %708 = vst [vmem:[#allocation3 + $0xb8] sm:$0xff] %v3916_v32 }
  0x6d   : > { %709 = vst [vmem:[#allocation3 + $0xc0] sm:$0xff] %v3916_v32  ;;  %710 = vst [vmem:[#allocation3 + $0xc8] sm:$0xff] %v3916_v32 }
  0x6e   : > { %711 = vst [vmem:[#allocation3 + $0xd0] sm:$0xff] %v3916_v32  ;;  %712 = vst [vmem:[#allocation3 + $0xd8] sm:$0xff] %v3916_v32 }
  0x6f   : > { %713 = vst [vmem:[#allocation3 + $0xe0] sm:$0xff] %v3916_v32  ;;  %714 = vst [vmem:[#allocation3 + $0xe8] sm:$0xff] %v3916_v32 }
  0x70   : > { %715 = vst [vmem:[#allocation3 + $0xf0] sm:$0xff] %v3916_v32  ;;  %716 = vst [vmem:[#allocation3 + $0xf8] sm:$0xff] %v3916_v32 }
  0x71 PF: > { %v4175_v33 = vld [vmem:[%s5675_s4] sm:$0xff]  ;;  %v4180_v34 = vld [vmem:[%s5675_s4 + $0x8] sm:$0xff]  ;;  %v4199_v39 = vld [vmem:[%s5675_s4 + $0x10] sm:$0xff]  ;;  %p3617_p13 = scmp.ne.s32.totalorder %s3898_s11, 1 }
  0x72   : > { %v4185_v35 = vld [vmem:[%s5676_s5] sm:$0xff]  ;;  %v3466_v36 = vcombine.high %v4175_v33, %v4180_v34  ;;  %v4192_v37 = vld [vmem:[%s5676_s5 + $0x8] sm:$0xff]  ;;  %v3465_v38 = vcombine.low %v4175_v33, %v4180_v34  ;;  %v4204_v40 = vld [vmem:[%s5675_s4 + $0x18] sm:$0xff] }
  0x73   : > { %v3514_v41 = vcombine.high %v4185_v35, %v4192_v37  ;;  %v3513_v42 = vcombine.low %v4185_v35, %v4192_v37  ;;  %v3468_v43 = vcombine.high %v4199_v39, %v4204_v40  ;;  %v4215_v44 = vld [vmem:[%s5676_s5 + $0x10] sm:$0xff]  ;;  %v4220_v45 = vld [vmem:[%s5676_s5 + $0x18] sm:$0xff]  ;;  %v4225_v46 = vld [vmem:[%s5675_s4 + $0x20] sm:$0xff]  ;;  %v3467_v51 = vcombine.low %v4199_v39, %v4204_v40 }
  0x74   : > { %1053 = vmatprep.subr.bf16.mxu0 %v3466_v36  ;;  %v3516_v47 = vcombine.high %v4215_v44, %v4220_v45  ;;  %v4232_v48 = vld [vmem:[%s5675_s4 + $0x28] sm:$0xff]  ;;  %v4237_v49 = vld [vmem:[%s5676_s5 + $0x20] sm:$0xff]  ;;  %v3515_v52 = vcombine.low %v4215_v44, %v4220_v45  ;;  %v4255_v55 = vld [vmem:[%s5675_s4 + $0x30] sm:$0xff] }
  0x75   : > { %v4242_v50 = vld [vmem:[%s5676_s5 + $0x28] sm:$0xff]  ;;  %1406 = vmatprep.subr.bf16.mxu1 %v3514_v41  ;;  %1054 = vmatpush1.bf16.msra.mxu0 %v3465_v38  ;;  %v3470_v53 = vcombine.high %v4225_v46, %v4232_v48  ;;  %v4260_v56 = vld [vmem:[%s5675_s4 + $0x38] sm:$0xff]  ;;  %v4265_v57 = vld [vmem:[%s5676_s5 + $0x30] sm:$0xff]  ;;  %v3469_v59 = vcombine.low %v4225_v46, %v4232_v48 }
  0x76   : > { %1407 = vmatpush1.bf16.msra.mxu1 %v3513_v42  ;;  %1055 = vmatprep.subr.bf16.mxu0 %v3468_v43  ;;  %v3518_v54 = vcombine.high %v4237_v49, %v4242_v50  ;;  %v4270_v58 = vld [vmem:[%s5676_s5 + $0x38] sm:$0xff]  ;;  %v3517_v60 = vcombine.low %v4237_v49, %v4242_v50  ;;  %v3472_v61 = vcombine.high %v4255_v55, %v4260_v56  ;;  %v4283_v63 = vld [vmem:[%s5675_s4 + $0x40] sm:$0xff]  ;;  %v4288_v0 = vld [vmem:[%s5675_s4 + $0x48] sm:$0xff] }
  0x77   : > { %1408 = vmatprep.subr.bf16.mxu1 %v3516_v47  ;;  %v3520_v62 = vcombine.high %v4265_v57, %v4270_v58  ;;  %v4293_v1 = vld [vmem:[%s5676_s5 + $0x40] sm:$0xff]  ;;  %v4298_v2 = vld [vmem:[%s5676_s5 + $0x48] sm:$0xff]  ;;  %v3471_v3 = vcombine.low %v4255_v55, %v4260_v56  ;;  %v3519_v4 = vcombine.low %v4265_v57, %v4270_v58  ;;  %v3474_v5 = vcombine.high %v4283_v63, %v4288_v0  ;;  %v4311_v7 = vld [vmem:[%s5675_s4 + $0x50] sm:$0xff] }
  0x78   : > { %v3522_v6 = vcombine.high %v4293_v1, %v4298_v2  ;;  %v4316_v8 = vld [vmem:[%s5675_s4 + $0x58] sm:$0xff]  ;;  %v4321_v9 = vld [vmem:[%s5676_s5 + $0x50] sm:$0xff]  ;;  %v3473_v11 = vcombine.low %v4283_v63, %v4288_v0  ;;  %v3521_v12 = vcombine.low %v4293_v1, %v4298_v2  ;;  %v4339_v15 = vld [vmem:[%s5675_s4 + $0x60] sm:$0xff] }
  0x79   : > { %1056 = vmatpush1.bf16.msra.mxu0 %v3467_v51  ;;  %v4326_v10 = vld [vmem:[%s5676_s5 + $0x58] sm:$0xff]  ;;  %v3476_v13 = vcombine.high %v4311_v7, %v4316_v8  ;;  %v4344_v16 = vld [vmem:[%s5675_s4 + $0x68] sm:$0xff]  ;;  %v4349_v17 = vld [vmem:[%s5676_s5 + $0x60] sm:$0xff]  ;;  %v3475_v19 = vcombine.low %v4311_v7, %v4316_v8 }
  0x7a   : > { %1409 = vmatpush1.bf16.msra.mxu1 %v3515_v52  ;;  %1057 = vmatprep.subr.bf16.mxu0 %v3470_v53  ;;  %v3524_v14 = vcombine.high %v4321_v9, %v4326_v10  ;;  %v4354_v18 = vld [vmem:[%s5676_s5 + $0x68] sm:$0xff]  ;;  %v3523_v20 = vcombine.low %v4321_v9, %v4326_v10  ;;  %v3478_v21 = vcombine.high %v4339_v15, %v4344_v16  ;;  %v4365_v22 = vld [vmem:[%s5675_s4 + $0x70] sm:$0xff]  ;;  %v4368_v23 = vld [vmem:[%s4086_s28] sm:$0xff] }
  0x7b   : > { %1410 = vmatprep.subr.bf16.mxu1 %v3518_v54  ;;  %v4371_v24 = vld [vmem:[%s4086_s28 + $0x8] sm:$0xff]  ;;  %v3526_v25 = vcombine.high %v4349_v17, %v4354_v18  ;;  %v4378_v26 = vld [vmem:[%s5675_s4 + $0x78] sm:$0xff]  ;;  %v4383_v28 = vld [vmem:[%s4091_s18] sm:$0xff]  ;;  %v3477_v41 = vcombine.low %v4339_v15, %v4344_v16  ;;  %v3525_v42 = vcombine.low %v4349_v17, %v4354_v18 }
  0x7c   : > { %v3450_v27 = vcombine.high %v4368_v23, %v4371_v24  ;;  %v4386_v29 = vld [vmem:[%s4091_s18 + $0x8] sm:$0xff]  ;;  %v4391_v30 = vld [vmem:[%s5676_s5 + $0x70] sm:$0xff]  ;;  %v4396_v31 = vld [vmem:[%s5676_s5 + $0x78] sm:$0xff]  ;;  %v4402_v36 = vadd.bf16 %v4383_v28, %v4368_v23  ;;  %v3480_v43 = vcombine.high %v4365_v22, %v4378_v26 }
  0x7d   : > { %1058 = vmatpush1.bf16.msra.mxu0 %v3469_v59  ;;  %v3498_v32 = vcombine.high %v4383_v28, %v4386_v29  ;;  %v4406_v38 = vadd.bf16 %v4386_v29, %v4371_v24  ;;  %v3528_v51 = vcombine.high %v4391_v30, %v4396_v31  ;;  %v4421_v52 = vld [vmem:[%s5675_s4 + $0x80] sm:$0xff]  ;;  %v4426_v53 = vld [vmem:[%s5675_s4 + $0x88] sm:$0xff] }
  0x7e   : > { %1411 = vmatpush1.bf16.msra.mxu1 %v3517_v60  ;;  %1059 = vmatprep.subr.bf16.mxu0 %v3472_v61  ;;  %5773 = vst [vmem:[#allocation7_spill] sm:$0xff] %v4402_v36  ;;  %v4431_v54 = vld [vmem:[%s5676_s5 + $0x80] sm:$0xff]  ;;  %v4436_v59 = vld [vmem:[%s5676_s5 + $0x88] sm:$0xff]  ;;  %v3479_v60 = vcombine.low %v4365_v22, %v4378_v26  ;;  %v3527_v61 = vcombine.low %v4391_v30, %v4396_v31 }
  0x7f   : > { %1412 = vmatprep.subr.bf16.mxu1 %v3520_v62  ;;  %5774 = vst [vmem:[#allocation8_spill] sm:$0xff] %v4406_v38  ;;  %1085 = vmatprep.mubr.bf16.mxu0 %v3450_v27  ;;  %v3482_v62 = vcombine.high %v4421_v52, %v4426_v53  ;;  %v4492_v27 = vld [vmem:[%s5676_s5 + $0xa8] sm:$0xff] }
  0x80   : > { %1438 = vmatprep.mubr.bf16.mxu1 %v3498_v32  ;;  %5777 = vst [vmem:[#allocation11_spill] sm:$0xff] %v4492_v27 }
  0x81   : > { %1060 = vmatpush1.bf16.msra.mxu0 %v3471_v3  ;;  %v3530_v3 = vcombine.high %v4431_v54, %v4436_v59 }
  0x82   : > { %1413 = vmatpush1.bf16.msra.mxu1 %v3519_v4  ;;  %1061 = vmatprep.subr.bf16.mxu0 %v3474_v5  ;;  %v4449_v4 = vld [vmem:[%s5675_s4 + $0x90] sm:$0xff]  ;;  %v4454_v5 = vld [vmem:[%s5675_s4 + $0x98] sm:$0xff] }
  0x83   : > { %1414 = vmatprep.subr.bf16.mxu1 %v3522_v6  ;;  %v4459_v6 = vld [vmem:[%s5676_s5 + $0x90] sm:$0xff]  ;;  %v3483_v32 = vcombine.low %v4449_v4, %v4454_v5 }
  0x85   : > { %1062 = vmatpush1.bf16.msra.mxu0 %v3473_v11  ;;  %v4464_v11 = vld [vmem:[%s5676_s5 + $0x98] sm:$0xff] }
  0x86   : > { %1415 = vmatpush1.bf16.msra.mxu1 %v3521_v12  ;;  %1063 = vmatprep.subr.bf16.mxu0 %v3476_v13  ;;  %v3481_v12 = vcombine.low %v4421_v52, %v4426_v53  ;;  %v3529_v13 = vcombine.low %v4431_v54, %v4436_v59 }
  0x87   : > { %1416 = vmatprep.subr.bf16.mxu1 %v3524_v14  ;;  %v3484_v14 = vcombine.high %v4449_v4, %v4454_v5 }
  0x89   : > { %1064 = vmatpush1.bf16.msra.mxu0 %v3475_v19  ;;  %v3532_v19 = vcombine.high %v4459_v6, %v4464_v11 }
  0x8a   : > { %1417 = vmatpush1.bf16.msra.mxu1 %v3523_v20  ;;  %1065 = vmatprep.subr.bf16.mxu0 %v3478_v21  ;;  %v4477_v20 = vld [vmem:[%s5675_s4 + $0xa0] sm:$0xff]  ;;  %v4482_v21 = vld [vmem:[%s5675_s4 + $0xa8] sm:$0xff] }
  0x8b   : > { %1418 = vmatprep.subr.bf16.mxu1 %v3526_v25  ;;  %5775 = vst [vmem:[#allocation9_spill] sm:$0xff] %v4482_v21  ;;  %v4487_v25 = vld [vmem:[%s5676_s5 + $0xa0] sm:$0xff] }
  0x8c   : > { %5776 = vst [vmem:[#allocation10_spill] sm:$0xff] %v4487_v25 }
  0x8d   : > { %1066 = vmatpush1.bf16.msra.mxu0 %v3477_v41  ;;  %v3531_v41 = vcombine.low %v4459_v6, %v4464_v11 }
  0x8e   : > { %1419 = vmatpush1.bf16.msra.mxu1 %v3525_v42  ;;  %1067 = vmatprep.subr.bf16.mxu0 %v3480_v43  ;;  %v3486_v42 = vcombine.high %v4477_v20, %v4482_v21  ;;  %v3534_v43 = vcombine.high %v4487_v25, %v4492_v27 }
  0x8f   : > { %1420 = vmatprep.subr.bf16.mxu1 %v3528_v51  ;;  %v4505_v51 = vld [vmem:[%s5675_s4 + $0xb0] sm:$0xff] }
  0x91   : > { %1068 = vmatpush1.bf16.msra.mxu0 %v3479_v60  ;;  %v4510_v60 = vld [vmem:[%s5675_s4 + $0xb8] sm:$0xff] }
  0x92   : > { %1421 = vmatpush1.bf16.msra.mxu1 %v3527_v61  ;;  %1069 = vmatprep.subr.bf16.mxu0 %v3482_v62  ;;  %5778 = vst [vmem:[#allocation12_spill] sm:$0xff] %v4510_v60  ;;  %v4515_v61 = vld [vmem:[%s5676_s5 + $0xb0] sm:$0xff]  ;;  %v4520_v62 = vld [vmem:[%s5676_s5 + $0xb8] sm:$0xff] }
  0x93   : > { %1422 = vmatprep.subr.bf16.mxu1 %v3530_v3  ;;  %5779 = vst [vmem:[#allocation13_spill] sm:$0xff] %v4520_v62  ;;  %v3485_v3 = vcombine.low %v4477_v20, %v4482_v21 }
  0x95   : > { %1070 = vmatpush1.bf16.msra.mxu0 %v3481_v12  ;;  %v3533_v12 = vcombine.low %v4487_v25, %v4492_v27  ;;  %v3535_v27 = vcombine.low %v4515_v61, %v4520_v62 }
  0x96   : > { %1423 = vmatpush1.bf16.msra.mxu1 %v3529_v13  ;;  %1071 = vmatprep.subr.bf16.mxu0 %v3484_v14  ;;  %v3488_v13 = vcombine.high %v4505_v51, %v4510_v60  ;;  %v3536_v14 = vcombine.high %v4515_v61, %v4520_v62 }
  0x97   : > { %1424 = vmatprep.subr.bf16.mxu1 %v3532_v19  ;;  %v4533_v19 = vld [vmem:[%s5675_s4 + $0xc0] sm:$0xff] }
  0x98   : > { %5780 = vst [vmem:[#allocation14_spill] sm:$0xff] %v4533_v19 }
  0x99   : > { %1072 = vmatpush1.bf16.msra.mxu0 %v3483_v32  ;;  %v4538_v32 = vld [vmem:[%s5675_s4 + $0xc8] sm:$0xff] }
  0x9a   : > { %1425 = vmatpush1.bf16.msra.mxu1 %v3531_v41  ;;  %1073 = vmatprep.subr.bf16.mxu0 %v3486_v42  ;;  %5781 = vst [vmem:[#allocation15_spill] sm:$0xff] %v4538_v32  ;;  %v4543_v41 = vld [vmem:[%s5676_s5 + $0xc0] sm:$0xff]  ;;  %v4548_v42 = vld [vmem:[%s5676_s5 + $0xc8] sm:$0xff]  ;;  %v3490_v21 = vcombine.high %v4533_v19, %v4538_v32  ;;  %v3489_v47 = vcombine.low %v4533_v19, %v4538_v32  ;;  %v4619_v19 = vld [vmem:[%s5675_s4 + $0xf0] sm:$0xff] }
  0x9b   : > { %1426 = vmatprep.subr.bf16.mxu1 %v3534_v43  ;;  %5782 = vst [vmem:[#allocation16_spill] sm:$0xff] %v4543_v41  ;;  %5783 = vst [vmem:[#allocation17_spill] sm:$0xff] %v4548_v42  ;;  %v3487_v43 = vcombine.low %v4505_v51, %v4510_v60  ;;  %v3538_v25 = vcombine.high %v4543_v41, %v4548_v42  ;;  %v3537_v38 = vcombine.low %v4543_v41, %v4548_v42  ;;  %v4591_v60 = vld [vmem:[%s5675_s4 + $0xe0] sm:$0xff] }
  0x9d   : > { %1074 = vmatpush1.bf16.msra.mxu0 %v3485_v3  ;;  %v4563_v3 = vld [vmem:[%s5675_s4 + $0xd0] sm:$0xff] }
  0x9e   : > { %1427 = vmatpush1.bf16.msra.mxu1 %v3533_v12  ;;  %1075 = vmatprep.subr.bf16.mxu0 %v3488_v13  ;;  %5784 = vst [vmem:[#allocation18_spill] sm:$0xff] %v4563_v3  ;;  %v4568_v12 = vld [vmem:[%s5675_s4 + $0xd8] sm:$0xff]  ;;  %v4573_v13 = vld [vmem:[%s5676_s5 + $0xd0] sm:$0xff] }
  0x9f   : > { %1428 = vmatprep.subr.bf16.mxu1 %v3536_v14  ;;  %5785 = vst [vmem:[#allocation19_spill] sm:$0xff] %v4568_v12  ;;  %5786 = vst [vmem:[#allocation20_spill] sm:$0xff] %v4573_v13  ;;  %v4578_v14 = vld [vmem:[%s5676_s5 + $0xd8] sm:$0xff]  ;;  %v3492_v36 = vcombine.high %v4563_v3, %v4568_v12 }
  0xa0   : > { %5787 = vst [vmem:[#allocation21_spill] sm:$0xff] %v4578_v14  ;;  %v3540_v62 = vcombine.high %v4573_v13, %v4578_v14  ;;  %v3539_v42 = vcombine.low %v4573_v13, %v4578_v14 }
  0xa1   : > { %1076 = vmatpush1.bf16.msra.mxu0 %v3487_v43  ;;  %v3491_v43 = vcombine.low %v4563_v3, %v4568_v12  ;;  %v1536_v12 = vadd.bf16 %v4192_v37, %v4180_v34  ;;  %v1538_v37 = vadd.bf16 %v4220_v45, %v4204_v40  ;;  %v3497_v40 = vcombine.low %v4383_v28, %v4386_v29 }
  0xa2   : > { %1429 = vmatpush1.bf16.msra.mxu1 %v3535_v27  ;;  %1077 = vmatprep.subr.bf16.mxu0 %v3490_v21  ;;  %v4596_v27 = vld [vmem:[%s5675_s4 + $0xe8] sm:$0xff]  ;;  %v4601_v21 = vld [vmem:[%s5676_s5 + $0xe0] sm:$0xff] }
  0xa3   : > { %1430 = vmatprep.subr.bf16.mxu1 %v3538_v25  ;;  %v4606_v25 = vld [vmem:[%s5676_s5 + $0xe8] sm:$0xff]  ;;  %v3494_v32 = vcombine.high %v4591_v60, %v4596_v27  ;;  %v3493_v14 = vcombine.low %v4591_v60, %v4596_v27 }
  0xa4   : > { %v3542_v41 = vcombine.high %v4601_v21, %v4606_v25  ;;  %v3541_v13 = vcombine.low %v4601_v21, %v4606_v25 }
  0xa5   : > { %1078 = vmatpush1.bf16.msra.mxu0 %v3489_v47  ;;  %v4634_v47 = vld [vmem:[%s5676_s5 + $0xf8] sm:$0xff] }
  0xa6   : > { %1431 = vmatpush1.bf16.msra.mxu1 %v3537_v38  ;;  %1079 = vmatprep.subr.bf16.mxu0 %v3492_v36  ;;  %v4624_v38 = vld [vmem:[%s5675_s4 + $0xf8] sm:$0xff]  ;;  %v4629_v36 = vld [vmem:[%s5676_s5 + $0xf0] sm:$0xff] }
  0xa7   : > { %1432 = vmatprep.subr.bf16.mxu1 %v3540_v62  ;;  %5788 = vst [vmem:[#allocation22_spill] sm:$0xff] %v4624_v38  ;;  %v1535_v62 = vadd.bf16 %v4185_v35, %v4175_v33  ;;  %v3496_v3 = vcombine.high %v4619_v19, %v4624_v38  ;;  %v3544_v33 = vcombine.high %v4629_v36, %v4634_v47 }
  0xa8   : > { %v3495_v34 = vcombine.low %v4619_v19, %v4624_v38  ;;  %v1537_v35 = vadd.bf16 %v4215_v44, %v4199_v39  ;;  %v4665_v38 = vld [vmem:[%s4091_s18 + $0x10] sm:$0xff]  ;;  %v4668_v39 = vld [vmem:[%s4091_s18 + $0x18] sm:$0xff] }
  0xa9   : > { %1080 = vmatpush1.bf16.msra.mxu0 %v3491_v43  ;;  %v4660_v43 = vld [vmem:[%s4086_s28 + $0x18] sm:$0xff]  ;;  %v3561_v44 = vcombine.low %v1535_v62, %v1536_v12 }
  0xaa   : > { %1433 = vmatpush1.bf16.msra.mxu1 %v3539_v42  ;;  %1081 = vmatprep.subr.bf16.mxu0 %v3494_v32  ;;  %v3543_v32 = vcombine.low %v4629_v36, %v4634_v47  ;;  %v3562_v42 = vcombine.high %v1535_v62, %v1536_v12  ;;  %v3564_v45 = vcombine.high %v1537_v35, %v1538_v37  ;;  %v4693_v62 = vld [vmem:[%s4091_s18 + $0x20] sm:$0xff] }
  0xab   : > { %1434 = vmatprep.subr.bf16.mxu1 %v3542_v41  ;;  %v4657_v41 = vld [vmem:[%s4086_s28 + $0x10] sm:$0xff]  ;;  %v3500_v12 = vcombine.high %v4665_v38, %v4668_v39  ;;  %v3563_v28 = vcombine.low %v1537_v35, %v1538_v37  ;;  %v1544_v35 = vadd.bf16 %v4298_v2, %v4288_v0  ;;  %v4716_v0 = vld [vmem:[%s4086_s28 + $0x38] sm:$0xff] }
  0xad   : > { %1082 = vmatpush1.bf16.msra.mxu0 %v3493_v14  ;;  %v3449_v14 = vcombine.low %v4368_v23, %v4371_v24  ;;  %v1539_v23 = vadd.bf16 %v4237_v49, %v4225_v46  ;;  %v1540_v24 = vadd.bf16 %v4242_v50, %v4232_v48  ;;  %v1542_v46 = vadd.bf16 %v4270_v58, %v4260_v56  ;;  %v4685_v49 = vld [vmem:[%s4086_s28 + $0x20] sm:$0xff]  ;;  %v4688_v48 = vld [vmem:[%s4086_s28 + $0x28] sm:$0xff] }
  0xae   : > { %1435 = vmatpush1.bf16.msra.mxu1 %v3541_v13  ;;  %1083 = vmatprep.subr.bf16.mxu0 %v3496_v3  ;;  %v3452_v3 = vcombine.high %v4657_v41, %v4660_v43  ;;  %v1541_v13 = vadd.bf16 %v4265_v57, %v4255_v55  ;;  %v3451_v50 = vcombine.low %v4657_v41, %v4660_v43 }
  0xaf   : > { %1436 = vmatprep.subr.bf16.mxu1 %v3544_v33  ;;  %v3566_v29 = vcombine.high %v1539_v23, %v1540_v24  ;;  %v4696_v33 = vld [vmem:[%s4091_s18 + $0x28] sm:$0xff]  ;;  %v3565_v55 = vcombine.low %v1539_v23, %v1540_v24  ;;  %v3454_v57 = vcombine.high %v4685_v49, %v4688_v48  ;;  %v1543_v58 = vadd.bf16 %v4293_v1, %v4283_v63  ;;  %v4713_v1 = vld [vmem:[%s4086_s28 + $0x30] sm:$0xff] }
  0xb0   : > { %v3568_v56 = vcombine.high %v1541_v13, %v1542_v46  ;;  %v3502_v37 = vcombine.high %v4693_v62, %v4696_v33  ;;  %v1546_v63 = vadd.bf16 %v4326_v10, %v4316_v8  ;;  %v3453_v2 = vcombine.low %v4685_v49, %v4688_v48 }
  0xb1   : > { %1084 = vmatpush1.bf16.msra.mxu0 %v3495_v34  ;;  %v3499_v34 = vcombine.low %v4665_v38, %v4668_v39  ;;  %v1547_v10 = vadd.bf16 %v4349_v17, %v4339_v15  ;;  %v1550_v15 = vadd.bf16 %v4396_v31, %v4378_v26  ;;  %v4741_v17 = vld [vmem:[%s4086_s28 + $0x40] sm:$0xff]  ;;  %v1551_v31 = vadd.bf16 %v4431_v54, %v4421_v52  ;;  %v4769_v54 = vld [vmem:[%s4086_s28 + $0x50] sm:$0xff] }
  0xb2   : > { %1437 = vmatpush1.bf16.msra.mxu1 %v3543_v32  ;;  %1807 = vmatprep.subr.bf16.mxu0 %v3562_v42  ;;  %v3567_v32 = vcombine.low %v1541_v13, %v1542_v46  ;;  %v3570_v42 = vcombine.high %v1543_v58, %v1544_v35  ;;  %v4752_v13 = vld [vmem:[%s4091_s18 + $0x48] sm:$0xff]  ;;  %v1554_v52 = vadd.bf16 %v4464_v11, %v4454_v5  ;;  %v5789_v11 = vld [vmem:[#allocation10_spill] sm:$0xff] }
  0xb4   : > { %1086 = vmatmul.mubr.bf16.vlgmr.msra.gmra.mrb[0].mxu0 %v3449_v14  ;;  %v1545_v14 = vadd.bf16 %v4321_v9, %v4311_v7  ;;  %v3569_v7 = vcombine.low %v1543_v58, %v1544_v35  ;;  %v3456_v9 = vcombine.high %v4713_v1, %v4716_v0  ;;  %v4777_v58 = vld [vmem:[%s4091_s18 + $0x50] sm:$0xff]  ;;  %v4780_v35 = vld [vmem:[%s4091_s18 + $0x58] sm:$0xff] }
  0xb5   : > { %1439 = vmatmul.mubr.bf16.vlgmr.msra.gmra.mrb[0].mxu1 %v3497_v40  ;;  %1808 = vmatpush1.bf16.msra.mxu0 %v3561_v44  ;;  %v4721_v44 = vld [vmem:[%s4091_s18 + $0x30] sm:$0xff]  ;;  %v4724_v40 = vld [vmem:[%s4091_s18 + $0x38] sm:$0xff] }
  0xb6   : > { %1809 = vmatprep.subr.bf16.mxu0 %v3564_v45  ;;  %1095 = vmatprep.mubr.bf16.mxu0 %v3452_v3  ;;  %v3501_v45 = vcombine.low %v4693_v62, %v4696_v33  ;;  %v3572_v8 = vcombine.high %v1545_v14, %v1546_v63  ;;  %v1548_v3 = vadd.bf16 %v4354_v18, %v4344_v16  ;;  %v4744_v16 = vld [vmem:[%s4086_s28 + $0x48] sm:$0xff] }
  0xb7   : > { %1448 = vmatprep.mubr.bf16.mxu1 %v3500_v12  ;;  %v3504_v23 = vcombine.high %v4721_v44, %v4724_v40  ;;  %v3571_v24 = vcombine.low %v1545_v14, %v1546_v63  ;;  %v3455_v18 = vcombine.low %v4713_v1, %v4716_v0  ;;  %v3503_v46 = vcombine.low %v4721_v44, %v4724_v40  ;;  %v5791_v14 = vld [vmem:[#allocation11_spill] sm:$0xff] }
  0xb8   : > { %v3574_v12 = vcombine.high %v1547_v10, %v1548_v3 }
  0xb9   : > { %1810 = vmatpush1.bf16.msra.mxu0 %v3563_v28  ;;  %v1549_v28 = vadd.bf16 %v4391_v30, %v4365_v22  ;;  %v3573_v22 = vcombine.low %v1547_v10, %v1548_v3  ;;  %v3458_v30 = vcombine.high %v4741_v17, %v4744_v16  ;;  %v4797_v3 = vld [vmem:[%s4086_s28 + $0x60] sm:$0xff] }
  0xba   : > { %1811 = vmatprep.subr.bf16.mxu0 %v3566_v29  ;;  %v4749_v29 = vld [vmem:[%s4091_s18 + $0x40] sm:$0xff] }
  0xbb   : > { %v3576_v26 = vcombine.high %v1549_v28, %v1550_v15 }
  0xbc   : > { %1096 = vmatmul.mubr.bf16.gmra.mrb[4].mxu0 %v3451_v50  ;;  %v1552_v50 = vadd.bf16 %v4436_v59, %v4426_v53  ;;  %v4772_v53 = vld [vmem:[%s4086_s28 + $0x58] sm:$0xff]  ;;  %v3457_v59 = vcombine.low %v4741_v17, %v4744_v16 }
  0xbd   : > { %1449 = vmatmul.mubr.bf16.gmra.mrb[4].mxu1 %v3499_v34  ;;  %1812 = vmatpush1.bf16.msra.mxu0 %v3565_v55  ;;  %v3506_v34 = vcombine.high %v4749_v29, %v4752_v13  ;;  %v3575_v55 = vcombine.low %v1549_v28, %v1550_v15  ;;  %v4808_v28 = vld [vmem:[%s4091_s18 + $0x68] sm:$0xff]  ;;  %v3507_v15 = vcombine.low %v4777_v58, %v4780_v35 }
  0xbe   : > { %1813 = vmatprep.subr.bf16.mxu0 %v3568_v56  ;;  %1105 = vmatprep.mubr.bf16.mxu0 %v3454_v57  ;;  %v3578_v56 = vcombine.high %v1551_v31, %v1552_v50  ;;  %v1553_v57 = vadd.bf16 %v4459_v6, %v4449_v4  ;;  %v3577_v4 = vcombine.low %v1551_v31, %v1552_v50  ;;  %v5797_v31 = vld [vmem:[#allocation17_spill] sm:$0xff] }
  0xbf   : > { %1458 = vmatprep.mubr.bf16.mxu1 %v3502_v37  ;;  %v3505_v37 = vcombine.low %v4749_v29, %v4752_v13  ;;  %v3460_v6 = vcombine.high %v4769_v54, %v4772_v53 }
  0xc0   : > { %v3580_v5 = vcombine.high %v1553_v57, %v1554_v52 }
  0xc1   : > { %1814 = vmatpush1.bf16.msra.mxu0 %v3567_v32  ;;  %v1555_v32 = vadd.bf16 %v5789_v11, %v4477_v20  ;;  %v5793_v20 = vld [vmem:[#allocation13_spill] sm:$0xff]  ;;  %v4828_v11 = vld [vmem:[%s4086_s28 + $0x78] sm:$0xff] }
  0xc2   : > { %1815 = vmatprep.subr.bf16.mxu0 %v3570_v42  ;;  %v5790_v42 = vld [vmem:[#allocation9_spill] sm:$0xff] }
  0xc3   : > { %v1556_v63 = vadd.bf16 %v5791_v14, %v5790_v42  ;;  %v4833_v42 = vld [vmem:[%s4091_s18 + $0x70] sm:$0xff]  ;;  %v4836_v14 = vld [vmem:[%s4091_s18 + $0x78] sm:$0xff] }
  0xc4   : > { %1106 = vmatmul.mubr.bf16.gmra.mrb[8].mxu0 %v3453_v2  ;;  %v3508_v2 = vcombine.high %v4777_v58, %v4780_v35 }
  0xc5   : > { %1459 = vmatmul.mubr.bf16.gmra.mrb[8].mxu1 %v3501_v45  ;;  %1816 = vmatpush1.bf16.msra.mxu0 %v3569_v7  ;;  %v3579_v45 = vcombine.low %v1553_v57, %v1554_v52  ;;  %v3582_v7 = vcombine.high %v1555_v32, %v1556_v63  ;;  %v5798_v57 = vld [vmem:[#allocation18_spill] sm:$0xff]  ;;  %v5799_v52 = vld [vmem:[#allocation20_spill] sm:$0xff] }
  0xc6   : > { %1817 = vmatprep.subr.bf16.mxu0 %v3572_v8  ;;  %1115 = vmatprep.mubr.bf16.mxu0 %v3456_v9  ;;  %v1557_v8 = vadd.bf16 %v4515_v61, %v4505_v51  ;;  %v5792_v9 = vld [vmem:[#allocation12_spill] sm:$0xff]  ;;  %v3581_v51 = vcombine.low %v1555_v32, %v1556_v63 }
  0xc7   : > { %1468 = vmatprep.mubr.bf16.mxu1 %v3504_v23  ;;  %v1558_v10 = vadd.bf16 %v5793_v20, %v5792_v9  ;;  %v4800_v23 = vld [vmem:[%s4086_s28 + $0x68] sm:$0xff]  ;;  %v1564_v9 = vadd.bf16 %v4606_v25, %v4596_v27  ;;  %v3512_v20 = vcombine.high %v4833_v42, %v4836_v14  ;;  %v3511_v27 = vcombine.low %v4833_v42, %v4836_v14 }
  0xc8   : > { %v3461_v32 = vcombine.low %v4797_v3, %v4800_v23 }
  0xc9   : > { %1818 = vmatpush1.bf16.msra.mxu0 %v3571_v24  ;;  %v3459_v24 = vcombine.low %v4769_v54, %v4772_v53  ;;  %v3584_v61 = vcombine.high %v1557_v8, %v1558_v10 }
  0xca   : > { %1819 = vmatprep.subr.bf16.mxu0 %v3574_v12  ;;  %v4805_v12 = vld [vmem:[%s4091_s18 + $0x60] sm:$0xff] }
  0xcb   : > { %v3509_v63 = vcombine.low %v4805_v12, %v4808_v28 }
  0xcc   : > { %1116 = vmatmul.mubr.bf16.gmra.mrb[12].mxu0 %v3455_v18  ;;  %v3462_v18 = vcombine.high %v4797_v3, %v4800_v23 }
  0xcd   : > { %1469 = vmatmul.mubr.bf16.gmra.mrb[12].mxu1 %v3503_v46  ;;  %1820 = vmatpush1.bf16.msra.mxu0 %v3573_v22  ;;  %v5794_v46 = vld [vmem:[#allocation14_spill] sm:$0xff]  ;;  %v5795_v22 = vld [vmem:[#allocation16_spill] sm:$0xff] }
  0xce   : > { %1821 = vmatprep.subr.bf16.mxu0 %v3576_v26  ;;  %1125 = vmatprep.mubr.bf16.mxu0 %v3458_v30  ;;  %v1559_v26 = vadd.bf16 %v5795_v22, %v5794_v46  ;;  %v5796_v30 = vld [vmem:[#allocation15_spill] sm:$0xff]  ;;  %v5804_v46 = vld [vmem:[#allocation8_spill] sm:$0xff] }
  0xcf   : > { %1478 = vmatprep.mubr.bf16.mxu1 %v3506_v34  ;;  %v1560_v50 = vadd.bf16 %v5797_v31, %v5796_v30  ;;  %v3510_v34 = vcombine.high %v4805_v12, %v4808_v28  ;;  %v1523_v31 = vadd.bf16 %v4693_v62, %v4685_v49  ;;  %v1527_v49 = vadd.bf16 %v4749_v29, %v4741_v17 }
  0xd0   : > { %v1531_v17 = vadd.bf16 %v4805_v12, %v4797_v3  ;;  %v5700_v3 = vmov 0  }
  0xd1   : > { %1822 = vmatpush1.bf16.msra.mxu0 %v3575_v55  ;;  %v3583_v55 = vcombine.low %v1557_v8, %v1558_v10  ;;  %v1563_v8 = vadd.bf16 %v4601_v21, %v4591_v60 }
  0xd2   : > { %1823 = vmatprep.subr.bf16.mxu0 %v3578_v56  ;;  %v3586_v56 = vcombine.high %v1559_v26, %v1560_v50 }
  0xd3   : > { %v3589_v21 = vcombine.low %v1563_v8, %v1564_v9 }
  0xd4   : > { %1126 = vmatmul.mubr.bf16.gmra.mrb[16].mxu0 %v3457_v59  ;;  %v1561_v59 = vadd.bf16 %v5799_v52, %v5798_v57  ;;  %v1952_v57 = vld [vmem:[%s5677_s6] sm:$0x3] }
  0xd5   : > { %1479 = vmatmul.mubr.bf16.gmra.mrb[16].mxu1 %v3505_v37  ;;  %1824 = vmatpush1.bf16.msra.mxu0 %v3577_v4  ;;  %v5800_v37 = vld [vmem:[#allocation19_spill] sm:$0xff]  ;;  %v5801_v4 = vld [vmem:[#allocation21_spill] sm:$0xff] }
  0xd6   : > { %1825 = vmatprep.subr.bf16.mxu0 %v3580_v5  ;;  %1135 = vmatprep.mubr.bf16.mxu0 %v3460_v6  ;;  %v1562_v5 = vadd.bf16 %v5801_v4, %v5800_v37  ;;  %v4825_v6 = vld [vmem:[%s4086_s28 + $0x70] sm:$0xff] }
  0xd7   : > { %1488 = vmatprep.mubr.bf16.mxu1 %v3508_v2  ;;  %v3585_v2 = vcombine.low %v1559_v26, %v1560_v50  ;;  %v3463_v60 = vcombine.low %v4825_v6, %v4828_v11  ;;  %v1526_v50 = vadd.bf16 %v4724_v40, %v4716_v0  ;;  %v1530_v0 = vadd.bf16 %v4780_v35, %v4772_v53 }
  0xd8   : > { %v3587_v10 = vcombine.low %v1561_v59, %v1562_v5  ;;  %v1534_v53 = vadd.bf16 %v4836_v14, %v4828_v11 }
  0xd9   : > { %1826 = vmatpush1.bf16.msra.mxu0 %v3579_v45  ;;  %v3588_v45 = vcombine.high %v1561_v59, %v1562_v5 }
  0xda   : > { %1827 = vmatprep.subr.bf16.mxu0 %v3582_v7  ;;  %v3464_v7 = vcombine.high %v4825_v6, %v4828_v11 }
  0xdc   : > { %1136 = vmatmul.mubr.bf16.gmra.mrb[20].mxu0 %v3459_v24  ;;  %v3590_v24 = vcombine.high %v1563_v8, %v1564_v9 }
  0xdd   : > { %1489 = vmatmul.mubr.bf16.gmra.mrb[20].mxu1 %v3507_v15  ;;  %1828 = vmatpush1.bf16.msra.mxu0 %v3581_v51  ;;  %v1565_v15 = vadd.bf16 %v4629_v36, %v4619_v19  ;;  %v5802_v51 = vld [vmem:[#allocation22_spill] sm:$0xff]  ;;  %v1521_v19 = vadd.bf16 %v4665_v38, %v4657_v41  ;;  %v1522_v36 = vadd.bf16 %v4668_v39, %v4660_v43 }
  0xde   : > { %1829 = vmatprep.subr.bf16.mxu0 %v3584_v61  ;;  %1145 = vmatprep.mubr.bf16.mxu0 %v3462_v18  ;;  %v1566_v61 = vadd.bf16 %v4634_v47, %v5802_v51  ;;  %v5803_v47 = vld [vmem:[#allocation7_spill] sm:$0xff]  ;;  %v1524_v38 = vadd.bf16 %v4696_v33, %v4688_v48  ;;  %v1525_v39 = vadd.bf16 %v4721_v44, %v4713_v1 }
  0xdf   : > { %1498 = vmatprep.mubr.bf16.mxu1 %v3510_v34  ;;  %v5805_v22 = vcombine.high %v5803_v47, %v5804_v46  ;;  %v3548_v26 = vcombine.high %v1521_v19, %v1522_v36  ;;  %v5806_v30 = vcombine.low %v5803_v47, %v5804_v46  ;;  %v3547_v41 = vcombine.low %v1521_v19, %v1522_v36 }
  0xe0   : > { %v3592_v25 = vcombine.high %v1565_v15, %v1566_v61  ;;  %v3591_v18 = vcombine.low %v1565_v15, %v1566_v61  ;;  %v3550_v43 = vcombine.high %v1523_v31, %v1524_v38  ;;  %v3549_v34 = vcombine.low %v1523_v31, %v1524_v38 }
  0xe1   : > { %1830 = vmatpush1.bf16.msra.mxu0 %v3583_v55  ;;  %v3552_v55 = vcombine.high %v1525_v39, %v1526_v50  ;;  %v1528_v48 = vadd.bf16 %v4752_v13, %v4744_v16  ;;  %v3551_v62 = vcombine.low %v1525_v39, %v1526_v50  ;;  %v1529_v1 = vadd.bf16 %v4777_v58, %v4769_v54  ;;  %v4977_v39 = vld [vmem:[%s4103_s26 + $0xc] sm:$0xf] }
  0xe2   : > { %1831 = vmatprep.subr.bf16.mxu0 %v3586_v56  ;;  %v1532_v16 = vadd.bf16 %v4808_v28, %v4800_v23  ;;  %v1533_v54 = vadd.bf16 %v4833_v42, %v4825_v6  ;;  %v1954_v23 = vlaneseq }
  0xe3   : > { %v3554_v33 = vcombine.high %v1527_v49, %v1528_v48  ;;  %v3553_v44 = vcombine.low %v1527_v49, %v1528_v48  ;;  %v3556_v40 = vcombine.high %v1529_v1, %v1530_v0  ;;  %v3555_v29 = vcombine.low %v1529_v1, %v1530_v0 }
  0xe4   : > { %1146 = vmatmul.mubr.bf16.gmra.mrb[24].mxu0 %v3461_v32  ;;  %v3558_v13 = vcombine.high %v1531_v17, %v1532_v16  ;;  %v3557_v58 = vcombine.low %v1531_v17, %v1532_v16  ;;  %v3560_v35 = vcombine.high %v1533_v54, %v1534_v53  ;;  %v3559_v56 = vcombine.low %v1533_v54, %v1534_v53 }
  0xe5   : > { %1499 = vmatmul.mubr.bf16.gmra.mrb[24].mxu1 %v3509_v63  ;;  %1832 = vmatpush1.bf16.msra.mxu0 %v3585_v2  ;;  %v4892_v12 = vshrl.u32 %v1954_v23, 7 }
  0xe6   : > { %1833 = vmatprep.subr.bf16.mxu0 %v3588_v45  ;;  %1155 = vmatprep.mubr.bf16.mxu0 %v3464_v7 }
  0xe7   : > { %1508 = vmatprep.mubr.bf16.mxu1 %v3512_v20  ;;  %v5703_v28 = vsub.s32 0, %v4892_v12  ;;  %v5702_v52 = vsub.s32 1, %v4892_v12 }
  0xe9   : > { %1834 = vmatpush1.bf16.msra.mxu0 %v3587_v10  ;;  %v4909_v6 = vrot.slane %v1952_v57, %v5703_v28  ;;  %v4919_v14 = vrot.slane %v1952_v57, %v5702_v52 }
  0xea   : > { %1835 = vmatprep.subr.bf16.mxu0 %v3590_v24 }
  0xec   : > { %1156 = vmatmul.mubr.bf16.gmra.mrb[28].mxu0 %v3463_v60 }
  0xed   : > { %1509 = vmatmul.mubr.bf16.gmra.mrb[28].mxu1 %v3511_v27  ;;  %1836 = vmatpush1.bf16.msra.mxu0 %v3589_v21 }
  0xee   : > { %1837 = vmatprep.subr.bf16.mxu0 %v3592_v25  ;;  %1839 = vmatprep.mubr.bf16.mxu0 %v5805_v22 }
  0xef   : > { %2248 = vmatprep.mubr.bf16.mxu1 %v5700_v3 }
  0xf1   : > { %1838 = vmatpush1.bf16.msra.mxu0 %v3591_v18 }
  0xf4   : > { %1840 = vmatmul.mubr.bf16.vlgmr.msra.gmra.mrb[32].mxu0 %v5806_v30  ;;  %v4967_v30 = vld [vmem:[%s4105_s27 + $0xc] sm:$0xf] }
  0xf5   : > { %1849 = vmatprep.mubr.bf16.mxu0 %v3548_v26  ;;  %v4964_v26 = vld [vmem:[%s4105_s27 + $0x8] sm:$0xf]  ;;  %5808 = vst [vmem:[#allocation9_spill] sm:$0xff] %v4967_v30  ;;  %v2493_v49 = vadd.bf16 %v4967_v30, %v4977_v39 }
  0xf6   : > { %5807 = vst [vmem:[#allocation10_spill] sm:$0xff] %v4964_v26 }
  0xfc   : > { %1850 = vmatmul.mubr.bf16.gmra.mrb[36].mxu0 %v3547_v41 }
  0xfd   : > { %1859 = vmatprep.mubr.bf16.mxu0 %v3550_v43  ;;  %v4974_v43 = vld [vmem:[%s4103_s26 + $0x8] sm:$0xf] }
 0x104   : > { %1860 = vmatmul.mubr.bf16.gmra.mrb[40].mxu0 %v3549_v34 }
 0x105   : > { %1869 = vmatprep.mubr.bf16.mxu0 %v3552_v55  ;;  %v2492_v55 = vadd.bf16 %v4964_v26, %v4974_v43 }
 0x10c   : > { %1870 = vmatmul.mubr.bf16.gmra.mrb[44].mxu0 %v3551_v62 }
 0x10d   : > { %1879 = vmatprep.mubr.bf16.mxu0 %v3554_v33 }
 0x114   : > { %1880 = vmatmul.mubr.bf16.gmra.mrb[48].mxu0 %v3553_v44  ;;  %v4995_v44 = vcombine.low %v2492_v55, %v2493_v49 }
 0x115   : > { %1889 = vmatprep.mubr.bf16.mxu0 %v3556_v40 }
 0x116   : > { %5809 = vst [vmem:[#allocation11_spill] sm:$0xff] %v4995_v44 }
 0x11c   : > { %1890 = vmatmul.mubr.bf16.gmra.mrb[52].mxu0 %v3555_v29 }
 0x11d   : > { %1899 = vmatprep.mubr.bf16.mxu0 %v3558_v13 }
 0x124   : > { %1900 = vmatmul.mubr.bf16.gmra.mrb[56].mxu0 %v3557_v58 }
 0x125   : > { %1909 = vmatprep.mubr.bf16.mxu0 %v3560_v35  ;;  %v5016_v35 = vld [vmem:[%s4105_s27 + $0x10] sm:$0xf] }
 0x126   : > { %5810 = vst [vmem:[#allocation12_spill] sm:$0xff] %v5016_v35 }
 0x12c   : > { %1910 = vmatmul.mubr.bf16.gmra.mrb[60].mxu0 %v3559_v56  ;;  %v5019_v56 = vld [vmem:[%s4105_s27 + $0x14] sm:$0xf] }
 0x12d   : > { %2409 = vmatprep.mubr.bf16.mxu0 %v5700_v3  ;;  %5811 = vst [vmem:[#allocation13_spill] sm:$0xff] %v5019_v56 }
 0x187   : > { %v4899_v59 = vpop.f32.mrb[0].mxu0 }
 0x188   : > { %v4901_v37 = vpop.f32.mrb[0].mxu1  ;;  %v4903_v4 = vpop.f32.mrb[1].mxu0 }
 0x189   : > { %v1920_v5 = vsub.f32 %v4899_v59, %v4901_v37  ;;  %v4911_v11 = vpop.f32.mrb[1].mxu1  ;;  %v4913_v32 = vpop.f32.mrb[2].mxu0 }
 0x18a   : > { %v1921_v42 = vsub.f32 %v4903_v4, %v4911_v11  ;;  %v4921_v63 = vpop.f32.mrb[2].mxu1  ;;  %v4923_v2 = vpop.f32.mrb[3].mxu0 }
 0x18b   : > { %v1922_v45 = vsub.f32 %v4913_v32, %v4921_v63  ;;  %v4927_v7 = vpop.f32.mrb[3].mxu1  ;;  %v1964_v9 = vadd.f32 %v4909_v6, %v1920_v5 }
 0x18c   : > { %v1923_v8 = vsub.f32 %v4923_v2, %v4927_v7  ;;  %v1965_v10 = vadd.f32 %v4919_v14, %v1921_v42  ;;  %v5026_v42 = vld [vmem:[%s4103_s26 + $0x10] sm:$0xf] }
 0x18d   : > { %v1966_v20 = vadd.f32 %v4909_v6, %v1922_v45  ;;  %v5029_v45 = vld [vmem:[%s4103_s26 + $0x14] sm:$0xf] }
 0x18e   : > { %v1967_v24 = vadd.f32 %v4919_v14, %v1923_v8 }
 0x18f   : > { %v4935_v15 = vpack.c.bf16 %v1966_v20, %v1964_v9  ;;  %v4937_v51 = vpop.f32.mrb[4].mxu0  ;;  %v2494_v20 = vadd.bf16 %v5016_v35, %v5026_v42 }
 0x190   : > { %v4939_v61 = vpop.f32.mrb[4].mxu1  ;;  %v4941_v60 = vpop.f32.mrb[5].mxu0  ;;  %v4943_v27 = vpack.c.bf16 %v1967_v24, %v1965_v10  ;;  %v2495_v10 = vadd.bf16 %v5019_v56, %v5029_v45 }
 0x191   : > { %v1924_v21 = vsub.f32 %v4937_v51, %v4939_v61  ;;  %v4947_v25 = vpop.f32.mrb[5].mxu1  ;;  %v4949_v18 = vpop.f32.mrb[6].mxu0 }
 0x192   : > { %v1925_v19 = vsub.f32 %v4941_v60, %v4947_v25  ;;  %v4953_v36 = vpop.f32.mrb[6].mxu1  ;;  %2216 = vmatprep.subr.bf16.mxu1 %v4943_v27  ;;  %v4956_v47 = vpop.f32.mrb[7].mxu0 }
 0x193   : > { %v1926_v46 = vsub.f32 %v4949_v18, %v4953_v36  ;;  %v4960_v22 = vpop.f32.mrb[7].mxu1  ;;  %2217 = vmatpush1.bf16.msra.mxu1 %v4935_v15  ;;  %v1968_v38 = vadd.f32 %v4909_v6, %v1924_v21 }
 0x194   : > { %v1927_v31 = vsub.f32 %v4956_v47, %v4960_v22  ;;  %v1969_v50 = vadd.f32 %v4919_v14, %v1925_v19 }
 0x195   : > { %v1970_v41 = vadd.f32 %v4909_v6, %v1926_v46 }
 0x196   : > { %v1971_v34 = vadd.f32 %v4919_v14, %v1927_v31 }
 0x197   : > { %v4985_v48 = vpack.c.bf16 %v1970_v41, %v1968_v38  ;;  %v4987_v62 = vpop.f32.mrb[8].mxu0  ;;  %v5047_v38 = vcombine.low %v2494_v20, %v2495_v10  ;;  %v5078_v20 = vld [vmem:[%s4103_s26 + $0x18] sm:$0xf]  ;;  %v5081_v10 = vld [vmem:[%s4103_s26 + $0x1c] sm:$0xf] }
 0x198   : > { %v4989_v33 = vpop.f32.mrb[8].mxu1  ;;  %v4991_v1 = vpop.f32.mrb[9].mxu0  ;;  %v4993_v0 = vpack.c.bf16 %v1971_v34, %v1969_v50 }
 0x199   : > { %v1928_v40 = vsub.f32 %v4987_v62, %v4989_v33  ;;  %v4999_v17 = vpop.f32.mrb[9].mxu1  ;;  %v5001_v16 = vpop.f32.mrb[10].mxu0  ;;  %5812 = vst [vmem:[#allocation14_spill] sm:$0xff] %v5047_v38 }
 0x19a   : > { %v1929_v29 = vsub.f32 %v4991_v1, %v4999_v17  ;;  %v5005_v13 = vpop.f32.mrb[10].mxu1  ;;  %2218 = vmatprep.subr.bf16.mxu1 %v4993_v0  ;;  %v5008_v54 = vpop.f32.mrb[11].mxu0 }
 0x19b   : > { %v1930_v53 = vsub.f32 %v5001_v16, %v5005_v13  ;;  %v5012_v58 = vpop.f32.mrb[11].mxu1  ;;  %2219 = vmatpush1.bf16.msra.mxu1 %v4985_v48  ;;  %v1972_v57 = vadd.f32 %v4909_v6, %v1928_v40 }
 0x19c   : > { %v1931_v23 = vsub.f32 %v5008_v54, %v5012_v58  ;;  %v1973_v8 = vadd.f32 %v4919_v14, %v1929_v29 }
 0x19d   : > { %v1974_v5 = vadd.f32 %v4909_v6, %v1930_v53 }
 0x19e   : > { %v1975_v9 = vadd.f32 %v4919_v14, %v1931_v23  ;;  %v5068_v23 = vld [vmem:[%s4105_s27 + $0x18] sm:$0xf] }
 0x19f   : > { %v5037_v24 = vpack.c.bf16 %v1974_v5, %v1972_v57  ;;  %v5039_v21 = vpop.f32.mrb[12].mxu0  ;;  %5814 = vst [vmem:[#allocation15_spill] sm:$0xff] %v5068_v23  ;;  %v5071_v57 = vld [vmem:[%s4105_s27 + $0x1c] sm:$0xf]  ;;  %v2496_v28 = vadd.bf16 %v5068_v23, %v5078_v20 }
 0x1a0   : > { %v5041_v19 = vpop.f32.mrb[12].mxu1  ;;  %v5043_v46 = vpop.f32.mrb[13].mxu0  ;;  %v5045_v31 = vpack.c.bf16 %v1975_v9, %v1973_v8  ;;  %5815 = vst [vmem:[#allocation17_spill] sm:$0xff] %v5071_v57  ;;  %v2497_v38 = vadd.bf16 %v5071_v57, %v5081_v10 }
 0x1a1   : > { %v1932_v41 = vsub.f32 %v5039_v21, %v5041_v19  ;;  %v5051_v50 = vpop.f32.mrb[13].mxu1  ;;  %v5053_v34 = vpop.f32.mrb[14].mxu0 }
 0x1a2   : > { %v1933_v55 = vsub.f32 %v5043_v46, %v5051_v50  ;;  %v5057_v49 = vpop.f32.mrb[14].mxu1  ;;  %2220 = vmatprep.subr.bf16.mxu1 %v5045_v31  ;;  %v5060_v40 = vpop.f32.mrb[15].mxu0 }
 0x1a3   : > { %v1934_v29 = vsub.f32 %v5053_v34, %v5057_v49  ;;  %v5064_v53 = vpop.f32.mrb[15].mxu1  ;;  %2221 = vmatpush1.bf16.msra.mxu1 %v5037_v24  ;;  %v1976_v8 = vadd.f32 %v4909_v6, %v1932_v41 }
 0x1a4   : > { %5813 = vst [vmem:[#allocation16_spill] sm:$0xff] %v5064_v53  ;;  %v1935_v5 = vsub.f32 %v5060_v40, %v5064_v53  ;;  %v1977_v3 = vadd.f32 %v4919_v14, %v1933_v55  ;;  %v5099_v55 = vcombine.low %v2496_v28, %v2497_v38  ;;  %v5120_v38 = vld [vmem:[%s4105_s27 + $0x20] sm:$0xf] }
 0x1a5   : > { %v1978_v9 = vadd.f32 %v4909_v6, %v1934_v29  ;;  %5827 = vst [vmem:[#allocation27_spill] sm:$0xff] %v5120_v38 }
 0x1a6   : > { %v1979_v52 = vadd.f32 %v4919_v14, %v1935_v5  ;;  %5821 = vst [vmem:[#allocation7_spill] sm:$0xff] %v5099_v55  ;;  %v5123_v55 = vld [vmem:[%s4105_s27 + $0x24] sm:$0xf] }
 0x1a7   : > { %v5089_v35 = vpack.c.bf16 %v1978_v9, %v1976_v8  ;;  %v5091_v41 = vpop.f32.mrb[16].mxu0  ;;  %5828 = vst [vmem:[#allocation28_spill] sm:$0xff] %v5123_v55 }
 0x1a8   : > { %5817 = vst [vmem:[#allocation20_spill] sm:$0xff] %v5091_v41  ;;  %v5093_v29 = vpop.f32.mrb[16].mxu1  ;;  %v5095_v56 = vpop.f32.mrb[17].mxu0  ;;  %v5097_v44 = vpack.c.bf16 %v1979_v52, %v1977_v3 }
 0x1a9   : > { %5816 = vst [vmem:[#allocation18_spill] sm:$0xff] %v5089_v35  ;;  %5818 = vst [vmem:[#allocation19_spill] sm:$0xff] %v5093_v29  ;;  %v1936_v5 = vsub.f32 %v5091_v41, %v5093_v29  ;;  %v5103_v23 = vpop.f32.mrb[17].mxu1  ;;  %v5105_v8 = vpop.f32.mrb[18].mxu0  ;;  %v5133_v29 = vld [vmem:[%s4103_s26 + $0x24] sm:$0xf] }
 0x1aa   : > { %5819 = vst [vmem:[#allocation21_spill] sm:$0xff] %v5095_v56  ;;  %5820 = vst [vmem:[#allocation22_spill] sm:$0xff] %v5097_v44  ;;  %v1937_v9 = vsub.f32 %v5095_v56, %v5103_v23  ;;  %v5109_v57 = vpop.f32.mrb[18].mxu1  ;;  %2222 = vmatprep.subr.bf16.mxu1 %v5097_v44  ;;  %v5112_v3 = vpop.f32.mrb[19].mxu0  ;;  %v2499_v56 = vadd.bf16 %v5123_v55, %v5133_v29 }
 0x1ab   : > { %5822 = vst [vmem:[#allocation8_spill] sm:$0xff] %v5103_v23  ;;  %5823 = vst [vmem:[#allocation23_spill] sm:$0xff] %v5105_v8  ;;  %v1938_v28 = vsub.f32 %v5105_v8, %v5109_v57  ;;  %v5116_v52 = vpop.f32.mrb[19].mxu1  ;;  %2223 = vmatpush1.bf16.msra.mxu1 %v5089_v35  ;;  %v1980_v30 = vadd.f32 %v4909_v6, %v1936_v5  ;;  %v5130_v23 = vld [vmem:[%s4103_s26 + $0x20] sm:$0xf] }
 0x1ac   : > { %5824 = vst [vmem:[#allocation24_spill] sm:$0xff] %v5109_v57  ;;  %5825 = vst [vmem:[#allocation25_spill] sm:$0xff] %v5112_v3  ;;  %v1939_v26 = vsub.f32 %v5112_v3, %v5116_v52  ;;  %v1981_v57 = vadd.f32 %v4919_v14, %v1937_v9  ;;  %v2498_v35 = vadd.bf16 %v5120_v38, %v5130_v23 }
 0x1ad   : > { %5826 = vst [vmem:[#allocation26_spill] sm:$0xff] %v5116_v52  ;;  %v1982_v44 = vadd.f32 %v4909_v6, %v1938_v28  ;;  %5829 = vst [vmem:[#allocation29_spill] sm:$0xff] %v5130_v23 }
 0x1ae   : > { %5830 = vst [vmem:[#allocation30_spill] sm:$0xff] %v5133_v29  ;;  %v1983_v8 = vadd.f32 %v4919_v14, %v1939_v26  ;;  %v5151_v9 = vcombine.low %v2498_v35, %v2499_v56 }
 0x1af   : > { %v5141_v41 = vpack.c.bf16 %v1982_v44, %v1980_v30  ;;  %v5143_v5 = vpop.f32.mrb[20].mxu0 }
 0x1b0   : > { %5832 = vst [vmem:[#allocation32_spill] sm:$0xff] %v5143_v5  ;;  %v5145_v28 = vpop.f32.mrb[20].mxu1  ;;  %v5147_v52 = vpop.f32.mrb[21].mxu0  ;;  %v5149_v3 = vpack.c.bf16 %v1983_v8, %v1981_v57  ;;  %5836 = vst [vmem:[#allocation36_spill] sm:$0xff] %v5151_v9  ;;  %v5172_v8 = vld [vmem:[%s4105_s27 + $0x28] sm:$0xf] }
 0x1b1   : > { %5831 = vst [vmem:[#allocation31_spill] sm:$0xff] %v5141_v41  ;;  %5833 = vst [vmem:[#allocation33_spill] sm:$0xff] %v5145_v28  ;;  %v1940_v26 = vsub.f32 %v5143_v5, %v5145_v28  ;;  %v5155_v38 = vpop.f32.mrb[21].mxu1  ;;  %v5157_v30 = vpop.f32.mrb[22].mxu0  ;;  %v5175_v9 = vld [vmem:[%s4105_s27 + $0x2c] sm:$0xf] }
 0x1b2   : > { %5834 = vst [vmem:[#allocation34_spill] sm:$0xff] %v5147_v52  ;;  %5835 = vst [vmem:[#allocation35_spill] sm:$0xff] %v5149_v3  ;;  %v1941_v44 = vsub.f32 %v5147_v52, %v5155_v38  ;;  %v5161_v55 = vpop.f32.mrb[22].mxu1  ;;  %2224 = vmatprep.subr.bf16.mxu1 %v5149_v3  ;;  %v5164_v57 = vpop.f32.mrb[23].mxu0  ;;  %v5182_v52 = vld [vmem:[%s4103_s26 + $0x28] sm:$0xf] }
 0x1b3   : > { %5837 = vst [vmem:[#allocation37_spill] sm:$0xff] %v5155_v38  ;;  %5838 = vst [vmem:[#allocation38_spill] sm:$0xff] %v5157_v30  ;;  %v1942_v35 = vsub.f32 %v5157_v30, %v5161_v55  ;;  %v5168_v56 = vpop.f32.mrb[23].mxu1  ;;  %2225 = vmatpush1.bf16.msra.mxu1 %v5141_v41  ;;  %v1984_v28 = vadd.f32 %v4909_v6, %v1940_v26  ;;  %v5185_v5 = vld [vmem:[%s4103_s26 + $0x2c] sm:$0xf]  ;;  %v2500_v41 = vadd.bf16 %v5172_v8, %v5182_v52 }
 0x1b4   : > { %5839 = vst [vmem:[#allocation39_spill] sm:$0xff] %v5161_v55  ;;  %5840 = vst [vmem:[#allocation40_spill] sm:$0xff] %v5164_v57  ;;  %v1943_v38 = vsub.f32 %v5164_v57, %v5168_v56  ;;  %v1985_v55 = vadd.f32 %v4919_v14, %v1941_v44  ;;  %v2501_v23 = vadd.bf16 %v5175_v9, %v5185_v5 }
 0x1b5   : > { %5841 = vst [vmem:[#allocation41_spill] sm:$0xff] %v5168_v56  ;;  %5842 = vst [vmem:[#allocation42_spill] sm:$0xff] %v5172_v8  ;;  %v1986_v3 = vadd.f32 %v4909_v6, %v1942_v35 }
 0x1b6   : > { %5843 = vst [vmem:[#allocation43_spill] sm:$0xff] %v5175_v9  ;;  %5844 = vst [vmem:[#allocation44_spill] sm:$0xff] %v5182_v52  ;;  %v1987_v30 = vadd.f32 %v4919_v14, %v1943_v38  ;;  %v5203_v44 = vcombine.low %v2500_v41, %v2501_v23 }
 0x1b7   : > { %5845 = vst [vmem:[#allocation45_spill] sm:$0xff] %v5185_v5  ;;  %v5193_v29 = vpack.c.bf16 %v1986_v3, %v1984_v28  ;;  %v5195_v26 = vpop.f32.mrb[24].mxu0 }
 0x1b8   : > { %5847 = vst [vmem:[#allocation47_spill] sm:$0xff] %v5195_v26  ;;  %v5197_v35 = vpop.f32.mrb[24].mxu1  ;;  %v5199_v56 = vpop.f32.mrb[25].mxu0  ;;  %v5201_v57 = vpack.c.bf16 %v1987_v30, %v1985_v55  ;;  %5851 = vst [vmem:[#allocation51_spill] sm:$0xff] %v5203_v44  ;;  %v5224_v30 = vld [vmem:[%s4105_s27 + $0x30] sm:$0xf] }
 0x1b9   : > { %5846 = vst [vmem:[#allocation46_spill] sm:$0xff] %v5193_v29  ;;  %5848 = vst [vmem:[#allocation48_spill] sm:$0xff] %v5197_v35  ;;  %v1944_v38 = vsub.f32 %v5195_v26, %v5197_v35  ;;  %v5207_v8 = vpop.f32.mrb[25].mxu1  ;;  %v5209_v3 = vpop.f32.mrb[26].mxu0  ;;  %v5227_v44 = vld [vmem:[%s4105_s27 + $0x34] sm:$0xf] }
 0x1ba   : > { %5849 = vst [vmem:[#allocation49_spill] sm:$0xff] %v5199_v56  ;;  %5850 = vst [vmem:[#allocation50_spill] sm:$0xff] %v5201_v57  ;;  %v1945_v28 = vsub.f32 %v5199_v56, %v5207_v8  ;;  %v5213_v9 = vpop.f32.mrb[26].mxu1  ;;  %2226 = vmatprep.subr.bf16.mxu1 %v5201_v57  ;;  %v5216_v55 = vpop.f32.mrb[27].mxu0  ;;  %v5234_v56 = vld [vmem:[%s4103_s26 + $0x30] sm:$0xf] }
 0x1bb   : > { %5852 = vst [vmem:[#allocation52_spill] sm:$0xff] %v5207_v8  ;;  %5853 = vst [vmem:[#allocation53_spill] sm:$0xff] %v5209_v3  ;;  %v1946_v23 = vsub.f32 %v5209_v3, %v5213_v9  ;;  %v5220_v41 = vpop.f32.mrb[27].mxu1  ;;  %2227 = vmatpush1.bf16.msra.mxu1 %v5193_v29  ;;  %v1988_v35 = vadd.f32 %v4909_v6, %v1944_v38  ;;  %v5237_v26 = vld [vmem:[%s4103_s26 + $0x34] sm:$0xf]  ;;  %v2502_v29 = vadd.bf16 %v5224_v30, %v5234_v56 }
 0x1bc   : > { %5854 = vst [vmem:[#allocation54_spill] sm:$0xff] %v5213_v9  ;;  %5855 = vst [vmem:[#allocation55_spill] sm:$0xff] %v5216_v55  ;;  %v1947_v8 = vsub.f32 %v5216_v55, %v5220_v41  ;;  %v1989_v9 = vadd.f32 %v4919_v14, %v1945_v28  ;;  %v2503_v52 = vadd.bf16 %v5227_v44, %v5237_v26 }
 0x1bd   : > { %5856 = vst [vmem:[#allocation56_spill] sm:$0xff] %v5220_v41  ;;  %5857 = vst [vmem:[#allocation57_spill] sm:$0xff] %v5224_v30  ;;  %v1990_v57 = vadd.f32 %v4909_v6, %v1946_v23 }
 0x1be   : > { %5858 = vst [vmem:[#allocation58_spill] sm:$0xff] %v5227_v44  ;;  %5859 = vst [vmem:[#allocation59_spill] sm:$0xff] %v5234_v56  ;;  %v1991_v3 = vadd.f32 %v4919_v14, %v1947_v8  ;;  %v5255_v28 = vcombine.low %v2502_v29, %v2503_v52 }
 0x1bf   : > { %5860 = vst [vmem:[#allocation60_spill] sm:$0xff] %v5237_v26  ;;  %v5245_v5 = vpack.c.bf16 %v1990_v57, %v1988_v35  ;;  %v5247_v38 = vpop.f32.mrb[28].mxu0 }
 0x1c0   : > { %5862 = vst [vmem:[#allocation62_spill] sm:$0xff] %v5247_v38  ;;  %v5249_v23 = vpop.f32.mrb[28].mxu1  ;;  %v5251_v41 = vpop.f32.mrb[29].mxu0  ;;  %v5253_v55 = vpack.c.bf16 %v1991_v3, %v1989_v9  ;;  %5866 = vst [vmem:[#allocation66_spill] sm:$0xff] %v5255_v28  ;;  %v5276_v3 = vld [vmem:[%s4105_s27 + $0x38] sm:$0xf] }
 0x1c1   : > { %5861 = vst [vmem:[#allocation61_spill] sm:$0xff] %v5245_v5  ;;  %5863 = vst [vmem:[#allocation63_spill] sm:$0xff] %v5249_v23  ;;  %v1948_v8 = vsub.f32 %v5247_v38, %v5249_v23  ;;  %v5259_v30 = vpop.f32.mrb[29].mxu1  ;;  %v5261_v57 = vpop.f32.mrb[30].mxu0  ;;  %v5279_v28 = vld [vmem:[%s4105_s27 + $0x3c] sm:$0xf] }
 0x1c2   : > { %5864 = vst [vmem:[#allocation64_spill] sm:$0xff] %v5251_v41  ;;  %5865 = vst [vmem:[#allocation65_spill] sm:$0xff] %v5253_v55  ;;  %v1949_v35 = vsub.f32 %v5251_v41, %v5259_v30  ;;  %v5265_v44 = vpop.f32.mrb[30].mxu1  ;;  %2228 = vmatprep.subr.bf16.mxu1 %v5253_v55  ;;  %v5268_v9 = vpop.f32.mrb[31].mxu0  ;;  %v5286_v41 = vld [vmem:[%s4103_s26 + $0x38] sm:$0xf] }
 0x1c3   : > { %5867 = vst [vmem:[#allocation67_spill] sm:$0xff] %v5259_v30  ;;  %5868 = vst [vmem:[#allocation68_spill] sm:$0xff] %v5261_v57  ;;  %v1950_v29 = vsub.f32 %v5261_v57, %v5265_v44  ;;  %v5272_v52 = vpop.f32.mrb[31].mxu1  ;;  %2229 = vmatpush1.bf16.msra.mxu1 %v5245_v5  ;;  %v1992_v55 = vadd.f32 %v4909_v6, %v1948_v8  ;;  %v2060_v38 = vld [vmem:[%s5678_s7] sm:$0x3]  ;;  %v2504_v56 = vadd.bf16 %v5276_v3, %v5286_v41 }
 0x1c4   : > { %5869 = vst [vmem:[#allocation69_spill] sm:$0xff] %v5265_v44  ;;  %5870 = vst [vmem:[#allocation70_spill] sm:$0xff] %v5268_v9  ;;  %v1951_v30 = vsub.f32 %v5268_v9, %v5272_v52  ;;  %v5289_v44 = vld [vmem:[%s4103_s26 + $0x3c] sm:$0xf]  ;;  %v1993_v57 = vadd.f32 %v4919_v14, %v1949_v35  ;;  %v5306_v9 = vld [vmem:[%s4103_s26 + $0x4] sm:$0xf] }
 0x1c5   : > { %5871 = vst [vmem:[#allocation71_spill] sm:$0xff] %v5272_v52  ;;  %5872 = vst [vmem:[#allocation72_spill] sm:$0xff] %v5276_v3  ;;  %v1994_v23 = vadd.f32 %v4909_v6, %v1950_v29  ;;  %v2505_v8 = vadd.bf16 %v5279_v28, %v5289_v44  ;;  %v5303_v29 = vld [vmem:[%s4103_s26] sm:$0xf] }
 0x1c6   : > { %5873 = vst [vmem:[#allocation73_spill] sm:$0xff] %v5279_v28  ;;  %5874 = vst [vmem:[#allocation74_spill] sm:$0xff] %v5286_v41  ;;  %v1995_v5 = vadd.f32 %v4919_v14, %v1951_v30 }
 0x1c7   : > { %5875 = vst [vmem:[#allocation75_spill] sm:$0xff] %v5289_v44  ;;  %v5300_v52 = vpack.c.bf16 %v1994_v23, %v1992_v55  ;;  %v1841_v6 = vpop.f32.mrb[32].mxu0  ;;  %v5311_v26 = vcombine.low %v2504_v56, %v2505_v8  ;;  %v5876_v55 = vsub.s32 0, %v4892_v12  ;;  %v5877_v56 = vsub.s32 1, %v4892_v12 }
 0x1c8   : > { %v1996_v35 = vsub.f32 %v1841_v6, %v4899_v59  ;;  %v1843_v14 = vpop.f32.mrb[33].mxu0  ;;  %v5309_v30 = vpack.c.bf16 %v1995_v5, %v1993_v57  ;;  %v3593_v59 = vcombine.low %v5303_v29, %v5306_v9 }
 0x1c9   : > { %v1997_v53 = vsub.f32 %v1843_v14, %v4903_v4  ;;  %v1845_v3 = vpop.f32.mrb[34].mxu0  ;;  %v5317_v23 = vrot.slane %v2060_v38, %v5876_v55  ;;  %v5326_v4 = vrot.slane %v2060_v38, %v5877_v56 }
 0x1ca   : > { %v2028_v41 = vsub.f32 %v1996_v35, %v4901_v37  ;;  %v1998_v28 = vsub.f32 %v1845_v3, %v4913_v32  ;;  %2230 = vmatprep.subr.bf16.mxu1 %v5309_v30  ;;  %v1847_v44 = vpop.f32.mrb[35].mxu0 }
 0x1cb   : > { %v2029_v5 = vsub.f32 %v1997_v53, %v4911_v11  ;;  %v1999_v37 = vsub.f32 %v1847_v44, %v4923_v2  ;;  %2231 = vmatpush1.bf16.msra.mxu1 %v5300_v52  ;;  %v5878_v53 = vmov 0  }
 0x1cc   : > { %v2030_v57 = vsub.f32 %v1998_v28, %v4921_v63  ;;  %v2072_v3 = vadd.f32 %v5317_v23, %v2028_v41 }
 0x1cd   : > { %v2031_v32 = vsub.f32 %v1999_v37, %v4927_v7  ;;  %v2073_v6 = vadd.f32 %v5326_v4, %v2029_v5 }
 0x1ce   : > { %v2074_v8 = vadd.f32 %v5317_v23, %v2030_v57  ;;  %2249 = vmatmul.mubr.bf16.vlgmr.msra.gmra.mrb[32].mxu1 %v3593_v59 }
 0x1cf   : > { %v2075_v11 = vadd.f32 %v5326_v4, %v2031_v32  ;;  %v1851_v12 = vpop.f32.mrb[36].mxu0  ;;  %2258 = vmatprep.mubr.bf16.mxu1 %v5878_v53 }
 0x1d0   : > { %v2152_v38 = vpack.c.bf16 %v2074_v8, %v2072_v3  ;;  %v2000_v2 = vsub.f32 %v1851_v12, %v4937_v51  ;;  %v1853_v44 = vpop.f32.mrb[37].mxu0  ;;  %v3594_v51 = vcombine.low %v4974_v43, %v4977_v39 }
 0x1d1   : > { %v2001_v63 = vsub.f32 %v1853_v44, %v4941_v60  ;;  %v1855_v28 = vpop.f32.mrb[38].mxu0  ;;  %v2153_v7 = vpack.c.bf16 %v2075_v11, %v2073_v6 }
 0x1d2   : > { %v2032_v41 = vsub.f32 %v2000_v2, %v4939_v61  ;;  %v2002_v35 = vsub.f32 %v1855_v28, %v4949_v18  ;;  %v1857_v14 = vpop.f32.mrb[39].mxu0  ;;  %v2506_v55 = vadd.bf16 %v2152_v38, %v4935_v15 }
 0x1d3   : > { %v2033_v59 = vsub.f32 %v2001_v63, %v4947_v25  ;;  %v2003_v5 = vsub.f32 %v1857_v14, %v4956_v47  ;;  %2377 = vmatprep.subr.bf16.mxu0 %v2153_v7  ;;  %v2507_v56 = vadd.bf16 %v2153_v7, %v4943_v27 }
 0x1d4   : > { %v2034_v60 = vsub.f32 %v2002_v35, %v4953_v36  ;;  %2378 = vmatpush1.bf16.msra.mxu0 %v2152_v38  ;;  %v2076_v18 = vadd.f32 %v5317_v23, %v2032_v41  ;;  %v3595_v38 = vcombine.low %v5026_v42, %v5029_v45 }
 0x1d5   : > { %v2035_v61 = vsub.f32 %v2003_v5, %v4960_v22  ;;  %2570 = vmatprep.subr.bf16.mxu1 %v2507_v56  ;;  %v2077_v25 = vadd.f32 %v5326_v4, %v2033_v59  ;;  %v5879_v59 = vld [vmem:[#allocation16_spill] sm:$0xff] }
 0x1d6   : > { %v2078_v15 = vadd.f32 %v5317_v23, %v2034_v60  ;;  %2571 = vmatpush1.bf16.msra.mxu1 %v2506_v55  ;;  %v3596_v55 = vcombine.low %v5078_v20, %v5081_v10  ;;  %v5880_v56 = vld [vmem:[#allocation20_spill] sm:$0xff] }
 0x1d7   : > { %v2079_v47 = vadd.f32 %v5326_v4, %v2035_v61  ;;  %v1861_v37 = vpop.f32.mrb[40].mxu0  ;;  %2259 = vmatmul.mubr.bf16.gmra.mrb[36].mxu1 %v3594_v51 }
 0x1d8   : > { %v2154_v27 = vpack.c.bf16 %v2078_v15, %v2076_v18  ;;  %v2004_v43 = vsub.f32 %v1861_v37, %v4987_v62  ;;  %v1863_v39 = vpop.f32.mrb[41].mxu0  ;;  %2268 = vmatprep.mubr.bf16.mxu1 %v5878_v53  ;;  %v5882_v18 = vld [vmem:[#allocation19_spill] sm:$0xff] }
 0x1d9   : > { %v2005_v36 = vsub.f32 %v1863_v39, %v4991_v1  ;;  %v1865_v22 = vpop.f32.mrb[42].mxu0  ;;  %v2155_v57 = vpack.c.bf16 %v2079_v47, %v2077_v25  ;;  %v5883_v25 = vld [vmem:[#allocation23_spill] sm:$0xff]  ;;  %v5885_v39 = vld [vmem:[#allocation8_spill] sm:$0xff] }
 0x1da   : > { %v2036_v32 = vsub.f32 %v2004_v43, %v4989_v33  ;;  %v2006_v3 = vsub.f32 %v1865_v22, %v5001_v16  ;;  %v1867_v8 = vpop.f32.mrb[43].mxu0  ;;  %v2508_v6 = vadd.bf16 %v2154_v27, %v4985_v48  ;;  %v5886_v22 = vld [vmem:[#allocation25_spill] sm:$0xff] }
 0x1db   : > { %v2037_v11 = vsub.f32 %v2005_v36, %v4999_v17  ;;  %v2007_v12 = vsub.f32 %v1867_v8, %v5008_v54  ;;  %2379 = vmatprep.subr.bf16.mxu0 %v2155_v57  ;;  %v2509_v62 = vadd.bf16 %v2155_v57, %v4993_v0  ;;  %v5888_v8 = vld [vmem:[#allocation30_spill] sm:$0xff] }
 0x1dc   : > { %v2038_v1 = vsub.f32 %v2006_v3, %v5005_v13  ;;  %2380 = vmatpush1.bf16.msra.mxu0 %v2154_v27  ;;  %v2080_v16 = vadd.f32 %v5317_v23, %v2036_v32  ;;  %v5884_v27 = vld [vmem:[#allocation18_spill] sm:$0xff] }
 0x1dd   : > { %v2039_v33 = vsub.f32 %v2007_v12, %v5012_v58  ;;  %2572 = vmatprep.subr.bf16.mxu1 %v2509_v62  ;;  %v2081_v17 = vadd.f32 %v5326_v4, %v2037_v11  ;;  %v5887_v32 = vld [vmem:[#allocation22_spill] sm:$0xff]  ;;  %v5890_v12 = vld [vmem:[#allocation24_spill] sm:$0xff] }
 0x1de   : > { %v2082_v48 = vadd.f32 %v5317_v23, %v2038_v1  ;;  %2573 = vmatpush1.bf16.msra.mxu1 %v2508_v6  ;;  %v5889_v6 = vld [vmem:[#allocation29_spill] sm:$0xff] }
 0x1df   : > { %v2083_v54 = vadd.f32 %v5326_v4, %v2039_v33  ;;  %v1871_v2 = vpop.f32.mrb[44].mxu0  ;;  %2269 = vmatmul.mubr.bf16.gmra.mrb[40].mxu1 %v3595_v38  ;;  %v3597_v11 = vcombine.low %v5889_v6, %v5888_v8  ;;  %v5891_v38 = vld [vmem:[#allocation26_spill] sm:$0xff] }
 0x1e0   : > { %v2156_v0 = vpack.c.bf16 %v2082_v48, %v2080_v16  ;;  %v2008_v42 = vsub.f32 %v1871_v2, %v5039_v21  ;;  %v1873_v45 = vpop.f32.mrb[45].mxu0  ;;  %2278 = vmatprep.mubr.bf16.mxu1 %v5878_v53 }
 0x1e1   : > { %v2009_v13 = vsub.f32 %v1873_v45, %v5043_v46  ;;  %v1875_v58 = vpop.f32.mrb[46].mxu0  ;;  %v2157_v44 = vpack.c.bf16 %v2083_v54, %v2081_v17 }
 0x1e2   : > { %v2040_v63 = vsub.f32 %v2008_v42, %v5041_v19  ;;  %v2010_v28 = vsub.f32 %v1875_v58, %v5053_v34  ;;  %v1877_v7 = vpop.f32.mrb[47].mxu0  ;;  %v2510_v41 = vadd.bf16 %v2156_v0, %v5037_v24 }
 0x1e3   : > { %v2041_v35 = vsub.f32 %v2009_v13, %v5051_v50  ;;  %v2011_v14 = vsub.f32 %v1877_v7, %v5060_v40  ;;  %2381 = vmatprep.subr.bf16.mxu0 %v2157_v44  ;;  %v2511_v21 = vadd.bf16 %v2157_v44, %v5045_v31  ;;  %v5893_v13 = vld [vmem:[#allocation34_spill] sm:$0xff] }
 0x1e4   : > { %v2042_v46 = vsub.f32 %v2010_v28, %v5057_v49  ;;  %2382 = vmatpush1.bf16.msra.mxu0 %v2156_v0  ;;  %v2084_v34 = vadd.f32 %v5317_v23, %v2040_v63  ;;  %v5881_v49 = vld [vmem:[#allocation21_spill] sm:$0xff]  ;;  %v5892_v0 = vld [vmem:[#allocation32_spill] sm:$0xff] }
 0x1e5   : > { %v2043_v19 = vsub.f32 %v2011_v14, %v5879_v59  ;;  %2574 = vmatprep.subr.bf16.mxu1 %v2511_v21  ;;  %v2085_v50 = vadd.f32 %v5326_v4, %v2041_v35  ;;  %v5894_v28 = vld [vmem:[#allocation33_spill] sm:$0xff]  ;;  %v5896_v21 = vld [vmem:[#allocation31_spill] sm:$0xff] }
 0x1e6   : > { %v2086_v24 = vadd.f32 %v5317_v23, %v2042_v46  ;;  %2575 = vmatpush1.bf16.msra.mxu1 %v2510_v41  ;;  %v5895_v41 = vld [vmem:[#allocation38_spill] sm:$0xff]  ;;  %v5897_v46 = vld [vmem:[#allocation37_spill] sm:$0xff] }
 0x1e7   : > { %v2087_v40 = vadd.f32 %v5326_v4, %v2043_v19  ;;  %v1881_v5 = vpop.f32.mrb[48].mxu0  ;;  %2279 = vmatmul.mubr.bf16.gmra.mrb[44].mxu1 %v3596_v55  ;;  %v5898_v19 = vld [vmem:[#allocation40_spill] sm:$0xff] }
 0x1e8   : > { %v2158_v31 = vpack.c.bf16 %v2086_v24, %v2084_v34  ;;  %v2012_v20 = vsub.f32 %v1881_v5, %v5880_v56  ;;  %v1883_v10 = vpop.f32.mrb[49].mxu0  ;;  %2288 = vmatprep.mubr.bf16.mxu1 %v5878_v53  ;;  %v5899_v24 = vld [vmem:[#allocation35_spill] sm:$0xff]  ;;  %v5901_v5 = vld [vmem:[#allocation44_spill] sm:$0xff] }
 0x1e9   : > { %v2013_v51 = vsub.f32 %v1883_v10, %v5881_v49  ;;  %v1885_v60 = vpop.f32.mrb[50].mxu0  ;;  %v2159_v61 = vpack.c.bf16 %v2087_v40, %v2085_v50  ;;  %v5900_v40 = vld [vmem:[#allocation45_spill] sm:$0xff]  ;;  %v5902_v56 = vld [vmem:[#allocation39_spill] sm:$0xff] }
 0x1ea   : > { %v2044_v15 = vsub.f32 %v2012_v20, %v5882_v18  ;;  %v2014_v47 = vsub.f32 %v1885_v60, %v5883_v25  ;;  %v1887_v37 = vpop.f32.mrb[51].mxu0  ;;  %v2512_v43 = vadd.bf16 %v2158_v31, %v5884_v27  ;;  %v5903_v10 = vld [vmem:[#allocation41_spill] sm:$0xff] }
 0x1eb   : > { %v2045_v36 = vsub.f32 %v2013_v51, %v5885_v39  ;;  %v2015_v57 = vsub.f32 %v1887_v37, %v5886_v22  ;;  %2383 = vmatprep.subr.bf16.mxu0 %v2159_v61  ;;  %v2513_v3 = vadd.bf16 %v2159_v61, %v5887_v32 }
 0x1ec   : > { %v2046_v62 = vsub.f32 %v2014_v47, %v5890_v12  ;;  %2384 = vmatpush1.bf16.msra.mxu0 %v2158_v31  ;;  %v2088_v33 = vadd.f32 %v5317_v23, %v2044_v15  ;;  %v3598_v31 = vcombine.low %v5901_v5, %v5900_v40  ;;  %v5904_v47 = vld [vmem:[#allocation47_spill] sm:$0xff] }
 0x1ed   : > { %v2047_v1 = vsub.f32 %v2015_v57, %v5891_v38  ;;  %2576 = vmatprep.subr.bf16.mxu1 %v2513_v3  ;;  %v2089_v48 = vadd.f32 %v5326_v4, %v2045_v36  ;;  %v5906_v57 = vld [vmem:[#allocation48_spill] sm:$0xff]  ;;  %v5907_v3 = vld [vmem:[#allocation53_spill] sm:$0xff] }
 0x1ee   : > { %v2090_v16 = vadd.f32 %v5317_v23, %v2046_v62  ;;  %2577 = vmatpush1.bf16.msra.mxu1 %v2512_v43  ;;  %v5905_v43 = vld [vmem:[#allocation49_spill] sm:$0xff]  ;;  %v5909_v62 = vld [vmem:[#allocation52_spill] sm:$0xff] }
 0x1ef   : > { %v2091_v17 = vadd.f32 %v5326_v4, %v2047_v1  ;;  %v1891_v54 = vpop.f32.mrb[52].mxu0  ;;  %2289 = vmatmul.mubr.bf16.gmra.mrb[48].mxu1 %v3597_v11  ;;  %v5908_v11 = vld [vmem:[#allocation46_spill] sm:$0xff]  ;;  %v5910_v1 = vld [vmem:[#allocation55_spill] sm:$0xff] }
 0x1f0   : > { %v2160_v2 = vpack.c.bf16 %v2090_v16, %v2088_v33  ;;  %v2016_v42 = vsub.f32 %v1891_v54, %v5892_v0  ;;  %v1893_v45 = vpop.f32.mrb[53].mxu0  ;;  %2298 = vmatprep.mubr.bf16.mxu1 %v5878_v53  ;;  %v5911_v16 = vld [vmem:[#allocation50_spill] sm:$0xff]  ;;  %v5913_v54 = vld [vmem:[#allocation59_spill] sm:$0xff] }
 0x1f1   : > { %v2017_v58 = vsub.f32 %v1893_v45, %v5893_v13  ;;  %v1895_v44 = vpop.f32.mrb[54].mxu0  ;;  %v2161_v63 = vpack.c.bf16 %v2091_v17, %v2089_v48  ;;  %v5912_v17 = vld [vmem:[#allocation60_spill] sm:$0xff]  ;;  %v5914_v0 = vld [vmem:[#allocation54_spill] sm:$0xff] }
 0x1f2   : > { %v2048_v7 = vsub.f32 %v2016_v42, %v5894_v28  ;;  %v2018_v35 = vsub.f32 %v1895_v44, %v5895_v41  ;;  %v1897_v14 = vpop.f32.mrb[55].mxu0  ;;  %v2514_v55 = vadd.bf16 %v2160_v2, %v5896_v21  ;;  %v5915_v45 = vld [vmem:[#allocation56_spill] sm:$0xff] }
 0x1f3   : > { %v2049_v59 = vsub.f32 %v2017_v58, %v5897_v46  ;;  %v2019_v34 = vsub.f32 %v1897_v14, %v5898_v19  ;;  %2385 = vmatprep.subr.bf16.mxu0 %v2161_v63  ;;  %v2515_v50 = vadd.bf16 %v2161_v63, %v5899_v24 }
 0x1f4   : > { %v2050_v20 = vsub.f32 %v2018_v35, %v5902_v56  ;;  %2386 = vmatpush1.bf16.msra.mxu0 %v2160_v2  ;;  %v2092_v51 = vadd.f32 %v5317_v23, %v2048_v7  ;;  %v3599_v2 = vcombine.low %v5913_v54, %v5912_v17  ;;  %v5916_v35 = vld [vmem:[#allocation62_spill] sm:$0xff]  ;;  %v5934_v17 = vld [vmem:[#allocation17_spill] sm:$0xff]  ;;  %v5935_v54 = vld [vmem:[#allocation15_spill] sm:$0xff] }
 0x1f5   : > { %v2051_v49 = vsub.f32 %v2019_v34, %v5903_v10  ;;  %2578 = vmatprep.subr.bf16.mxu1 %v2515_v50  ;;  %v2093_v61 = vadd.f32 %v5326_v4, %v2049_v59  ;;  %v5918_v34 = vld [vmem:[#allocation63_spill] sm:$0xff]  ;;  %v5919_v50 = vld [vmem:[#allocation68_spill] sm:$0xff] }
 0x1f6   : > { %v2094_v60 = vadd.f32 %v5317_v23, %v2050_v20  ;;  %2579 = vmatpush1.bf16.msra.mxu1 %v2514_v55  ;;  %v5917_v55 = vld [vmem:[#allocation64_spill] sm:$0xff]  ;;  %v5921_v20 = vld [vmem:[#allocation67_spill] sm:$0xff] }
 0x1f7   : > { %v2095_v18 = vadd.f32 %v5326_v4, %v2051_v49  ;;  %v1901_v15 = vpop.f32.mrb[56].mxu0  ;;  %2299 = vmatmul.mubr.bf16.gmra.mrb[52].mxu1 %v3598_v31  ;;  %v5920_v31 = vld [vmem:[#allocation61_spill] sm:$0xff]  ;;  %v5922_v49 = vld [vmem:[#allocation70_spill] sm:$0xff] }
 0x1f8   : > { %v2162_v25 = vpack.c.bf16 %v2094_v60, %v2092_v51  ;;  %v2020_v37 = vsub.f32 %v1901_v15, %v5904_v47  ;;  %v1903_v27 = vpop.f32.mrb[57].mxu0  ;;  %2308 = vmatprep.mubr.bf16.mxu1 %v5878_v53  ;;  %v5923_v60 = vld [vmem:[#allocation65_spill] sm:$0xff]  ;;  %v5925_v15 = vld [vmem:[#allocation74_spill] sm:$0xff] }
 0x1f9   : > { %v2021_v39 = vsub.f32 %v1903_v27, %v5905_v43  ;;  %v1905_v36 = vpop.f32.mrb[58].mxu0  ;;  %v2163_v22 = vpack.c.bf16 %v2095_v18, %v2093_v61  ;;  %v5924_v18 = vld [vmem:[#allocation75_spill] sm:$0xff]  ;;  %v5926_v47 = vld [vmem:[#allocation69_spill] sm:$0xff] }
 0x1fa   : > { %v2052_v32 = vsub.f32 %v2020_v37, %v5906_v57  ;;  %v2022_v8 = vsub.f32 %v1905_v36, %v5907_v3  ;;  %v1907_v6 = vpop.f32.mrb[59].mxu0  ;;  %v2516_v12 = vadd.bf16 %v2162_v25, %v5908_v11  ;;  %v5927_v27 = vld [vmem:[#allocation71_spill] sm:$0xff] }
 0x1fb   : > { %v2053_v38 = vsub.f32 %v2021_v39, %v5909_v62  ;;  %v2023_v33 = vsub.f32 %v1907_v6, %v5910_v1  ;;  %2387 = vmatprep.subr.bf16.mxu0 %v2163_v22  ;;  %v2517_v48 = vadd.bf16 %v2163_v22, %v5911_v16  ;;  %v2120_v22 = vld [vmem:[%s4105_s27] sm:$0xf]  ;;  %v2121_v57 = vld [vmem:[%s4105_s27 + $0x4] sm:$0xf] }
 0x1fc   : > { %v2054_v42 = vsub.f32 %v2022_v8, %v5914_v0  ;;  %2388 = vmatpush1.bf16.msra.mxu0 %v2162_v25  ;;  %v2096_v58 = vadd.f32 %v5317_v23, %v2052_v32  ;;  %v3600_v25 = vcombine.low %v5925_v15, %v5924_v18  ;;  %v2490_v11 = vadd.bf16 %v2120_v22, %v5303_v29  ;;  %v5929_v29 = vld [vmem:[#allocation10_spill] sm:$0xff]  ;;  %v5936_v0 = vld [vmem:[#allocation7_spill] sm:$0xff] }
 0x1fd   : > { %v2055_v13 = vsub.f32 %v2023_v33, %v5915_v45  ;;  %2580 = vmatprep.subr.bf16.mxu1 %v2517_v48  ;;  %v2097_v63 = vadd.f32 %v5326_v4, %v2053_v38  ;;  %v3601_v38 = vcombine.low %v2120_v22, %v2121_v57  ;;  %v5933_v48 = vld [vmem:[#allocation14_spill] sm:$0xff]  ;;  %v5938_v45 = vld [vmem:[#allocation27_spill] sm:$0xff] }
 0x1fe   : > { %v2098_v44 = vadd.f32 %v5317_v23, %v2054_v42  ;;  %2581 = vmatpush1.bf16.msra.mxu1 %v2516_v12  ;;  %v2491_v12 = vadd.bf16 %v2121_v57, %v5306_v9  ;;  %v5930_v9 = vld [vmem:[#allocation11_spill] sm:$0xff]  ;;  %v5937_v42 = vld [vmem:[#allocation28_spill] sm:$0xff] }
 0x1ff   : > { %v2099_v28 = vadd.f32 %v5326_v4, %v2055_v13  ;;  %v1911_v7 = vpop.f32.mrb[60].mxu0  ;;  %2309 = vmatmul.mubr.bf16.gmra.mrb[56].mxu1 %v3599_v2  ;;  %v3604_v2 = vcombine.low %v5935_v54, %v5934_v17  ;;  %v3605_v13 = vcombine.low %v5938_v45, %v5937_v42  ;;  %v2686_v17 = vld [vmem:[#allocation2 + $0x18] sm:$0xff] }
 0x200   : > { %v2164_v41 = vpack.c.bf16 %v2098_v44, %v2096_v58  ;;  %v2024_v14 = vsub.f32 %v1911_v7, %v5916_v35  ;;  %v1913_v21 = vpop.f32.mrb[61].mxu0  ;;  %2318 = vmatprep.mubr.bf16.mxu1 %v5878_v53  ;;  %v3609_v1 = vcombine.low %v2490_v11, %v2491_v12  ;;  %v5939_v58 = vld [vmem:[#allocation36_spill] sm:$0xff]  ;;  %v5940_v44 = vld [vmem:[#allocation43_spill] sm:$0xff]  ;;  %v5944_v35 = vld [vmem:[#allocation57_spill] sm:$0xff] }
 0x201   : > { %v2025_v46 = vsub.f32 %v1913_v21, %v5917_v55  ;;  %v1915_v59 = vpop.f32.mrb[62].mxu0  ;;  %v2165_v19 = vpack.c.bf16 %v2099_v28, %v2097_v63  ;;  %v5941_v63 = vld [vmem:[#allocation42_spill] sm:$0xff]  ;;  %v5942_v7 = vld [vmem:[#allocation51_spill] sm:$0xff]  ;;  %v5946_v55 = vld [vmem:[#allocation73_spill] sm:$0xff] }
 0x202   : > { %v2056_v24 = vsub.f32 %v2024_v14, %v5918_v34  ;;  %v2026_v40 = vsub.f32 %v1915_v59, %v5919_v50  ;;  %v1917_v5 = vpop.f32.mrb[63].mxu0  ;;  %v2518_v56 = vadd.bf16 %v2164_v41, %v5920_v31  ;;  %v3606_v28 = vcombine.low %v5941_v63, %v5940_v44  ;;  %v5945_v21 = vld [vmem:[#allocation66_spill] sm:$0xff]  ;;  %v2812_v63 = vld [vmem:[#allocation3 + $0x8] sm:$0xff] }
 0x203   : > { %v2057_v10 = vsub.f32 %v2025_v46, %v5921_v20  ;;  %v2027_v51 = vsub.f32 %v1917_v5, %v5922_v49  ;;  %2389 = vmatprep.subr.bf16.mxu0 %v2165_v19  ;;  %v2519_v61 = vadd.bf16 %v2165_v19, %v5923_v60  ;;  %v5947_v46 = vld [vmem:[#allocation72_spill] sm:$0xff] }
 0x204   : > { %v2058_v37 = vsub.f32 %v2026_v40, %v5926_v47  ;;  %2390 = vmatpush1.bf16.msra.mxu0 %v2164_v41  ;;  %v2100_v39 = vadd.f32 %v5317_v23, %v2056_v24  ;;  %v5943_v41 = vld [vmem:[#allocation58_spill] sm:$0xff]  ;;  %v3608_v59 = vcombine.low %v5947_v46, %v5946_v55 }
 0x205   : > { %v2059_v43 = vsub.f32 %v2027_v51, %v5927_v27  ;;  %2582 = vmatprep.subr.bf16.mxu1 %v2519_v61  ;;  %v2101_v32 = vadd.f32 %v5326_v4, %v2057_v10  ;;  %v3607_v14 = vcombine.low %v5944_v35, %v5943_v41 }
 0x206   : > { %v2102_v36 = vadd.f32 %v5317_v23, %v2058_v37  ;;  %2583 = vmatpush1.bf16.msra.mxu1 %v2518_v56 }
 0x207   : > { %v2103_v3 = vadd.f32 %v5326_v4, %v2059_v43  ;;  %2319 = vmatmul.mubr.bf16.gmra.mrb[60].mxu1 %v3600_v25  ;;  %v5928_v4 = vld [vmem:[#allocation9_spill] sm:$0xff] }
 0x208   : > { %v2166_v8 = vpack.c.bf16 %v2102_v36, %v2100_v39  ;;  %2602 = vmatprep.mubr.bf16.mxu1 %v5878_v53  ;;  %v3602_v33 = vcombine.low %v5929_v29, %v5928_v4 }
 0x209   : > { %v2167_v6 = vpack.c.bf16 %v2103_v3, %v2101_v32 }
 0x20a   : > { %v2520_v62 = vadd.bf16 %v2166_v8, %v5300_v52  ;;  %v5931_v52 = vld [vmem:[#allocation13_spill] sm:$0xff] }
 0x20b   : > { %2391 = vmatprep.subr.bf16.mxu0 %v2167_v6  ;;  %v2521_v23 = vadd.bf16 %v2167_v6, %v5309_v30  ;;  %v5932_v30 = vld [vmem:[#allocation12_spill] sm:$0xff] }
 0x20c   : > { %2392 = vmatpush1.bf16.msra.mxu0 %v2166_v8  ;;  %v3603_v16 = vcombine.low %v5932_v30, %v5931_v52 }
 0x20d   : > { %2584 = vmatprep.subr.bf16.mxu1 %v2521_v23 }
 0x20e   : > { %2585 = vmatpush1.bf16.msra.mxu1 %v2520_v62  ;;  %v2683_v62 = vld [vmem:[#allocation2] sm:$0xff] }
 0x20f   : > { %2410 = vmatmul.mubr.bf16.vlgmr.msra.gmra.mrb[64].mxu0 %v3601_v38 }
 0x210   : > { %2419 = vmatprep.mubr.bf16.mxu0 %v5878_v53 }
 0x211   : > { %2603 = vmatmul.mubr.bf16.vlgmr.msra.gmra.mrb[64].mxu1 %v3609_v1  ;;  %v2684_v1 = vld [vmem:[#allocation2 + $0x8] sm:$0xff] }
 0x212   : > { %2612 = vmatprep.mubr.bf16.mxu1 %v5878_v53 }
 0x217   : > { %2420 = vmatmul.mubr.bf16.gmra.mrb[68].mxu0 %v3602_v33  ;;  %v2685_v33 = vld [vmem:[#allocation2 + $0x10] sm:$0xff] }
 0x218   : > { %2429 = vmatprep.mubr.bf16.mxu0 %v5878_v53 }
 0x219   : > { %2613 = vmatmul.mubr.bf16.gmra.mrb[68].mxu1 %v5930_v9 }
 0x21a   : > { %2622 = vmatprep.mubr.bf16.mxu1 %v5878_v53 }
 0x21f   : > { %2430 = vmatmul.mubr.bf16.gmra.mrb[72].mxu0 %v3603_v16 }
 0x220   : > { %2439 = vmatprep.mubr.bf16.mxu0 %v5878_v53 }
 0x221   : > { %2623 = vmatmul.mubr.bf16.gmra.mrb[72].mxu1 %v5933_v48 }
 0x222   : > { %2632 = vmatprep.mubr.bf16.mxu1 %v5878_v53 }
 0x227   : > { %2440 = vmatmul.mubr.bf16.gmra.mrb[76].mxu0 %v3604_v2 }
 0x228   : > { %2449 = vmatprep.mubr.bf16.mxu0 %v5878_v53 }
 0x229   : > { %2633 = vmatmul.mubr.bf16.gmra.mrb[76].mxu1 %v5936_v0  ;;  %v2811_v0 = vld [vmem:[#allocation3] sm:$0xff] }
 0x22a   : > { %2642 = vmatprep.mubr.bf16.mxu1 %v5878_v53 }
 0x22f   : > { %2450 = vmatmul.mubr.bf16.gmra.mrb[80].mxu0 %v3605_v13 }
 0x230   : > { %2459 = vmatprep.mubr.bf16.mxu0 %v5878_v53 }
 0x231   : > { %2643 = vmatmul.mubr.bf16.gmra.mrb[80].mxu1 %v5939_v58 }
 0x232   : > { %2652 = vmatprep.mubr.bf16.mxu1 %v5878_v53 }
 0x237   : > { %2460 = vmatmul.mubr.bf16.gmra.mrb[84].mxu0 %v3606_v28 }
 0x238   : > { %2469 = vmatprep.mubr.bf16.mxu0 %v5878_v53 }
 0x239   : > { %2653 = vmatmul.mubr.bf16.gmra.mrb[84].mxu1 %v5942_v7 }
 0x23a   : > { %2662 = vmatprep.mubr.bf16.mxu1 %v5878_v53 }
 0x23f   : > { %2470 = vmatmul.mubr.bf16.gmra.mrb[88].mxu0 %v3607_v14  ;;  %v2813_v14 = vld [vmem:[#allocation3 + $0x10] sm:$0xff] }
 0x240   : > { %2479 = vmatprep.mubr.bf16.mxu0 %v5878_v53 }
 0x241   : > { %2663 = vmatmul.mubr.bf16.gmra.mrb[88].mxu1 %v5945_v21 }
 0x242   : > { %2672 = vmatprep.mubr.bf16.mxu1 %v5878_v53 }
 0x247   : > { %2480 = vmatmul.mubr.bf16.gmra.mrb[92].mxu0 %v3608_v59  ;;  %v2814_v59 = vld [vmem:[#allocation3 + $0x18] sm:$0xff] }
 0x249   : > { %2673 = vmatmul.mubr.bf16.gmra.mrb[92].mxu1 %v5311_v26 }
 0x2a1   : > { %v2250_v19 = vpop.f32.mrb[32].mxu1 }
 0x2a2   : > { %v2252_v34 = vpop.f32.mrb[33].mxu1 }
 0x2a3   : > { %v5497_v24 = vpop.f32.mrb[34].mxu1 }
 0x2a4   : > { %v5499_v50 = vpop.f32.mrb[35].mxu1 }
 0x2aa   : > { %v5501_v40 = vpop.f32.mrb[36].mxu1 }
 0x2ab   : > { %v5503_v5 = vpop.f32.mrb[37].mxu1 }
 0x2ac   : > { %v5505_v31 = vpop.f32.mrb[38].mxu1 }
 0x2ad   : > { %v5507_v56 = vpop.f32.mrb[39].mxu1 }
 0x2b2   : > { %v5509_v53 = vpop.f32.mrb[40].mxu1 }
 0x2b3   : > { %v5511_v20 = vpop.f32.mrb[41].mxu1 }
 0x2b4   : > { %v5513_v10 = vpop.f32.mrb[42].mxu1 }
 0x2b5   : > { %v5515_v26 = vpop.f32.mrb[43].mxu1 }
 0x2ba   : > { %v5517_v49 = vpop.f32.mrb[44].mxu1 }
 0x2bb   : > { %v5519_v51 = vpop.f32.mrb[45].mxu1 }
 0x2bc   : > { %v5521_v60 = vpop.f32.mrb[46].mxu1 }
 0x2bd   : > { %v5523_v61 = vpop.f32.mrb[47].mxu1 }
 0x2c2   : > { %v5525_v18 = vpop.f32.mrb[48].mxu1 }
 0x2c3   : > { %v5527_v15 = vpop.f32.mrb[49].mxu1 }
 0x2c4   : > { %v5529_v25 = vpop.f32.mrb[50].mxu1 }
 0x2c5   : > { %v5531_v47 = vpop.f32.mrb[51].mxu1 }
 0x2ca   : > { %v5533_v37 = vpop.f32.mrb[52].mxu1 }
 0x2cb   : > { %v5535_v27 = vpop.f32.mrb[53].mxu1 }
 0x2cc   : > { %v5537_v43 = vpop.f32.mrb[54].mxu1 }
 0x2cd   : > { %v5539_v39 = vpop.f32.mrb[55].mxu1 }
 0x2d2   : > { %v5541_v36 = vpop.f32.mrb[56].mxu1 }
 0x2d3   : > { %v5543_v22 = vpop.f32.mrb[57].mxu1 }
 0x2d4   : > { %v5545_v57 = vpop.f32.mrb[58].mxu1 }
 0x2d5   : > { %v5547_v32 = vpop.f32.mrb[59].mxu1 }
 0x2da   : > { %v5549_v3 = vpop.f32.mrb[60].mxu1 }
 0x2db   : > { %v5551_v8 = vpop.f32.mrb[61].mxu1 }
 0x2dc   : > { %v5553_v6 = vpop.f32.mrb[62].mxu1 }
 0x2dd   : > { %v5555_v11 = vpop.f32.mrb[63].mxu1 }
 0x2e2   : > { %v2411_v12 = vpop.f32.mrb[64].mxu0 }
 0x2e3   : > { %v2715_v23 = vsub.f32 %v2250_v19, %v2411_v12  ;;  %v2413_v38 = vpop.f32.mrb[65].mxu0 }
 0x2e4   : > { %v2716_v4 = vsub.f32 %v2252_v34, %v2413_v38  ;;  %v2415_v29 = vpop.f32.mrb[66].mxu0  ;;  %v2604_v9 = vpop.f32.mrb[64].mxu1 }
 0x2e5   : > { %v2747_v52 = vadd.f32 %v2715_v23, %v2683_v62  ;;  %v2717_v30 = vsub.f32 %v5497_v24, %v2415_v29  ;;  %v2843_v16 = vsub.f32 %v2604_v9, %v2250_v19  ;;  %v2417_v48 = vpop.f32.mrb[67].mxu0  ;;  %v2606_v54 = vpop.f32.mrb[65].mxu1  ;;  %v2687_v23 = vld [vmem:[#allocation2 + $0x20] sm:$0xff]  ;;  %v2689_v9 = vld [vmem:[#allocation2 + $0x30] sm:$0xff] }
 0x2e6   : > { %v2748_v2 = vadd.f32 %v2716_v4, %v2684_v1  ;;  %v2718_v42 = vsub.f32 %v5499_v50, %v2417_v48  ;;  %v2844_v45 = vsub.f32 %v2606_v54, %v2252_v34  ;;  %v2608_v13 = vpop.f32.mrb[66].mxu1  ;;  %v2688_v4 = vld [vmem:[#allocation2 + $0x28] sm:$0xff] }
 0x2e7   : > { %2779 = vst [vmem:[#allocation2] sm:$0xff] %v2747_v52  ;;  %v2749_v58 = vadd.f32 %v2717_v30, %v2685_v33  ;;  %v2875_v44 = vsub.f32 %v2843_v16, %v2411_v12  ;;  %v2845_v28 = vsub.f32 %v2608_v13, %v5497_v24  ;;  %v2610_v7 = vpop.f32.mrb[67].mxu1 }
 0x2e8   : > { %2780 = vst [vmem:[#allocation2 + $0x8] sm:$0xff] %v2748_v2  ;;  %v2750_v41 = vadd.f32 %v2718_v42, %v2686_v17  ;;  %v2876_v35 = vsub.f32 %v2844_v45, %v2413_v38  ;;  %v2846_v21 = vsub.f32 %v2610_v7, %v5499_v50  ;;  %v2690_v17 = vld [vmem:[#allocation2 + $0x38] sm:$0xff] }
 0x2e9   : > { %2781 = vst [vmem:[#allocation2 + $0x10] sm:$0xff] %v2749_v58  ;;  %v2907_v55 = vadd.f32 %v2875_v44, %v2811_v0  ;;  %v2877_v46 = vsub.f32 %v2845_v28, %v2415_v29  ;;  %v2815_v0 = vld [vmem:[#allocation3 + $0x20] sm:$0xff] }
 0x2ea   : > { %2782 = vst [vmem:[#allocation2 + $0x18] sm:$0xff] %v2750_v41  ;;  %v2908_v19 = vadd.f32 %v2876_v35, %v2812_v63  ;;  %v2878_v34 = vsub.f32 %v2846_v21, %v2417_v48  ;;  %v2421_v62 = vpop.f32.mrb[68].mxu0  ;;  %v2816_v63 = vld [vmem:[#allocation3 + $0x28] sm:$0xff]  ;;  %v2817_v35 = vld [vmem:[#allocation3 + $0x30] sm:$0xff] }
 0x2eb   : > { %2939 = vst [vmem:[#allocation3] sm:$0xff] %v2907_v55  ;;  %v2909_v12 = vadd.f32 %v2877_v46, %v2813_v14  ;;  %v2719_v24 = vsub.f32 %v5501_v40, %v2421_v62  ;;  %v2423_v1 = vpop.f32.mrb[69].mxu0  ;;  %v2818_v46 = vld [vmem:[#allocation3 + $0x38] sm:$0xff] }
 0x2ec   : > { %2940 = vst [vmem:[#allocation3 + $0x8] sm:$0xff] %v2908_v19  ;;  %v2910_v38 = vadd.f32 %v2878_v34, %v2814_v59  ;;  %v2720_v33 = vsub.f32 %v5503_v5, %v2423_v1  ;;  %v2425_v50 = vpop.f32.mrb[70].mxu0  ;;  %v2614_v52 = vpop.f32.mrb[68].mxu1  ;;  %v2691_v34 = vld [vmem:[#allocation2 + $0x40] sm:$0xff] }
 0x2ed   : > { %2941 = vst [vmem:[#allocation3 + $0x10] sm:$0xff] %v2909_v12  ;;  %v2751_v29 = vadd.f32 %v2719_v24, %v2687_v23  ;;  %v2721_v30 = vsub.f32 %v5505_v31, %v2425_v50  ;;  %v2847_v16 = vsub.f32 %v2614_v52, %v5501_v40  ;;  %v2427_v48 = vpop.f32.mrb[71].mxu0  ;;  %v2616_v54 = vpop.f32.mrb[69].mxu1  ;;  %v2692_v12 = vld [vmem:[#allocation2 + $0x48] sm:$0xff] }
 0x2ee   : > { %2942 = vst [vmem:[#allocation3 + $0x18] sm:$0xff] %v2910_v38  ;;  %v2752_v2 = vadd.f32 %v2720_v33, %v2688_v4  ;;  %v2722_v42 = vsub.f32 %v5507_v56, %v2427_v48  ;;  %v2848_v45 = vsub.f32 %v2616_v54, %v5503_v5  ;;  %v2618_v13 = vpop.f32.mrb[70].mxu1  ;;  %v2693_v4 = vld [vmem:[#allocation2 + $0x50] sm:$0xff] }
 0x2ef   : > { %2783 = vst [vmem:[#allocation2 + $0x20] sm:$0xff] %v2751_v29  ;;  %v2753_v58 = vadd.f32 %v2721_v30, %v2689_v9  ;;  %v2879_v44 = vsub.f32 %v2847_v16, %v2421_v62  ;;  %v2849_v28 = vsub.f32 %v2618_v13, %v5505_v31  ;;  %v2620_v7 = vpop.f32.mrb[71].mxu1  ;;  %v2694_v29 = vld [vmem:[#allocation2 + $0x58] sm:$0xff] }
 0x2f0   : > { %2784 = vst [vmem:[#allocation2 + $0x28] sm:$0xff] %v2752_v2  ;;  %v2754_v40 = vadd.f32 %v2722_v42, %v2690_v17  ;;  %v2880_v41 = vsub.f32 %v2848_v45, %v2423_v1  ;;  %v2850_v14 = vsub.f32 %v2620_v7, %v5507_v56  ;;  %v2820_v45 = vld [vmem:[#allocation3 + $0x48] sm:$0xff] }
 0x2f1   : > { %2785 = vst [vmem:[#allocation2 + $0x30] sm:$0xff] %v2753_v58  ;;  %v2911_v21 = vadd.f32 %v2879_v44, %v2815_v0  ;;  %v2881_v55 = vsub.f32 %v2849_v28, %v2425_v50 }
 0x2f2   : > { %2786 = vst [vmem:[#allocation2 + $0x38] sm:$0xff] %v2754_v40  ;;  %v2912_v5 = vadd.f32 %v2880_v41, %v2816_v63  ;;  %v2882_v59 = vsub.f32 %v2850_v14, %v2427_v48  ;;  %v2431_v19 = vpop.f32.mrb[72].mxu0  ;;  %v2819_v48 = vld [vmem:[#allocation3 + $0x40] sm:$0xff]  ;;  %v2821_v63 = vld [vmem:[#allocation3 + $0x50] sm:$0xff]  ;;  %v2822_v41 = vld [vmem:[#allocation3 + $0x58] sm:$0xff] }
 0x2f3   : > { %2943 = vst [vmem:[#allocation3 + $0x20] sm:$0xff] %v2911_v21  ;;  %v2913_v62 = vadd.f32 %v2881_v55, %v2817_v35  ;;  %v2723_v31 = vsub.f32 %v5509_v53, %v2431_v19  ;;  %v2433_v23 = vpop.f32.mrb[73].mxu0  ;;  %v2695_v21 = vld [vmem:[#allocation2 + $0x60] sm:$0xff] }
 0x2f4   : > { %2944 = vst [vmem:[#allocation3 + $0x28] sm:$0xff] %v2912_v5  ;;  %v2914_v24 = vadd.f32 %v2882_v59, %v2818_v46  ;;  %v2724_v1 = vsub.f32 %v5511_v20, %v2433_v23  ;;  %v2435_v56 = vpop.f32.mrb[74].mxu0  ;;  %v2624_v38 = vpop.f32.mrb[72].mxu1  ;;  %v2696_v5 = vld [vmem:[#allocation2 + $0x68] sm:$0xff] }
 0x2f5   : > { %2945 = vst [vmem:[#allocation3 + $0x30] sm:$0xff] %v2913_v62  ;;  %v2755_v33 = vadd.f32 %v2723_v31, %v2691_v34  ;;  %v2725_v50 = vsub.f32 %v5513_v10, %v2435_v56  ;;  %v2851_v9 = vsub.f32 %v2624_v38, %v5509_v53  ;;  %v2437_v52 = vpop.f32.mrb[75].mxu0  ;;  %v2626_v30 = vpop.f32.mrb[73].mxu1  ;;  %v2697_v34 = vld [vmem:[#allocation2 + $0x70] sm:$0xff]  ;;  %v2823_v38 = vld [vmem:[#allocation3 + $0x60] sm:$0xff] }
 0x2f6   : > { %2946 = vst [vmem:[#allocation3 + $0x38] sm:$0xff] %v2914_v24  ;;  %v2756_v16 = vadd.f32 %v2724_v1, %v2692_v12  ;;  %v2726_v17 = vsub.f32 %v5515_v26, %v2437_v52  ;;  %v2852_v54 = vsub.f32 %v2626_v30, %v5511_v20  ;;  %v2628_v2 = vpop.f32.mrb[74].mxu1  ;;  %v2698_v1 = vld [vmem:[#allocation2 + $0x78] sm:$0xff]  ;;  %v2824_v30 = vld [vmem:[#allocation3 + $0x68] sm:$0xff] }
 0x2f7   : > { %2787 = vst [vmem:[#allocation2 + $0x40] sm:$0xff] %v2755_v33  ;;  %v2757_v0 = vadd.f32 %v2725_v50, %v2693_v4  ;;  %v2883_v42 = vsub.f32 %v2851_v9, %v2431_v19  ;;  %v2853_v13 = vsub.f32 %v2628_v2, %v5513_v10  ;;  %v2630_v58 = vpop.f32.mrb[75].mxu1 }
 0x2f8   : > { %2788 = vst [vmem:[#allocation2 + $0x48] sm:$0xff] %v2756_v16  ;;  %v2758_v53 = vadd.f32 %v2726_v17, %v2694_v29  ;;  %v2884_v44 = vsub.f32 %v2852_v54, %v2433_v23  ;;  %v2854_v28 = vsub.f32 %v2630_v58, %v5515_v26  ;;  %v2825_v54 = vld [vmem:[#allocation3 + $0x70] sm:$0xff] }
 0x2f9   : > { %2789 = vst [vmem:[#allocation2 + $0x50] sm:$0xff] %v2757_v0  ;;  %v2915_v7 = vadd.f32 %v2883_v42, %v2819_v48  ;;  %v2885_v40 = vsub.f32 %v2853_v13, %v2435_v56 }
 0x2fa   : > { %2790 = vst [vmem:[#allocation2 + $0x58] sm:$0xff] %v2758_v53  ;;  %v2916_v20 = vadd.f32 %v2884_v44, %v2820_v45  ;;  %v2886_v35 = vsub.f32 %v2854_v28, %v2437_v52  ;;  %v2441_v14 = vpop.f32.mrb[76].mxu0  ;;  %v2826_v45 = vld [vmem:[#allocation3 + $0x78] sm:$0xff]  ;;  %v2699_v53 = vld [vmem:[#allocation2 + $0x80] sm:$0xff]  ;;  %v2700_v28 = vld [vmem:[#allocation2 + $0x88] sm:$0xff] }
 0x2fb   : > { %2947 = vst [vmem:[#allocation3 + $0x40] sm:$0xff] %v2915_v7  ;;  %v2917_v55 = vadd.f32 %v2885_v40, %v2821_v63  ;;  %v2727_v10 = vsub.f32 %v5517_v49, %v2441_v14  ;;  %v2443_v46 = vpop.f32.mrb[77].mxu0 }
 0x2fc   : > { %2948 = vst [vmem:[#allocation3 + $0x48] sm:$0xff] %v2916_v20  ;;  %v2918_v59 = vadd.f32 %v2886_v35, %v2822_v41  ;;  %v2728_v19 = vsub.f32 %v5519_v51, %v2443_v46  ;;  %v2445_v26 = vpop.f32.mrb[78].mxu0  ;;  %v2634_v62 = vpop.f32.mrb[76].mxu1  ;;  %v2701_v41 = vld [vmem:[#allocation2 + $0x90] sm:$0xff] }
 0x2fd   : > { %2949 = vst [vmem:[#allocation3 + $0x50] sm:$0xff] %v2917_v55  ;;  %v2759_v31 = vadd.f32 %v2727_v10, %v2695_v21  ;;  %v2729_v23 = vsub.f32 %v5521_v60, %v2445_v26  ;;  %v2855_v12 = vsub.f32 %v2634_v62, %v5517_v49  ;;  %v2447_v24 = vpop.f32.mrb[79].mxu0  ;;  %v2636_v56 = vpop.f32.mrb[77].mxu1  ;;  %v2702_v10 = vld [vmem:[#allocation2 + $0x98] sm:$0xff] }
 0x2fe   : > { %2950 = vst [vmem:[#allocation3 + $0x58] sm:$0xff] %v2918_v59  ;;  %v2760_v4 = vadd.f32 %v2728_v19, %v2696_v5  ;;  %v2730_v33 = vsub.f32 %v5523_v61, %v2447_v24  ;;  %v2856_v50 = vsub.f32 %v2636_v56, %v5519_v51  ;;  %v2638_v9 = vpop.f32.mrb[78].mxu1  ;;  %v2827_v59 = vld [vmem:[#allocation3 + $0x80] sm:$0xff]  ;;  %v2829_v56 = vld [vmem:[#allocation3 + $0x90] sm:$0xff] }
 0x2ff   : > { %2791 = vst [vmem:[#allocation2 + $0x60] sm:$0xff] %v2759_v31  ;;  %v2761_v52 = vadd.f32 %v2729_v23, %v2697_v34  ;;  %v2887_v29 = vsub.f32 %v2855_v12, %v2441_v14  ;;  %v2857_v16 = vsub.f32 %v2638_v9, %v5521_v60  ;;  %v2640_v48 = vpop.f32.mrb[79].mxu1  ;;  %v2828_v23 = vld [vmem:[#allocation3 + $0x88] sm:$0xff] }
 0x300   : > { %2792 = vst [vmem:[#allocation2 + $0x68] sm:$0xff] %v2760_v4  ;;  %v2762_v49 = vadd.f32 %v2730_v33, %v2698_v1  ;;  %v2888_v17 = vsub.f32 %v2856_v50, %v2443_v46  ;;  %v2858_v2 = vsub.f32 %v2640_v48, %v5523_v61  ;;  %v2830_v50 = vld [vmem:[#allocation3 + $0x98] sm:$0xff]  ;;  %v2704_v48 = vld [vmem:[#allocation2 + $0xa8] sm:$0xff] }
 0x301   : > { %2793 = vst [vmem:[#allocation2 + $0x70] sm:$0xff] %v2761_v52  ;;  %v2919_v0 = vadd.f32 %v2887_v29, %v2823_v38  ;;  %v2889_v42 = vsub.f32 %v2857_v16, %v2445_v26  ;;  %v2703_v29 = vld [vmem:[#allocation2 + $0xa0] sm:$0xff] }
 0x302   : > { %2794 = vst [vmem:[#allocation2 + $0x78] sm:$0xff] %v2762_v49  ;;  %v2920_v51 = vadd.f32 %v2888_v17, %v2824_v30  ;;  %v2890_v13 = vsub.f32 %v2858_v2, %v2447_v24  ;;  %v2451_v58 = vpop.f32.mrb[80].mxu0 }
 0x303   : > { %2951 = vst [vmem:[#allocation3 + $0x60] sm:$0xff] %v2919_v0  ;;  %v2921_v44 = vadd.f32 %v2889_v42, %v2825_v54  ;;  %v2731_v60 = vsub.f32 %v5525_v18, %v2451_v58  ;;  %v2453_v63 = vpop.f32.mrb[81].mxu0  ;;  %v2705_v54 = vld [vmem:[#allocation2 + $0xb0] sm:$0xff] }
 0x304   : > { %2952 = vst [vmem:[#allocation3 + $0x68] sm:$0xff] %v2920_v51  ;;  %v2922_v7 = vadd.f32 %v2890_v13, %v2826_v45  ;;  %v2732_v40 = vsub.f32 %v5527_v15, %v2453_v63  ;;  %v2455_v61 = vpop.f32.mrb[82].mxu0  ;;  %v2644_v20 = vpop.f32.mrb[80].mxu1  ;;  %v2706_v13 = vld [vmem:[#allocation2 + $0xb8] sm:$0xff] }
 0x305   : > { %2953 = vst [vmem:[#allocation3 + $0x70] sm:$0xff] %v2921_v44  ;;  %v2763_v35 = vadd.f32 %v2731_v60, %v2699_v53  ;;  %v2733_v14 = vsub.f32 %v5529_v25, %v2455_v61  ;;  %v2859_v21 = vsub.f32 %v2644_v20, %v5525_v18  ;;  %v2457_v55 = vpop.f32.mrb[83].mxu0  ;;  %v2646_v46 = vpop.f32.mrb[81].mxu1  ;;  %v2831_v44 = vld [vmem:[#allocation3 + $0xa0] sm:$0xff] }
 0x306   : > { %2954 = vst [vmem:[#allocation3 + $0x78] sm:$0xff] %v2922_v7  ;;  %v2764_v5 = vadd.f32 %v2732_v40, %v2700_v28  ;;  %v2734_v19 = vsub.f32 %v5531_v47, %v2457_v55  ;;  %v2860_v26 = vsub.f32 %v2646_v46, %v5527_v15  ;;  %v2648_v34 = vpop.f32.mrb[82].mxu1  ;;  %v2834_v46 = vld [vmem:[#allocation3 + $0xb8] sm:$0xff] }
 0x307   : > { %2795 = vst [vmem:[#allocation2 + $0x80] sm:$0xff] %v2763_v35  ;;  %v2765_v62 = vadd.f32 %v2733_v14, %v2701_v41  ;;  %v2891_v31 = vsub.f32 %v2859_v21, %v2451_v58  ;;  %v2861_v12 = vsub.f32 %v2648_v34, %v5529_v25  ;;  %v2650_v24 = vpop.f32.mrb[83].mxu1  ;;  %v2833_v14 = vld [vmem:[#allocation3 + $0xb0] sm:$0xff] }
 0x308   : > { %2796 = vst [vmem:[#allocation2 + $0x88] sm:$0xff] %v2764_v5  ;;  %v2766_v18 = vadd.f32 %v2734_v19, %v2702_v10  ;;  %v2892_v1 = vsub.f32 %v2860_v26, %v2453_v63  ;;  %v2862_v4 = vsub.f32 %v2650_v24, %v5531_v47  ;;  %v2707_v19 = vld [vmem:[#allocation2 + $0xc0] sm:$0xff] }
 0x309   : > { %2797 = vst [vmem:[#allocation2 + $0x90] sm:$0xff] %v2765_v62  ;;  %v2923_v38 = vadd.f32 %v2891_v31, %v2827_v59  ;;  %v2893_v33 = vsub.f32 %v2861_v12, %v2455_v61  ;;  %v2832_v61 = vld [vmem:[#allocation3 + $0xa8] sm:$0xff]  ;;  %v2709_v12 = vld [vmem:[#allocation2 + $0xd0] sm:$0xff] }
 0x30a   : > { %2798 = vst [vmem:[#allocation2 + $0x98] sm:$0xff] %v2766_v18  ;;  %v2924_v15 = vadd.f32 %v2892_v1, %v2828_v23  ;;  %v2894_v9 = vsub.f32 %v2862_v4, %v2457_v55  ;;  %v2461_v52 = vpop.f32.mrb[84].mxu0  ;;  %v2708_v62 = vld [vmem:[#allocation2 + $0xc8] sm:$0xff] }
 0x30b   : > { %2955 = vst [vmem:[#allocation3 + $0x80] sm:$0xff] %v2923_v38  ;;  %v2925_v30 = vadd.f32 %v2893_v33, %v2829_v56  ;;  %v2735_v25 = vsub.f32 %v5533_v37, %v2461_v52  ;;  %v2463_v16 = vpop.f32.mrb[85].mxu0  ;;  %v2710_v38 = vld [vmem:[#allocation2 + $0xd8] sm:$0xff] }
 0x30c   : > { %2956 = vst [vmem:[#allocation3 + $0x88] sm:$0xff] %v2924_v15  ;;  %v2926_v49 = vadd.f32 %v2894_v9, %v2830_v50  ;;  %v2736_v17 = vsub.f32 %v5535_v27, %v2463_v16  ;;  %v2465_v47 = vpop.f32.mrb[86].mxu0  ;;  %v2654_v2 = vpop.f32.mrb[84].mxu1  ;;  %v2835_v15 = vld [vmem:[#allocation3 + $0xc0] sm:$0xff] }
 0x30d   : > { %2957 = vst [vmem:[#allocation3 + $0x90] sm:$0xff] %v2925_v30  ;;  %v2767_v0 = vadd.f32 %v2735_v25, %v2703_v29  ;;  %v2737_v42 = vsub.f32 %v5537_v43, %v2465_v47  ;;  %v2863_v45 = vsub.f32 %v2654_v2, %v5533_v37  ;;  %v2467_v51 = vpop.f32.mrb[87].mxu0  ;;  %v2656_v58 = vpop.f32.mrb[85].mxu1 }
 0x30e   : > { %2958 = vst [vmem:[#allocation3 + $0x98] sm:$0xff] %v2926_v49  ;;  %v2768_v53 = vadd.f32 %v2736_v17, %v2704_v48  ;;  %v2738_v60 = vsub.f32 %v5539_v39, %v2467_v51  ;;  %v2864_v63 = vsub.f32 %v2656_v58, %v5535_v27  ;;  %v2658_v28 = vpop.f32.mrb[86].mxu1 }
 0x30f   : > { %2799 = vst [vmem:[#allocation2 + $0xa0] sm:$0xff] %v2767_v0  ;;  %v2769_v7 = vadd.f32 %v2737_v42, %v2705_v54  ;;  %v2895_v40 = vsub.f32 %v2863_v45, %v2461_v52  ;;  %v2865_v41 = vsub.f32 %v2658_v28, %v5537_v43  ;;  %v2660_v20 = vpop.f32.mrb[87].mxu1  ;;  %v2838_v42 = vld [vmem:[#allocation3 + $0xd8] sm:$0xff]  ;;  %v2713_v28 = vld [vmem:[#allocation2 + $0xf0] sm:$0xff] }
 0x310   : > { %2800 = vst [vmem:[#allocation2 + $0xa8] sm:$0xff] %v2768_v53  ;;  %v2770_v37 = vadd.f32 %v2738_v60, %v2706_v13  ;;  %v2896_v35 = vsub.f32 %v2864_v63, %v2463_v16  ;;  %v2866_v21 = vsub.f32 %v2660_v20, %v5539_v39  ;;  %v2836_v16 = vld [vmem:[#allocation3 + $0xc8] sm:$0xff]  ;;  %v2711_v13 = vld [vmem:[#allocation2 + $0xe0] sm:$0xff] }
 0x311   : > { %2801 = vst [vmem:[#allocation2 + $0xb0] sm:$0xff] %v2769_v7  ;;  %v2927_v55 = vadd.f32 %v2895_v40, %v2831_v44  ;;  %v2897_v10 = vsub.f32 %v2865_v41, %v2465_v47  ;;  %v2837_v47 = vld [vmem:[#allocation3 + $0xd0] sm:$0xff]  ;;  %v2712_v44 = vld [vmem:[#allocation2 + $0xe8] sm:$0xff] }
 0x312   : > { %2802 = vst [vmem:[#allocation2 + $0xb8] sm:$0xff] %v2770_v37  ;;  %v2928_v27 = vadd.f32 %v2896_v35, %v2832_v61  ;;  %v2898_v5 = vsub.f32 %v2866_v21, %v2467_v51  ;;  %v2471_v59 = vpop.f32.mrb[88].mxu0  ;;  %v2714_v37 = vld [vmem:[#allocation2 + $0xf8] sm:$0xff]  ;;  %v2839_v21 = vld [vmem:[#allocation3 + $0xe0] sm:$0xff] }
 0x313   : > { %2959 = vst [vmem:[#allocation3 + $0xa0] sm:$0xff] %v2927_v55  ;;  %v2929_v26 = vadd.f32 %v2897_v10, %v2833_v14  ;;  %v2739_v43 = vsub.f32 %v5541_v36, %v2471_v59  ;;  %v2473_v34 = vpop.f32.mrb[89].mxu0 }
 0x314   : > { %2960 = vst [vmem:[#allocation3 + $0xa8] sm:$0xff] %v2928_v27  ;;  %v2930_v31 = vadd.f32 %v2898_v5, %v2834_v46  ;;  %v2740_v23 = vsub.f32 %v5543_v22, %v2473_v34  ;;  %v2475_v39 = vpop.f32.mrb[90].mxu0  ;;  %v2664_v24 = vpop.f32.mrb[88].mxu1 }
 0x315   : > { %2961 = vst [vmem:[#allocation3 + $0xb0] sm:$0xff] %v2929_v26  ;;  %v2771_v18 = vadd.f32 %v2739_v43, %v2707_v19  ;;  %v2741_v1 = vsub.f32 %v5545_v57, %v2475_v39  ;;  %v2867_v56 = vsub.f32 %v2664_v24, %v5541_v36  ;;  %v2477_v4 = vpop.f32.mrb[91].mxu0  ;;  %v2666_v33 = vpop.f32.mrb[89].mxu1 }
 0x316   : > { %2962 = vst [vmem:[#allocation3 + $0xb8] sm:$0xff] %v2930_v31  ;;  %v2772_v50 = vadd.f32 %v2740_v23, %v2708_v62  ;;  %v2742_v9 = vsub.f32 %v5547_v32, %v2477_v4  ;;  %v2868_v52 = vsub.f32 %v2666_v33, %v5543_v22  ;;  %v2668_v29 = vpop.f32.mrb[90].mxu1  ;;  %v2980_v33 = vld [vmem:[#allocation2 + $0x28] sm:$0xff] (!%p3617_p13) }
 0x317   : > { %2803 = vst [vmem:[#allocation2 + $0xc0] sm:$0xff] %v2771_v18  ;;  %v2773_v30 = vadd.f32 %v2741_v1, %v2709_v12  ;;  %v2899_v25 = vsub.f32 %v2867_v56, %v2471_v59  ;;  %v2869_v48 = vsub.f32 %v2668_v29, %v5545_v57  ;;  %v2670_v49 = vpop.f32.mrb[91].mxu1  ;;  %v2840_v59 = vld [vmem:[#allocation3 + $0xe8] sm:$0xff]  ;;  %v2983_v29 = vld [vmem:[#allocation2 + $0x40] sm:$0xff] (!%p3617_p13) }
 0x318   : > { %2804 = vst [vmem:[#allocation2 + $0xc8] sm:$0xff] %v2772_v50  ;;  %v2774_v36 = vadd.f32 %v2742_v9, %v2710_v38  ;;  %v2900_v17 = vsub.f32 %v2868_v52, %v2473_v34  ;;  %v2870_v54 = vsub.f32 %v2670_v49, %v5547_v32  ;;  %v2841_v34 = vld [vmem:[#allocation3 + $0xf0] sm:$0xff]  ;;  %v2976_v1 = vld [vmem:[#allocation2 + $0x8] sm:$0xff] (!%p3617_p13)  ;;  %v2979_v38 = vld [vmem:[#allocation2 + $0x20] sm:$0xff] (!%p3617_p13) }
 0x319   : > { %2805 = vst [vmem:[#allocation2 + $0xd0] sm:$0xff] %v2773_v30  ;;  %v2931_v2 = vadd.f32 %v2899_v25, %v2835_v15  ;;  %v2901_v0 = vsub.f32 %v2869_v48, %v2475_v39  ;;  %v2842_v39 = vld [vmem:[#allocation3 + $0xf8] sm:$0xff]  ;;  %v3660_v15 = vpack.c.bf16 (!%p3617_p13), %v2980_v33, %v2979_v38  ;;  %v2981_v9 = vld [vmem:[#allocation2 + $0x30] sm:$0xff] (!%p3617_p13)  ;;  %v2984_v25 = vld [vmem:[#allocation2 + $0x48] sm:$0xff] (!%p3617_p13) }
 0x31a   : > { %2806 = vst [vmem:[#allocation2 + $0xd8] sm:$0xff] %v2774_v36  ;;  %v2932_v22 = vadd.f32 %v2900_v17, %v2836_v16  ;;  %v2902_v45 = vsub.f32 %v2870_v54, %v2477_v4  ;;  %v2481_v51 = vpop.f32.mrb[92].mxu0  ;;  %v2978_v4 = vld [vmem:[#allocation2 + $0x18] sm:$0xff] (!%p3617_p13)  ;;  %v2985_v16 = vld [vmem:[#allocation2 + $0x50] sm:$0xff] (!%p3617_p13)  ;;  %v3662_v49 = vpack.c.bf16 (!%p3617_p13), %v2984_v25, %v2983_v29  ;;  %v2987_v17 = vld [vmem:[#allocation2 + $0x60] sm:$0xff] (!%p3617_p13) }
 0x31b   : > { %2963 = vst [vmem:[#allocation3 + $0xc0] sm:$0xff] %v2931_v2  ;;  %v2933_v58 = vadd.f32 %v2901_v0, %v2837_v47  ;;  %v2743_v57 = vsub.f32 %v5549_v3, %v2481_v51  ;;  %v2483_v53 = vpop.f32.mrb[93].mxu0  ;;  %v2982_v52 = vld [vmem:[#allocation2 + $0x38] sm:$0xff] (!%p3617_p13)  ;;  %3105 = vst [vmem:[%s4096_s20 + $0x10] sm:$0xff] (!%p3617_p13), %v3660_v15  ;;  %v2988_v47 = vld [vmem:[#allocation2 + $0x68] sm:$0xff] (!%p3617_p13) }
 0x31c   : > { %2964 = vst [vmem:[#allocation3 + $0xc8] sm:$0xff] %v2932_v22  ;;  %v2934_v60 = vadd.f32 %v2902_v45, %v2838_v42  ;;  %v2744_v63 = vsub.f32 %v5551_v8, %v2483_v53  ;;  %v2485_v32 = vpop.f32.mrb[94].mxu0  ;;  %v2674_v7 = vpop.f32.mrb[92].mxu1  ;;  %v3661_v30 = vpack.c.bf16 (!%p3617_p13), %v2982_v52, %v2981_v9  ;;  %v2986_v48 = vld [vmem:[#allocation2 + $0x58] sm:$0xff] (!%p3617_p13)  ;;  %v2989_v54 = vld [vmem:[#allocation2 + $0x70] sm:$0xff] (!%p3617_p13)  ;;  %v3664_v2 = vpack.c.bf16 (!%p3617_p13), %v2988_v47, %v2987_v17  ;;  %v2991_v42 = vld [vmem:[#allocation2 + $0x80] sm:$0xff] (!%p3617_p13) }
 0x31d   : > { %2965 = vst [vmem:[#allocation3 + $0xd0] sm:$0xff] %v2933_v58  ;;  %v2775_v40 = vadd.f32 %v2743_v57, %v2711_v13  ;;  %v2745_v61 = vsub.f32 %v5553_v6, %v2485_v32  ;;  %v2871_v41 = vsub.f32 %v2674_v7, %v5549_v3  ;;  %v2487_v20 = vpop.f32.mrb[95].mxu0  ;;  %v2676_v35 = vpop.f32.mrb[93].mxu1  ;;  %v3663_v36 = vpack.c.bf16 (!%p3617_p13), %v2986_v48, %v2985_v16  ;;  %v2990_v0 = vld [vmem:[#allocation2 + $0x78] sm:$0xff] (!%p3617_p13)  ;;  %v2992_v22 = vld [vmem:[#allocation2 + $0x88] sm:$0xff] (!%p3617_p13)  ;;  %v2993_v13 = vld [vmem:[#allocation2 + $0x90] sm:$0xff] (!%p3617_p13) }
 0x31e   : > { %2966 = vst [vmem:[#allocation3 + $0xd8] sm:$0xff] %v2934_v60  ;;  %v2776_v14 = vadd.f32 %v2744_v63, %v2712_v44  ;;  %v2746_v55 = vsub.f32 %v5555_v11, %v2487_v20  ;;  %v2872_v10 = vsub.f32 %v2676_v35, %v5551_v8  ;;  %v2678_v46 = vpop.f32.mrb[94].mxu1  ;;  %3106 = vst [vmem:[%s4096_s20 + $0x18] sm:$0xff] (!%p3617_p13), %v3661_v30  ;;  %v2994_v58 = vld [vmem:[#allocation2 + $0x98] sm:$0xff] (!%p3617_p13)  ;;  %v2995_v57 = vld [vmem:[#allocation2 + $0xa0] sm:$0xff] (!%p3617_p13) }
 0x31f   : > { %2807 = vst [vmem:[#allocation2 + $0xe0] sm:$0xff] %v2775_v40  ;;  %v2777_v27 = vadd.f32 %v2745_v61, %v2713_v28  ;;  %v2903_v5 = vsub.f32 %v2871_v41, %v2481_v51  ;;  %v2873_v19 = vsub.f32 %v2678_v46, %v5553_v6  ;;  %v2680_v26 = vpop.f32.mrb[95].mxu1  ;;  %v2975_v6 = vld [vmem:[#allocation2] sm:$0xff] (!%p3617_p13)  ;;  %3107 = vst [vmem:[%s4096_s20 + $0x20] sm:$0xff] (!%p3617_p13), %v3662_v49  ;;  %v2996_v44 = vld [vmem:[#allocation2 + $0xa8] sm:$0xff] (!%p3617_p13) }
 0x320   : > { %2808 = vst [vmem:[#allocation2 + $0xe8] sm:$0xff] %v2776_v14  ;;  %v2778_v3 = vadd.f32 %v2746_v55, %v2714_v37  ;;  %v2904_v43 = vsub.f32 %v2872_v10, %v2483_v53  ;;  %v2874_v62 = vsub.f32 %v2680_v26, %v5555_v11  ;;  %2974 = sbr.rel (%p3617_p13) target bundleno = 822 (0x336), region = 142  ;;  %v2977_v11 = vld [vmem:[#allocation2 + $0x10] sm:$0xff] (!%p3617_p13)  ;;  %v3658_v56 = vpack.c.bf16 (!%p3617_p13), %v2976_v1, %v2975_v6  ;;  %v2998_v63 = vld [vmem:[#allocation2 + $0xb8] sm:$0xff] (!%p3617_p13)  ;;  %v2999_v7 = vld [vmem:[#allocation2 + $0xc0] sm:$0xff] (!%p3617_p13) }
 0x321   : > { %2809 = vst [vmem:[#allocation2 + $0xf0] sm:$0xff] %v2777_v27  ;;  %v2935_v31 = vadd.f32 %v2903_v5, %v2839_v21  ;;  %v2905_v23 = vsub.f32 %v2873_v19, %v2485_v32  ;;  %v3659_v50 = vpack.c.bf16 (!%p3617_p13), %v2978_v4, %v2977_v11  ;;  %3108 = vst [vmem:[%s4096_s20 + $0x28] sm:$0xff] (!%p3617_p13), %v3663_v36  ;;  %v2997_v60 = vld [vmem:[#allocation2 + $0xb0] sm:$0xff] (!%p3617_p13)  ;;  %v3000_v40 = vld [vmem:[#allocation2 + $0xc8] sm:$0xff] (!%p3617_p13) }
 0x322   : > { %2810 = vst [vmem:[#allocation2 + $0xf8] sm:$0xff] %v2778_v3  ;;  %v2936_v8 = vadd.f32 %v2904_v43, %v2840_v59  ;;  %v2906_v12 = vsub.f32 %v2874_v62, %v2487_v20  ;;  %3103 = vst [vmem:[%s4096_s20] sm:$0xff] (!%p3617_p13), %v3658_v56  ;;  %v3665_v45 = vpack.c.bf16 (!%p3617_p13), %v2990_v0, %v2989_v54  ;;  %v3001_v61 = vld [vmem:[#allocation2 + $0xd0] sm:$0xff] (!%p3617_p13)  ;;  %v3002_v20 = vld [vmem:[#allocation2 + $0xd8] sm:$0xff] (!%p3617_p13) }
 0x323   : > { %2967 = vst [vmem:[#allocation3 + $0xe0] sm:$0xff] %v2935_v31  ;;  %v2937_v24 = vadd.f32 %v2905_v23, %v2841_v34  ;;  %3104 = vst [vmem:[%s4096_s20 + $0x8] sm:$0xff] (!%p3617_p13), %v3659_v50  ;;  %v3666_v51 = vpack.c.bf16 (!%p3617_p13), %v2992_v22, %v2991_v42  ;;  %v3667_v53 = vpack.c.bf16 (!%p3617_p13), %v2994_v58, %v2993_v13  ;;  %v3119_v46 = vld [vmem:[#allocation3] sm:$0xff] (!%p3617_p13)  ;;  %v3120_v5 = vld [vmem:[#allocation3 + $0x8] sm:$0xff] (!%p3617_p13) }
 0x324   : > { %2968 = vst [vmem:[#allocation3 + $0xe8] sm:$0xff] %v2936_v8  ;;  %v2938_v18 = vadd.f32 %v2906_v12, %v2842_v39  ;;  %3109 = vst [vmem:[%s4096_s20 + $0x30] sm:$0xff] (!%p3617_p13), %v3664_v2  ;;  %v3668_v32 = vpack.c.bf16 (!%p3617_p13), %v2996_v44, %v2995_v57  ;;  %v3669_v28 = vpack.c.bf16 (!%p3617_p13), %v2998_v63, %v2997_v60  ;;  %v3121_v59 = vld [vmem:[#allocation3 + $0x10] sm:$0xff] (!%p3617_p13)  ;;  %v3122_v19 = vld [vmem:[#allocation3 + $0x18] sm:$0xff] (!%p3617_p13) }
 0x325   : > { %2969 = vst [vmem:[#allocation3 + $0xf0] sm:$0xff] %v2937_v24  ;;  %3110 = vst [vmem:[%s4096_s20 + $0x38] sm:$0xff] (!%p3617_p13), %v3665_v45  ;;  %v3670_v41 = vpack.c.bf16 (!%p3617_p13), %v3000_v40, %v2999_v7  ;;  %v3671_v14 = vpack.c.bf16 (!%p3617_p13), %v3002_v20, %v3001_v61  ;;  %v3674_v26 = vpack.c.bf16 (!%p3617_p13), %v3120_v5, %v3119_v46  ;;  %v3123_v43 = vld [vmem:[#allocation3 + $0x20] sm:$0xff] (!%p3617_p13)  ;;  %v3124_v34 = vld [vmem:[#allocation3 + $0x28] sm:$0xff] (!%p3617_p13) }
 0x326   : > { %2970 = vst [vmem:[#allocation3 + $0xf8] sm:$0xff] %v2938_v18  ;;  %3111 = vst [vmem:[%s4096_s20 + $0x40] sm:$0xff] (!%p3617_p13), %v3666_v51  ;;  %v3003_v37 = vld [vmem:[#allocation2 + $0xe0] sm:$0xff] (!%p3617_p13)  ;;  %v3675_v3 = vpack.c.bf16 (!%p3617_p13), %v3122_v19, %v3121_v59  ;;  %v3125_v62 = vld [vmem:[#allocation3 + $0x30] sm:$0xff] (!%p3617_p13)  ;;  %v3676_v31 = vpack.c.bf16 (!%p3617_p13), %v3124_v34, %v3123_v43 }
 0x327   : > { %3112 = vst [vmem:[%s4096_s20 + $0x48] sm:$0xff] %v3667_v53  ;;  %v3004_v35 = vld [vmem:[#allocation2 + $0xe8] sm:$0xff]  ;;  %3113 = vst [vmem:[%s4096_s20 + $0x50] sm:$0xff] %v3668_v32  ;;  %v3126_v23 = vld [vmem:[#allocation3 + $0x38] sm:$0xff] }
 0x328   : > { %3114 = vst [vmem:[%s4096_s20 + $0x58] sm:$0xff] %v3669_v28  ;;  %v3672_v21 = vpack.c.bf16 %v3004_v35, %v3003_v37  ;;  %v3005_v55 = vld [vmem:[#allocation2 + $0xf0] sm:$0xff]  ;;  %3115 = vst [vmem:[%s4096_s20 + $0x60] sm:$0xff] %v3670_v41  ;;  %v3127_v39 = vld [vmem:[#allocation3 + $0x40] sm:$0xff]  ;;  %v3677_v12 = vpack.c.bf16 %v3126_v23, %v3125_v62 }
 0x329   : > { %v3006_v10 = vld [vmem:[#allocation2 + $0xf8] sm:$0xff]  ;;  %3116 = vst [vmem:[%s4096_s20 + $0x68] sm:$0xff] %v3671_v14  ;;  %v3128_v8 = vld [vmem:[#allocation3 + $0x48] sm:$0xff]  ;;  %3247 = vst [vmem:[%s4101_s17] sm:$0xff] %v3674_v26 }
 0x32a   : > { %v3673_v27 = vpack.c.bf16 %v3006_v10, %v3005_v55  ;;  %3117 = vst [vmem:[%s4096_s20 + $0x70] sm:$0xff] %v3672_v21  ;;  %3248 = vst [vmem:[%s4101_s17 + $0x8] sm:$0xff] %v3675_v3  ;;  %v3678_v24 = vpack.c.bf16 %v3128_v8, %v3127_v39  ;;  %v3129_v18 = vld [vmem:[#allocation3 + $0x50] sm:$0xff]  ;;  %v3130_v6 = vld [vmem:[#allocation3 + $0x58] sm:$0xff] }
 0x32b   : > { %v3131_v1 = vld [vmem:[#allocation3 + $0x60] sm:$0xff]  ;;  %3249 = vst [vmem:[%s4101_s17 + $0x10] sm:$0xff] %v3676_v31  ;;  %v3679_v11 = vpack.c.bf16 %v3130_v6, %v3129_v18  ;;  %v3132_v56 = vld [vmem:[#allocation3 + $0x68] sm:$0xff]  ;;  %v3133_v4 = vld [vmem:[#allocation3 + $0x70] sm:$0xff] }
 0x32c   : > { %3118 = vst [vmem:[%s4096_s20 + $0x78] sm:$0xff] %v3673_v27  ;;  %v3134_v38 = vld [vmem:[#allocation3 + $0x78] sm:$0xff]  ;;  %3250 = vst [vmem:[%s4101_s17 + $0x18] sm:$0xff] %v3677_v12  ;;  %v3680_v33 = vpack.c.bf16 %v3132_v56, %v3131_v1  ;;  %v3135_v15 = vld [vmem:[#allocation3 + $0x80] sm:$0xff] }
 0x32d   : > { %3251 = vst [vmem:[%s4101_s17 + $0x20] sm:$0xff] %v3678_v24  ;;  %v3681_v50 = vpack.c.bf16 %v3134_v38, %v3133_v4  ;;  %v3136_v9 = vld [vmem:[#allocation3 + $0x88] sm:$0xff]  ;;  %v3137_v52 = vld [vmem:[#allocation3 + $0x90] sm:$0xff]  ;;  %3252 = vst [vmem:[%s4101_s17 + $0x28] sm:$0xff] %v3679_v11 }
 0x32e   : > { %v3682_v29 = vpack.c.bf16 %v3136_v9, %v3135_v15  ;;  %v3138_v30 = vld [vmem:[#allocation3 + $0x98] sm:$0xff]  ;;  %v3139_v25 = vld [vmem:[#allocation3 + $0xa0] sm:$0xff]  ;;  %v3140_v16 = vld [vmem:[#allocation3 + $0xa8] sm:$0xff]  ;;  %3253 = vst [vmem:[%s4101_s17 + $0x30] sm:$0xff] %v3680_v33 }
 0x32f   : > { %3254 = vst [vmem:[%s4101_s17 + $0x38] sm:$0xff] %v3681_v50  ;;  %v3683_v48 = vpack.c.bf16 %v3138_v30, %v3137_v52  ;;  %v3684_v49 = vpack.c.bf16 %v3140_v16, %v3139_v25  ;;  %v3141_v36 = vld [vmem:[#allocation3 + $0xb0] sm:$0xff]  ;;  %v3142_v17 = vld [vmem:[#allocation3 + $0xb8] sm:$0xff]  ;;  %v3143_v47 = vld [vmem:[#allocation3 + $0xc0] sm:$0xff] }
 0x330   : > { %3255 = vst [vmem:[%s4101_s17 + $0x40] sm:$0xff] %v3682_v29  ;;  %v3685_v54 = vpack.c.bf16 %v3142_v17, %v3141_v36  ;;  %v3144_v2 = vld [vmem:[#allocation3 + $0xc8] sm:$0xff]  ;;  %v3145_v0 = vld [vmem:[#allocation3 + $0xd0] sm:$0xff]  ;;  %v3146_v42 = vld [vmem:[#allocation3 + $0xd8] sm:$0xff] }
 0x331   : > { %3256 = vst [vmem:[%s4101_s17 + $0x48] sm:$0xff] %v3683_v48  ;;  %3257 = vst [vmem:[%s4101_s17 + $0x50] sm:$0xff] %v3684_v49  ;;  %v3686_v22 = vpack.c.bf16 %v3144_v2, %v3143_v47  ;;  %v3687_v45 = vpack.c.bf16 %v3146_v42, %v3145_v0  ;;  %v3147_v51 = vld [vmem:[#allocation3 + $0xe0] sm:$0xff]  ;;  %v3148_v13 = vld [vmem:[#allocation3 + $0xe8] sm:$0xff] }
 0x332   : > { %v3149_v58 = vld [vmem:[#allocation3 + $0xf0] sm:$0xff]  ;;  %3258 = vst [vmem:[%s4101_s17 + $0x58] sm:$0xff] %v3685_v54  ;;  %v3688_v57 = vpack.c.bf16 %v3148_v13, %v3147_v51  ;;  %v3150_v53 = vld [vmem:[#allocation3 + $0xf8] sm:$0xff] }
 0x333   : > { %3259 = vst [vmem:[%s4101_s17 + $0x60] sm:$0xff] %v3686_v22  ;;  %3260 = vst [vmem:[%s4101_s17 + $0x68] sm:$0xff] %v3687_v45  ;;  %v3689_v44 = vpack.c.bf16 %v3150_v53, %v3149_v58 }
 0x334   : > { %3261 = vst [vmem:[%s4101_s17 + $0x70] sm:$0xff] %v3688_v57 }
 0x335   : > { %3262 = vst [vmem:[%s4101_s17 + $0x78] sm:$0xff] %v3689_v44 }
 0x336 PF: > { %s20_s15 = sadd.s32 1, %s3914_s15   ;;  %s5948_s20 = sld [smem:[#allocation6_spill]] }
 0x337   : > { %p17_p0 = scmp.ge.s32.totalorder %s20_s15, 6   ;;  %s5949_s30 = smov %s3894_s10 }
 0x338   : > { %s5950_s10 = smov %s4023_s23  ;;  %s5951_s11 = smov %s3906_s13 }
 0x339   : > { %s5952_s12 = smov %s3910_s14  ;;  %s5953_s13 = smov %s5956_s16 }
 0x33a   :  { %19 = sbr.rel (!%p17_p0) target bundleno = 7 (0x7), region = 203 }
 0x33c   : > { %s5954_s14 = smov %s5948_s20 }

// kernel: orthogonal_gcn_forward.13
= control target key start
LH: loop header
LB: loop body
LE: loop exit
PB: predicated region body
PF: predicated region fallthrough
CT: control target
= control target key end

     0   :  { %s5861_s0 = inlined_call_operand.vmem [shape: bf16[256,256], index: 0, kind: input, shape index: {}]   ;;  %s5862_s1 = inlined_call_operand.vmem [shape: bf16[256,256], index: 1, kind: input, shape index: {}]   ;;  %s5863_s2 = inlined_call_operand.vmem [shape: bf16[256,256], index: 2, kind: input, shape index: {}]   ;;  %s5864_s3 = inlined_call_operand.vmem [shape: bf16[256,256], index: 3, kind: input, shape index: {}]   ;;  %s5865_s4 = inlined_call_operand.vmem [shape: bf16[256,256], index: 4, kind: input, shape index: {}]   ;;  %s5866_s5 = inlined_call_operand.vmem [shape: bf16[256,256], index: 5, kind: input, shape index: {}]   ;;  %s5867_s6 = inlined_call_operand.vmem [shape: f32[1,256], index: 6, kind: input, shape index: {}]   ;;  %s5868_s7 = inlined_call_operand.vmem [shape: f32[1,256], index: 7, kind: input, shape index: {}]   ;;  %s5869_s8 = inlined_call_operand.vmem [shape: bf16[256,256], index: 8, kind: output, shape index: {0}]   ;;  %s5870_s9 = inlined_call_operand.hbm [shape: bf16[256,256], index: 9, kind: output, shape index: {1}]  }
   0x1   :  { %5965 = sst [smem:[#allocation86_spill]] %s5861_s0 }
   0x2   :  { %5966 = sst [smem:[#allocation87_spill]] %s5862_s1 }
   0x3   :  { %5967 = sst [smem:[#allocation88_spill]] %s5870_s9 }
   0x4   :  { %15 = vsyncpa [#allocation7], 0 }
   0x5   :  { %17 = vsyncpa [#allocation7 + $0x1], 0  ;;  %s4077_s30 = smov 0   ;;  %s4079_s10 = smov 0  }
   0x6   :  { %s4081_s11 = smov 0   ;;  %s4083_s12 = smov 0  }
   0x7   :  { %s4085_s13 = smov 0   ;;  %s4087_s14 = smov 0  }
   0x8   :  { %s4089_s15 = smov 0   ;;  %s4091_s16 = smov 0  }
   0x9   :  { %s4093_s17 = smov 0   ;;  %s4095_s18 = smov 0  }
   0xa LB: > { %5968 = sst [smem:[#allocation9_spill]] %s3984_s30  ;;  %s3435_s19 = sadd.s32 4294967295, %s4020_s18   ;;  %s4020_s18 = sphi %s4095_s18, %s23_s18   ;;  %s4016_s17 = sphi %s4093_s17, %s6165_s17   ;;  %s4012_s16 = sphi %s4091_s16, %s6164_s16   ;;  %s4008_s15 = sphi %s4089_s15, %s6163_s15   ;;  %s4004_s14 = sphi %s4087_s14, %s6162_s14   ;;  %s4000_s13 = sphi %s4085_s13, %s6161_s13   ;;  %s3996_s12 = sphi %s4083_s12, %s6160_s12   ;;  %s3992_s11 = sphi %s4081_s11, %s6168_s11   ;;  %s3988_s10 = sphi %s4079_s10, %s6167_s10   ;;  %s3984_s30 = sphi %s4077_s30, %s6166_s30  }
   0xb   : > { %5969 = sst [smem:[#allocation10_spill]] %s4000_s13  ;;  %s3436_s20 = sadd.s32 4294967294, %s4020_s18  }
   0xc   : > { %5970 = sst [smem:[#allocation11_spill]] %s4012_s16  ;;  %s32_s21 = sadd.s32 1, %s4012_s16 }
   0xd   : > { %5971 = sst [smem:[#allocation12_spill]] %s4016_s17  ;;  %s35_s22 = sadd.s32 1, %s4016_s17 }
   0xe   : > { %p33_p0 = scmp.ge.s32.totalorder %s32_s21, 2  ;;  %s44_s23 = sadd.s32 1, %s4000_s13 }
   0xf   : > { %p51_p1 = scmp.ne.s32.totalorder %s4000_s13, %s3996_s12  ;;  %p52_p2 = scmp.eq.s32.totalorder %s4020_s18, 0 }
  0x10   : > { %s6170_s21 = smov (%p33_p0, %s32_s21), 0  ;;  %s6172_s22 = smov (!%p33_p0, %s35_s22), %s4016_s17 }
  0x11   : > { %5972 = sst [smem:[#allocation13_spill]] %s6170_s21  ;;  %s40_s24 = ssub.s32 %s4012_s16, %s6170_s21 }
  0x12   : > { %p4140_p3 = por %p52_p2, %p51_p1  ;;  %p37_p4 = scmp.ge.s32.totalorder %s6172_s22, 2 }
  0x13   : > { %s260_s26 = sadd.s32 1, %s3992_s11  ;;  %p270_p5 = scmp.ne.s32.totalorder %s3992_s11, %s3988_s10 }
  0x14   : > { %p271_p6 = scmp.eq.s32.totalorder %s3435_s19, 3  ;;  %s6174_s22 = smov (%p37_p4, %s6172_s22), 0 }
  0x15   : > { %5974 = sst [smem:[#allocation14_spill]] %s6174_s22  ;;  %p276_p8 = scmp.ne.s32.totalorder %s3988_s10, %s3984_s30 }
  0x16   : > { %p4149_p7 = por %p271_p6, %p270_p5  ;;  %s39_s28 = ssub.s32 %s4016_s17, %s6174_s22 }
  0x17   : > { %p277_p9 = scmp.eq.s32.totalorder %s3436_s20, 3  ;;  %s41_s29 = sor.u32 %s40_s24, %s39_s28 }
  0x18   : > { %p258_p10 = scmp.eq.s32.totalorder %s39_s28, 0  ;;  %p42_p11 = scmp.eq.s32.totalorder %s41_s29, 0 }
  0x19   : > { %p4157_p12 = por %p277_p9, %p276_p8  ;;  %p3438_p13 = scmp.ge.s32.totalorder %s4020_s18, 4 }
  0x1a   : > { %s4162_s9 = scalar_select %p258_p10, %s3992_s11, %s260_s26  }
  0x1b   : > { %s5976_s21 = scalar_select %p4157_p12, 1, 0 }
  0x1c   : > { %s4165_s19 = scalar_select %p42_p11, %s4000_s13, %s44_s23  }
  0x1d   : > { %5977 = sst [smem:[#allocation15_spill]] %s5976_s21  ;;  %305 = sbr.rel (%p3438_p13) target bundleno = 76 (0x4c), region = 32 }
  0x1e   : > { %5978 = sst [smem:[#allocation16_spill]] %s4165_s19 }
  0x24   : > { %308 = sbr.rel (!%p4140_p3) target bundleno = 56 (0x38), region = 36  ;;  %s310_s20 = sand.u32 (%p4140_p3), 1, %s4000_s13  }
  0x25   : > { %s3668_s24 = sshll.u32 (%p4140_p3), %s4016_s17, 5  ;;  %s3439_s28 = sshll.u32 (%p4140_p3), %s310_s20, 6 }
  0x26   : > { %s315_s29 = sadd.s32 (%p4140_p3), %s4012_s16, %s3668_s24  ;;  %s5979_s0 = sld [smem:[#allocation86_spill]] (%p4140_p3) }
  0x27   : > { %s3442_s22 = sshll.u32 (%p4140_p3), %s315_s29, 2  ;;  %s312_s23 = scalar_lea.vmem (%p4140_p3), [#allocation4], %s3439_s28 }
  0x2c   : > { %s4176_s26 = scalar_lea.vmem %s5979_s0, %s3442_s22 }
  0x2d   : > { %v333_v0 = vld [vmem:[%s4176_s26] sm:$0xf]  ;;  %v335_v1 = vld [vmem:[%s4176_s26 + $0x8] sm:$0xf]  ;;  %v337_v2 = vld [vmem:[%s4176_s26 + $0x10] sm:$0xf] }
  0x2e   : > { %334 = vst [vmem:[%s312_s23] sm:$0xf] %v333_v0  ;;  %336 = vst [vmem:[%s312_s23 + $0x4] sm:$0xf] %v335_v1  ;;  %v339_v3 = vld [vmem:[%s4176_s26 + $0x18] sm:$0xf] }
  0x2f   : > { %338 = vst [vmem:[%s312_s23 + $0x8] sm:$0xf] %v337_v2  ;;  %v341_v4 = vld [vmem:[%s4176_s26 + $0x20] sm:$0xf]  ;;  %v343_v5 = vld [vmem:[%s4176_s26 + $0x28] sm:$0xf] }
  0x30   : > { %340 = vst [vmem:[%s312_s23 + $0xc] sm:$0xf] %v339_v3  ;;  %342 = vst [vmem:[%s312_s23 + $0x10] sm:$0xf] %v341_v4  ;;  %v345_v6 = vld [vmem:[%s4176_s26 + $0x30] sm:$0xf] }
  0x31   : > { %344 = vst [vmem:[%s312_s23 + $0x14] sm:$0xf] %v343_v5  ;;  %v347_v7 = vld [vmem:[%s4176_s26 + $0x38] sm:$0xf]  ;;  %v349_v8 = vld [vmem:[%s4176_s26 + $0x40] sm:$0xf] }
  0x32   : > { %346 = vst [vmem:[%s312_s23 + $0x18] sm:$0xf] %v345_v6  ;;  %348 = vst [vmem:[%s312_s23 + $0x1c] sm:$0xf] %v347_v7  ;;  %v351_v9 = vld [vmem:[%s4176_s26 + $0x48] sm:$0xf] }
  0x33   : > { %350 = vst [vmem:[%s312_s23 + $0x20] sm:$0xf] %v349_v8  ;;  %v353_v10 = vld [vmem:[%s4176_s26 + $0x50] sm:$0xf]  ;;  %v355_v11 = vld [vmem:[%s4176_s26 + $0x58] sm:$0xf] }
  0x34   : > { %352 = vst [vmem:[%s312_s23 + $0x24] sm:$0xf] %v351_v9  ;;  %354 = vst [vmem:[%s312_s23 + $0x28] sm:$0xf] %v353_v10  ;;  %v357_v12 = vld [vmem:[%s4176_s26 + $0x60] sm:$0xf] }
  0x35   : > { %356 = vst [vmem:[%s312_s23 + $0x2c] sm:$0xf] %v355_v11  ;;  %v359_v13 = vld [vmem:[%s4176_s26 + $0x68] sm:$0xf]  ;;  %v361_v14 = vld [vmem:[%s4176_s26 + $0x70] sm:$0xf] }
  0x36   : > { %358 = vst [vmem:[%s312_s23 + $0x30] sm:$0xf] %v357_v12  ;;  %360 = vst [vmem:[%s312_s23 + $0x34] sm:$0xf] %v359_v13  ;;  %v363_v15 = vld [vmem:[%s4176_s26 + $0x78] sm:$0xf] }
  0x37   : > { %362 = vst [vmem:[%s312_s23 + $0x38] sm:$0xf] %v361_v14  ;;  %364 = vst [vmem:[%s312_s23 + $0x3c] sm:$0xf] %v363_v15 }
  0x38 PF: > { %419 = sbr.rel (!%p4140_p3) target bundleno = 76 (0x4c), region = 77  ;;  %s421_s30 = sand.u32 (%p4140_p3), 1, %s4000_s13  }
  0x39   : > { %s3669_s21 = sshll.u32 (%p4140_p3), %s4016_s17, 5  ;;  %s3443_s22 = sshll.u32 (%p4140_p3), %s421_s30, 6 }
  0x3a   : > { %s426_s20 = sadd.s32 (%p4140_p3), %s4012_s16, %s3669_s21  ;;  %s5980_s1 = sld [smem:[#allocation87_spill]] (%p4140_p3) }
  0x3b   : > { %s3446_s24 = sshll.u32 (%p4140_p3), %s426_s20, 2  ;;  %s423_s25 = scalar_lea.vmem (%p4140_p3), [#allocation5], %s3443_s22 }
  0x40   : > { %s4202_s0 = scalar_lea.vmem %s5980_s1, %s3446_s24 }
  0x41   : > { %v444_v16 = vld [vmem:[%s4202_s0] sm:$0xf]  ;;  %v446_v17 = vld [vmem:[%s4202_s0 + $0x8] sm:$0xf]  ;;  %v448_v18 = vld [vmem:[%s4202_s0 + $0x10] sm:$0xf] }
  0x42   : > { %445 = vst [vmem:[%s423_s25] sm:$0xf] %v444_v16  ;;  %447 = vst [vmem:[%s423_s25 + $0x4] sm:$0xf] %v446_v17  ;;  %v450_v19 = vld [vmem:[%s4202_s0 + $0x18] sm:$0xf] }
  0x43   : > { %449 = vst [vmem:[%s423_s25 + $0x8] sm:$0xf] %v448_v18  ;;  %v452_v20 = vld [vmem:[%s4202_s0 + $0x20] sm:$0xf]  ;;  %v454_v21 = vld [vmem:[%s4202_s0 + $0x28] sm:$0xf] }
  0x44   : > { %451 = vst [vmem:[%s423_s25 + $0xc] sm:$0xf] %v450_v19  ;;  %453 = vst [vmem:[%s423_s25 + $0x10] sm:$0xf] %v452_v20  ;;  %v456_v22 = vld [vmem:[%s4202_s0 + $0x30] sm:$0xf] }
  0x45   : > { %455 = vst [vmem:[%s423_s25 + $0x14] sm:$0xf] %v454_v21  ;;  %v458_v23 = vld [vmem:[%s4202_s0 + $0x38] sm:$0xf]  ;;  %v460_v24 = vld [vmem:[%s4202_s0 + $0x40] sm:$0xf] }
  0x46   : > { %457 = vst [vmem:[%s423_s25 + $0x18] sm:$0xf] %v456_v22  ;;  %459 = vst [vmem:[%s423_s25 + $0x1c] sm:$0xf] %v458_v23  ;;  %v462_v25 = vld [vmem:[%s4202_s0 + $0x48] sm:$0xf] }
  0x47   : > { %461 = vst [vmem:[%s423_s25 + $0x20] sm:$0xf] %v460_v24  ;;  %v464_v26 = vld [vmem:[%s4202_s0 + $0x50] sm:$0xf]  ;;  %v466_v27 = vld [vmem:[%s4202_s0 + $0x58] sm:$0xf] }
  0x48   : > { %463 = vst [vmem:[%s423_s25 + $0x24] sm:$0xf] %v462_v25  ;;  %465 = vst [vmem:[%s423_s25 + $0x28] sm:$0xf] %v464_v26  ;;  %v468_v28 = vld [vmem:[%s4202_s0 + $0x60] sm:$0xf] }
  0x49   : > { %467 = vst [vmem:[%s423_s25 + $0x2c] sm:$0xf] %v466_v27  ;;  %v470_v29 = vld [vmem:[%s4202_s0 + $0x68] sm:$0xf]  ;;  %v472_v30 = vld [vmem:[%s4202_s0 + $0x70] sm:$0xf] }
  0x4a   : > { %469 = vst [vmem:[%s423_s25 + $0x30] sm:$0xf] %v468_v28  ;;  %471 = vst [vmem:[%s423_s25 + $0x34] sm:$0xf] %v470_v29  ;;  %v474_v31 = vld [vmem:[%s4202_s0 + $0x78] sm:$0xf] }
  0x4b   : > { %473 = vst [vmem:[%s423_s25 + $0x38] sm:$0xf] %v472_v30  ;;  %475 = vst [vmem:[%s423_s25 + $0x3c] sm:$0xf] %v474_v31 }
  0x4c PF: > { %p3447_p0 = scmp.ge.s32.totalorder %s4020_s18, 1  ;;  %p549_p1 = scmp.lt.s32.totalorder %s4020_s18, 5 }
  0x4e   : > { %p550_p2 = pnand %p3447_p0, %p549_p1 }
  0x50   : > { %553 = sbr.rel (%p550_p2) target bundleno = 866 (0x362), region = 126 }
  0x57   : > { %s556_s26 = sand.u32 1, %s3996_s12   ;;  %s5877_s23 = sand.u32 1, %s3988_s10  }
  0x58   : > { %s3448_s30 = sshll.u32 %s556_s26, 6  ;;  %s3450_s21 = sshll.u32 %s5877_s23, 7 }
  0x59   : > { %s3451_s0 = sshll.u32 %s4004_s14, 4  ;;  %s3457_s22 = sshll.u32 %s4008_s15, 4 }
  0x5a   : > { %p623_p3 = scmp.lt.s32.totalorder %s3451_s0, 31  ;;  %p637_p4 = scmp.lt.s32.totalorder %s3457_s22, 31 }
  0x5b   : > { %s4243_s19 = scalar_lea.vmem [#allocation4], %s3448_s30  ;;  %s4245_s13 = scalar_lea.vmem [#allocation5], %s3448_s30 }
  0x5c   : > { %s6176_s0 = smov (!%p623_p3, %s3451_s0), 31  ;;  %s6178_s22 = smov (!%p637_p4, %s3457_s22), 31 }
  0x5d   : > { %s3670_s20 = sshll.u32 %s6176_s0, 3  ;;  %s3672_s26 = sshll.u32 %s6178_s22, 3 }
  0x5e   : > { %s4231_s29 = scalar_lea.vmem %s5863_s2, %s3670_s20  ;;  %s4236_s12 = scalar_lea.vmem %s5864_s3, %s3670_s20 }
  0x5f   : > { %s4241_s16 = scalar_lea.vmem %s5869_s8, %s3672_s26  ;;  %s4247_s0 = scalar_lea.vmem [#allocation6], %s3450_s21 }
  0x60   : > { %p3460_p5 = scmp.ne.s32.totalorder %s4004_s14, 0 }
  0x61   : > { %v4022_v32 = vmov (!%p3460_p5), 0.0  }
  0x62   : > { %648 = sbr.rel (%p3460_p5) target bundleno = 130 (0x82), region = 138  ;;  %649 = vst [vmem:[#allocation2] sm:$0xff] (!%p3460_p5), %v4022_v32  ;;  %650 = vst [vmem:[#allocation2 + $0x8] sm:$0xff] (!%p3460_p5), %v4022_v32 }
  0x63   : > { %651 = vst [vmem:[#allocation2 + $0x10] sm:$0xff] (!%p3460_p5), %v4022_v32  ;;  %652 = vst [vmem:[#allocation2 + $0x18] sm:$0xff] (!%p3460_p5), %v4022_v32 }
  0x64   : > { %653 = vst [vmem:[#allocation2 + $0x20] sm:$0xff] (!%p3460_p5), %v4022_v32  ;;  %654 = vst [vmem:[#allocation2 + $0x28] sm:$0xff] (!%p3460_p5), %v4022_v32 }
  0x65   : > { %655 = vst [vmem:[#allocation2 + $0x30] sm:$0xff] (!%p3460_p5), %v4022_v32  ;;  %656 = vst [vmem:[#allocation2 + $0x38] sm:$0xff] (!%p3460_p5), %v4022_v32 }
  0x66   : > { %657 = vst [vmem:[#allocation2 + $0x40] sm:$0xff] (!%p3460_p5), %v4022_v32  ;;  %658 = vst [vmem:[#allocation2 + $0x48] sm:$0xff] (!%p3460_p5), %v4022_v32 }
  0x67   : > { %659 = vst [vmem:[#allocation2 + $0x50] sm:$0xff] (!%p3460_p5), %v4022_v32  ;;  %660 = vst [vmem:[#allocation2 + $0x58] sm:$0xff] (!%p3460_p5), %v4022_v32 }
  0x68   : > { %661 = vst [vmem:[#allocation2 + $0x60] sm:$0xff] (!%p3460_p5), %v4022_v32  ;;  %662 = vst [vmem:[#allocation2 + $0x68] sm:$0xff] (!%p3460_p5), %v4022_v32 }
  0x69   : > { %663 = vst [vmem:[#allocation2 + $0x70] sm:$0xff] %v4022_v32  ;;  %664 = vst [vmem:[#allocation2 + $0x78] sm:$0xff] %v4022_v32 }
  0x6a   : > { %665 = vst [vmem:[#allocation2 + $0x80] sm:$0xff] %v4022_v32  ;;  %666 = vst [vmem:[#allocation2 + $0x88] sm:$0xff] %v4022_v32 }
  0x6b   : > { %667 = vst [vmem:[#allocation2 + $0x90] sm:$0xff] %v4022_v32  ;;  %668 = vst [vmem:[#allocation2 + $0x98] sm:$0xff] %v4022_v32 }
  0x6c   : > { %669 = vst [vmem:[#allocation2 + $0xa0] sm:$0xff] %v4022_v32  ;;  %670 = vst [vmem:[#allocation2 + $0xa8] sm:$0xff] %v4022_v32 }
  0x6d   : > { %671 = vst [vmem:[#allocation2 + $0xb0] sm:$0xff] %v4022_v32  ;;  %672 = vst [vmem:[#allocation2 + $0xb8] sm:$0xff] %v4022_v32 }
  0x6e   : > { %673 = vst [vmem:[#allocation2 + $0xc0] sm:$0xff] %v4022_v32  ;;  %674 = vst [vmem:[#allocation2 + $0xc8] sm:$0xff] %v4022_v32 }
  0x6f   : > { %675 = vst [vmem:[#allocation2 + $0xd0] sm:$0xff] %v4022_v32  ;;  %676 = vst [vmem:[#allocation2 + $0xd8] sm:$0xff] %v4022_v32 }
  0x70   : > { %677 = vst [vmem:[#allocation2 + $0xe0] sm:$0xff] %v4022_v32  ;;  %678 = vst [vmem:[#allocation2 + $0xe8] sm:$0xff] %v4022_v32 }
  0x71   : > { %679 = vst [vmem:[#allocation2 + $0xf0] sm:$0xff] %v4022_v32  ;;  %680 = vst [vmem:[#allocation2 + $0xf8] sm:$0xff] %v4022_v32 }
  0x72   : > { %681 = vst [vmem:[#allocation3] sm:$0xff] %v4022_v32  ;;  %682 = vst [vmem:[#allocation3 + $0x8] sm:$0xff] %v4022_v32 }
  0x73   : > { %683 = vst [vmem:[#allocation3 + $0x10] sm:$0xff] %v4022_v32  ;;  %684 = vst [vmem:[#allocation3 + $0x18] sm:$0xff] %v4022_v32 }
  0x74   : > { %685 = vst [vmem:[#allocation3 + $0x20] sm:$0xff] %v4022_v32  ;;  %686 = vst [vmem:[#allocation3 + $0x28] sm:$0xff] %v4022_v32 }
  0x75   : > { %687 = vst [vmem:[#allocation3 + $0x30] sm:$0xff] %v4022_v32  ;;  %688 = vst [vmem:[#allocation3 + $0x38] sm:$0xff] %v4022_v32 }
  0x76   : > { %689 = vst [vmem:[#allocation3 + $0x40] sm:$0xff] %v4022_v32  ;;  %690 = vst [vmem:[#allocation3 + $0x48] sm:$0xff] %v4022_v32 }
  0x77   : > { %691 = vst [vmem:[#allocation3 + $0x50] sm:$0xff] %v4022_v32  ;;  %692 = vst [vmem:[#allocation3 + $0x58] sm:$0xff] %v4022_v32 }
  0x78   : > { %693 = vst [vmem:[#allocation3 + $0x60] sm:$0xff] %v4022_v32  ;;  %694 = vst [vmem:[#allocation3 + $0x68] sm:$0xff] %v4022_v32 }
  0x79   : > { %695 = vst [vmem:[#allocation3 + $0x70] sm:$0xff] %v4022_v32  ;;  %696 = vst [vmem:[#allocation3 + $0x78] sm:$0xff] %v4022_v32 }
  0x7a   : > { %697 = vst [vmem:[#allocation3 + $0x80] sm:$0xff] %v4022_v32  ;;  %698 = vst [vmem:[#allocation3 + $0x88] sm:$0xff] %v4022_v32 }
  0x7b   : > { %699 = vst [vmem:[#allocation3 + $0x90] sm:$0xff] %v4022_v32  ;;  %700 = vst [vmem:[#allocation3 + $0x98] sm:$0xff] %v4022_v32 }
  0x7c   : > { %701 = vst [vmem:[#allocation3 + $0xa0] sm:$0xff] %v4022_v32  ;;  %702 = vst [vmem:[#allocation3 + $0xa8] sm:$0xff] %v4022_v32 }
  0x7d   : > { %703 = vst [vmem:[#allocation3 + $0xb0] sm:$0xff] %v4022_v32  ;;  %704 = vst [vmem:[#allocation3 + $0xb8] sm:$0xff] %v4022_v32 }
  0x7e   : > { %705 = vst [vmem:[#allocation3 + $0xc0] sm:$0xff] %v4022_v32  ;;  %706 = vst [vmem:[#allocation3 + $0xc8] sm:$0xff] %v4022_v32 }
  0x7f   : > { %707 = vst [vmem:[#allocation3 + $0xd0] sm:$0xff] %v4022_v32  ;;  %708 = vst [vmem:[#allocation3 + $0xd8] sm:$0xff] %v4022_v32 }
  0x80   : > { %709 = vst [vmem:[#allocation3 + $0xe0] sm:$0xff] %v4022_v32  ;;  %710 = vst [vmem:[#allocation3 + $0xe8] sm:$0xff] %v4022_v32 }
  0x81   : > { %711 = vst [vmem:[#allocation3 + $0xf0] sm:$0xff] %v4022_v32  ;;  %712 = vst [vmem:[#allocation3 + $0xf8] sm:$0xff] %v4022_v32 }
  0x82 PF: > { %v4317_v33 = vld [vmem:[%s5865_s4] sm:$0xff]  ;;  %v4322_v34 = vld [vmem:[%s5865_s4 + $0x8] sm:$0xff]  ;;  %v4341_v39 = vld [vmem:[%s5865_s4 + $0x10] sm:$0xff]  ;;  %p3629_p6 = scmp.ne.s32.totalorder %s4004_s14, 1 }
  0x83   : > { %v4327_v35 = vld [vmem:[%s5866_s5] sm:$0xff]  ;;  %v3478_v36 = vcombine.high %v4317_v33, %v4322_v34  ;;  %v4334_v37 = vld [vmem:[%s5866_s5 + $0x8] sm:$0xff]  ;;  %v3477_v38 = vcombine.low %v4317_v33, %v4322_v34  ;;  %v4346_v40 = vld [vmem:[%s5865_s4 + $0x18] sm:$0xff] }
  0x84   : > { %v3526_v41 = vcombine.high %v4327_v35, %v4334_v37  ;;  %v3525_v42 = vcombine.low %v4327_v35, %v4334_v37  ;;  %v3480_v43 = vcombine.high %v4341_v39, %v4346_v40  ;;  %v4357_v44 = vld [vmem:[%s5866_s5 + $0x10] sm:$0xff]  ;;  %v4362_v45 = vld [vmem:[%s5866_s5 + $0x18] sm:$0xff]  ;;  %v4367_v46 = vld [vmem:[%s5865_s4 + $0x20] sm:$0xff]  ;;  %v3479_v51 = vcombine.low %v4341_v39, %v4346_v40 }
  0x85   : > { %1049 = vmatprep.subr.bf16.mxu0 %v3478_v36  ;;  %v3528_v47 = vcombine.high %v4357_v44, %v4362_v45  ;;  %v4374_v48 = vld [vmem:[%s5865_s4 + $0x28] sm:$0xff]  ;;  %v4379_v49 = vld [vmem:[%s5866_s5 + $0x20] sm:$0xff]  ;;  %v3527_v52 = vcombine.low %v4357_v44, %v4362_v45  ;;  %v4397_v55 = vld [vmem:[%s5865_s4 + $0x30] sm:$0xff] }
  0x86   : > { %v4384_v50 = vld [vmem:[%s5866_s5 + $0x28] sm:$0xff]  ;;  %1402 = vmatprep.subr.bf16.mxu1 %v3526_v41  ;;  %1050 = vmatpush1.bf16.msra.mxu0 %v3477_v38  ;;  %v3482_v53 = vcombine.high %v4367_v46, %v4374_v48  ;;  %v4402_v56 = vld [vmem:[%s5865_s4 + $0x38] sm:$0xff]  ;;  %v4407_v57 = vld [vmem:[%s5866_s5 + $0x30] sm:$0xff]  ;;  %v3481_v59 = vcombine.low %v4367_v46, %v4374_v48 }
  0x87   : > { %1403 = vmatpush1.bf16.msra.mxu1 %v3525_v42  ;;  %1051 = vmatprep.subr.bf16.mxu0 %v3480_v43  ;;  %v3530_v54 = vcombine.high %v4379_v49, %v4384_v50  ;;  %v4412_v58 = vld [vmem:[%s5866_s5 + $0x38] sm:$0xff]  ;;  %v3529_v60 = vcombine.low %v4379_v49, %v4384_v50  ;;  %v3484_v61 = vcombine.high %v4397_v55, %v4402_v56  ;;  %v4425_v63 = vld [vmem:[%s5865_s4 + $0x40] sm:$0xff]  ;;  %v4430_v0 = vld [vmem:[%s5865_s4 + $0x48] sm:$0xff] }
  0x88   : > { %1404 = vmatprep.subr.bf16.mxu1 %v3528_v47  ;;  %v3532_v62 = vcombine.high %v4407_v57, %v4412_v58  ;;  %v4435_v1 = vld [vmem:[%s5866_s5 + $0x40] sm:$0xff]  ;;  %v4440_v2 = vld [vmem:[%s5866_s5 + $0x48] sm:$0xff]  ;;  %v3483_v3 = vcombine.low %v4397_v55, %v4402_v56  ;;  %v3531_v4 = vcombine.low %v4407_v57, %v4412_v58  ;;  %v3486_v5 = vcombine.high %v4425_v63, %v4430_v0  ;;  %v4453_v7 = vld [vmem:[%s5865_s4 + $0x50] sm:$0xff] }
  0x89   : > { %v3534_v6 = vcombine.high %v4435_v1, %v4440_v2  ;;  %v4458_v8 = vld [vmem:[%s5865_s4 + $0x58] sm:$0xff]  ;;  %v4463_v9 = vld [vmem:[%s5866_s5 + $0x50] sm:$0xff]  ;;  %v3485_v11 = vcombine.low %v4425_v63, %v4430_v0  ;;  %v3533_v12 = vcombine.low %v4435_v1, %v4440_v2  ;;  %v4481_v15 = vld [vmem:[%s5865_s4 + $0x60] sm:$0xff] }
  0x8a   : > { %1052 = vmatpush1.bf16.msra.mxu0 %v3479_v51  ;;  %v4468_v10 = vld [vmem:[%s5866_s5 + $0x58] sm:$0xff]  ;;  %v3488_v13 = vcombine.high %v4453_v7, %v4458_v8  ;;  %v4486_v16 = vld [vmem:[%s5865_s4 + $0x68] sm:$0xff]  ;;  %v4491_v17 = vld [vmem:[%s5866_s5 + $0x60] sm:$0xff]  ;;  %v3487_v19 = vcombine.low %v4453_v7, %v4458_v8 }
  0x8b   : > { %1405 = vmatpush1.bf16.msra.mxu1 %v3527_v52  ;;  %1053 = vmatprep.subr.bf16.mxu0 %v3482_v53  ;;  %v3536_v14 = vcombine.high %v4463_v9, %v4468_v10  ;;  %v4496_v18 = vld [vmem:[%s5866_s5 + $0x68] sm:$0xff]  ;;  %v3535_v20 = vcombine.low %v4463_v9, %v4468_v10  ;;  %v3490_v21 = vcombine.high %v4481_v15, %v4486_v16  ;;  %v4507_v22 = vld [vmem:[%s5865_s4 + $0x70] sm:$0xff]  ;;  %v4510_v23 = vld [vmem:[%s4231_s29] sm:$0xff] }
  0x8c   : > { %1406 = vmatprep.subr.bf16.mxu1 %v3530_v54  ;;  %v4513_v24 = vld [vmem:[%s4231_s29 + $0x8] sm:$0xff]  ;;  %v3538_v25 = vcombine.high %v4491_v17, %v4496_v18  ;;  %v4520_v26 = vld [vmem:[%s5865_s4 + $0x78] sm:$0xff]  ;;  %v4525_v28 = vld [vmem:[%s4236_s12] sm:$0xff]  ;;  %v3489_v41 = vcombine.low %v4481_v15, %v4486_v16  ;;  %v3537_v42 = vcombine.low %v4491_v17, %v4496_v18 }
  0x8d   : > { %v3462_v27 = vcombine.high %v4510_v23, %v4513_v24  ;;  %v4528_v29 = vld [vmem:[%s4236_s12 + $0x8] sm:$0xff]  ;;  %v4533_v30 = vld [vmem:[%s5866_s5 + $0x70] sm:$0xff]  ;;  %v4538_v31 = vld [vmem:[%s5866_s5 + $0x78] sm:$0xff]  ;;  %v4544_v36 = vadd.bf16 %v4525_v28, %v4510_v23  ;;  %v3492_v43 = vcombine.high %v4507_v22, %v4520_v26 }
  0x8e   : > { %1054 = vmatpush1.bf16.msra.mxu0 %v3481_v59  ;;  %v3510_v32 = vcombine.high %v4525_v28, %v4528_v29  ;;  %v4548_v38 = vadd.bf16 %v4528_v29, %v4513_v24  ;;  %v3540_v51 = vcombine.high %v4533_v30, %v4538_v31  ;;  %v4563_v52 = vld [vmem:[%s5865_s4 + $0x80] sm:$0xff]  ;;  %v4568_v53 = vld [vmem:[%s5865_s4 + $0x88] sm:$0xff] }
  0x8f   : > { %1407 = vmatpush1.bf16.msra.mxu1 %v3529_v60  ;;  %1055 = vmatprep.subr.bf16.mxu0 %v3484_v61  ;;  %5981 = vst [vmem:[#allocation17_spill] sm:$0xff] %v4544_v36  ;;  %v4573_v54 = vld [vmem:[%s5866_s5 + $0x80] sm:$0xff]  ;;  %v4578_v59 = vld [vmem:[%s5866_s5 + $0x88] sm:$0xff]  ;;  %v3491_v60 = vcombine.low %v4507_v22, %v4520_v26  ;;  %v3539_v61 = vcombine.low %v4533_v30, %v4538_v31 }
  0x90   : > { %1408 = vmatprep.subr.bf16.mxu1 %v3532_v62  ;;  %5982 = vst [vmem:[#allocation18_spill] sm:$0xff] %v4548_v38  ;;  %1081 = vmatprep.mubr.bf16.mxu0 %v3462_v27  ;;  %v3494_v62 = vcombine.high %v4563_v52, %v4568_v53  ;;  %v4634_v27 = vld [vmem:[%s5866_s5 + $0xa8] sm:$0xff] }
  0x91   : > { %1434 = vmatprep.mubr.bf16.mxu1 %v3510_v32  ;;  %5985 = vst [vmem:[#allocation21_spill] sm:$0xff] %v4634_v27 }
  0x92   : > { %1056 = vmatpush1.bf16.msra.mxu0 %v3483_v3  ;;  %v3542_v3 = vcombine.high %v4573_v54, %v4578_v59 }
  0x93   : > { %1409 = vmatpush1.bf16.msra.mxu1 %v3531_v4  ;;  %1057 = vmatprep.subr.bf16.mxu0 %v3486_v5  ;;  %v4591_v4 = vld [vmem:[%s5865_s4 + $0x90] sm:$0xff]  ;;  %v4596_v5 = vld [vmem:[%s5865_s4 + $0x98] sm:$0xff] }
  0x94   : > { %1410 = vmatprep.subr.bf16.mxu1 %v3534_v6  ;;  %v4601_v6 = vld [vmem:[%s5866_s5 + $0x90] sm:$0xff]  ;;  %v3495_v32 = vcombine.low %v4591_v4, %v4596_v5 }
  0x96   : > { %1058 = vmatpush1.bf16.msra.mxu0 %v3485_v11  ;;  %v4606_v11 = vld [vmem:[%s5866_s5 + $0x98] sm:$0xff] }
  0x97   : > { %1411 = vmatpush1.bf16.msra.mxu1 %v3533_v12  ;;  %1059 = vmatprep.subr.bf16.mxu0 %v3488_v13  ;;  %v3493_v12 = vcombine.low %v4563_v52, %v4568_v53  ;;  %v3541_v13 = vcombine.low %v4573_v54, %v4578_v59 }
  0x98   : > { %1412 = vmatprep.subr.bf16.mxu1 %v3536_v14  ;;  %v3496_v14 = vcombine.high %v4591_v4, %v4596_v5 }
  0x9a   : > { %1060 = vmatpush1.bf16.msra.mxu0 %v3487_v19  ;;  %v3544_v19 = vcombine.high %v4601_v6, %v4606_v11 }
  0x9b   : > { %1413 = vmatpush1.bf16.msra.mxu1 %v3535_v20  ;;  %1061 = vmatprep.subr.bf16.mxu0 %v3490_v21  ;;  %v4619_v20 = vld [vmem:[%s5865_s4 + $0xa0] sm:$0xff]  ;;  %v4624_v21 = vld [vmem:[%s5865_s4 + $0xa8] sm:$0xff] }
  0x9c   : > { %1414 = vmatprep.subr.bf16.mxu1 %v3538_v25  ;;  %5983 = vst [vmem:[#allocation19_spill] sm:$0xff] %v4624_v21  ;;  %v4629_v25 = vld [vmem:[%s5866_s5 + $0xa0] sm:$0xff] }
  0x9d   : > { %5984 = vst [vmem:[#allocation20_spill] sm:$0xff] %v4629_v25 }
  0x9e   : > { %1062 = vmatpush1.bf16.msra.mxu0 %v3489_v41  ;;  %v3543_v41 = vcombine.low %v4601_v6, %v4606_v11 }
  0x9f   : > { %1415 = vmatpush1.bf16.msra.mxu1 %v3537_v42  ;;  %1063 = vmatprep.subr.bf16.mxu0 %v3492_v43  ;;  %v3498_v42 = vcombine.high %v4619_v20, %v4624_v21  ;;  %v3546_v43 = vcombine.high %v4629_v25, %v4634_v27 }
  0xa0   : > { %1416 = vmatprep.subr.bf16.mxu1 %v3540_v51  ;;  %v4647_v51 = vld [vmem:[%s5865_s4 + $0xb0] sm:$0xff] }
  0xa2   : > { %1064 = vmatpush1.bf16.msra.mxu0 %v3491_v60  ;;  %v4652_v60 = vld [vmem:[%s5865_s4 + $0xb8] sm:$0xff] }
  0xa3   : > { %1417 = vmatpush1.bf16.msra.mxu1 %v3539_v61  ;;  %1065 = vmatprep.subr.bf16.mxu0 %v3494_v62  ;;  %5986 = vst [vmem:[#allocation22_spill] sm:$0xff] %v4652_v60  ;;  %v4657_v61 = vld [vmem:[%s5866_s5 + $0xb0] sm:$0xff]  ;;  %v4662_v62 = vld [vmem:[%s5866_s5 + $0xb8] sm:$0xff] }
  0xa4   : > { %1418 = vmatprep.subr.bf16.mxu1 %v3542_v3  ;;  %5987 = vst [vmem:[#allocation23_spill] sm:$0xff] %v4662_v62  ;;  %v3497_v3 = vcombine.low %v4619_v20, %v4624_v21 }
  0xa6   : > { %1066 = vmatpush1.bf16.msra.mxu0 %v3493_v12  ;;  %v3545_v12 = vcombine.low %v4629_v25, %v4634_v27  ;;  %v3547_v27 = vcombine.low %v4657_v61, %v4662_v62 }
  0xa7   : > { %1419 = vmatpush1.bf16.msra.mxu1 %v3541_v13  ;;  %1067 = vmatprep.subr.bf16.mxu0 %v3496_v14  ;;  %v3500_v13 = vcombine.high %v4647_v51, %v4652_v60  ;;  %v3548_v14 = vcombine.high %v4657_v61, %v4662_v62 }
  0xa8   : > { %1420 = vmatprep.subr.bf16.mxu1 %v3544_v19  ;;  %v4675_v19 = vld [vmem:[%s5865_s4 + $0xc0] sm:$0xff] }
  0xa9   : > { %5988 = vst [vmem:[#allocation24_spill] sm:$0xff] %v4675_v19 }
  0xaa   : > { %1068 = vmatpush1.bf16.msra.mxu0 %v3495_v32  ;;  %v4680_v32 = vld [vmem:[%s5865_s4 + $0xc8] sm:$0xff] }
  0xab   : > { %1421 = vmatpush1.bf16.msra.mxu1 %v3543_v41  ;;  %1069 = vmatprep.subr.bf16.mxu0 %v3498_v42  ;;  %5989 = vst [vmem:[#allocation25_spill] sm:$0xff] %v4680_v32  ;;  %v4685_v41 = vld [vmem:[%s5866_s5 + $0xc0] sm:$0xff]  ;;  %v4690_v42 = vld [vmem:[%s5866_s5 + $0xc8] sm:$0xff]  ;;  %v3502_v21 = vcombine.high %v4675_v19, %v4680_v32  ;;  %v3501_v47 = vcombine.low %v4675_v19, %v4680_v32  ;;  %v4761_v19 = vld [vmem:[%s5865_s4 + $0xf0] sm:$0xff] }
  0xac   : > { %1422 = vmatprep.subr.bf16.mxu1 %v3546_v43  ;;  %5990 = vst [vmem:[#allocation26_spill] sm:$0xff] %v4685_v41  ;;  %5991 = vst [vmem:[#allocation27_spill] sm:$0xff] %v4690_v42  ;;  %v3499_v43 = vcombine.low %v4647_v51, %v4652_v60  ;;  %v3550_v25 = vcombine.high %v4685_v41, %v4690_v42  ;;  %v3549_v38 = vcombine.low %v4685_v41, %v4690_v42  ;;  %v4733_v60 = vld [vmem:[%s5865_s4 + $0xe0] sm:$0xff] }
  0xae   : > { %1070 = vmatpush1.bf16.msra.mxu0 %v3497_v3  ;;  %v4705_v3 = vld [vmem:[%s5865_s4 + $0xd0] sm:$0xff] }
  0xaf   : > { %1423 = vmatpush1.bf16.msra.mxu1 %v3545_v12  ;;  %1071 = vmatprep.subr.bf16.mxu0 %v3500_v13  ;;  %5992 = vst [vmem:[#allocation28_spill] sm:$0xff] %v4705_v3  ;;  %v4710_v12 = vld [vmem:[%s5865_s4 + $0xd8] sm:$0xff]  ;;  %v4715_v13 = vld [vmem:[%s5866_s5 + $0xd0] sm:$0xff] }
  0xb0   : > { %1424 = vmatprep.subr.bf16.mxu1 %v3548_v14  ;;  %5993 = vst [vmem:[#allocation29_spill] sm:$0xff] %v4710_v12  ;;  %5994 = vst [vmem:[#allocation30_spill] sm:$0xff] %v4715_v13  ;;  %v4720_v14 = vld [vmem:[%s5866_s5 + $0xd8] sm:$0xff]  ;;  %v3504_v36 = vcombine.high %v4705_v3, %v4710_v12 }
  0xb1   : > { %5995 = vst [vmem:[#allocation31_spill] sm:$0xff] %v4720_v14  ;;  %v3552_v62 = vcombine.high %v4715_v13, %v4720_v14  ;;  %v3551_v42 = vcombine.low %v4715_v13, %v4720_v14 }
  0xb2   : > { %1072 = vmatpush1.bf16.msra.mxu0 %v3499_v43  ;;  %v3503_v43 = vcombine.low %v4705_v3, %v4710_v12  ;;  %v1532_v12 = vadd.bf16 %v4334_v37, %v4322_v34  ;;  %v1534_v37 = vadd.bf16 %v4362_v45, %v4346_v40  ;;  %v3509_v40 = vcombine.low %v4525_v28, %v4528_v29 }
  0xb3   : > { %1425 = vmatpush1.bf16.msra.mxu1 %v3547_v27  ;;  %1073 = vmatprep.subr.bf16.mxu0 %v3502_v21  ;;  %v4738_v27 = vld [vmem:[%s5865_s4 + $0xe8] sm:$0xff]  ;;  %v4743_v21 = vld [vmem:[%s5866_s5 + $0xe0] sm:$0xff] }
  0xb4   : > { %1426 = vmatprep.subr.bf16.mxu1 %v3550_v25  ;;  %v4748_v25 = vld [vmem:[%s5866_s5 + $0xe8] sm:$0xff]  ;;  %v3506_v32 = vcombine.high %v4733_v60, %v4738_v27  ;;  %v3505_v14 = vcombine.low %v4733_v60, %v4738_v27 }
  0xb5   : > { %v3554_v41 = vcombine.high %v4743_v21, %v4748_v25  ;;  %v3553_v13 = vcombine.low %v4743_v21, %v4748_v25 }
  0xb6   : > { %1074 = vmatpush1.bf16.msra.mxu0 %v3501_v47  ;;  %v4776_v47 = vld [vmem:[%s5866_s5 + $0xf8] sm:$0xff] }
  0xb7   : > { %1427 = vmatpush1.bf16.msra.mxu1 %v3549_v38  ;;  %1075 = vmatprep.subr.bf16.mxu0 %v3504_v36  ;;  %v4766_v38 = vld [vmem:[%s5865_s4 + $0xf8] sm:$0xff]  ;;  %v4771_v36 = vld [vmem:[%s5866_s5 + $0xf0] sm:$0xff] }
  0xb8   : > { %1428 = vmatprep.subr.bf16.mxu1 %v3552_v62  ;;  %5996 = vst [vmem:[#allocation32_spill] sm:$0xff] %v4766_v38  ;;  %v1531_v62 = vadd.bf16 %v4327_v35, %v4317_v33  ;;  %v3508_v3 = vcombine.high %v4761_v19, %v4766_v38  ;;  %v3556_v33 = vcombine.high %v4771_v36, %v4776_v47 }
  0xb9   : > { %v3507_v34 = vcombine.low %v4761_v19, %v4766_v38  ;;  %v1533_v35 = vadd.bf16 %v4357_v44, %v4341_v39  ;;  %v4807_v38 = vld [vmem:[%s4236_s12 + $0x10] sm:$0xff]  ;;  %v4810_v39 = vld [vmem:[%s4236_s12 + $0x18] sm:$0xff] }
  0xba   : > { %1076 = vmatpush1.bf16.msra.mxu0 %v3503_v43  ;;  %v4802_v43 = vld [vmem:[%s4231_s29 + $0x18] sm:$0xff]  ;;  %v3573_v44 = vcombine.low %v1531_v62, %v1532_v12 }
  0xbb   : > { %1429 = vmatpush1.bf16.msra.mxu1 %v3551_v42  ;;  %1077 = vmatprep.subr.bf16.mxu0 %v3506_v32  ;;  %v3555_v32 = vcombine.low %v4771_v36, %v4776_v47  ;;  %v3574_v42 = vcombine.high %v1531_v62, %v1532_v12  ;;  %v3576_v45 = vcombine.high %v1533_v35, %v1534_v37  ;;  %v4835_v62 = vld [vmem:[%s4236_s12 + $0x20] sm:$0xff] }
  0xbc   : > { %1430 = vmatprep.subr.bf16.mxu1 %v3554_v41  ;;  %v4799_v41 = vld [vmem:[%s4231_s29 + $0x10] sm:$0xff]  ;;  %v3512_v12 = vcombine.high %v4807_v38, %v4810_v39  ;;  %v3575_v28 = vcombine.low %v1533_v35, %v1534_v37  ;;  %v1540_v35 = vadd.bf16 %v4440_v2, %v4430_v0  ;;  %v4858_v0 = vld [vmem:[%s4231_s29 + $0x38] sm:$0xff] }
  0xbe   : > { %1078 = vmatpush1.bf16.msra.mxu0 %v3505_v14  ;;  %v3461_v14 = vcombine.low %v4510_v23, %v4513_v24  ;;  %v1535_v23 = vadd.bf16 %v4379_v49, %v4367_v46  ;;  %v1536_v24 = vadd.bf16 %v4384_v50, %v4374_v48  ;;  %v1538_v46 = vadd.bf16 %v4412_v58, %v4402_v56  ;;  %v4827_v49 = vld [vmem:[%s4231_s29 + $0x20] sm:$0xff]  ;;  %v4830_v48 = vld [vmem:[%s4231_s29 + $0x28] sm:$0xff] }
  0xbf   : > { %1431 = vmatpush1.bf16.msra.mxu1 %v3553_v13  ;;  %1079 = vmatprep.subr.bf16.mxu0 %v3508_v3  ;;  %v3464_v3 = vcombine.high %v4799_v41, %v4802_v43  ;;  %v1537_v13 = vadd.bf16 %v4407_v57, %v4397_v55  ;;  %v3463_v50 = vcombine.low %v4799_v41, %v4802_v43 }
  0xc0   : > { %1432 = vmatprep.subr.bf16.mxu1 %v3556_v33  ;;  %v3578_v29 = vcombine.high %v1535_v23, %v1536_v24  ;;  %v4838_v33 = vld [vmem:[%s4236_s12 + $0x28] sm:$0xff]  ;;  %v3577_v55 = vcombine.low %v1535_v23, %v1536_v24  ;;  %v3466_v57 = vcombine.high %v4827_v49, %v4830_v48  ;;  %v1539_v58 = vadd.bf16 %v4435_v1, %v4425_v63  ;;  %v4855_v1 = vld [vmem:[%s4231_s29 + $0x30] sm:$0xff] }
  0xc1   : > { %v3580_v56 = vcombine.high %v1537_v13, %v1538_v46  ;;  %v3514_v37 = vcombine.high %v4835_v62, %v4838_v33  ;;  %v1542_v63 = vadd.bf16 %v4468_v10, %v4458_v8  ;;  %v3465_v2 = vcombine.low %v4827_v49, %v4830_v48 }
  0xc2   : > { %1080 = vmatpush1.bf16.msra.mxu0 %v3507_v34  ;;  %v3511_v34 = vcombine.low %v4807_v38, %v4810_v39  ;;  %v1543_v10 = vadd.bf16 %v4491_v17, %v4481_v15  ;;  %v1546_v15 = vadd.bf16 %v4538_v31, %v4520_v26  ;;  %v4883_v17 = vld [vmem:[%s4231_s29 + $0x40] sm:$0xff]  ;;  %v1547_v31 = vadd.bf16 %v4573_v54, %v4563_v52  ;;  %v4911_v54 = vld [vmem:[%s4231_s29 + $0x50] sm:$0xff] }
  0xc3   : > { %1433 = vmatpush1.bf16.msra.mxu1 %v3555_v32  ;;  %1803 = vmatprep.subr.bf16.mxu0 %v3574_v42  ;;  %v3579_v32 = vcombine.low %v1537_v13, %v1538_v46  ;;  %v3582_v42 = vcombine.high %v1539_v58, %v1540_v35  ;;  %v4894_v13 = vld [vmem:[%s4236_s12 + $0x48] sm:$0xff]  ;;  %v1550_v52 = vadd.bf16 %v4606_v11, %v4596_v5  ;;  %v5997_v11 = vld [vmem:[#allocation20_spill] sm:$0xff] }
  0xc5   : > { %1082 = vmatmul.mubr.bf16.vlgmr.msra.gmra.mrb[0].mxu0 %v3461_v14  ;;  %v1541_v14 = vadd.bf16 %v4463_v9, %v4453_v7  ;;  %v3581_v7 = vcombine.low %v1539_v58, %v1540_v35  ;;  %v3468_v9 = vcombine.high %v4855_v1, %v4858_v0  ;;  %v4919_v58 = vld [vmem:[%s4236_s12 + $0x50] sm:$0xff]  ;;  %v4922_v35 = vld [vmem:[%s4236_s12 + $0x58] sm:$0xff] }
  0xc6   : > { %1435 = vmatmul.mubr.bf16.vlgmr.msra.gmra.mrb[0].mxu1 %v3509_v40  ;;  %1804 = vmatpush1.bf16.msra.mxu0 %v3573_v44  ;;  %v4863_v44 = vld [vmem:[%s4236_s12 + $0x30] sm:$0xff]  ;;  %v4866_v40 = vld [vmem:[%s4236_s12 + $0x38] sm:$0xff] }
  0xc7   : > { %1805 = vmatprep.subr.bf16.mxu0 %v3576_v45  ;;  %1091 = vmatprep.mubr.bf16.mxu0 %v3464_v3  ;;  %v3513_v45 = vcombine.low %v4835_v62, %v4838_v33  ;;  %v3584_v8 = vcombine.high %v1541_v14, %v1542_v63  ;;  %v1544_v3 = vadd.bf16 %v4496_v18, %v4486_v16  ;;  %v4886_v16 = vld [vmem:[%s4231_s29 + $0x48] sm:$0xff] }
  0xc8   : > { %1444 = vmatprep.mubr.bf16.mxu1 %v3512_v12  ;;  %v3516_v23 = vcombine.high %v4863_v44, %v4866_v40  ;;  %v3583_v24 = vcombine.low %v1541_v14, %v1542_v63  ;;  %v3467_v18 = vcombine.low %v4855_v1, %v4858_v0  ;;  %v3515_v46 = vcombine.low %v4863_v44, %v4866_v40  ;;  %v5999_v14 = vld [vmem:[#allocation21_spill] sm:$0xff] }
  0xc9   : > { %v3586_v12 = vcombine.high %v1543_v10, %v1544_v3 }
  0xca   : > { %1806 = vmatpush1.bf16.msra.mxu0 %v3575_v28  ;;  %v1545_v28 = vadd.bf16 %v4533_v30, %v4507_v22  ;;  %v3585_v22 = vcombine.low %v1543_v10, %v1544_v3  ;;  %v3470_v30 = vcombine.high %v4883_v17, %v4886_v16  ;;  %v4939_v3 = vld [vmem:[%s4231_s29 + $0x60] sm:$0xff] }
  0xcb   : > { %1807 = vmatprep.subr.bf16.mxu0 %v3578_v29  ;;  %v4891_v29 = vld [vmem:[%s4236_s12 + $0x40] sm:$0xff] }
  0xcc   : > { %v3588_v26 = vcombine.high %v1545_v28, %v1546_v15 }
  0xcd   : > { %1092 = vmatmul.mubr.bf16.gmra.mrb[4].mxu0 %v3463_v50  ;;  %v1548_v50 = vadd.bf16 %v4578_v59, %v4568_v53  ;;  %v4914_v53 = vld [vmem:[%s4231_s29 + $0x58] sm:$0xff]  ;;  %v3469_v59 = vcombine.low %v4883_v17, %v4886_v16 }
  0xce   : > { %1445 = vmatmul.mubr.bf16.gmra.mrb[4].mxu1 %v3511_v34  ;;  %1808 = vmatpush1.bf16.msra.mxu0 %v3577_v55  ;;  %v3518_v34 = vcombine.high %v4891_v29, %v4894_v13  ;;  %v3587_v55 = vcombine.low %v1545_v28, %v1546_v15  ;;  %v4950_v28 = vld [vmem:[%s4236_s12 + $0x68] sm:$0xff]  ;;  %v3519_v15 = vcombine.low %v4919_v58, %v4922_v35 }
  0xcf   : > { %1809 = vmatprep.subr.bf16.mxu0 %v3580_v56  ;;  %1101 = vmatprep.mubr.bf16.mxu0 %v3466_v57  ;;  %v3590_v56 = vcombine.high %v1547_v31, %v1548_v50  ;;  %v1549_v57 = vadd.bf16 %v4601_v6, %v4591_v4  ;;  %v3589_v4 = vcombine.low %v1547_v31, %v1548_v50  ;;  %v6005_v31 = vld [vmem:[#allocation27_spill] sm:$0xff] }
  0xd0   : > { %1454 = vmatprep.mubr.bf16.mxu1 %v3514_v37  ;;  %v3517_v37 = vcombine.low %v4891_v29, %v4894_v13  ;;  %v3472_v6 = vcombine.high %v4911_v54, %v4914_v53 }
  0xd1   : > { %v3592_v5 = vcombine.high %v1549_v57, %v1550_v52 }
  0xd2   : > { %1810 = vmatpush1.bf16.msra.mxu0 %v3579_v32  ;;  %v1551_v32 = vadd.bf16 %v5997_v11, %v4619_v20  ;;  %v6001_v20 = vld [vmem:[#allocation23_spill] sm:$0xff]  ;;  %v4970_v11 = vld [vmem:[%s4231_s29 + $0x78] sm:$0xff] }
  0xd3   : > { %1811 = vmatprep.subr.bf16.mxu0 %v3582_v42  ;;  %v5998_v42 = vld [vmem:[#allocation19_spill] sm:$0xff] }
  0xd4   : > { %v1552_v63 = vadd.bf16 %v5999_v14, %v5998_v42  ;;  %v4975_v42 = vld [vmem:[%s4236_s12 + $0x70] sm:$0xff]  ;;  %v4978_v14 = vld [vmem:[%s4236_s12 + $0x78] sm:$0xff] }
  0xd5   : > { %1102 = vmatmul.mubr.bf16.gmra.mrb[8].mxu0 %v3465_v2  ;;  %v3520_v2 = vcombine.high %v4919_v58, %v4922_v35 }
  0xd6   : > { %1455 = vmatmul.mubr.bf16.gmra.mrb[8].mxu1 %v3513_v45  ;;  %1812 = vmatpush1.bf16.msra.mxu0 %v3581_v7  ;;  %v3591_v45 = vcombine.low %v1549_v57, %v1550_v52  ;;  %v3594_v7 = vcombine.high %v1551_v32, %v1552_v63  ;;  %v6006_v57 = vld [vmem:[#allocation28_spill] sm:$0xff]  ;;  %v6007_v52 = vld [vmem:[#allocation30_spill] sm:$0xff] }
  0xd7   : > { %1813 = vmatprep.subr.bf16.mxu0 %v3584_v8  ;;  %1111 = vmatprep.mubr.bf16.mxu0 %v3468_v9  ;;  %v1553_v8 = vadd.bf16 %v4657_v61, %v4647_v51  ;;  %v6000_v9 = vld [vmem:[#allocation22_spill] sm:$0xff]  ;;  %v3593_v51 = vcombine.low %v1551_v32, %v1552_v63 }
  0xd8   : > { %1464 = vmatprep.mubr.bf16.mxu1 %v3516_v23  ;;  %v1554_v10 = vadd.bf16 %v6001_v20, %v6000_v9  ;;  %v4942_v23 = vld [vmem:[%s4231_s29 + $0x68] sm:$0xff]  ;;  %v1560_v9 = vadd.bf16 %v4748_v25, %v4738_v27  ;;  %v3524_v20 = vcombine.high %v4975_v42, %v4978_v14  ;;  %v3523_v27 = vcombine.low %v4975_v42, %v4978_v14 }
  0xd9   : > { %v3473_v32 = vcombine.low %v4939_v3, %v4942_v23 }
  0xda   : > { %1814 = vmatpush1.bf16.msra.mxu0 %v3583_v24  ;;  %v3471_v24 = vcombine.low %v4911_v54, %v4914_v53  ;;  %v3596_v61 = vcombine.high %v1553_v8, %v1554_v10 }
  0xdb   : > { %1815 = vmatprep.subr.bf16.mxu0 %v3586_v12  ;;  %v4947_v12 = vld [vmem:[%s4236_s12 + $0x60] sm:$0xff] }
  0xdc   : > { %v3521_v63 = vcombine.low %v4947_v12, %v4950_v28 }
  0xdd   : > { %1112 = vmatmul.mubr.bf16.gmra.mrb[12].mxu0 %v3467_v18  ;;  %v3474_v18 = vcombine.high %v4939_v3, %v4942_v23 }
  0xde   : > { %1465 = vmatmul.mubr.bf16.gmra.mrb[12].mxu1 %v3515_v46  ;;  %1816 = vmatpush1.bf16.msra.mxu0 %v3585_v22  ;;  %v6002_v46 = vld [vmem:[#allocation24_spill] sm:$0xff]  ;;  %v6003_v22 = vld [vmem:[#allocation26_spill] sm:$0xff] }
  0xdf   : > { %1817 = vmatprep.subr.bf16.mxu0 %v3588_v26  ;;  %1121 = vmatprep.mubr.bf16.mxu0 %v3470_v30  ;;  %v1555_v26 = vadd.bf16 %v6003_v22, %v6002_v46  ;;  %v6004_v30 = vld [vmem:[#allocation25_spill] sm:$0xff]  ;;  %v6012_v46 = vld [vmem:[#allocation18_spill] sm:$0xff] }
  0xe0   : > { %1474 = vmatprep.mubr.bf16.mxu1 %v3518_v34  ;;  %v1556_v50 = vadd.bf16 %v6005_v31, %v6004_v30  ;;  %v3522_v34 = vcombine.high %v4947_v12, %v4950_v28  ;;  %v1519_v31 = vadd.bf16 %v4835_v62, %v4827_v49  ;;  %v1523_v49 = vadd.bf16 %v4891_v29, %v4883_v17 }
  0xe1   : > { %v1527_v17 = vadd.bf16 %v4947_v12, %v4939_v3  ;;  %v5898_v3 = vmov 0  }
  0xe2   : > { %1818 = vmatpush1.bf16.msra.mxu0 %v3587_v55  ;;  %v3595_v55 = vcombine.low %v1553_v8, %v1554_v10  ;;  %v1559_v8 = vadd.bf16 %v4743_v21, %v4733_v60 }
  0xe3   : > { %1819 = vmatprep.subr.bf16.mxu0 %v3590_v56  ;;  %v3598_v56 = vcombine.high %v1555_v26, %v1556_v50 }
  0xe4   : > { %v3601_v21 = vcombine.low %v1559_v8, %v1560_v9 }
  0xe5   : > { %1122 = vmatmul.mubr.bf16.gmra.mrb[16].mxu0 %v3469_v59  ;;  %v1557_v59 = vadd.bf16 %v6007_v52, %v6006_v57  ;;  %v1948_v57 = vld [vmem:[%s5867_s6] sm:$0x3] }
  0xe6   : > { %1475 = vmatmul.mubr.bf16.gmra.mrb[16].mxu1 %v3517_v37  ;;  %1820 = vmatpush1.bf16.msra.mxu0 %v3589_v4  ;;  %v6008_v37 = vld [vmem:[#allocation29_spill] sm:$0xff]  ;;  %v6009_v4 = vld [vmem:[#allocation31_spill] sm:$0xff] }
  0xe7   : > { %1821 = vmatprep.subr.bf16.mxu0 %v3592_v5  ;;  %1131 = vmatprep.mubr.bf16.mxu0 %v3472_v6  ;;  %v1558_v5 = vadd.bf16 %v6009_v4, %v6008_v37  ;;  %v4967_v6 = vld [vmem:[%s4231_s29 + $0x70] sm:$0xff] }
  0xe8   : > { %1484 = vmatprep.mubr.bf16.mxu1 %v3520_v2  ;;  %v3597_v2 = vcombine.low %v1555_v26, %v1556_v50  ;;  %v3475_v60 = vcombine.low %v4967_v6, %v4970_v11  ;;  %v1522_v50 = vadd.bf16 %v4866_v40, %v4858_v0  ;;  %v1526_v0 = vadd.bf16 %v4922_v35, %v4914_v53 }
  0xe9   : > { %v3599_v10 = vcombine.low %v1557_v59, %v1558_v5  ;;  %v1530_v53 = vadd.bf16 %v4978_v14, %v4970_v11 }
  0xea   : > { %1822 = vmatpush1.bf16.msra.mxu0 %v3591_v45  ;;  %v3600_v45 = vcombine.high %v1557_v59, %v1558_v5 }
  0xeb   : > { %1823 = vmatprep.subr.bf16.mxu0 %v3594_v7  ;;  %v3476_v7 = vcombine.high %v4967_v6, %v4970_v11 }
  0xed   : > { %1132 = vmatmul.mubr.bf16.gmra.mrb[20].mxu0 %v3471_v24  ;;  %v3602_v24 = vcombine.high %v1559_v8, %v1560_v9 }
  0xee   : > { %1485 = vmatmul.mubr.bf16.gmra.mrb[20].mxu1 %v3519_v15  ;;  %1824 = vmatpush1.bf16.msra.mxu0 %v3593_v51  ;;  %v1561_v15 = vadd.bf16 %v4771_v36, %v4761_v19  ;;  %v6010_v51 = vld [vmem:[#allocation32_spill] sm:$0xff]  ;;  %v1517_v19 = vadd.bf16 %v4807_v38, %v4799_v41  ;;  %v1518_v36 = vadd.bf16 %v4810_v39, %v4802_v43 }
  0xef   : > { %1825 = vmatprep.subr.bf16.mxu0 %v3596_v61  ;;  %1141 = vmatprep.mubr.bf16.mxu0 %v3474_v18  ;;  %v1562_v61 = vadd.bf16 %v4776_v47, %v6010_v51  ;;  %v6011_v47 = vld [vmem:[#allocation17_spill] sm:$0xff]  ;;  %v1520_v38 = vadd.bf16 %v4838_v33, %v4830_v48  ;;  %v1521_v39 = vadd.bf16 %v4863_v44, %v4855_v1 }
  0xf0   : > { %1494 = vmatprep.mubr.bf16.mxu1 %v3522_v34  ;;  %v6013_v22 = vcombine.high %v6011_v47, %v6012_v46  ;;  %v3560_v26 = vcombine.high %v1517_v19, %v1518_v36  ;;  %v6014_v30 = vcombine.low %v6011_v47, %v6012_v46  ;;  %v3559_v41 = vcombine.low %v1517_v19, %v1518_v36 }
  0xf1   : > { %v3604_v25 = vcombine.high %v1561_v15, %v1562_v61  ;;  %v3603_v18 = vcombine.low %v1561_v15, %v1562_v61  ;;  %v3562_v43 = vcombine.high %v1519_v31, %v1520_v38  ;;  %v3561_v34 = vcombine.low %v1519_v31, %v1520_v38 }
  0xf2   : > { %1826 = vmatpush1.bf16.msra.mxu0 %v3595_v55  ;;  %v3564_v55 = vcombine.high %v1521_v39, %v1522_v50  ;;  %v1524_v48 = vadd.bf16 %v4894_v13, %v4886_v16  ;;  %v3563_v62 = vcombine.low %v1521_v39, %v1522_v50  ;;  %v1525_v1 = vadd.bf16 %v4919_v58, %v4911_v54  ;;  %v5119_v39 = vld [vmem:[%s4243_s19 + $0xc] sm:$0xf] }
  0xf3   : > { %1827 = vmatprep.subr.bf16.mxu0 %v3598_v56  ;;  %v1528_v16 = vadd.bf16 %v4950_v28, %v4942_v23  ;;  %v1529_v54 = vadd.bf16 %v4975_v42, %v4967_v6  ;;  %v1950_v23 = vlaneseq }
  0xf4   : > { %v3566_v33 = vcombine.high %v1523_v49, %v1524_v48  ;;  %v3565_v44 = vcombine.low %v1523_v49, %v1524_v48  ;;  %v3568_v40 = vcombine.high %v1525_v1, %v1526_v0  ;;  %v3567_v29 = vcombine.low %v1525_v1, %v1526_v0 }
  0xf5   : > { %1142 = vmatmul.mubr.bf16.gmra.mrb[24].mxu0 %v3473_v32  ;;  %v3570_v13 = vcombine.high %v1527_v17, %v1528_v16  ;;  %v3569_v58 = vcombine.low %v1527_v17, %v1528_v16  ;;  %v3572_v35 = vcombine.high %v1529_v54, %v1530_v53  ;;  %v3571_v56 = vcombine.low %v1529_v54, %v1530_v53 }
  0xf6   : > { %1495 = vmatmul.mubr.bf16.gmra.mrb[24].mxu1 %v3521_v63  ;;  %1828 = vmatpush1.bf16.msra.mxu0 %v3597_v2  ;;  %v5034_v12 = vshrl.u32 %v1950_v23, 7 }
  0xf7   : > { %1829 = vmatprep.subr.bf16.mxu0 %v3600_v45  ;;  %1151 = vmatprep.mubr.bf16.mxu0 %v3476_v7 }
  0xf8   : > { %1504 = vmatprep.mubr.bf16.mxu1 %v3524_v20  ;;  %v5901_v28 = vsub.s32 0, %v5034_v12  ;;  %v5900_v52 = vsub.s32 1, %v5034_v12 }
  0xfa   : > { %1830 = vmatpush1.bf16.msra.mxu0 %v3599_v10  ;;  %v5051_v6 = vrot.slane %v1948_v57, %v5901_v28  ;;  %v5061_v14 = vrot.slane %v1948_v57, %v5900_v52 }
  0xfb   : > { %1831 = vmatprep.subr.bf16.mxu0 %v3602_v24 }
  0xfd   : > { %1152 = vmatmul.mubr.bf16.gmra.mrb[28].mxu0 %v3475_v60 }
  0xfe   : > { %1505 = vmatmul.mubr.bf16.gmra.mrb[28].mxu1 %v3523_v27  ;;  %1832 = vmatpush1.bf16.msra.mxu0 %v3601_v21 }
  0xff   : > { %1833 = vmatprep.subr.bf16.mxu0 %v3604_v25  ;;  %1835 = vmatprep.mubr.bf16.mxu0 %v6013_v22 }
 0x100   : > { %2244 = vmatprep.mubr.bf16.mxu1 %v5898_v3 }
 0x102   : > { %1834 = vmatpush1.bf16.msra.mxu0 %v3603_v18 }
 0x105   : > { %1836 = vmatmul.mubr.bf16.vlgmr.msra.gmra.mrb[32].mxu0 %v6014_v30  ;;  %v5109_v30 = vld [vmem:[%s4245_s13 + $0xc] sm:$0xf] }
 0x106   : > { %1845 = vmatprep.mubr.bf16.mxu0 %v3560_v26  ;;  %v5106_v26 = vld [vmem:[%s4245_s13 + $0x8] sm:$0xf]  ;;  %6016 = vst [vmem:[#allocation19_spill] sm:$0xff] %v5109_v30  ;;  %v2489_v49 = vadd.bf16 %v5109_v30, %v5119_v39 }
 0x107   : > { %6015 = vst [vmem:[#allocation20_spill] sm:$0xff] %v5106_v26 }
 0x10d   : > { %1846 = vmatmul.mubr.bf16.gmra.mrb[36].mxu0 %v3559_v41 }
 0x10e   : > { %1855 = vmatprep.mubr.bf16.mxu0 %v3562_v43  ;;  %v5116_v43 = vld [vmem:[%s4243_s19 + $0x8] sm:$0xf] }
 0x115   : > { %1856 = vmatmul.mubr.bf16.gmra.mrb[40].mxu0 %v3561_v34 }
 0x116   : > { %1865 = vmatprep.mubr.bf16.mxu0 %v3564_v55  ;;  %v2488_v55 = vadd.bf16 %v5106_v26, %v5116_v43 }
 0x11d   : > { %1866 = vmatmul.mubr.bf16.gmra.mrb[44].mxu0 %v3563_v62 }
 0x11e   : > { %1875 = vmatprep.mubr.bf16.mxu0 %v3566_v33 }
 0x125   : > { %1876 = vmatmul.mubr.bf16.gmra.mrb[48].mxu0 %v3565_v44  ;;  %v5137_v44 = vcombine.low %v2488_v55, %v2489_v49 }
 0x126   : > { %1885 = vmatprep.mubr.bf16.mxu0 %v3568_v40 }
 0x127   : > { %6017 = vst [vmem:[#allocation21_spill] sm:$0xff] %v5137_v44 }
 0x12d   : > { %1886 = vmatmul.mubr.bf16.gmra.mrb[52].mxu0 %v3567_v29 }
 0x12e   : > { %1895 = vmatprep.mubr.bf16.mxu0 %v3570_v13 }
 0x135   : > { %1896 = vmatmul.mubr.bf16.gmra.mrb[56].mxu0 %v3569_v58 }
 0x136   : > { %1905 = vmatprep.mubr.bf16.mxu0 %v3572_v35  ;;  %v5158_v35 = vld [vmem:[%s4245_s13 + $0x10] sm:$0xf] }
 0x137   : > { %6018 = vst [vmem:[#allocation22_spill] sm:$0xff] %v5158_v35 }
 0x13d   : > { %1906 = vmatmul.mubr.bf16.gmra.mrb[60].mxu0 %v3571_v56  ;;  %v5161_v56 = vld [vmem:[%s4245_s13 + $0x14] sm:$0xf] }
 0x13e   : > { %2405 = vmatprep.mubr.bf16.mxu0 %v5898_v3  ;;  %6019 = vst [vmem:[#allocation23_spill] sm:$0xff] %v5161_v56 }
 0x198   : > { %v5041_v59 = vpop.f32.mrb[0].mxu0 }
 0x199   : > { %v5043_v37 = vpop.f32.mrb[0].mxu1  ;;  %v5045_v4 = vpop.f32.mrb[1].mxu0 }
 0x19a   : > { %v1916_v5 = vsub.f32 %v5041_v59, %v5043_v37  ;;  %v5053_v11 = vpop.f32.mrb[1].mxu1  ;;  %v5055_v32 = vpop.f32.mrb[2].mxu0 }
 0x19b   : > { %v1917_v42 = vsub.f32 %v5045_v4, %v5053_v11  ;;  %v5063_v63 = vpop.f32.mrb[2].mxu1  ;;  %v5065_v2 = vpop.f32.mrb[3].mxu0 }
 0x19c   : > { %v1918_v45 = vsub.f32 %v5055_v32, %v5063_v63  ;;  %v5069_v7 = vpop.f32.mrb[3].mxu1  ;;  %v1960_v9 = vadd.f32 %v5051_v6, %v1916_v5 }
 0x19d   : > { %v1919_v8 = vsub.f32 %v5065_v2, %v5069_v7  ;;  %v1961_v10 = vadd.f32 %v5061_v14, %v1917_v42  ;;  %v5168_v42 = vld [vmem:[%s4243_s19 + $0x10] sm:$0xf] }
 0x19e   : > { %v1962_v20 = vadd.f32 %v5051_v6, %v1918_v45  ;;  %v5171_v45 = vld [vmem:[%s4243_s19 + $0x14] sm:$0xf] }
 0x19f   : > { %v1963_v24 = vadd.f32 %v5061_v14, %v1919_v8 }
 0x1a0   : > { %v5077_v15 = vpack.c.bf16 %v1962_v20, %v1960_v9  ;;  %v5079_v51 = vpop.f32.mrb[4].mxu0  ;;  %v2490_v20 = vadd.bf16 %v5158_v35, %v5168_v42 }
 0x1a1   : > { %v5081_v61 = vpop.f32.mrb[4].mxu1  ;;  %v5083_v60 = vpop.f32.mrb[5].mxu0  ;;  %v5085_v27 = vpack.c.bf16 %v1963_v24, %v1961_v10  ;;  %v2491_v10 = vadd.bf16 %v5161_v56, %v5171_v45 }
 0x1a2   : > { %v1920_v21 = vsub.f32 %v5079_v51, %v5081_v61  ;;  %v5089_v25 = vpop.f32.mrb[5].mxu1  ;;  %v5091_v18 = vpop.f32.mrb[6].mxu0 }
 0x1a3   : > { %v1921_v19 = vsub.f32 %v5083_v60, %v5089_v25  ;;  %v5095_v36 = vpop.f32.mrb[6].mxu1  ;;  %2212 = vmatprep.subr.bf16.mxu1 %v5085_v27  ;;  %v5098_v47 = vpop.f32.mrb[7].mxu0 }
 0x1a4   : > { %v1922_v46 = vsub.f32 %v5091_v18, %v5095_v36  ;;  %v5102_v22 = vpop.f32.mrb[7].mxu1  ;;  %2213 = vmatpush1.bf16.msra.mxu1 %v5077_v15  ;;  %v1964_v38 = vadd.f32 %v5051_v6, %v1920_v21 }
 0x1a5   : > { %v1923_v31 = vsub.f32 %v5098_v47, %v5102_v22  ;;  %v1965_v50 = vadd.f32 %v5061_v14, %v1921_v19 }
 0x1a6   : > { %v1966_v41 = vadd.f32 %v5051_v6, %v1922_v46 }
 0x1a7   : > { %v1967_v34 = vadd.f32 %v5061_v14, %v1923_v31 }
 0x1a8   : > { %v5127_v48 = vpack.c.bf16 %v1966_v41, %v1964_v38  ;;  %v5129_v62 = vpop.f32.mrb[8].mxu0  ;;  %v5189_v38 = vcombine.low %v2490_v20, %v2491_v10  ;;  %v5220_v20 = vld [vmem:[%s4243_s19 + $0x18] sm:$0xf]  ;;  %v5223_v10 = vld [vmem:[%s4243_s19 + $0x1c] sm:$0xf] }
 0x1a9   : > { %v5131_v33 = vpop.f32.mrb[8].mxu1  ;;  %v5133_v1 = vpop.f32.mrb[9].mxu0  ;;  %v5135_v0 = vpack.c.bf16 %v1967_v34, %v1965_v50 }
 0x1aa   : > { %v1924_v40 = vsub.f32 %v5129_v62, %v5131_v33  ;;  %v5141_v17 = vpop.f32.mrb[9].mxu1  ;;  %v5143_v16 = vpop.f32.mrb[10].mxu0  ;;  %6020 = vst [vmem:[#allocation24_spill] sm:$0xff] %v5189_v38 }
 0x1ab   : > { %v1925_v29 = vsub.f32 %v5133_v1, %v5141_v17  ;;  %v5147_v13 = vpop.f32.mrb[10].mxu1  ;;  %2214 = vmatprep.subr.bf16.mxu1 %v5135_v0  ;;  %v5150_v54 = vpop.f32.mrb[11].mxu0 }
 0x1ac   : > { %v1926_v53 = vsub.f32 %v5143_v16, %v5147_v13  ;;  %v5154_v58 = vpop.f32.mrb[11].mxu1  ;;  %2215 = vmatpush1.bf16.msra.mxu1 %v5127_v48  ;;  %v1968_v57 = vadd.f32 %v5051_v6, %v1924_v40 }
 0x1ad   : > { %v1927_v23 = vsub.f32 %v5150_v54, %v5154_v58  ;;  %v1969_v8 = vadd.f32 %v5061_v14, %v1925_v29 }
 0x1ae   : > { %v1970_v5 = vadd.f32 %v5051_v6, %v1926_v53 }
 0x1af   : > { %v1971_v9 = vadd.f32 %v5061_v14, %v1927_v23  ;;  %v5210_v23 = vld [vmem:[%s4245_s13 + $0x18] sm:$0xf] }
 0x1b0   : > { %v5179_v24 = vpack.c.bf16 %v1970_v5, %v1968_v57  ;;  %v5181_v21 = vpop.f32.mrb[12].mxu0  ;;  %6022 = vst [vmem:[#allocation25_spill] sm:$0xff] %v5210_v23  ;;  %v5213_v57 = vld [vmem:[%s4245_s13 + $0x1c] sm:$0xf]  ;;  %v2492_v28 = vadd.bf16 %v5210_v23, %v5220_v20 }
 0x1b1   : > { %v5183_v19 = vpop.f32.mrb[12].mxu1  ;;  %v5185_v46 = vpop.f32.mrb[13].mxu0  ;;  %v5187_v31 = vpack.c.bf16 %v1971_v9, %v1969_v8  ;;  %6023 = vst [vmem:[#allocation27_spill] sm:$0xff] %v5213_v57  ;;  %v2493_v38 = vadd.bf16 %v5213_v57, %v5223_v10 }
 0x1b2   : > { %v1928_v41 = vsub.f32 %v5181_v21, %v5183_v19  ;;  %v5193_v50 = vpop.f32.mrb[13].mxu1  ;;  %v5195_v34 = vpop.f32.mrb[14].mxu0 }
 0x1b3   : > { %v1929_v55 = vsub.f32 %v5185_v46, %v5193_v50  ;;  %v5199_v49 = vpop.f32.mrb[14].mxu1  ;;  %2216 = vmatprep.subr.bf16.mxu1 %v5187_v31  ;;  %v5202_v40 = vpop.f32.mrb[15].mxu0 }
 0x1b4   : > { %v1930_v29 = vsub.f32 %v5195_v34, %v5199_v49  ;;  %v5206_v53 = vpop.f32.mrb[15].mxu1  ;;  %2217 = vmatpush1.bf16.msra.mxu1 %v5179_v24  ;;  %v1972_v8 = vadd.f32 %v5051_v6, %v1928_v41 }
 0x1b5   : > { %6021 = vst [vmem:[#allocation26_spill] sm:$0xff] %v5206_v53  ;;  %v1931_v5 = vsub.f32 %v5202_v40, %v5206_v53  ;;  %v1973_v3 = vadd.f32 %v5061_v14, %v1929_v55  ;;  %v5241_v55 = vcombine.low %v2492_v28, %v2493_v38  ;;  %v5262_v38 = vld [vmem:[%s4245_s13 + $0x20] sm:$0xf] }
 0x1b6   : > { %v1974_v9 = vadd.f32 %v5051_v6, %v1930_v29  ;;  %6035 = vst [vmem:[#allocation37_spill] sm:$0xff] %v5262_v38 }
 0x1b7   : > { %v1975_v52 = vadd.f32 %v5061_v14, %v1931_v5  ;;  %6029 = vst [vmem:[#allocation17_spill] sm:$0xff] %v5241_v55  ;;  %v5265_v55 = vld [vmem:[%s4245_s13 + $0x24] sm:$0xf] }
 0x1b8   : > { %v5231_v35 = vpack.c.bf16 %v1974_v9, %v1972_v8  ;;  %v5233_v41 = vpop.f32.mrb[16].mxu0  ;;  %6036 = vst [vmem:[#allocation38_spill] sm:$0xff] %v5265_v55 }
 0x1b9   : > { %6025 = vst [vmem:[#allocation30_spill] sm:$0xff] %v5233_v41  ;;  %v5235_v29 = vpop.f32.mrb[16].mxu1  ;;  %v5237_v56 = vpop.f32.mrb[17].mxu0  ;;  %v5239_v44 = vpack.c.bf16 %v1975_v52, %v1973_v3 }
 0x1ba   : > { %6024 = vst [vmem:[#allocation28_spill] sm:$0xff] %v5231_v35  ;;  %6026 = vst [vmem:[#allocation29_spill] sm:$0xff] %v5235_v29  ;;  %v1932_v5 = vsub.f32 %v5233_v41, %v5235_v29  ;;  %v5245_v23 = vpop.f32.mrb[17].mxu1  ;;  %v5247_v8 = vpop.f32.mrb[18].mxu0  ;;  %v5275_v29 = vld [vmem:[%s4243_s19 + $0x24] sm:$0xf] }
 0x1bb   : > { %6027 = vst [vmem:[#allocation31_spill] sm:$0xff] %v5237_v56  ;;  %6028 = vst [vmem:[#allocation32_spill] sm:$0xff] %v5239_v44  ;;  %v1933_v9 = vsub.f32 %v5237_v56, %v5245_v23  ;;  %v5251_v57 = vpop.f32.mrb[18].mxu1  ;;  %2218 = vmatprep.subr.bf16.mxu1 %v5239_v44  ;;  %v5254_v3 = vpop.f32.mrb[19].mxu0  ;;  %v2495_v56 = vadd.bf16 %v5265_v55, %v5275_v29 }
 0x1bc   : > { %6030 = vst [vmem:[#allocation18_spill] sm:$0xff] %v5245_v23  ;;  %6031 = vst [vmem:[#allocation33_spill] sm:$0xff] %v5247_v8  ;;  %v1934_v28 = vsub.f32 %v5247_v8, %v5251_v57  ;;  %v5258_v52 = vpop.f32.mrb[19].mxu1  ;;  %2219 = vmatpush1.bf16.msra.mxu1 %v5231_v35  ;;  %v1976_v30 = vadd.f32 %v5051_v6, %v1932_v5  ;;  %v5272_v23 = vld [vmem:[%s4243_s19 + $0x20] sm:$0xf] }
 0x1bd   : > { %6032 = vst [vmem:[#allocation34_spill] sm:$0xff] %v5251_v57  ;;  %6033 = vst [vmem:[#allocation35_spill] sm:$0xff] %v5254_v3  ;;  %v1935_v26 = vsub.f32 %v5254_v3, %v5258_v52  ;;  %v1977_v57 = vadd.f32 %v5061_v14, %v1933_v9  ;;  %v2494_v35 = vadd.bf16 %v5262_v38, %v5272_v23 }
 0x1be   : > { %6034 = vst [vmem:[#allocation36_spill] sm:$0xff] %v5258_v52  ;;  %v1978_v44 = vadd.f32 %v5051_v6, %v1934_v28  ;;  %6037 = vst [vmem:[#allocation39_spill] sm:$0xff] %v5272_v23 }
 0x1bf   : > { %6038 = vst [vmem:[#allocation40_spill] sm:$0xff] %v5275_v29  ;;  %v1979_v8 = vadd.f32 %v5061_v14, %v1935_v26  ;;  %v5293_v9 = vcombine.low %v2494_v35, %v2495_v56 }
 0x1c0   : > { %v5283_v41 = vpack.c.bf16 %v1978_v44, %v1976_v30  ;;  %v5285_v5 = vpop.f32.mrb[20].mxu0 }
 0x1c1   : > { %6040 = vst [vmem:[#allocation42_spill] sm:$0xff] %v5285_v5  ;;  %v5287_v28 = vpop.f32.mrb[20].mxu1  ;;  %v5289_v52 = vpop.f32.mrb[21].mxu0  ;;  %v5291_v3 = vpack.c.bf16 %v1979_v8, %v1977_v57  ;;  %6044 = vst [vmem:[#allocation46_spill] sm:$0xff] %v5293_v9  ;;  %v5314_v8 = vld [vmem:[%s4245_s13 + $0x28] sm:$0xf] }
 0x1c2   : > { %6039 = vst [vmem:[#allocation41_spill] sm:$0xff] %v5283_v41  ;;  %6041 = vst [vmem:[#allocation43_spill] sm:$0xff] %v5287_v28  ;;  %v1936_v26 = vsub.f32 %v5285_v5, %v5287_v28  ;;  %v5297_v38 = vpop.f32.mrb[21].mxu1  ;;  %v5299_v30 = vpop.f32.mrb[22].mxu0  ;;  %v5317_v9 = vld [vmem:[%s4245_s13 + $0x2c] sm:$0xf] }
 0x1c3   : > { %6042 = vst [vmem:[#allocation44_spill] sm:$0xff] %v5289_v52  ;;  %6043 = vst [vmem:[#allocation45_spill] sm:$0xff] %v5291_v3  ;;  %v1937_v44 = vsub.f32 %v5289_v52, %v5297_v38  ;;  %v5303_v55 = vpop.f32.mrb[22].mxu1  ;;  %2220 = vmatprep.subr.bf16.mxu1 %v5291_v3  ;;  %v5306_v57 = vpop.f32.mrb[23].mxu0  ;;  %v5324_v52 = vld [vmem:[%s4243_s19 + $0x28] sm:$0xf] }
 0x1c4   : > { %6045 = vst [vmem:[#allocation47_spill] sm:$0xff] %v5297_v38  ;;  %6046 = vst [vmem:[#allocation48_spill] sm:$0xff] %v5299_v30  ;;  %v1938_v35 = vsub.f32 %v5299_v30, %v5303_v55  ;;  %v5310_v56 = vpop.f32.mrb[23].mxu1  ;;  %2221 = vmatpush1.bf16.msra.mxu1 %v5283_v41  ;;  %v1980_v28 = vadd.f32 %v5051_v6, %v1936_v26  ;;  %v5327_v5 = vld [vmem:[%s4243_s19 + $0x2c] sm:$0xf]  ;;  %v2496_v41 = vadd.bf16 %v5314_v8, %v5324_v52 }
 0x1c5   : > { %6047 = vst [vmem:[#allocation49_spill] sm:$0xff] %v5303_v55  ;;  %6048 = vst [vmem:[#allocation50_spill] sm:$0xff] %v5306_v57  ;;  %v1939_v38 = vsub.f32 %v5306_v57, %v5310_v56  ;;  %v1981_v55 = vadd.f32 %v5061_v14, %v1937_v44  ;;  %v2497_v23 = vadd.bf16 %v5317_v9, %v5327_v5 }
 0x1c6   : > { %6049 = vst [vmem:[#allocation51_spill] sm:$0xff] %v5310_v56  ;;  %6050 = vst [vmem:[#allocation52_spill] sm:$0xff] %v5314_v8  ;;  %v1982_v3 = vadd.f32 %v5051_v6, %v1938_v35 }
 0x1c7   : > { %6051 = vst [vmem:[#allocation53_spill] sm:$0xff] %v5317_v9  ;;  %6052 = vst [vmem:[#allocation54_spill] sm:$0xff] %v5324_v52  ;;  %v1983_v30 = vadd.f32 %v5061_v14, %v1939_v38  ;;  %v5345_v44 = vcombine.low %v2496_v41, %v2497_v23 }
 0x1c8   : > { %6053 = vst [vmem:[#allocation55_spill] sm:$0xff] %v5327_v5  ;;  %v5335_v29 = vpack.c.bf16 %v1982_v3, %v1980_v28  ;;  %v5337_v26 = vpop.f32.mrb[24].mxu0 }
 0x1c9   : > { %6055 = vst [vmem:[#allocation57_spill] sm:$0xff] %v5337_v26  ;;  %v5339_v35 = vpop.f32.mrb[24].mxu1  ;;  %v5341_v56 = vpop.f32.mrb[25].mxu0  ;;  %v5343_v57 = vpack.c.bf16 %v1983_v30, %v1981_v55  ;;  %6059 = vst [vmem:[#allocation61_spill] sm:$0xff] %v5345_v44  ;;  %v5366_v30 = vld [vmem:[%s4245_s13 + $0x30] sm:$0xf] }
 0x1ca   : > { %6054 = vst [vmem:[#allocation56_spill] sm:$0xff] %v5335_v29  ;;  %6056 = vst [vmem:[#allocation58_spill] sm:$0xff] %v5339_v35  ;;  %v1940_v38 = vsub.f32 %v5337_v26, %v5339_v35  ;;  %v5349_v8 = vpop.f32.mrb[25].mxu1  ;;  %v5351_v3 = vpop.f32.mrb[26].mxu0  ;;  %v5369_v44 = vld [vmem:[%s4245_s13 + $0x34] sm:$0xf] }
 0x1cb   : > { %6057 = vst [vmem:[#allocation59_spill] sm:$0xff] %v5341_v56  ;;  %6058 = vst [vmem:[#allocation60_spill] sm:$0xff] %v5343_v57  ;;  %v1941_v28 = vsub.f32 %v5341_v56, %v5349_v8  ;;  %v5355_v9 = vpop.f32.mrb[26].mxu1  ;;  %2222 = vmatprep.subr.bf16.mxu1 %v5343_v57  ;;  %v5358_v55 = vpop.f32.mrb[27].mxu0  ;;  %v5376_v56 = vld [vmem:[%s4243_s19 + $0x30] sm:$0xf] }
 0x1cc   : > { %6060 = vst [vmem:[#allocation62_spill] sm:$0xff] %v5349_v8  ;;  %6061 = vst [vmem:[#allocation63_spill] sm:$0xff] %v5351_v3  ;;  %v1942_v23 = vsub.f32 %v5351_v3, %v5355_v9  ;;  %v5362_v41 = vpop.f32.mrb[27].mxu1  ;;  %2223 = vmatpush1.bf16.msra.mxu1 %v5335_v29  ;;  %v1984_v35 = vadd.f32 %v5051_v6, %v1940_v38  ;;  %v5379_v26 = vld [vmem:[%s4243_s19 + $0x34] sm:$0xf]  ;;  %v2498_v29 = vadd.bf16 %v5366_v30, %v5376_v56 }
 0x1cd   : > { %6062 = vst [vmem:[#allocation64_spill] sm:$0xff] %v5355_v9  ;;  %6063 = vst [vmem:[#allocation65_spill] sm:$0xff] %v5358_v55  ;;  %v1943_v8 = vsub.f32 %v5358_v55, %v5362_v41  ;;  %v1985_v9 = vadd.f32 %v5061_v14, %v1941_v28  ;;  %v2499_v52 = vadd.bf16 %v5369_v44, %v5379_v26 }
 0x1ce   : > { %6064 = vst [vmem:[#allocation66_spill] sm:$0xff] %v5362_v41  ;;  %6065 = vst [vmem:[#allocation67_spill] sm:$0xff] %v5366_v30  ;;  %v1986_v57 = vadd.f32 %v5051_v6, %v1942_v23 }
 0x1cf   : > { %6066 = vst [vmem:[#allocation68_spill] sm:$0xff] %v5369_v44  ;;  %6067 = vst [vmem:[#allocation69_spill] sm:$0xff] %v5376_v56  ;;  %v1987_v3 = vadd.f32 %v5061_v14, %v1943_v8  ;;  %v5397_v28 = vcombine.low %v2498_v29, %v2499_v52 }
 0x1d0   : > { %6068 = vst [vmem:[#allocation70_spill] sm:$0xff] %v5379_v26  ;;  %v5387_v5 = vpack.c.bf16 %v1986_v57, %v1984_v35  ;;  %v5389_v38 = vpop.f32.mrb[28].mxu0 }
 0x1d1   : > { %6070 = vst [vmem:[#allocation72_spill] sm:$0xff] %v5389_v38  ;;  %v5391_v23 = vpop.f32.mrb[28].mxu1  ;;  %v5393_v41 = vpop.f32.mrb[29].mxu0  ;;  %v5395_v55 = vpack.c.bf16 %v1987_v3, %v1985_v9  ;;  %6074 = vst [vmem:[#allocation76_spill] sm:$0xff] %v5397_v28  ;;  %v5418_v3 = vld [vmem:[%s4245_s13 + $0x38] sm:$0xf] }
 0x1d2   : > { %6069 = vst [vmem:[#allocation71_spill] sm:$0xff] %v5387_v5  ;;  %6071 = vst [vmem:[#allocation73_spill] sm:$0xff] %v5391_v23  ;;  %v1944_v8 = vsub.f32 %v5389_v38, %v5391_v23  ;;  %v5401_v30 = vpop.f32.mrb[29].mxu1  ;;  %v5403_v57 = vpop.f32.mrb[30].mxu0  ;;  %v5421_v28 = vld [vmem:[%s4245_s13 + $0x3c] sm:$0xf] }
 0x1d3   : > { %6072 = vst [vmem:[#allocation74_spill] sm:$0xff] %v5393_v41  ;;  %6073 = vst [vmem:[#allocation75_spill] sm:$0xff] %v5395_v55  ;;  %v1945_v35 = vsub.f32 %v5393_v41, %v5401_v30  ;;  %v5407_v44 = vpop.f32.mrb[30].mxu1  ;;  %2224 = vmatprep.subr.bf16.mxu1 %v5395_v55  ;;  %v5410_v9 = vpop.f32.mrb[31].mxu0  ;;  %v5428_v41 = vld [vmem:[%s4243_s19 + $0x38] sm:$0xf] }
 0x1d4   : > { %6075 = vst [vmem:[#allocation77_spill] sm:$0xff] %v5401_v30  ;;  %6076 = vst [vmem:[#allocation78_spill] sm:$0xff] %v5403_v57  ;;  %v1946_v29 = vsub.f32 %v5403_v57, %v5407_v44  ;;  %v5414_v52 = vpop.f32.mrb[31].mxu1  ;;  %2225 = vmatpush1.bf16.msra.mxu1 %v5387_v5  ;;  %v1988_v55 = vadd.f32 %v5051_v6, %v1944_v8  ;;  %v2056_v38 = vld [vmem:[%s5868_s7] sm:$0x3]  ;;  %v2500_v56 = vadd.bf16 %v5418_v3, %v5428_v41 }
 0x1d5   : > { %6077 = vst [vmem:[#allocation79_spill] sm:$0xff] %v5407_v44  ;;  %6078 = vst [vmem:[#allocation80_spill] sm:$0xff] %v5410_v9  ;;  %v1947_v30 = vsub.f32 %v5410_v9, %v5414_v52  ;;  %v5431_v44 = vld [vmem:[%s4243_s19 + $0x3c] sm:$0xf]  ;;  %v1989_v57 = vadd.f32 %v5061_v14, %v1945_v35  ;;  %v5448_v9 = vld [vmem:[%s4243_s19 + $0x4] sm:$0xf] }
 0x1d6   : > { %6079 = vst [vmem:[#allocation81_spill] sm:$0xff] %v5414_v52  ;;  %6080 = vst [vmem:[#allocation82_spill] sm:$0xff] %v5418_v3  ;;  %v1990_v23 = vadd.f32 %v5051_v6, %v1946_v29  ;;  %v2501_v8 = vadd.bf16 %v5421_v28, %v5431_v44  ;;  %v5445_v29 = vld [vmem:[%s4243_s19] sm:$0xf] }
 0x1d7   : > { %6081 = vst [vmem:[#allocation83_spill] sm:$0xff] %v5421_v28  ;;  %6082 = vst [vmem:[#allocation84_spill] sm:$0xff] %v5428_v41  ;;  %v1991_v5 = vadd.f32 %v5061_v14, %v1947_v30 }
 0x1d8   : > { %6083 = vst [vmem:[#allocation85_spill] sm:$0xff] %v5431_v44  ;;  %v5442_v52 = vpack.c.bf16 %v1990_v23, %v1988_v55  ;;  %v1837_v6 = vpop.f32.mrb[32].mxu0  ;;  %v5453_v26 = vcombine.low %v2500_v56, %v2501_v8  ;;  %v6084_v55 = vsub.s32 0, %v5034_v12  ;;  %v6085_v56 = vsub.s32 1, %v5034_v12 }
 0x1d9   : > { %v1992_v35 = vsub.f32 %v1837_v6, %v5041_v59  ;;  %v1839_v14 = vpop.f32.mrb[33].mxu0  ;;  %v5451_v30 = vpack.c.bf16 %v1991_v5, %v1989_v57  ;;  %v3605_v59 = vcombine.low %v5445_v29, %v5448_v9 }
 0x1da   : > { %v1993_v53 = vsub.f32 %v1839_v14, %v5045_v4  ;;  %v1841_v3 = vpop.f32.mrb[34].mxu0  ;;  %v5459_v23 = vrot.slane %v2056_v38, %v6084_v55  ;;  %v5468_v4 = vrot.slane %v2056_v38, %v6085_v56 }
 0x1db   : > { %v2024_v41 = vsub.f32 %v1992_v35, %v5043_v37  ;;  %v1994_v28 = vsub.f32 %v1841_v3, %v5055_v32  ;;  %2226 = vmatprep.subr.bf16.mxu1 %v5451_v30  ;;  %v1843_v44 = vpop.f32.mrb[35].mxu0 }
 0x1dc   : > { %v2025_v5 = vsub.f32 %v1993_v53, %v5053_v11  ;;  %v1995_v37 = vsub.f32 %v1843_v44, %v5065_v2  ;;  %2227 = vmatpush1.bf16.msra.mxu1 %v5442_v52  ;;  %v6086_v53 = vmov 0  }
 0x1dd   : > { %v2026_v57 = vsub.f32 %v1994_v28, %v5063_v63  ;;  %v2068_v3 = vadd.f32 %v5459_v23, %v2024_v41 }
 0x1de   : > { %v2027_v32 = vsub.f32 %v1995_v37, %v5069_v7  ;;  %v2069_v6 = vadd.f32 %v5468_v4, %v2025_v5 }
 0x1df   : > { %v2070_v8 = vadd.f32 %v5459_v23, %v2026_v57  ;;  %2245 = vmatmul.mubr.bf16.vlgmr.msra.gmra.mrb[32].mxu1 %v3605_v59 }
 0x1e0   : > { %v2071_v11 = vadd.f32 %v5468_v4, %v2027_v32  ;;  %v1847_v12 = vpop.f32.mrb[36].mxu0  ;;  %2254 = vmatprep.mubr.bf16.mxu1 %v6086_v53 }
 0x1e1   : > { %v2148_v38 = vpack.c.bf16 %v2070_v8, %v2068_v3  ;;  %v1996_v2 = vsub.f32 %v1847_v12, %v5079_v51  ;;  %v1849_v44 = vpop.f32.mrb[37].mxu0  ;;  %v3606_v51 = vcombine.low %v5116_v43, %v5119_v39 }
 0x1e2   : > { %v1997_v63 = vsub.f32 %v1849_v44, %v5083_v60  ;;  %v1851_v28 = vpop.f32.mrb[38].mxu0  ;;  %v2149_v7 = vpack.c.bf16 %v2071_v11, %v2069_v6 }
 0x1e3   : > { %v2028_v41 = vsub.f32 %v1996_v2, %v5081_v61  ;;  %v1998_v35 = vsub.f32 %v1851_v28, %v5091_v18  ;;  %v1853_v14 = vpop.f32.mrb[39].mxu0  ;;  %v2502_v55 = vadd.bf16 %v2148_v38, %v5077_v15 }
 0x1e4   : > { %v2029_v59 = vsub.f32 %v1997_v63, %v5089_v25  ;;  %v1999_v5 = vsub.f32 %v1853_v14, %v5098_v47  ;;  %2373 = vmatprep.subr.bf16.mxu0 %v2149_v7  ;;  %v2503_v56 = vadd.bf16 %v2149_v7, %v5085_v27 }
 0x1e5   : > { %v2030_v60 = vsub.f32 %v1998_v35, %v5095_v36  ;;  %2374 = vmatpush1.bf16.msra.mxu0 %v2148_v38  ;;  %v2072_v18 = vadd.f32 %v5459_v23, %v2028_v41  ;;  %v3607_v38 = vcombine.low %v5168_v42, %v5171_v45 }
 0x1e6   : > { %v2031_v61 = vsub.f32 %v1999_v5, %v5102_v22  ;;  %2566 = vmatprep.subr.bf16.mxu1 %v2503_v56  ;;  %v2073_v25 = vadd.f32 %v5468_v4, %v2029_v59  ;;  %v6087_v59 = vld [vmem:[#allocation26_spill] sm:$0xff] }
 0x1e7   : > { %v2074_v15 = vadd.f32 %v5459_v23, %v2030_v60  ;;  %2567 = vmatpush1.bf16.msra.mxu1 %v2502_v55  ;;  %v3608_v55 = vcombine.low %v5220_v20, %v5223_v10  ;;  %v6088_v56 = vld [vmem:[#allocation30_spill] sm:$0xff] }
 0x1e8   : > { %v2075_v47 = vadd.f32 %v5468_v4, %v2031_v61  ;;  %v1857_v37 = vpop.f32.mrb[40].mxu0  ;;  %2255 = vmatmul.mubr.bf16.gmra.mrb[36].mxu1 %v3606_v51 }
 0x1e9   : > { %v2150_v27 = vpack.c.bf16 %v2074_v15, %v2072_v18  ;;  %v2000_v43 = vsub.f32 %v1857_v37, %v5129_v62  ;;  %v1859_v39 = vpop.f32.mrb[41].mxu0  ;;  %2264 = vmatprep.mubr.bf16.mxu1 %v6086_v53  ;;  %v6090_v18 = vld [vmem:[#allocation29_spill] sm:$0xff] }
 0x1ea   : > { %v2001_v36 = vsub.f32 %v1859_v39, %v5133_v1  ;;  %v1861_v22 = vpop.f32.mrb[42].mxu0  ;;  %v2151_v57 = vpack.c.bf16 %v2075_v47, %v2073_v25  ;;  %v6091_v25 = vld [vmem:[#allocation33_spill] sm:$0xff]  ;;  %v6093_v39 = vld [vmem:[#allocation18_spill] sm:$0xff] }
 0x1eb   : > { %v2032_v32 = vsub.f32 %v2000_v43, %v5131_v33  ;;  %v2002_v3 = vsub.f32 %v1861_v22, %v5143_v16  ;;  %v1863_v8 = vpop.f32.mrb[43].mxu0  ;;  %v2504_v6 = vadd.bf16 %v2150_v27, %v5127_v48  ;;  %v6094_v22 = vld [vmem:[#allocation35_spill] sm:$0xff] }
 0x1ec   : > { %v2033_v11 = vsub.f32 %v2001_v36, %v5141_v17  ;;  %v2003_v12 = vsub.f32 %v1863_v8, %v5150_v54  ;;  %2375 = vmatprep.subr.bf16.mxu0 %v2151_v57  ;;  %v2505_v62 = vadd.bf16 %v2151_v57, %v5135_v0  ;;  %v6096_v8 = vld [vmem:[#allocation40_spill] sm:$0xff] }
 0x1ed   : > { %v2034_v1 = vsub.f32 %v2002_v3, %v5147_v13  ;;  %2376 = vmatpush1.bf16.msra.mxu0 %v2150_v27  ;;  %v2076_v16 = vadd.f32 %v5459_v23, %v2032_v32  ;;  %v6092_v27 = vld [vmem:[#allocation28_spill] sm:$0xff] }
 0x1ee   : > { %v2035_v33 = vsub.f32 %v2003_v12, %v5154_v58  ;;  %2568 = vmatprep.subr.bf16.mxu1 %v2505_v62  ;;  %v2077_v17 = vadd.f32 %v5468_v4, %v2033_v11  ;;  %v6095_v32 = vld [vmem:[#allocation32_spill] sm:$0xff]  ;;  %v6098_v12 = vld [vmem:[#allocation34_spill] sm:$0xff] }
 0x1ef   : > { %v2078_v48 = vadd.f32 %v5459_v23, %v2034_v1  ;;  %2569 = vmatpush1.bf16.msra.mxu1 %v2504_v6  ;;  %v6097_v6 = vld [vmem:[#allocation39_spill] sm:$0xff] }
 0x1f0   : > { %v2079_v54 = vadd.f32 %v5468_v4, %v2035_v33  ;;  %v1867_v2 = vpop.f32.mrb[44].mxu0  ;;  %2265 = vmatmul.mubr.bf16.gmra.mrb[40].mxu1 %v3607_v38  ;;  %v3609_v11 = vcombine.low %v6097_v6, %v6096_v8  ;;  %v6099_v38 = vld [vmem:[#allocation36_spill] sm:$0xff] }
 0x1f1   : > { %v2152_v0 = vpack.c.bf16 %v2078_v48, %v2076_v16  ;;  %v2004_v42 = vsub.f32 %v1867_v2, %v5181_v21  ;;  %v1869_v45 = vpop.f32.mrb[45].mxu0  ;;  %2274 = vmatprep.mubr.bf16.mxu1 %v6086_v53 }
 0x1f2   : > { %v2005_v13 = vsub.f32 %v1869_v45, %v5185_v46  ;;  %v1871_v58 = vpop.f32.mrb[46].mxu0  ;;  %v2153_v44 = vpack.c.bf16 %v2079_v54, %v2077_v17 }
 0x1f3   : > { %v2036_v63 = vsub.f32 %v2004_v42, %v5183_v19  ;;  %v2006_v28 = vsub.f32 %v1871_v58, %v5195_v34  ;;  %v1873_v7 = vpop.f32.mrb[47].mxu0  ;;  %v2506_v41 = vadd.bf16 %v2152_v0, %v5179_v24 }
 0x1f4   : > { %v2037_v35 = vsub.f32 %v2005_v13, %v5193_v50  ;;  %v2007_v14 = vsub.f32 %v1873_v7, %v5202_v40  ;;  %2377 = vmatprep.subr.bf16.mxu0 %v2153_v44  ;;  %v2507_v21 = vadd.bf16 %v2153_v44, %v5187_v31  ;;  %v6101_v13 = vld [vmem:[#allocation44_spill] sm:$0xff] }
 0x1f5   : > { %v2038_v46 = vsub.f32 %v2006_v28, %v5199_v49  ;;  %2378 = vmatpush1.bf16.msra.mxu0 %v2152_v0  ;;  %v2080_v34 = vadd.f32 %v5459_v23, %v2036_v63  ;;  %v6089_v49 = vld [vmem:[#allocation31_spill] sm:$0xff]  ;;  %v6100_v0 = vld [vmem:[#allocation42_spill] sm:$0xff] }
 0x1f6   : > { %v2039_v19 = vsub.f32 %v2007_v14, %v6087_v59  ;;  %2570 = vmatprep.subr.bf16.mxu1 %v2507_v21  ;;  %v2081_v50 = vadd.f32 %v5468_v4, %v2037_v35  ;;  %v6102_v28 = vld [vmem:[#allocation43_spill] sm:$0xff]  ;;  %v6104_v21 = vld [vmem:[#allocation41_spill] sm:$0xff] }
 0x1f7   : > { %v2082_v24 = vadd.f32 %v5459_v23, %v2038_v46  ;;  %2571 = vmatpush1.bf16.msra.mxu1 %v2506_v41  ;;  %v6103_v41 = vld [vmem:[#allocation48_spill] sm:$0xff]  ;;  %v6105_v46 = vld [vmem:[#allocation47_spill] sm:$0xff] }
 0x1f8   : > { %v2083_v40 = vadd.f32 %v5468_v4, %v2039_v19  ;;  %v1877_v5 = vpop.f32.mrb[48].mxu0  ;;  %2275 = vmatmul.mubr.bf16.gmra.mrb[44].mxu1 %v3608_v55  ;;  %v6106_v19 = vld [vmem:[#allocation50_spill] sm:$0xff] }
 0x1f9   : > { %v2154_v31 = vpack.c.bf16 %v2082_v24, %v2080_v34  ;;  %v2008_v20 = vsub.f32 %v1877_v5, %v6088_v56  ;;  %v1879_v10 = vpop.f32.mrb[49].mxu0  ;;  %2284 = vmatprep.mubr.bf16.mxu1 %v6086_v53  ;;  %v6107_v24 = vld [vmem:[#allocation45_spill] sm:$0xff]  ;;  %v6109_v5 = vld [vmem:[#allocation54_spill] sm:$0xff] }
 0x1fa   : > { %v2009_v51 = vsub.f32 %v1879_v10, %v6089_v49  ;;  %v1881_v60 = vpop.f32.mrb[50].mxu0  ;;  %v2155_v61 = vpack.c.bf16 %v2083_v40, %v2081_v50  ;;  %v6108_v40 = vld [vmem:[#allocation55_spill] sm:$0xff]  ;;  %v6110_v56 = vld [vmem:[#allocation49_spill] sm:$0xff] }
 0x1fb   : > { %v2040_v15 = vsub.f32 %v2008_v20, %v6090_v18  ;;  %v2010_v47 = vsub.f32 %v1881_v60, %v6091_v25  ;;  %v1883_v37 = vpop.f32.mrb[51].mxu0  ;;  %v2508_v43 = vadd.bf16 %v2154_v31, %v6092_v27  ;;  %v6111_v10 = vld [vmem:[#allocation51_spill] sm:$0xff] }
 0x1fc   : > { %v2041_v36 = vsub.f32 %v2009_v51, %v6093_v39  ;;  %v2011_v57 = vsub.f32 %v1883_v37, %v6094_v22  ;;  %2379 = vmatprep.subr.bf16.mxu0 %v2155_v61  ;;  %v2509_v3 = vadd.bf16 %v2155_v61, %v6095_v32 }
 0x1fd   : > { %v2042_v62 = vsub.f32 %v2010_v47, %v6098_v12  ;;  %2380 = vmatpush1.bf16.msra.mxu0 %v2154_v31  ;;  %v2084_v33 = vadd.f32 %v5459_v23, %v2040_v15  ;;  %v3610_v31 = vcombine.low %v6109_v5, %v6108_v40  ;;  %v6112_v47 = vld [vmem:[#allocation57_spill] sm:$0xff] }
 0x1fe   : > { %v2043_v1 = vsub.f32 %v2011_v57, %v6099_v38  ;;  %2572 = vmatprep.subr.bf16.mxu1 %v2509_v3  ;;  %v2085_v48 = vadd.f32 %v5468_v4, %v2041_v36  ;;  %v6114_v57 = vld [vmem:[#allocation58_spill] sm:$0xff]  ;;  %v6115_v3 = vld [vmem:[#allocation63_spill] sm:$0xff] }
 0x1ff   : > { %v2086_v16 = vadd.f32 %v5459_v23, %v2042_v62  ;;  %2573 = vmatpush1.bf16.msra.mxu1 %v2508_v43  ;;  %v6113_v43 = vld [vmem:[#allocation59_spill] sm:$0xff]  ;;  %v6117_v62 = vld [vmem:[#allocation62_spill] sm:$0xff] }
 0x200   : > { %v2087_v17 = vadd.f32 %v5468_v4, %v2043_v1  ;;  %v1887_v54 = vpop.f32.mrb[52].mxu0  ;;  %2285 = vmatmul.mubr.bf16.gmra.mrb[48].mxu1 %v3609_v11  ;;  %v6116_v11 = vld [vmem:[#allocation56_spill] sm:$0xff]  ;;  %v6118_v1 = vld [vmem:[#allocation65_spill] sm:$0xff] }
 0x201   : > { %v2156_v2 = vpack.c.bf16 %v2086_v16, %v2084_v33  ;;  %v2012_v42 = vsub.f32 %v1887_v54, %v6100_v0  ;;  %v1889_v45 = vpop.f32.mrb[53].mxu0  ;;  %2294 = vmatprep.mubr.bf16.mxu1 %v6086_v53  ;;  %v6119_v16 = vld [vmem:[#allocation60_spill] sm:$0xff]  ;;  %v6121_v54 = vld [vmem:[#allocation69_spill] sm:$0xff] }
 0x202   : > { %v2013_v58 = vsub.f32 %v1889_v45, %v6101_v13  ;;  %v1891_v44 = vpop.f32.mrb[54].mxu0  ;;  %v2157_v63 = vpack.c.bf16 %v2087_v17, %v2085_v48  ;;  %v6120_v17 = vld [vmem:[#allocation70_spill] sm:$0xff]  ;;  %v6122_v0 = vld [vmem:[#allocation64_spill] sm:$0xff] }
 0x203   : > { %v2044_v7 = vsub.f32 %v2012_v42, %v6102_v28  ;;  %v2014_v35 = vsub.f32 %v1891_v44, %v6103_v41  ;;  %v1893_v14 = vpop.f32.mrb[55].mxu0  ;;  %v2510_v55 = vadd.bf16 %v2156_v2, %v6104_v21  ;;  %v6123_v45 = vld [vmem:[#allocation66_spill] sm:$0xff] }
 0x204   : > { %v2045_v59 = vsub.f32 %v2013_v58, %v6105_v46  ;;  %v2015_v34 = vsub.f32 %v1893_v14, %v6106_v19  ;;  %2381 = vmatprep.subr.bf16.mxu0 %v2157_v63  ;;  %v2511_v50 = vadd.bf16 %v2157_v63, %v6107_v24 }
 0x205   : > { %v2046_v20 = vsub.f32 %v2014_v35, %v6110_v56  ;;  %2382 = vmatpush1.bf16.msra.mxu0 %v2156_v2  ;;  %v2088_v51 = vadd.f32 %v5459_v23, %v2044_v7  ;;  %v3611_v2 = vcombine.low %v6121_v54, %v6120_v17  ;;  %v6124_v35 = vld [vmem:[#allocation72_spill] sm:$0xff]  ;;  %v6142_v17 = vld [vmem:[#allocation27_spill] sm:$0xff]  ;;  %v6143_v54 = vld [vmem:[#allocation25_spill] sm:$0xff] }
 0x206   : > { %v2047_v49 = vsub.f32 %v2015_v34, %v6111_v10  ;;  %2574 = vmatprep.subr.bf16.mxu1 %v2511_v50  ;;  %v2089_v61 = vadd.f32 %v5468_v4, %v2045_v59  ;;  %v6126_v34 = vld [vmem:[#allocation73_spill] sm:$0xff]  ;;  %v6127_v50 = vld [vmem:[#allocation78_spill] sm:$0xff] }
 0x207   : > { %v2090_v60 = vadd.f32 %v5459_v23, %v2046_v20  ;;  %2575 = vmatpush1.bf16.msra.mxu1 %v2510_v55  ;;  %v6125_v55 = vld [vmem:[#allocation74_spill] sm:$0xff]  ;;  %v6129_v20 = vld [vmem:[#allocation77_spill] sm:$0xff] }
 0x208   : > { %v2091_v18 = vadd.f32 %v5468_v4, %v2047_v49  ;;  %v1897_v15 = vpop.f32.mrb[56].mxu0  ;;  %2295 = vmatmul.mubr.bf16.gmra.mrb[52].mxu1 %v3610_v31  ;;  %v6128_v31 = vld [vmem:[#allocation71_spill] sm:$0xff]  ;;  %v6130_v49 = vld [vmem:[#allocation80_spill] sm:$0xff] }
 0x209   : > { %v2158_v25 = vpack.c.bf16 %v2090_v60, %v2088_v51  ;;  %v2016_v37 = vsub.f32 %v1897_v15, %v6112_v47  ;;  %v1899_v27 = vpop.f32.mrb[57].mxu0  ;;  %2304 = vmatprep.mubr.bf16.mxu1 %v6086_v53  ;;  %v6131_v60 = vld [vmem:[#allocation75_spill] sm:$0xff]  ;;  %v6133_v15 = vld [vmem:[#allocation84_spill] sm:$0xff] }
 0x20a   : > { %v2017_v39 = vsub.f32 %v1899_v27, %v6113_v43  ;;  %v1901_v36 = vpop.f32.mrb[58].mxu0  ;;  %v2159_v22 = vpack.c.bf16 %v2091_v18, %v2089_v61  ;;  %v6132_v18 = vld [vmem:[#allocation85_spill] sm:$0xff]  ;;  %v6134_v47 = vld [vmem:[#allocation79_spill] sm:$0xff] }
 0x20b   : > { %v2048_v32 = vsub.f32 %v2016_v37, %v6114_v57  ;;  %v2018_v8 = vsub.f32 %v1901_v36, %v6115_v3  ;;  %v1903_v6 = vpop.f32.mrb[59].mxu0  ;;  %v2512_v12 = vadd.bf16 %v2158_v25, %v6116_v11  ;;  %v6135_v27 = vld [vmem:[#allocation81_spill] sm:$0xff] }
 0x20c   : > { %v2049_v38 = vsub.f32 %v2017_v39, %v6117_v62  ;;  %v2019_v33 = vsub.f32 %v1903_v6, %v6118_v1  ;;  %2383 = vmatprep.subr.bf16.mxu0 %v2159_v22  ;;  %v2513_v48 = vadd.bf16 %v2159_v22, %v6119_v16  ;;  %v2116_v22 = vld [vmem:[%s4245_s13] sm:$0xf]  ;;  %v2117_v57 = vld [vmem:[%s4245_s13 + $0x4] sm:$0xf] }
 0x20d   : > { %v2050_v42 = vsub.f32 %v2018_v8, %v6122_v0  ;;  %2384 = vmatpush1.bf16.msra.mxu0 %v2158_v25  ;;  %v2092_v58 = vadd.f32 %v5459_v23, %v2048_v32  ;;  %v3612_v25 = vcombine.low %v6133_v15, %v6132_v18  ;;  %v2486_v11 = vadd.bf16 %v2116_v22, %v5445_v29  ;;  %v6137_v29 = vld [vmem:[#allocation20_spill] sm:$0xff]  ;;  %v6144_v0 = vld [vmem:[#allocation17_spill] sm:$0xff] }
 0x20e   : > { %v2051_v13 = vsub.f32 %v2019_v33, %v6123_v45  ;;  %2576 = vmatprep.subr.bf16.mxu1 %v2513_v48  ;;  %v2093_v63 = vadd.f32 %v5468_v4, %v2049_v38  ;;  %v3613_v38 = vcombine.low %v2116_v22, %v2117_v57  ;;  %v6141_v48 = vld [vmem:[#allocation24_spill] sm:$0xff]  ;;  %v6146_v45 = vld [vmem:[#allocation37_spill] sm:$0xff] }
 0x20f   : > { %v2094_v44 = vadd.f32 %v5459_v23, %v2050_v42  ;;  %2577 = vmatpush1.bf16.msra.mxu1 %v2512_v12  ;;  %v2487_v12 = vadd.bf16 %v2117_v57, %v5448_v9  ;;  %v6138_v9 = vld [vmem:[#allocation21_spill] sm:$0xff]  ;;  %v6145_v42 = vld [vmem:[#allocation38_spill] sm:$0xff] }
 0x210   : > { %v2095_v28 = vadd.f32 %v5468_v4, %v2051_v13  ;;  %v1907_v7 = vpop.f32.mrb[60].mxu0  ;;  %2305 = vmatmul.mubr.bf16.gmra.mrb[56].mxu1 %v3611_v2  ;;  %v3616_v2 = vcombine.low %v6143_v54, %v6142_v17  ;;  %v3617_v13 = vcombine.low %v6146_v45, %v6145_v42  ;;  %v2682_v17 = vld [vmem:[#allocation2 + $0x18] sm:$0xff] }
 0x211   : > { %v2160_v41 = vpack.c.bf16 %v2094_v44, %v2092_v58  ;;  %v2020_v14 = vsub.f32 %v1907_v7, %v6124_v35  ;;  %v1909_v21 = vpop.f32.mrb[61].mxu0  ;;  %2314 = vmatprep.mubr.bf16.mxu1 %v6086_v53  ;;  %v3621_v1 = vcombine.low %v2486_v11, %v2487_v12  ;;  %v6147_v58 = vld [vmem:[#allocation46_spill] sm:$0xff]  ;;  %v6148_v44 = vld [vmem:[#allocation53_spill] sm:$0xff]  ;;  %v6152_v35 = vld [vmem:[#allocation67_spill] sm:$0xff] }
 0x212   : > { %v2021_v46 = vsub.f32 %v1909_v21, %v6125_v55  ;;  %v1911_v59 = vpop.f32.mrb[62].mxu0  ;;  %v2161_v19 = vpack.c.bf16 %v2095_v28, %v2093_v63  ;;  %v6149_v63 = vld [vmem:[#allocation52_spill] sm:$0xff]  ;;  %v6150_v7 = vld [vmem:[#allocation61_spill] sm:$0xff]  ;;  %v6154_v55 = vld [vmem:[#allocation83_spill] sm:$0xff] }
 0x213   : > { %v2052_v24 = vsub.f32 %v2020_v14, %v6126_v34  ;;  %v2022_v40 = vsub.f32 %v1911_v59, %v6127_v50  ;;  %v1913_v5 = vpop.f32.mrb[63].mxu0  ;;  %v2514_v56 = vadd.bf16 %v2160_v41, %v6128_v31  ;;  %v3618_v28 = vcombine.low %v6149_v63, %v6148_v44  ;;  %v6153_v21 = vld [vmem:[#allocation76_spill] sm:$0xff]  ;;  %v2808_v63 = vld [vmem:[#allocation3 + $0x8] sm:$0xff] }
 0x214   : > { %v2053_v10 = vsub.f32 %v2021_v46, %v6129_v20  ;;  %v2023_v51 = vsub.f32 %v1913_v5, %v6130_v49  ;;  %2385 = vmatprep.subr.bf16.mxu0 %v2161_v19  ;;  %v2515_v61 = vadd.bf16 %v2161_v19, %v6131_v60  ;;  %v6155_v46 = vld [vmem:[#allocation82_spill] sm:$0xff] }
 0x215   : > { %v2054_v37 = vsub.f32 %v2022_v40, %v6134_v47  ;;  %2386 = vmatpush1.bf16.msra.mxu0 %v2160_v41  ;;  %v2096_v39 = vadd.f32 %v5459_v23, %v2052_v24  ;;  %v6151_v41 = vld [vmem:[#allocation68_spill] sm:$0xff]  ;;  %v3620_v59 = vcombine.low %v6155_v46, %v6154_v55 }
 0x216   : > { %v2055_v43 = vsub.f32 %v2023_v51, %v6135_v27  ;;  %2578 = vmatprep.subr.bf16.mxu1 %v2515_v61  ;;  %v2097_v32 = vadd.f32 %v5468_v4, %v2053_v10  ;;  %v3619_v14 = vcombine.low %v6152_v35, %v6151_v41 }
 0x217   : > { %v2098_v36 = vadd.f32 %v5459_v23, %v2054_v37  ;;  %2579 = vmatpush1.bf16.msra.mxu1 %v2514_v56 }
 0x218   : > { %v2099_v3 = vadd.f32 %v5468_v4, %v2055_v43  ;;  %2315 = vmatmul.mubr.bf16.gmra.mrb[60].mxu1 %v3612_v25  ;;  %v6136_v4 = vld [vmem:[#allocation19_spill] sm:$0xff] }
 0x219   : > { %v2162_v8 = vpack.c.bf16 %v2098_v36, %v2096_v39  ;;  %2598 = vmatprep.mubr.bf16.mxu1 %v6086_v53  ;;  %v3614_v33 = vcombine.low %v6137_v29, %v6136_v4 }
 0x21a   : > { %v2163_v6 = vpack.c.bf16 %v2099_v3, %v2097_v32 }
 0x21b   : > { %v2516_v62 = vadd.bf16 %v2162_v8, %v5442_v52  ;;  %v6139_v52 = vld [vmem:[#allocation23_spill] sm:$0xff] }
 0x21c   : > { %2387 = vmatprep.subr.bf16.mxu0 %v2163_v6  ;;  %v2517_v23 = vadd.bf16 %v2163_v6, %v5451_v30  ;;  %v6140_v30 = vld [vmem:[#allocation22_spill] sm:$0xff] }
 0x21d   : > { %2388 = vmatpush1.bf16.msra.mxu0 %v2162_v8  ;;  %v3615_v16 = vcombine.low %v6140_v30, %v6139_v52 }
 0x21e   : > { %2580 = vmatprep.subr.bf16.mxu1 %v2517_v23 }
 0x21f   : > { %2581 = vmatpush1.bf16.msra.mxu1 %v2516_v62  ;;  %v2679_v62 = vld [vmem:[#allocation2] sm:$0xff] }
 0x220   : > { %2406 = vmatmul.mubr.bf16.vlgmr.msra.gmra.mrb[64].mxu0 %v3613_v38 }
 0x221   : > { %2415 = vmatprep.mubr.bf16.mxu0 %v6086_v53 }
 0x222   : > { %2599 = vmatmul.mubr.bf16.vlgmr.msra.gmra.mrb[64].mxu1 %v3621_v1  ;;  %v2680_v1 = vld [vmem:[#allocation2 + $0x8] sm:$0xff] }
 0x223   : > { %2608 = vmatprep.mubr.bf16.mxu1 %v6086_v53 }
 0x228   : > { %2416 = vmatmul.mubr.bf16.gmra.mrb[68].mxu0 %v3614_v33  ;;  %v2681_v33 = vld [vmem:[#allocation2 + $0x10] sm:$0xff] }
 0x229   : > { %2425 = vmatprep.mubr.bf16.mxu0 %v6086_v53 }
 0x22a   : > { %2609 = vmatmul.mubr.bf16.gmra.mrb[68].mxu1 %v6138_v9 }
 0x22b   : > { %2618 = vmatprep.mubr.bf16.mxu1 %v6086_v53 }
 0x230   : > { %2426 = vmatmul.mubr.bf16.gmra.mrb[72].mxu0 %v3615_v16 }
 0x231   : > { %2435 = vmatprep.mubr.bf16.mxu0 %v6086_v53 }
 0x232   : > { %2619 = vmatmul.mubr.bf16.gmra.mrb[72].mxu1 %v6141_v48 }
 0x233   : > { %2628 = vmatprep.mubr.bf16.mxu1 %v6086_v53 }
 0x238   : > { %2436 = vmatmul.mubr.bf16.gmra.mrb[76].mxu0 %v3616_v2 }
 0x239   : > { %2445 = vmatprep.mubr.bf16.mxu0 %v6086_v53 }
 0x23a   : > { %2629 = vmatmul.mubr.bf16.gmra.mrb[76].mxu1 %v6144_v0  ;;  %v2807_v0 = vld [vmem:[#allocation3] sm:$0xff] }
 0x23b   : > { %2638 = vmatprep.mubr.bf16.mxu1 %v6086_v53 }
 0x240   : > { %2446 = vmatmul.mubr.bf16.gmra.mrb[80].mxu0 %v3617_v13 }
 0x241   : > { %2455 = vmatprep.mubr.bf16.mxu0 %v6086_v53 }
 0x242   : > { %2639 = vmatmul.mubr.bf16.gmra.mrb[80].mxu1 %v6147_v58 }
 0x243   : > { %2648 = vmatprep.mubr.bf16.mxu1 %v6086_v53 }
 0x248   : > { %2456 = vmatmul.mubr.bf16.gmra.mrb[84].mxu0 %v3618_v28 }
 0x249   : > { %2465 = vmatprep.mubr.bf16.mxu0 %v6086_v53 }
 0x24a   : > { %2649 = vmatmul.mubr.bf16.gmra.mrb[84].mxu1 %v6150_v7 }
 0x24b   : > { %2658 = vmatprep.mubr.bf16.mxu1 %v6086_v53 }
 0x250   : > { %2466 = vmatmul.mubr.bf16.gmra.mrb[88].mxu0 %v3619_v14  ;;  %v2809_v14 = vld [vmem:[#allocation3 + $0x10] sm:$0xff] }
 0x251   : > { %2475 = vmatprep.mubr.bf16.mxu0 %v6086_v53 }
 0x252   : > { %2659 = vmatmul.mubr.bf16.gmra.mrb[88].mxu1 %v6153_v21 }
 0x253   : > { %2668 = vmatprep.mubr.bf16.mxu1 %v6086_v53 }
 0x258   : > { %2476 = vmatmul.mubr.bf16.gmra.mrb[92].mxu0 %v3620_v59  ;;  %v2810_v59 = vld [vmem:[#allocation3 + $0x18] sm:$0xff] }
 0x25a   : > { %2669 = vmatmul.mubr.bf16.gmra.mrb[92].mxu1 %v5453_v26 }
 0x2b2   : > { %v2246_v19 = vpop.f32.mrb[32].mxu1 }
 0x2b3   : > { %v2248_v34 = vpop.f32.mrb[33].mxu1 }
 0x2b4   : > { %v5639_v24 = vpop.f32.mrb[34].mxu1 }
 0x2b5   : > { %v5641_v50 = vpop.f32.mrb[35].mxu1 }
 0x2bb   : > { %v5643_v40 = vpop.f32.mrb[36].mxu1 }
 0x2bc   : > { %v5645_v5 = vpop.f32.mrb[37].mxu1 }
 0x2bd   : > { %v5647_v31 = vpop.f32.mrb[38].mxu1 }
 0x2be   : > { %v5649_v56 = vpop.f32.mrb[39].mxu1 }
 0x2c3   : > { %v5651_v53 = vpop.f32.mrb[40].mxu1 }
 0x2c4   : > { %v5653_v20 = vpop.f32.mrb[41].mxu1 }
 0x2c5   : > { %v5655_v10 = vpop.f32.mrb[42].mxu1 }
 0x2c6   : > { %v5657_v26 = vpop.f32.mrb[43].mxu1 }
 0x2cb   : > { %v5659_v49 = vpop.f32.mrb[44].mxu1 }
 0x2cc   : > { %v5661_v51 = vpop.f32.mrb[45].mxu1 }
 0x2cd   : > { %v5663_v60 = vpop.f32.mrb[46].mxu1 }
 0x2ce   : > { %v5665_v61 = vpop.f32.mrb[47].mxu1 }
 0x2d3   : > { %v5667_v18 = vpop.f32.mrb[48].mxu1 }
 0x2d4   : > { %v5669_v15 = vpop.f32.mrb[49].mxu1 }
 0x2d5   : > { %v5671_v25 = vpop.f32.mrb[50].mxu1 }
 0x2d6   : > { %v5673_v47 = vpop.f32.mrb[51].mxu1 }
 0x2db   : > { %v5675_v37 = vpop.f32.mrb[52].mxu1 }
 0x2dc   : > { %v5677_v27 = vpop.f32.mrb[53].mxu1 }
 0x2dd   : > { %v5679_v43 = vpop.f32.mrb[54].mxu1 }
 0x2de   : > { %v5681_v39 = vpop.f32.mrb[55].mxu1 }
 0x2e3   : > { %v5683_v36 = vpop.f32.mrb[56].mxu1 }
 0x2e4   : > { %v5685_v22 = vpop.f32.mrb[57].mxu1 }
 0x2e5   : > { %v5687_v57 = vpop.f32.mrb[58].mxu1 }
 0x2e6   : > { %v5689_v32 = vpop.f32.mrb[59].mxu1 }
 0x2eb   : > { %v5691_v3 = vpop.f32.mrb[60].mxu1 }
 0x2ec   : > { %v5693_v8 = vpop.f32.mrb[61].mxu1 }
 0x2ed   : > { %v5695_v6 = vpop.f32.mrb[62].mxu1 }
 0x2ee   : > { %v5697_v11 = vpop.f32.mrb[63].mxu1 }
 0x2f3   : > { %v2407_v12 = vpop.f32.mrb[64].mxu0 }
 0x2f4   : > { %v2711_v23 = vsub.f32 %v2246_v19, %v2407_v12  ;;  %v2409_v38 = vpop.f32.mrb[65].mxu0 }
 0x2f5   : > { %v2712_v4 = vsub.f32 %v2248_v34, %v2409_v38  ;;  %v2411_v29 = vpop.f32.mrb[66].mxu0  ;;  %v2600_v9 = vpop.f32.mrb[64].mxu1 }
 0x2f6   : > { %v2743_v52 = vadd.f32 %v2711_v23, %v2679_v62  ;;  %v2713_v30 = vsub.f32 %v5639_v24, %v2411_v29  ;;  %v2839_v16 = vsub.f32 %v2600_v9, %v2246_v19  ;;  %v2413_v48 = vpop.f32.mrb[67].mxu0  ;;  %v2602_v54 = vpop.f32.mrb[65].mxu1  ;;  %v2683_v23 = vld [vmem:[#allocation2 + $0x20] sm:$0xff]  ;;  %v2685_v9 = vld [vmem:[#allocation2 + $0x30] sm:$0xff] }
 0x2f7   : > { %v2744_v2 = vadd.f32 %v2712_v4, %v2680_v1  ;;  %v2714_v42 = vsub.f32 %v5641_v50, %v2413_v48  ;;  %v2840_v45 = vsub.f32 %v2602_v54, %v2248_v34  ;;  %v2604_v13 = vpop.f32.mrb[66].mxu1  ;;  %v2684_v4 = vld [vmem:[#allocation2 + $0x28] sm:$0xff] }
 0x2f8   : > { %2775 = vst [vmem:[#allocation2] sm:$0xff] %v2743_v52  ;;  %v2745_v58 = vadd.f32 %v2713_v30, %v2681_v33  ;;  %v2871_v44 = vsub.f32 %v2839_v16, %v2407_v12  ;;  %v2841_v28 = vsub.f32 %v2604_v13, %v5639_v24  ;;  %v2606_v7 = vpop.f32.mrb[67].mxu1 }
 0x2f9   : > { %2776 = vst [vmem:[#allocation2 + $0x8] sm:$0xff] %v2744_v2  ;;  %v2746_v41 = vadd.f32 %v2714_v42, %v2682_v17  ;;  %v2872_v35 = vsub.f32 %v2840_v45, %v2409_v38  ;;  %v2842_v21 = vsub.f32 %v2606_v7, %v5641_v50  ;;  %v2686_v17 = vld [vmem:[#allocation2 + $0x38] sm:$0xff] }
 0x2fa   : > { %2777 = vst [vmem:[#allocation2 + $0x10] sm:$0xff] %v2745_v58  ;;  %v2903_v55 = vadd.f32 %v2871_v44, %v2807_v0  ;;  %v2873_v46 = vsub.f32 %v2841_v28, %v2411_v29  ;;  %v2811_v0 = vld [vmem:[#allocation3 + $0x20] sm:$0xff] }
 0x2fb   : > { %2778 = vst [vmem:[#allocation2 + $0x18] sm:$0xff] %v2746_v41  ;;  %v2904_v19 = vadd.f32 %v2872_v35, %v2808_v63  ;;  %v2874_v34 = vsub.f32 %v2842_v21, %v2413_v48  ;;  %v2417_v62 = vpop.f32.mrb[68].mxu0  ;;  %v2812_v63 = vld [vmem:[#allocation3 + $0x28] sm:$0xff]  ;;  %v2813_v35 = vld [vmem:[#allocation3 + $0x30] sm:$0xff] }
 0x2fc   : > { %2935 = vst [vmem:[#allocation3] sm:$0xff] %v2903_v55  ;;  %v2905_v12 = vadd.f32 %v2873_v46, %v2809_v14  ;;  %v2715_v24 = vsub.f32 %v5643_v40, %v2417_v62  ;;  %v2419_v1 = vpop.f32.mrb[69].mxu0  ;;  %v2814_v46 = vld [vmem:[#allocation3 + $0x38] sm:$0xff] }
 0x2fd   : > { %2936 = vst [vmem:[#allocation3 + $0x8] sm:$0xff] %v2904_v19  ;;  %v2906_v38 = vadd.f32 %v2874_v34, %v2810_v59  ;;  %v2716_v33 = vsub.f32 %v5645_v5, %v2419_v1  ;;  %v2421_v50 = vpop.f32.mrb[70].mxu0  ;;  %v2610_v52 = vpop.f32.mrb[68].mxu1  ;;  %v2687_v34 = vld [vmem:[#allocation2 + $0x40] sm:$0xff] }
 0x2fe   : > { %2937 = vst [vmem:[#allocation3 + $0x10] sm:$0xff] %v2905_v12  ;;  %v2747_v29 = vadd.f32 %v2715_v24, %v2683_v23  ;;  %v2717_v30 = vsub.f32 %v5647_v31, %v2421_v50  ;;  %v2843_v16 = vsub.f32 %v2610_v52, %v5643_v40  ;;  %v2423_v48 = vpop.f32.mrb[71].mxu0  ;;  %v2612_v54 = vpop.f32.mrb[69].mxu1  ;;  %v2688_v12 = vld [vmem:[#allocation2 + $0x48] sm:$0xff] }
 0x2ff   : > { %2938 = vst [vmem:[#allocation3 + $0x18] sm:$0xff] %v2906_v38  ;;  %v2748_v2 = vadd.f32 %v2716_v33, %v2684_v4  ;;  %v2718_v42 = vsub.f32 %v5649_v56, %v2423_v48  ;;  %v2844_v45 = vsub.f32 %v2612_v54, %v5645_v5  ;;  %v2614_v13 = vpop.f32.mrb[70].mxu1  ;;  %v2689_v4 = vld [vmem:[#allocation2 + $0x50] sm:$0xff] }
 0x300   : > { %2779 = vst [vmem:[#allocation2 + $0x20] sm:$0xff] %v2747_v29  ;;  %v2749_v58 = vadd.f32 %v2717_v30, %v2685_v9  ;;  %v2875_v44 = vsub.f32 %v2843_v16, %v2417_v62  ;;  %v2845_v28 = vsub.f32 %v2614_v13, %v5647_v31  ;;  %v2616_v7 = vpop.f32.mrb[71].mxu1  ;;  %v2690_v29 = vld [vmem:[#allocation2 + $0x58] sm:$0xff] }
 0x301   : > { %2780 = vst [vmem:[#allocation2 + $0x28] sm:$0xff] %v2748_v2  ;;  %v2750_v40 = vadd.f32 %v2718_v42, %v2686_v17  ;;  %v2876_v41 = vsub.f32 %v2844_v45, %v2419_v1  ;;  %v2846_v14 = vsub.f32 %v2616_v7, %v5649_v56  ;;  %v2816_v45 = vld [vmem:[#allocation3 + $0x48] sm:$0xff] }
 0x302   : > { %2781 = vst [vmem:[#allocation2 + $0x30] sm:$0xff] %v2749_v58  ;;  %v2907_v21 = vadd.f32 %v2875_v44, %v2811_v0  ;;  %v2877_v55 = vsub.f32 %v2845_v28, %v2421_v50 }
 0x303   : > { %2782 = vst [vmem:[#allocation2 + $0x38] sm:$0xff] %v2750_v40  ;;  %v2908_v5 = vadd.f32 %v2876_v41, %v2812_v63  ;;  %v2878_v59 = vsub.f32 %v2846_v14, %v2423_v48  ;;  %v2427_v19 = vpop.f32.mrb[72].mxu0  ;;  %v2815_v48 = vld [vmem:[#allocation3 + $0x40] sm:$0xff]  ;;  %v2817_v63 = vld [vmem:[#allocation3 + $0x50] sm:$0xff]  ;;  %v2818_v41 = vld [vmem:[#allocation3 + $0x58] sm:$0xff] }
 0x304   : > { %2939 = vst [vmem:[#allocation3 + $0x20] sm:$0xff] %v2907_v21  ;;  %v2909_v62 = vadd.f32 %v2877_v55, %v2813_v35  ;;  %v2719_v31 = vsub.f32 %v5651_v53, %v2427_v19  ;;  %v2429_v23 = vpop.f32.mrb[73].mxu0  ;;  %v2691_v21 = vld [vmem:[#allocation2 + $0x60] sm:$0xff] }
 0x305   : > { %2940 = vst [vmem:[#allocation3 + $0x28] sm:$0xff] %v2908_v5  ;;  %v2910_v24 = vadd.f32 %v2878_v59, %v2814_v46  ;;  %v2720_v1 = vsub.f32 %v5653_v20, %v2429_v23  ;;  %v2431_v56 = vpop.f32.mrb[74].mxu0  ;;  %v2620_v38 = vpop.f32.mrb[72].mxu1  ;;  %v2692_v5 = vld [vmem:[#allocation2 + $0x68] sm:$0xff] }
 0x306   : > { %2941 = vst [vmem:[#allocation3 + $0x30] sm:$0xff] %v2909_v62  ;;  %v2751_v33 = vadd.f32 %v2719_v31, %v2687_v34  ;;  %v2721_v50 = vsub.f32 %v5655_v10, %v2431_v56  ;;  %v2847_v9 = vsub.f32 %v2620_v38, %v5651_v53  ;;  %v2433_v52 = vpop.f32.mrb[75].mxu0  ;;  %v2622_v30 = vpop.f32.mrb[73].mxu1  ;;  %v2693_v34 = vld [vmem:[#allocation2 + $0x70] sm:$0xff]  ;;  %v2819_v38 = vld [vmem:[#allocation3 + $0x60] sm:$0xff] }
 0x307   : > { %2942 = vst [vmem:[#allocation3 + $0x38] sm:$0xff] %v2910_v24  ;;  %v2752_v16 = vadd.f32 %v2720_v1, %v2688_v12  ;;  %v2722_v17 = vsub.f32 %v5657_v26, %v2433_v52  ;;  %v2848_v54 = vsub.f32 %v2622_v30, %v5653_v20  ;;  %v2624_v2 = vpop.f32.mrb[74].mxu1  ;;  %v2694_v1 = vld [vmem:[#allocation2 + $0x78] sm:$0xff]  ;;  %v2820_v30 = vld [vmem:[#allocation3 + $0x68] sm:$0xff] }
 0x308   : > { %2783 = vst [vmem:[#allocation2 + $0x40] sm:$0xff] %v2751_v33  ;;  %v2753_v0 = vadd.f32 %v2721_v50, %v2689_v4  ;;  %v2879_v42 = vsub.f32 %v2847_v9, %v2427_v19  ;;  %v2849_v13 = vsub.f32 %v2624_v2, %v5655_v10  ;;  %v2626_v58 = vpop.f32.mrb[75].mxu1 }
 0x309   : > { %2784 = vst [vmem:[#allocation2 + $0x48] sm:$0xff] %v2752_v16  ;;  %v2754_v53 = vadd.f32 %v2722_v17, %v2690_v29  ;;  %v2880_v44 = vsub.f32 %v2848_v54, %v2429_v23  ;;  %v2850_v28 = vsub.f32 %v2626_v58, %v5657_v26  ;;  %v2821_v54 = vld [vmem:[#allocation3 + $0x70] sm:$0xff] }
 0x30a   : > { %2785 = vst [vmem:[#allocation2 + $0x50] sm:$0xff] %v2753_v0  ;;  %v2911_v7 = vadd.f32 %v2879_v42, %v2815_v48  ;;  %v2881_v40 = vsub.f32 %v2849_v13, %v2431_v56 }
 0x30b   : > { %2786 = vst [vmem:[#allocation2 + $0x58] sm:$0xff] %v2754_v53  ;;  %v2912_v20 = vadd.f32 %v2880_v44, %v2816_v45  ;;  %v2882_v35 = vsub.f32 %v2850_v28, %v2433_v52  ;;  %v2437_v14 = vpop.f32.mrb[76].mxu0  ;;  %v2822_v45 = vld [vmem:[#allocation3 + $0x78] sm:$0xff]  ;;  %v2695_v53 = vld [vmem:[#allocation2 + $0x80] sm:$0xff]  ;;  %v2696_v28 = vld [vmem:[#allocation2 + $0x88] sm:$0xff] }
 0x30c   : > { %2943 = vst [vmem:[#allocation3 + $0x40] sm:$0xff] %v2911_v7  ;;  %v2913_v55 = vadd.f32 %v2881_v40, %v2817_v63  ;;  %v2723_v10 = vsub.f32 %v5659_v49, %v2437_v14  ;;  %v2439_v46 = vpop.f32.mrb[77].mxu0 }
 0x30d   : > { %2944 = vst [vmem:[#allocation3 + $0x48] sm:$0xff] %v2912_v20  ;;  %v2914_v59 = vadd.f32 %v2882_v35, %v2818_v41  ;;  %v2724_v19 = vsub.f32 %v5661_v51, %v2439_v46  ;;  %v2441_v26 = vpop.f32.mrb[78].mxu0  ;;  %v2630_v62 = vpop.f32.mrb[76].mxu1  ;;  %v2697_v41 = vld [vmem:[#allocation2 + $0x90] sm:$0xff] }
 0x30e   : > { %2945 = vst [vmem:[#allocation3 + $0x50] sm:$0xff] %v2913_v55  ;;  %v2755_v31 = vadd.f32 %v2723_v10, %v2691_v21  ;;  %v2725_v23 = vsub.f32 %v5663_v60, %v2441_v26  ;;  %v2851_v12 = vsub.f32 %v2630_v62, %v5659_v49  ;;  %v2443_v24 = vpop.f32.mrb[79].mxu0  ;;  %v2632_v56 = vpop.f32.mrb[77].mxu1  ;;  %v2698_v10 = vld [vmem:[#allocation2 + $0x98] sm:$0xff] }
 0x30f   : > { %2946 = vst [vmem:[#allocation3 + $0x58] sm:$0xff] %v2914_v59  ;;  %v2756_v4 = vadd.f32 %v2724_v19, %v2692_v5  ;;  %v2726_v33 = vsub.f32 %v5665_v61, %v2443_v24  ;;  %v2852_v50 = vsub.f32 %v2632_v56, %v5661_v51  ;;  %v2634_v9 = vpop.f32.mrb[78].mxu1  ;;  %v2823_v59 = vld [vmem:[#allocation3 + $0x80] sm:$0xff]  ;;  %v2825_v56 = vld [vmem:[#allocation3 + $0x90] sm:$0xff] }
 0x310   : > { %2787 = vst [vmem:[#allocation2 + $0x60] sm:$0xff] %v2755_v31  ;;  %v2757_v52 = vadd.f32 %v2725_v23, %v2693_v34  ;;  %v2883_v29 = vsub.f32 %v2851_v12, %v2437_v14  ;;  %v2853_v16 = vsub.f32 %v2634_v9, %v5663_v60  ;;  %v2636_v48 = vpop.f32.mrb[79].mxu1  ;;  %v2824_v23 = vld [vmem:[#allocation3 + $0x88] sm:$0xff] }
 0x311   : > { %2788 = vst [vmem:[#allocation2 + $0x68] sm:$0xff] %v2756_v4  ;;  %v2758_v49 = vadd.f32 %v2726_v33, %v2694_v1  ;;  %v2884_v17 = vsub.f32 %v2852_v50, %v2439_v46  ;;  %v2854_v2 = vsub.f32 %v2636_v48, %v5665_v61  ;;  %v2826_v50 = vld [vmem:[#allocation3 + $0x98] sm:$0xff]  ;;  %v2700_v48 = vld [vmem:[#allocation2 + $0xa8] sm:$0xff] }
 0x312   : > { %2789 = vst [vmem:[#allocation2 + $0x70] sm:$0xff] %v2757_v52  ;;  %v2915_v0 = vadd.f32 %v2883_v29, %v2819_v38  ;;  %v2885_v42 = vsub.f32 %v2853_v16, %v2441_v26  ;;  %v2699_v29 = vld [vmem:[#allocation2 + $0xa0] sm:$0xff] }
 0x313   : > { %2790 = vst [vmem:[#allocation2 + $0x78] sm:$0xff] %v2758_v49  ;;  %v2916_v51 = vadd.f32 %v2884_v17, %v2820_v30  ;;  %v2886_v13 = vsub.f32 %v2854_v2, %v2443_v24  ;;  %v2447_v58 = vpop.f32.mrb[80].mxu0 }
 0x314   : > { %2947 = vst [vmem:[#allocation3 + $0x60] sm:$0xff] %v2915_v0  ;;  %v2917_v44 = vadd.f32 %v2885_v42, %v2821_v54  ;;  %v2727_v60 = vsub.f32 %v5667_v18, %v2447_v58  ;;  %v2449_v63 = vpop.f32.mrb[81].mxu0  ;;  %v2701_v54 = vld [vmem:[#allocation2 + $0xb0] sm:$0xff] }
 0x315   : > { %2948 = vst [vmem:[#allocation3 + $0x68] sm:$0xff] %v2916_v51  ;;  %v2918_v7 = vadd.f32 %v2886_v13, %v2822_v45  ;;  %v2728_v40 = vsub.f32 %v5669_v15, %v2449_v63  ;;  %v2451_v61 = vpop.f32.mrb[82].mxu0  ;;  %v2640_v20 = vpop.f32.mrb[80].mxu1  ;;  %v2702_v13 = vld [vmem:[#allocation2 + $0xb8] sm:$0xff] }
 0x316   : > { %2949 = vst [vmem:[#allocation3 + $0x70] sm:$0xff] %v2917_v44  ;;  %v2759_v35 = vadd.f32 %v2727_v60, %v2695_v53  ;;  %v2729_v14 = vsub.f32 %v5671_v25, %v2451_v61  ;;  %v2855_v21 = vsub.f32 %v2640_v20, %v5667_v18  ;;  %v2453_v55 = vpop.f32.mrb[83].mxu0  ;;  %v2642_v46 = vpop.f32.mrb[81].mxu1  ;;  %v2827_v44 = vld [vmem:[#allocation3 + $0xa0] sm:$0xff] }
 0x317   : > { %2950 = vst [vmem:[#allocation3 + $0x78] sm:$0xff] %v2918_v7  ;;  %v2760_v5 = vadd.f32 %v2728_v40, %v2696_v28  ;;  %v2730_v19 = vsub.f32 %v5673_v47, %v2453_v55  ;;  %v2856_v26 = vsub.f32 %v2642_v46, %v5669_v15  ;;  %v2644_v34 = vpop.f32.mrb[82].mxu1  ;;  %v2830_v46 = vld [vmem:[#allocation3 + $0xb8] sm:$0xff] }
 0x318   : > { %2791 = vst [vmem:[#allocation2 + $0x80] sm:$0xff] %v2759_v35  ;;  %v2761_v62 = vadd.f32 %v2729_v14, %v2697_v41  ;;  %v2887_v31 = vsub.f32 %v2855_v21, %v2447_v58  ;;  %v2857_v12 = vsub.f32 %v2644_v34, %v5671_v25  ;;  %v2646_v24 = vpop.f32.mrb[83].mxu1  ;;  %v2829_v14 = vld [vmem:[#allocation3 + $0xb0] sm:$0xff] }
 0x319   : > { %2792 = vst [vmem:[#allocation2 + $0x88] sm:$0xff] %v2760_v5  ;;  %v2762_v18 = vadd.f32 %v2730_v19, %v2698_v10  ;;  %v2888_v1 = vsub.f32 %v2856_v26, %v2449_v63  ;;  %v2858_v4 = vsub.f32 %v2646_v24, %v5673_v47  ;;  %v2703_v19 = vld [vmem:[#allocation2 + $0xc0] sm:$0xff] }
 0x31a   : > { %2793 = vst [vmem:[#allocation2 + $0x90] sm:$0xff] %v2761_v62  ;;  %v2919_v38 = vadd.f32 %v2887_v31, %v2823_v59  ;;  %v2889_v33 = vsub.f32 %v2857_v12, %v2451_v61  ;;  %v2828_v61 = vld [vmem:[#allocation3 + $0xa8] sm:$0xff]  ;;  %v2705_v12 = vld [vmem:[#allocation2 + $0xd0] sm:$0xff] }
 0x31b   : > { %2794 = vst [vmem:[#allocation2 + $0x98] sm:$0xff] %v2762_v18  ;;  %v2920_v15 = vadd.f32 %v2888_v1, %v2824_v23  ;;  %v2890_v9 = vsub.f32 %v2858_v4, %v2453_v55  ;;  %v2457_v52 = vpop.f32.mrb[84].mxu0  ;;  %v2704_v62 = vld [vmem:[#allocation2 + $0xc8] sm:$0xff] }
 0x31c   : > { %2951 = vst [vmem:[#allocation3 + $0x80] sm:$0xff] %v2919_v38  ;;  %v2921_v30 = vadd.f32 %v2889_v33, %v2825_v56  ;;  %v2731_v25 = vsub.f32 %v5675_v37, %v2457_v52  ;;  %v2459_v16 = vpop.f32.mrb[85].mxu0  ;;  %v2706_v38 = vld [vmem:[#allocation2 + $0xd8] sm:$0xff] }
 0x31d   : > { %2952 = vst [vmem:[#allocation3 + $0x88] sm:$0xff] %v2920_v15  ;;  %v2922_v49 = vadd.f32 %v2890_v9, %v2826_v50  ;;  %v2732_v17 = vsub.f32 %v5677_v27, %v2459_v16  ;;  %v2461_v47 = vpop.f32.mrb[86].mxu0  ;;  %v2650_v2 = vpop.f32.mrb[84].mxu1  ;;  %v2831_v15 = vld [vmem:[#allocation3 + $0xc0] sm:$0xff] }
 0x31e   : > { %2953 = vst [vmem:[#allocation3 + $0x90] sm:$0xff] %v2921_v30  ;;  %v2763_v0 = vadd.f32 %v2731_v25, %v2699_v29  ;;  %v2733_v42 = vsub.f32 %v5679_v43, %v2461_v47  ;;  %v2859_v45 = vsub.f32 %v2650_v2, %v5675_v37  ;;  %v2463_v51 = vpop.f32.mrb[87].mxu0  ;;  %v2652_v58 = vpop.f32.mrb[85].mxu1 }
 0x31f   : > { %2954 = vst [vmem:[#allocation3 + $0x98] sm:$0xff] %v2922_v49  ;;  %v2764_v53 = vadd.f32 %v2732_v17, %v2700_v48  ;;  %v2734_v60 = vsub.f32 %v5681_v39, %v2463_v51  ;;  %v2860_v63 = vsub.f32 %v2652_v58, %v5677_v27  ;;  %v2654_v28 = vpop.f32.mrb[86].mxu1 }
 0x320   : > { %2795 = vst [vmem:[#allocation2 + $0xa0] sm:$0xff] %v2763_v0  ;;  %v2765_v7 = vadd.f32 %v2733_v42, %v2701_v54  ;;  %v2891_v40 = vsub.f32 %v2859_v45, %v2457_v52  ;;  %v2861_v41 = vsub.f32 %v2654_v28, %v5679_v43  ;;  %v2656_v20 = vpop.f32.mrb[87].mxu1  ;;  %v2834_v42 = vld [vmem:[#allocation3 + $0xd8] sm:$0xff]  ;;  %v2709_v28 = vld [vmem:[#allocation2 + $0xf0] sm:$0xff] }
 0x321   : > { %2796 = vst [vmem:[#allocation2 + $0xa8] sm:$0xff] %v2764_v53  ;;  %v2766_v37 = vadd.f32 %v2734_v60, %v2702_v13  ;;  %v2892_v35 = vsub.f32 %v2860_v63, %v2459_v16  ;;  %v2862_v21 = vsub.f32 %v2656_v20, %v5681_v39  ;;  %v2832_v16 = vld [vmem:[#allocation3 + $0xc8] sm:$0xff]  ;;  %v2707_v13 = vld [vmem:[#allocation2 + $0xe0] sm:$0xff] }
 0x322   : > { %2797 = vst [vmem:[#allocation2 + $0xb0] sm:$0xff] %v2765_v7  ;;  %v2923_v55 = vadd.f32 %v2891_v40, %v2827_v44  ;;  %v2893_v10 = vsub.f32 %v2861_v41, %v2461_v47  ;;  %v2833_v47 = vld [vmem:[#allocation3 + $0xd0] sm:$0xff]  ;;  %v2708_v44 = vld [vmem:[#allocation2 + $0xe8] sm:$0xff] }
 0x323   : > { %2798 = vst [vmem:[#allocation2 + $0xb8] sm:$0xff] %v2766_v37  ;;  %v2924_v27 = vadd.f32 %v2892_v35, %v2828_v61  ;;  %v2894_v5 = vsub.f32 %v2862_v21, %v2463_v51  ;;  %v2467_v59 = vpop.f32.mrb[88].mxu0  ;;  %v2710_v37 = vld [vmem:[#allocation2 + $0xf8] sm:$0xff]  ;;  %v2835_v21 = vld [vmem:[#allocation3 + $0xe0] sm:$0xff] }
 0x324   : > { %2955 = vst [vmem:[#allocation3 + $0xa0] sm:$0xff] %v2923_v55  ;;  %v2925_v26 = vadd.f32 %v2893_v10, %v2829_v14  ;;  %v2735_v43 = vsub.f32 %v5683_v36, %v2467_v59  ;;  %v2469_v34 = vpop.f32.mrb[89].mxu0 }
 0x325   : > { %2956 = vst [vmem:[#allocation3 + $0xa8] sm:$0xff] %v2924_v27  ;;  %v2926_v31 = vadd.f32 %v2894_v5, %v2830_v46  ;;  %v2736_v23 = vsub.f32 %v5685_v22, %v2469_v34  ;;  %v2471_v39 = vpop.f32.mrb[90].mxu0  ;;  %v2660_v24 = vpop.f32.mrb[88].mxu1 }
 0x326   : > { %2957 = vst [vmem:[#allocation3 + $0xb0] sm:$0xff] %v2925_v26  ;;  %v2767_v18 = vadd.f32 %v2735_v43, %v2703_v19  ;;  %v2737_v1 = vsub.f32 %v5687_v57, %v2471_v39  ;;  %v2863_v56 = vsub.f32 %v2660_v24, %v5683_v36  ;;  %v2473_v4 = vpop.f32.mrb[91].mxu0  ;;  %v2662_v33 = vpop.f32.mrb[89].mxu1 }
 0x327   : > { %2958 = vst [vmem:[#allocation3 + $0xb8] sm:$0xff] %v2926_v31  ;;  %v2768_v50 = vadd.f32 %v2736_v23, %v2704_v62  ;;  %v2738_v9 = vsub.f32 %v5689_v32, %v2473_v4  ;;  %v2864_v52 = vsub.f32 %v2662_v33, %v5685_v22  ;;  %v2664_v29 = vpop.f32.mrb[90].mxu1  ;;  %v2976_v33 = vld [vmem:[#allocation2 + $0x28] sm:$0xff] (!%p3629_p6) }
 0x328   : > { %2799 = vst [vmem:[#allocation2 + $0xc0] sm:$0xff] %v2767_v18  ;;  %v2769_v30 = vadd.f32 %v2737_v1, %v2705_v12  ;;  %v2895_v25 = vsub.f32 %v2863_v56, %v2467_v59  ;;  %v2865_v48 = vsub.f32 %v2664_v29, %v5687_v57  ;;  %v2666_v49 = vpop.f32.mrb[91].mxu1  ;;  %v2836_v59 = vld [vmem:[#allocation3 + $0xe8] sm:$0xff]  ;;  %v2979_v29 = vld [vmem:[#allocation2 + $0x40] sm:$0xff] (!%p3629_p6) }
 0x329   : > { %2800 = vst [vmem:[#allocation2 + $0xc8] sm:$0xff] %v2768_v50  ;;  %v2770_v36 = vadd.f32 %v2738_v9, %v2706_v38  ;;  %v2896_v17 = vsub.f32 %v2864_v52, %v2469_v34  ;;  %v2866_v54 = vsub.f32 %v2666_v49, %v5689_v32  ;;  %v2837_v34 = vld [vmem:[#allocation3 + $0xf0] sm:$0xff]  ;;  %v2972_v1 = vld [vmem:[#allocation2 + $0x8] sm:$0xff] (!%p3629_p6)  ;;  %v2975_v38 = vld [vmem:[#allocation2 + $0x20] sm:$0xff] (!%p3629_p6) }
 0x32a   : > { %2801 = vst [vmem:[#allocation2 + $0xd0] sm:$0xff] %v2769_v30  ;;  %v2927_v2 = vadd.f32 %v2895_v25, %v2831_v15  ;;  %v2897_v0 = vsub.f32 %v2865_v48, %v2471_v39  ;;  %v2838_v39 = vld [vmem:[#allocation3 + $0xf8] sm:$0xff]  ;;  %v3675_v15 = vpack.c.bf16 (!%p3629_p6), %v2976_v33, %v2975_v38  ;;  %v2977_v9 = vld [vmem:[#allocation2 + $0x30] sm:$0xff] (!%p3629_p6)  ;;  %v2980_v25 = vld [vmem:[#allocation2 + $0x48] sm:$0xff] (!%p3629_p6) }
 0x32b   : > { %2802 = vst [vmem:[#allocation2 + $0xd8] sm:$0xff] %v2770_v36  ;;  %v2928_v22 = vadd.f32 %v2896_v17, %v2832_v16  ;;  %v2898_v45 = vsub.f32 %v2866_v54, %v2473_v4  ;;  %v2477_v51 = vpop.f32.mrb[92].mxu0  ;;  %v2974_v4 = vld [vmem:[#allocation2 + $0x18] sm:$0xff] (!%p3629_p6)  ;;  %v2981_v16 = vld [vmem:[#allocation2 + $0x50] sm:$0xff] (!%p3629_p6)  ;;  %v3677_v49 = vpack.c.bf16 (!%p3629_p6), %v2980_v25, %v2979_v29  ;;  %v2983_v17 = vld [vmem:[#allocation2 + $0x60] sm:$0xff] (!%p3629_p6) }
 0x32c   : > { %2959 = vst [vmem:[#allocation3 + $0xc0] sm:$0xff] %v2927_v2  ;;  %v2929_v58 = vadd.f32 %v2897_v0, %v2833_v47  ;;  %v2739_v57 = vsub.f32 %v5691_v3, %v2477_v51  ;;  %v2479_v53 = vpop.f32.mrb[93].mxu0  ;;  %v2978_v52 = vld [vmem:[#allocation2 + $0x38] sm:$0xff] (!%p3629_p6)  ;;  %3101 = vst [vmem:[%s4241_s16 + $0x10] sm:$0xff] (!%p3629_p6), %v3675_v15  ;;  %v2984_v47 = vld [vmem:[#allocation2 + $0x68] sm:$0xff] (!%p3629_p6) }
 0x32d   : > { %2960 = vst [vmem:[#allocation3 + $0xc8] sm:$0xff] %v2928_v22  ;;  %v2930_v60 = vadd.f32 %v2898_v45, %v2834_v42  ;;  %v2740_v63 = vsub.f32 %v5693_v8, %v2479_v53  ;;  %v2481_v32 = vpop.f32.mrb[94].mxu0  ;;  %v2670_v7 = vpop.f32.mrb[92].mxu1  ;;  %v3676_v30 = vpack.c.bf16 (!%p3629_p6), %v2978_v52, %v2977_v9  ;;  %v2982_v48 = vld [vmem:[#allocation2 + $0x58] sm:$0xff] (!%p3629_p6)  ;;  %v2985_v54 = vld [vmem:[#allocation2 + $0x70] sm:$0xff] (!%p3629_p6)  ;;  %v3679_v2 = vpack.c.bf16 (!%p3629_p6), %v2984_v47, %v2983_v17  ;;  %v2987_v42 = vld [vmem:[#allocation2 + $0x80] sm:$0xff] (!%p3629_p6) }
 0x32e   : > { %2961 = vst [vmem:[#allocation3 + $0xd0] sm:$0xff] %v2929_v58  ;;  %v2771_v40 = vadd.f32 %v2739_v57, %v2707_v13  ;;  %v2741_v61 = vsub.f32 %v5695_v6, %v2481_v32  ;;  %v2867_v41 = vsub.f32 %v2670_v7, %v5691_v3  ;;  %v2483_v20 = vpop.f32.mrb[95].mxu0  ;;  %v2672_v35 = vpop.f32.mrb[93].mxu1  ;;  %v3678_v36 = vpack.c.bf16 (!%p3629_p6), %v2982_v48, %v2981_v16  ;;  %v2986_v0 = vld [vmem:[#allocation2 + $0x78] sm:$0xff] (!%p3629_p6)  ;;  %v2988_v22 = vld [vmem:[#allocation2 + $0x88] sm:$0xff] (!%p3629_p6)  ;;  %v2989_v13 = vld [vmem:[#allocation2 + $0x90] sm:$0xff] (!%p3629_p6) }
 0x32f   : > { %2962 = vst [vmem:[#allocation3 + $0xd8] sm:$0xff] %v2930_v60  ;;  %v2772_v14 = vadd.f32 %v2740_v63, %v2708_v44  ;;  %v2742_v55 = vsub.f32 %v5697_v11, %v2483_v20  ;;  %v2868_v10 = vsub.f32 %v2672_v35, %v5693_v8  ;;  %v2674_v46 = vpop.f32.mrb[94].mxu1  ;;  %3102 = vst [vmem:[%s4241_s16 + $0x18] sm:$0xff] (!%p3629_p6), %v3676_v30  ;;  %v2990_v58 = vld [vmem:[#allocation2 + $0x98] sm:$0xff] (!%p3629_p6)  ;;  %v2991_v57 = vld [vmem:[#allocation2 + $0xa0] sm:$0xff] (!%p3629_p6) }
 0x330   : > { %2803 = vst [vmem:[#allocation2 + $0xe0] sm:$0xff] %v2771_v40  ;;  %v2773_v27 = vadd.f32 %v2741_v61, %v2709_v28  ;;  %v2899_v5 = vsub.f32 %v2867_v41, %v2477_v51  ;;  %v2869_v19 = vsub.f32 %v2674_v46, %v5695_v6  ;;  %v2676_v26 = vpop.f32.mrb[95].mxu1  ;;  %v2971_v6 = vld [vmem:[#allocation2] sm:$0xff] (!%p3629_p6)  ;;  %3103 = vst [vmem:[%s4241_s16 + $0x20] sm:$0xff] (!%p3629_p6), %v3677_v49  ;;  %v2992_v44 = vld [vmem:[#allocation2 + $0xa8] sm:$0xff] (!%p3629_p6) }
 0x331   : > { %2804 = vst [vmem:[#allocation2 + $0xe8] sm:$0xff] %v2772_v14  ;;  %v2774_v3 = vadd.f32 %v2742_v55, %v2710_v37  ;;  %v2900_v43 = vsub.f32 %v2868_v10, %v2479_v53  ;;  %v2870_v62 = vsub.f32 %v2676_v26, %v5697_v11  ;;  %2970 = sbr.rel (%p3629_p6) target bundleno = 839 (0x347), region = 142  ;;  %v2973_v11 = vld [vmem:[#allocation2 + $0x10] sm:$0xff] (!%p3629_p6)  ;;  %v3673_v56 = vpack.c.bf16 (!%p3629_p6), %v2972_v1, %v2971_v6  ;;  %v2994_v63 = vld [vmem:[#allocation2 + $0xb8] sm:$0xff] (!%p3629_p6)  ;;  %v2995_v7 = vld [vmem:[#allocation2 + $0xc0] sm:$0xff] (!%p3629_p6) }
 0x332   : > { %2805 = vst [vmem:[#allocation2 + $0xf0] sm:$0xff] %v2773_v27  ;;  %v2931_v31 = vadd.f32 %v2899_v5, %v2835_v21  ;;  %v2901_v23 = vsub.f32 %v2869_v19, %v2481_v32  ;;  %v3674_v50 = vpack.c.bf16 (!%p3629_p6), %v2974_v4, %v2973_v11  ;;  %3104 = vst [vmem:[%s4241_s16 + $0x28] sm:$0xff] (!%p3629_p6), %v3678_v36  ;;  %v2993_v60 = vld [vmem:[#allocation2 + $0xb0] sm:$0xff] (!%p3629_p6)  ;;  %v2996_v40 = vld [vmem:[#allocation2 + $0xc8] sm:$0xff] (!%p3629_p6) }
 0x333   : > { %2806 = vst [vmem:[#allocation2 + $0xf8] sm:$0xff] %v2774_v3  ;;  %v2932_v8 = vadd.f32 %v2900_v43, %v2836_v59  ;;  %v2902_v12 = vsub.f32 %v2870_v62, %v2483_v20  ;;  %3099 = vst [vmem:[%s4241_s16] sm:$0xff] (!%p3629_p6), %v3673_v56  ;;  %v3680_v45 = vpack.c.bf16 (!%p3629_p6), %v2986_v0, %v2985_v54  ;;  %v2997_v61 = vld [vmem:[#allocation2 + $0xd0] sm:$0xff] (!%p3629_p6)  ;;  %v2998_v20 = vld [vmem:[#allocation2 + $0xd8] sm:$0xff] (!%p3629_p6) }
 0x334   : > { %2963 = vst [vmem:[#allocation3 + $0xe0] sm:$0xff] %v2931_v31  ;;  %v2933_v24 = vadd.f32 %v2901_v23, %v2837_v34  ;;  %3100 = vst [vmem:[%s4241_s16 + $0x8] sm:$0xff] (!%p3629_p6), %v3674_v50  ;;  %v3681_v51 = vpack.c.bf16 (!%p3629_p6), %v2988_v22, %v2987_v42  ;;  %v3682_v53 = vpack.c.bf16 (!%p3629_p6), %v2990_v58, %v2989_v13  ;;  %v3115_v46 = vld [vmem:[#allocation3] sm:$0xff] (!%p3629_p6)  ;;  %v3116_v5 = vld [vmem:[#allocation3 + $0x8] sm:$0xff] (!%p3629_p6) }
 0x335   : > { %2964 = vst [vmem:[#allocation3 + $0xe8] sm:$0xff] %v2932_v8  ;;  %v2934_v18 = vadd.f32 %v2902_v12, %v2838_v39  ;;  %3105 = vst [vmem:[%s4241_s16 + $0x30] sm:$0xff] (!%p3629_p6), %v3679_v2  ;;  %v3683_v32 = vpack.c.bf16 (!%p3629_p6), %v2992_v44, %v2991_v57  ;;  %v3684_v28 = vpack.c.bf16 (!%p3629_p6), %v2994_v63, %v2993_v60  ;;  %v3117_v59 = vld [vmem:[#allocation3 + $0x10] sm:$0xff] (!%p3629_p6)  ;;  %v3118_v19 = vld [vmem:[#allocation3 + $0x18] sm:$0xff] (!%p3629_p6) }
 0x336   : > { %2965 = vst [vmem:[#allocation3 + $0xf0] sm:$0xff] %v2933_v24  ;;  %3106 = vst [vmem:[%s4241_s16 + $0x38] sm:$0xff] (!%p3629_p6), %v3680_v45  ;;  %v3685_v41 = vpack.c.bf16 (!%p3629_p6), %v2996_v40, %v2995_v7  ;;  %v3686_v14 = vpack.c.bf16 (!%p3629_p6), %v2998_v20, %v2997_v61  ;;  %v3689_v26 = vpack.c.bf16 (!%p3629_p6), %v3116_v5, %v3115_v46  ;;  %v3119_v43 = vld [vmem:[#allocation3 + $0x20] sm:$0xff] (!%p3629_p6)  ;;  %v3120_v34 = vld [vmem:[#allocation3 + $0x28] sm:$0xff] (!%p3629_p6) }
 0x337   : > { %2966 = vst [vmem:[#allocation3 + $0xf8] sm:$0xff] %v2934_v18  ;;  %3107 = vst [vmem:[%s4241_s16 + $0x40] sm:$0xff] (!%p3629_p6), %v3681_v51  ;;  %v2999_v37 = vld [vmem:[#allocation2 + $0xe0] sm:$0xff] (!%p3629_p6)  ;;  %v3690_v3 = vpack.c.bf16 (!%p3629_p6), %v3118_v19, %v3117_v59  ;;  %v3121_v62 = vld [vmem:[#allocation3 + $0x30] sm:$0xff] (!%p3629_p6)  ;;  %v3691_v31 = vpack.c.bf16 (!%p3629_p6), %v3120_v34, %v3119_v43 }
 0x338   : > { %3108 = vst [vmem:[%s4241_s16 + $0x48] sm:$0xff] %v3682_v53  ;;  %v3000_v35 = vld [vmem:[#allocation2 + $0xe8] sm:$0xff]  ;;  %3109 = vst [vmem:[%s4241_s16 + $0x50] sm:$0xff] %v3683_v32  ;;  %v3122_v23 = vld [vmem:[#allocation3 + $0x38] sm:$0xff] }
 0x339   : > { %3110 = vst [vmem:[%s4241_s16 + $0x58] sm:$0xff] %v3684_v28  ;;  %v3687_v21 = vpack.c.bf16 %v3000_v35, %v2999_v37  ;;  %v3001_v55 = vld [vmem:[#allocation2 + $0xf0] sm:$0xff]  ;;  %3111 = vst [vmem:[%s4241_s16 + $0x60] sm:$0xff] %v3685_v41  ;;  %v3123_v39 = vld [vmem:[#allocation3 + $0x40] sm:$0xff]  ;;  %v3692_v12 = vpack.c.bf16 %v3122_v23, %v3121_v62 }
 0x33a   : > { %v3002_v10 = vld [vmem:[#allocation2 + $0xf8] sm:$0xff]  ;;  %3112 = vst [vmem:[%s4241_s16 + $0x68] sm:$0xff] %v3686_v14  ;;  %v3124_v8 = vld [vmem:[#allocation3 + $0x48] sm:$0xff]  ;;  %3243 = vst [vmem:[%s4247_s0] sm:$0xff] %v3689_v26 }
 0x33b   : > { %v3688_v27 = vpack.c.bf16 %v3002_v10, %v3001_v55  ;;  %3113 = vst [vmem:[%s4241_s16 + $0x70] sm:$0xff] %v3687_v21  ;;  %3244 = vst [vmem:[%s4247_s0 + $0x8] sm:$0xff] %v3690_v3  ;;  %v3693_v24 = vpack.c.bf16 %v3124_v8, %v3123_v39  ;;  %v3125_v18 = vld [vmem:[#allocation3 + $0x50] sm:$0xff]  ;;  %v3126_v6 = vld [vmem:[#allocation3 + $0x58] sm:$0xff] }
 0x33c   : > { %v3127_v1 = vld [vmem:[#allocation3 + $0x60] sm:$0xff]  ;;  %3245 = vst [vmem:[%s4247_s0 + $0x10] sm:$0xff] %v3691_v31  ;;  %v3694_v11 = vpack.c.bf16 %v3126_v6, %v3125_v18  ;;  %v3128_v56 = vld [vmem:[#allocation3 + $0x68] sm:$0xff]  ;;  %v3129_v4 = vld [vmem:[#allocation3 + $0x70] sm:$0xff] }
 0x33d   : > { %3114 = vst [vmem:[%s4241_s16 + $0x78] sm:$0xff] %v3688_v27  ;;  %v3130_v38 = vld [vmem:[#allocation3 + $0x78] sm:$0xff]  ;;  %3246 = vst [vmem:[%s4247_s0 + $0x18] sm:$0xff] %v3692_v12  ;;  %v3695_v33 = vpack.c.bf16 %v3128_v56, %v3127_v1  ;;  %v3131_v15 = vld [vmem:[#allocation3 + $0x80] sm:$0xff] }
 0x33e   : > { %3247 = vst [vmem:[%s4247_s0 + $0x20] sm:$0xff] %v3693_v24  ;;  %v3696_v50 = vpack.c.bf16 %v3130_v38, %v3129_v4  ;;  %v3132_v9 = vld [vmem:[#allocation3 + $0x88] sm:$0xff]  ;;  %v3133_v52 = vld [vmem:[#allocation3 + $0x90] sm:$0xff]  ;;  %3248 = vst [vmem:[%s4247_s0 + $0x28] sm:$0xff] %v3694_v11 }
 0x33f   : > { %v3697_v29 = vpack.c.bf16 %v3132_v9, %v3131_v15  ;;  %v3134_v30 = vld [vmem:[#allocation3 + $0x98] sm:$0xff]  ;;  %v3135_v25 = vld [vmem:[#allocation3 + $0xa0] sm:$0xff]  ;;  %v3136_v16 = vld [vmem:[#allocation3 + $0xa8] sm:$0xff]  ;;  %3249 = vst [vmem:[%s4247_s0 + $0x30] sm:$0xff] %v3695_v33 }
 0x340   : > { %3250 = vst [vmem:[%s4247_s0 + $0x38] sm:$0xff] %v3696_v50  ;;  %v3698_v48 = vpack.c.bf16 %v3134_v30, %v3133_v52  ;;  %v3699_v49 = vpack.c.bf16 %v3136_v16, %v3135_v25  ;;  %v3137_v36 = vld [vmem:[#allocation3 + $0xb0] sm:$0xff]  ;;  %v3138_v17 = vld [vmem:[#allocation3 + $0xb8] sm:$0xff]  ;;  %v3139_v47 = vld [vmem:[#allocation3 + $0xc0] sm:$0xff] }
 0x341   : > { %3251 = vst [vmem:[%s4247_s0 + $0x40] sm:$0xff] %v3697_v29  ;;  %v3700_v54 = vpack.c.bf16 %v3138_v17, %v3137_v36  ;;  %v3140_v2 = vld [vmem:[#allocation3 + $0xc8] sm:$0xff]  ;;  %v3141_v0 = vld [vmem:[#allocation3 + $0xd0] sm:$0xff]  ;;  %v3142_v42 = vld [vmem:[#allocation3 + $0xd8] sm:$0xff] }
 0x342   : > { %3252 = vst [vmem:[%s4247_s0 + $0x48] sm:$0xff] %v3698_v48  ;;  %3253 = vst [vmem:[%s4247_s0 + $0x50] sm:$0xff] %v3699_v49  ;;  %v3701_v22 = vpack.c.bf16 %v3140_v2, %v3139_v47  ;;  %v3702_v45 = vpack.c.bf16 %v3142_v42, %v3141_v0  ;;  %v3143_v51 = vld [vmem:[#allocation3 + $0xe0] sm:$0xff]  ;;  %v3144_v13 = vld [vmem:[#allocation3 + $0xe8] sm:$0xff] }
 0x343   : > { %v3145_v58 = vld [vmem:[#allocation3 + $0xf0] sm:$0xff]  ;;  %3254 = vst [vmem:[%s4247_s0 + $0x58] sm:$0xff] %v3700_v54  ;;  %v3703_v57 = vpack.c.bf16 %v3144_v13, %v3143_v51  ;;  %v3146_v53 = vld [vmem:[#allocation3 + $0xf8] sm:$0xff] }
 0x344   : > { %3255 = vst [vmem:[%s4247_s0 + $0x60] sm:$0xff] %v3701_v22  ;;  %3256 = vst [vmem:[%s4247_s0 + $0x68] sm:$0xff] %v3702_v45  ;;  %v3704_v44 = vpack.c.bf16 %v3146_v53, %v3145_v58 }
 0x345   : > { %3257 = vst [vmem:[%s4247_s0 + $0x70] sm:$0xff] %v3703_v57 }
 0x346   : > { %3258 = vst [vmem:[%s4247_s0 + $0x78] sm:$0xff] %v3704_v44 }
 0x347 PF: > { %s3706_s13 = sshll.u32 %s4008_s15, 11  ;;  %s6156_s19 = sld [smem:[#allocation88_spill]] }
 0x348   : > { %s3284_s26 = sshll.u32 %s4247_s0, 4  ;;  %s6157_s1 = sand.u32 1, %s3988_s10   ;;  %s5799_s26 = int_to_ptr.vmem [resolvable:$true] %s3284_s26 }
 0x349   : > { %s5803_s17 = scalar_lea.sflag [#allocation7], %s6157_s1  ;;  %s3910_s23 = scalar_lea.vmem %s5799_s26, 2048 }
 0x34a   : > { %p3911_p8 = scmp.ne.s32.totalorder %s5799_s26, %s3910_s23  ;;  %s4024_s15 = smov [#allocation6]  }
 0x34b   : > { %s3914_s30 = sshll.u32 %s4024_s15, 4  ;;  %s3915_s30 = int_to_ptr.vmem [resolvable:$false] %s3914_s30 }
 0x34c   : > { %p3912_p9 = pnand %p3911_p8, %p4149_p7  ;;  %s3916_s21 = scalar_lea.vmem %s3915_s30, 4096 }
 0x34d   : > { %s5796_s25 = scalar_lea.hbm %s6156_s19, %s3706_s13  ;;  %p3917_p11 = scmp.lt.s32.totalorder %s5799_s26, %s3915_s30 }
 0x34e   : > { %p3913_p10 = pneg %p3912_p9  ;;  %p3918_p13 = scmp.lt.s32.totalorder %s3916_s21, %s3910_s23 }
 0x350   : > { %p3919_p0 = por %p3918_p13, %p3917_p11 }
 0x352   : > { %p3920_p1 = pnand %p3919_p0, %p3913_p10 }
 0x354   : > { %3923 = shalt.err (!%p3920_p1)
}
 0x355   : > { %s3924_s0 = scalar_lea.hbm %s5796_s25, 2048  ;;  %s3928_s29 = scalar_lea.hbm %s6156_s19, 4096 }
 0x356   : > { %p3925_p2 = scmp.ne.s32.totalorder %s5796_s25, %s3924_s0  ;;  %p3929_p5 = scmp.lt.u32.totalorder %s5796_s25, %s6156_s19 }
 0x357   : > { %p3930_p6 = scmp.lt.u32.totalorder %s3928_s29, %s3924_s0  ;;  %p3932_p9 = scmp.lt.u32.totalorder %s3924_s0, %s5796_s25 }
 0x358   : > { %p3926_p3 = pnand %p3925_p2, %p4149_p7 }
 0x359   : > { %p3931_p8 = por %p3930_p6, %p3929_p5 }
 0x35a   : > { %p3927_p4 = pneg %p3926_p3 }
 0x35b   : > { %p3933_p10 = por %p3932_p9, %p3931_p8 }
 0x35d   : > { %p3934_p11 = pnand %p3933_p10, %p3927_p4 }
 0x35f   : > { %3937 = shalt.err (!%p3934_p11)
}
 0x360   : > { %s4025_s28 = smov 128   ;;  %s4026_s13 = smov 8  }
 0x361   : > { %3707 = dma.vmem_to_hbm [thread:$0]  (%p4149_p7), %s5799_s26, 2048, %s5796_s25, %s5803_s17, %s4025_s28, %s4025_s28, %s4026_s13  }
 0x362 PF: > { %s6158_s14 = sld [smem:[#allocation9_spill]]  ;;  %p3713_p13 = scmp.ge.s32.totalorder %s4020_s18, 2 }
 0x364   : > { %p3710_p0 = pnand %p3713_p13, %p4157_p12 }
 0x368   : > { %s3308_s1 = sand.u32 1, %s6158_s14  }
 0x369   : > { %s3309_s23 = scalar_lea.sflag [#allocation7], %s3308_s1 }
 0x36a   : > { %3979 = dma.done.wait (!%p3710_p0), %s3309_s23, 2048  }
 0x36b   : > { %3981 = vsyncadd (!%p3710_p0), %s3309_s23, 4294965248  ;;  %s23_s18 = sadd.s32 1, %s4020_s18   ;;  %s6160_s12 = sld [smem:[#allocation10_spill]] }
 0x36c   : > { %p20_p1 = scmp.ge.s32.totalorder %s23_s18, 6   ;;  %s6161_s13 = sld [smem:[#allocation16_spill]] }
 0x36d   : > { %s6162_s14 = sld [smem:[#allocation11_spill]]  ;;  %s6163_s15 = sld [smem:[#allocation12_spill]] }
 0x36e   : > { %s6164_s16 = sld [smem:[#allocation13_spill]]  ;;  %s6165_s17 = sld [smem:[#allocation14_spill]] }
 0x36f   : > { %s6166_s30 = smov %s3988_s10  ;;  %s6167_s10 = smov %s3992_s11 }
 0x370   : > { %s6168_s11 = smov %s4162_s9  ;;  %22 = sbr.rel (!%p20_p1) target bundleno = 10 (0xa), region = 208 }
 0x377   :  { %3314 = vsyncpa [#allocation7], 1 }
 0x378   :  { %3316 = vsyncpa [#allocation7 + $0x1], 1 }

</bundles_post_ra>
